<compile_context>
chip_gen: v5e
topology: v5e:2x2
jax: 0.10.0
libtpu: 0.0.40
codegen_flags: <defaults>
</compile_context>

<pallas_src>
import functools

import jax
import jax.numpy as jnp
import numpy as np
from jax.experimental import pallas as pl
from jax.experimental.pallas import tpu as pltpu


# ----------------------------------------------------------------------------
# Fused kernel: LSTM1 -> LSTM2 -> FC -> averaged log_softmax, one invocation.
# Gate order matches PyTorch nn.LSTM: i, f, g, o.
# ----------------------------------------------------------------------------
def spatial_rnn_kernel(x_ref, w_ih1_ref, w_hh1_ref, b1_ref,
                       w2_ref, b2_ref, fcw_ref, fcb_ref,
                       out_ref, gin_scr):
    T = fcw_ref.shape[0]
    H = w_hh1_ref.shape[0]
    CP = fcb_ref.shape[1]             # lane-padded class count (multiple of 128)
    C = out_ref.shape[1]              # real class count
    BP = x_ref.shape[0] // T          # padded (2*B -> multiple of 8) batch
    B = out_ref.shape[0]              # original per-skeleton batch

    # --- Prologue: layer-1 input projection hoisted off the serial chain. ---
    # (T*BP, D) @ (D, 4H) + (1, 4H)  ->  VMEM scratch, read back per step.
    gin_scr[...] = (
        jnp.dot(x_ref[...], w_ih1_ref[...], preferred_element_type=jnp.float32)
        + b1_ref[...])

    # Hoist loop-invariant weight loads / broadcasts (JAX does not CSE them).
    w_hh1 = w_hh1_ref[...]                                    # (H, 4H)
    w2 = w2_ref[...]                                          # (2H, 4H)
    b2_b = jnp.broadcast_to(b2_ref[...], (BP, 4 * H))         # (BP, 4H)

    def gate_math(gates, c_prev):
        # Full-width (BP, 4H) EUP ops, then slice.
        sig = jax.nn.sigmoid(gates)
        th = jnp.tanh(gates)
        i_g = sig[:, 0 * H:1 * H]
        f_g = sig[:, 1 * H:2 * H]
        g_g = th[:, 2 * H:3 * H]
        o_g = sig[:, 3 * H:4 * H]
        c_new = f_g * c_prev + i_g * g_g
        h_new = o_g * jnp.tanh(c_new)
        return h_new, c_new

    def step(t, carry):
        h1, c1, h2, c2, acc = carry

        # ----- layer 1: only h_prev @ W_hh is on the recurrent chain. -----
        row = pl.multiple_of(t * BP, BP)                      # sublane-aligned
        g_in = gin_scr[pl.ds(row, BP), :]                     # (BP, 4H)
        gates1 = g_in + jnp.dot(h1, w_hh1,
                                preferred_element_type=jnp.float32)
        h1, c1 = gate_math(gates1, c1)

        # ----- layer 2: fused [h1_t, h2_prev] @ [W_ih2; W_hh2]. -----
        inp2 = jnp.concatenate([h1, h2], axis=1)              # (BP, 2H)
        gates2 = jnp.dot(inp2, w2,
                         preferred_element_type=jnp.float32) + b2_b
        h2, c2 = gate_math(gates2, c2)

        # ----- fused FC head contribution for this timestep (lane-dense CP).
        acc = acc + jnp.dot(h2, fcw_ref[t],
                            preferred_element_type=jnp.float32)
        return h1, c1, h2, c2, acc

    zeros_bh = jnp.zeros((BP, H), jnp.float32)
    acc0 = jnp.broadcast_to(fcb_ref[...], (BP, CP))
    _, _, _, _, acc = jax.lax.fori_loop(
        0, T, step, (zeros_bh, zeros_bh, zeros_bh, zeros_bh, acc0),
        unroll=True)

    # --- Head finish: mask padded classes, log_softmax on the packed batch,
    # split the two skeletons and average. Done once, off the hot loop.
    col = jax.lax.broadcasted_iota(jnp.int32, (BP, CP), 1)
    acc_m = jnp.where(col < C, acc, jnp.float32(-1e30))
    m = jnp.max(acc_m, axis=-1, keepdims=True)
    zs = acc_m - m
    logp = zs - jnp.log(jnp.sum(jnp.exp(zs), axis=-1, keepdims=True))  # (BP,CP)

    # Rows [0:B] = skeleton0, [B:2B] = skeleton1; padded rows/cols discarded.
    out_ref[...] = (logp[0:B, 0:C] + logp[B:2 * B, 0:C]) * 0.5


def _round_up(x, m):
    return ((x + m - 1) // m) * m


def spatial_rnn_forward(params, skeleton0, skeleton1):
    B, T, D = skeleton0.shape
    H = params["w_hh1_t"].shape[0]
    C = params["fc_b"].shape[1]
    BP = max(8, _round_up(2 * B, 8))          # pad combined batch to 8 sublanes
    CP = _round_up(C, 128)                    # lane-dense class dim

    # Concatenate both skeletons along batch (shared weights), zero-pad batch,
    # go time-major and flatten so the prologue matmul sees one (T*BP, D) slab.
    x = jnp.concatenate([skeleton0, skeleton1], axis=0)       # (2B, T, D)
    pad = BP - 2 * B
    if pad > 0:
        x = jnp.pad(x, ((0, pad), (0, 0), (0, 0)))
    x_flat = jnp.transpose(x, (1, 0, 2)).reshape(T * BP, D)   # (T*BP, D)

    # Zero-pad the FC head along the class dim so in-kernel matmul outputs and
    # the accumulator are full-128-lane (unmasked) vregs.
    fcw = params["fc_w_3d"]                                   # (T, H, C)
    fcb = params["fc_b"]                                      # (1, C)
    if CP > C:
        fcw = jnp.pad(fcw, ((0, 0), (0, 0), (0, CP - C)))
        fcb = jnp.pad(fcb, ((0, 0), (0, CP - C)))

    return pl.pallas_call(
        spatial_rnn_kernel,
        out_shape=jax.ShapeDtypeStruct((B, C), jnp.float32),
        scratch_shapes=[
            pltpu.VMEM((T * BP, 4 * H), jnp.float32),   # hoisted input gates
        ],
    )(x_flat,
      params["w_ih1_t"], params["w_hh1_t"], params["b1"],
      params["w2_stacked"], params["b2"],
      fcw, fcb)


# ----------------------------------------------------------------------------
# Pure-JAX reference (mirrors PyTorch semantics) for a sanity check.
# ----------------------------------------------------------------------------
def reference_forward(params, skeleton0, skeleton1):
    H = params["w_hh1_t"].shape[0]
    C = params["fc_b"].shape[1]
    w_ih2_t = params["w2_stacked"][:H]
    w_hh2_t = params["w2_stacked"][H:]
    fc_w_t = params["fc_w_3d"].reshape(-1, C)

    def lstm_ref(x_btd, w_ih_t, w_hh_t, b):
        B = x_btd.shape[0]

        def step(carry, x_t):
            h, c = carry
            g = x_t @ w_ih_t + h @ w_hh_t + b
            i = jax.nn.sigmoid(g[:, 0 * H:1 * H])
            f = jax.nn.sigmoid(g[:, 1 * H:2 * H])
            gg = jnp.tanh(g[:, 2 * H:3 * H])
            o = jax.nn.sigmoid(g[:, 3 * H:4 * H])
            c = f * c + i * gg
            h = o * jnp.tanh(c)
            return (h, c), h

        init = (jnp.zeros((B, H), jnp.float32), jnp.zeros((B, H), jnp.float32))
        _, hs = jax.lax.scan(step, init, jnp.transpose(x_btd, (1, 0, 2)))
        return jnp.transpose(hs, (1, 0, 2))

    def encode(x):
        h = lstm_ref(x, params["w_ih1_t"], params["w_hh1_t"], params["b1"])
        h = lstm_ref(h, w_ih2_t, w_hh2_t, params["b2"])
        return h.reshape(h.shape[0], -1)

    y0 = encode(skeleton0) @ fc_w_t + params["fc_b"]
    y1 = encode(skeleton1) @ fc_w_t + params["fc_b"]
    return (jax.nn.log_softmax(y0, axis=1) + jax.nn.log_softmax(y1, axis=1)) / 2


def init_params(key, input_size, hidden_size, seq_len, num_classes):
    ks = jax.random.split(key, 10)
    k_lstm = 1.0 / np.sqrt(hidden_size)

    def uni(k, shape, bound):
        return jax.random.uniform(k, shape, jnp.float32, -bound, bound)

    # PyTorch nn.LSTM param shapes: W_ih (4H, D), W_hh (4H, H), b_ih/b_hh (4H,)
    w_ih1 = uni(ks[0], (4 * hidden_size, input_size), k_lstm)
    w_hh1 = uni(ks[1], (4 * hidden_size, hidden_size), k_lstm)
    b_ih1 = uni(ks[2], (4 * hidden_size,), k_lstm)
    b_hh1 = uni(ks[3], (4 * hidden_size,), k_lstm)

    w_ih2 = uni(ks[4], (4 * hidden_size, hidden_size), k_lstm)
    w_hh2 = uni(ks[5], (4 * hidden_size, hidden_size), k_lstm)
    b_ih2 = uni(ks[6], (4 * hidden_size,), k_lstm)
    b_hh2 = uni(ks[7], (4 * hidden_size,), k_lstm)

    # fc: Linear(hidden*seq -> num_classes), kaiming_normal_ weight init
    fan_in = hidden_size * seq_len
    fc_w = jax.random.normal(ks[8], (num_classes, fan_in),
                             jnp.float32) * np.sqrt(2.0 / fan_in)
    fc_b = uni(ks[9], (num_classes,), 1.0 / np.sqrt(fan_in))

    return {
        "w_ih1_t": w_ih1.T,                                     # (D, 4H)
        "w_hh1_t": w_hh1.T,                                     # (H, 4H)
        "b1": (b_ih1 + b_hh1)[None, :],                         # (1, 4H)
        "w2_stacked": jnp.concatenate([w_ih2.T, w_hh2.T], 0),   # (2H, 4H)
        "b2": (b_ih2 + b_hh2)[None, :],                         # (1, 4H)
        "fc_w_3d": fc_w.T.reshape(seq_len, hidden_size,
                                  num_classes),                 # (T, H, C)
        "fc_b": fc_b[None, :],                                  # (1, C)
    }


if __name__ == "__main__":
    # Small shapes consistent with the module: seq length must be 27 because
    # fc expects hidden_size * 27 features.
    B, T, D_IN, HID, CLS = 2, 27, 24, 32, 60

    key = jax.random.PRNGKey(0)
    k_p, k_x0, k_x1 = jax.random.split(key, 3)
    params = init_params(k_p, D_IN, HID, T, CLS)

    skeleton0 = jax.random.normal(k_x0, (B, T, D_IN), jnp.float32)
    skeleton1 = jax.random.normal(k_x1, (B, T, D_IN), jnp.float32)

    fwd = jax.jit(functools.partial(spatial_rnn_forward, params))
    out = fwd(skeleton0, skeleton1)
    out = jax.block_until_ready(out)

    ref = jax.block_until_ready(reference_forward(params, skeleton0, skeleton1))
    np.testing.assert_allclose(np.asarray(out), np.asarray(ref),
                               atol=1e-2, rtol=1e-2)
    assert out.shape == (B, CLS) and out.dtype == jnp.float32

    print("KERNEL_OK")
</pallas_src>

<mosaic_0001>
module attributes {stable_mosaic.version = 11 : i64} {
  func.func @spatial_rnn_kernel(%arg0: memref<216x24xf32, #tpu.memory_space<vmem>>, %arg1: memref<24x128xf32, #tpu.memory_space<vmem>>, %arg2: memref<32x128xf32, #tpu.memory_space<vmem>>, %arg3: memref<1x128xf32, #tpu.memory_space<vmem>>, %arg4: memref<64x128xf32, #tpu.memory_space<vmem>>, %arg5: memref<1x128xf32, #tpu.memory_space<vmem>>, %arg6: memref<27x32x128xf32, #tpu.memory_space<vmem>>, %arg7: memref<1x128xf32, #tpu.memory_space<vmem>>, %arg8: memref<2x60xf32, #tpu.memory_space<vmem>>, %arg9: memref<216x128xf32, #tpu.memory_space<vmem>>) attributes {dimension_semantics = [], scalar_prefetch = 0 : i64, scratch_operands = 1 : i64, tpu.core_type = #tpu.core_type<tc>} {
    %c0 = arith.constant 0 : index
    %c0_0 = arith.constant 0 : index
    %0 = vector.load %arg0[%c0, %c0_0] : memref<216x24xf32, #tpu.memory_space<vmem>>, vector<216x24xf32>
    %c0_1 = arith.constant 0 : index
    %c0_2 = arith.constant 0 : index
    %1 = vector.load %arg1[%c0_1, %c0_2] : memref<24x128xf32, #tpu.memory_space<vmem>>, vector<24x128xf32>
    %cst = arith.constant dense<0.000000e+00> : vector<216x128xf32>
    %2 = tpu.matmul %0, %1, %cst {dimension_numbers = #tpu.dot_dimension_numbers<[1], [0], [0], [1], [0, 0, 1, 1], [], []>} : vector<216x24xf32>, vector<24x128xf32>, vector<216x128xf32> -> vector<216x128xf32>
    %c0_3 = arith.constant 0 : index
    %c0_4 = arith.constant 0 : index
    %3 = vector.load %arg3[%c0_3, %c0_4] : memref<1x128xf32, #tpu.memory_space<vmem>>, vector<1x128xf32>
    %4 = vector.broadcast %3 : vector<1x128xf32> to vector<216x128xf32>
    %5 = arith.addf %2, %4 : vector<216x128xf32>
    %c0_5 = arith.constant 0 : index
    %c0_6 = arith.constant 0 : index
    %6 = vector.load %arg9[%c0_5, %c0_6] : memref<216x128xf32, #tpu.memory_space<vmem>>, vector<216x128xf32>
    tpu.vector_store %arg9[%c0_5, %c0_6], %5 {strides = array<i32>} : memref<216x128xf32, #tpu.memory_space<vmem>>, vector<216x128xf32>,
    %c0_7 = arith.constant 0 : index
    %c0_8 = arith.constant 0 : index
    %7 = vector.load %arg2[%c0_7, %c0_8] : memref<32x128xf32, #tpu.memory_space<vmem>>, vector<32x128xf32>
    %c0_9 = arith.constant 0 : index
    %c0_10 = arith.constant 0 : index
    %8 = vector.load %arg4[%c0_9, %c0_10] : memref<64x128xf32, #tpu.memory_space<vmem>>, vector<64x128xf32>
    %c0_11 = arith.constant 0 : index
    %c0_12 = arith.constant 0 : index
    %9 = vector.load %arg5[%c0_11, %c0_12] : memref<1x128xf32, #tpu.memory_space<vmem>>, vector<1x128xf32>
    %10 = vector.shape_cast %9 : vector<1x128xf32> to vector<1x128xf32>
    %11 = vector.broadcast %10 : vector<1x128xf32> to vector<8x128xf32>
    %cst_13 = arith.constant 0.000000e+00 : f32
    %12 = vector.broadcast %cst_13 : f32 to vector<8x32xf32>
    %c0_14 = arith.constant 0 : index
    %c0_15 = arith.constant 0 : index
    %13 = vector.load %arg7[%c0_14, %c0_15] : memref<1x128xf32, #tpu.memory_space<vmem>>, vector<1x128xf32>
    %14 = vector.shape_cast %13 : vector<1x128xf32> to vector<1x128xf32>
    %15 = vector.broadcast %14 : vector<1x128xf32> to vector<8x128xf32>
    %c0_i32 = arith.constant 0 : i32
    %c8_i32 = arith.constant 8 : i32
    %16 = arith.muli %c0_i32, %c8_i32 : i32
    %17 = tpu.assume_multiple %16, 8 : i32
    %18 = arith.index_cast %17 : i32 to index
    %c0_16 = arith.constant 0 : index
    %19 = vector.load %arg9[%18, %c0_16] : memref<216x128xf32, #tpu.memory_space<vmem>>, vector<8x128xf32>
    %cst_17 = arith.constant dense<0.000000e+00> : vector<8x128xf32>
    %20 = tpu.matmul %12, %7, %cst_17 {dimension_numbers = #tpu.dot_dimension_numbers<[1], [0], [0], [1], [0, 0, 1, 1], [], []>} : vector<8x32xf32>, vector<32x128xf32>, vector<8x128xf32> -> vector<8x128xf32>
    %21 = arith.addf %19, %20 : vector<8x128xf32>
    %22 = arith.negf %21 : vector<8x128xf32>
    %23 = math.exp %22 : vector<8x128xf32>
    %cst_18 = arith.constant 1.000000e+00 : f32
    %24 = vector.broadcast %cst_18 : f32 to vector<8x128xf32>
    %25 = arith.addf %24, %23 : vector<8x128xf32>
    %26 = arith.divf %24, %25 : vector<8x128xf32>
    %27 = math.tanh %21 : vector<8x128xf32>
    %28 = vector.extract_strided_slice %26 {offsets = [0, 0], sizes = [8, 32], strides = [1, 1]} : vector<8x128xf32> to vector<8x32xf32>
    %29 = vector.extract_strided_slice %26 {offsets = [0, 32], sizes = [8, 32], strides = [1, 1]} : vector<8x128xf32> to vector<8x32xf32>
    %30 = vector.extract_strided_slice %27 {offsets = [0, 64], sizes = [8, 32], strides = [1, 1]} : vector<8x128xf32> to vector<8x32xf32>
    %31 = vector.extract_strided_slice %26 {offsets = [0, 96], sizes = [8, 32], strides = [1, 1]} : vector<8x128xf32> to vector<8x32xf32>
    %32 = arith.mulf %29, %12 : vector<8x32xf32>
    %33 = arith.mulf %28, %30 : vector<8x32xf32>
    %34 = arith.addf %32, %33 : vector<8x32xf32>
    %35 = math.tanh %34 : vector<8x32xf32>
    %36 = arith.mulf %31, %35 : vector<8x32xf32>
    %37 = tpu.concatenate %36, %12 in 1 : vector<8x32xf32>, vector<8x32xf32> -> vector<8x64xf32>
    %cst_19 = arith.constant dense<0.000000e+00> : vector<8x128xf32>
    %38 = tpu.matmul %37, %8, %cst_19 {dimension_numbers = #tpu.dot_dimension_numbers<[1], [0], [0], [1], [0, 0, 1, 1], [], []>} : vector<8x64xf32>, vector<64x128xf32>, vector<8x128xf32> -> vector<8x128xf32>
    %39 = arith.addf %38, %11 : vector<8x128xf32>
    %40 = arith.negf %39 : vector<8x128xf32>
    %41 = math.exp %40 : vector<8x128xf32>
    %cst_20 = arith.constant 1.000000e+00 : f32
    %42 = vector.broadcast %cst_20 : f32 to vector<8x128xf32>
    %43 = arith.addf %42, %41 : vector<8x128xf32>
    %44 = arith.divf %42, %43 : vector<8x128xf32>
    %45 = math.tanh %39 : vector<8x128xf32>
    %46 = vector.extract_strided_slice %44 {offsets = [0, 0], sizes = [8, 32], strides = [1, 1]} : vector<8x128xf32> to vector<8x32xf32>
    %47 = vector.extract_strided_slice %44 {offsets = [0, 32], sizes = [8, 32], strides = [1, 1]} : vector<8x128xf32> to vector<8x32xf32>
    %48 = vector.extract_strided_slice %45 {offsets = [0, 64], sizes = [8, 32], strides = [1, 1]} : vector<8x128xf32> to vector<8x32xf32>
    %49 = vector.extract_strided_slice %44 {offsets = [0, 96], sizes = [8, 32], strides = [1, 1]} : vector<8x128xf32> to vector<8x32xf32>
    %50 = arith.mulf %47, %12 : vector<8x32xf32>
    %51 = arith.mulf %46, %48 : vector<8x32xf32>
    %52 = arith.addf %50, %51 : vector<8x32xf32>
    %53 = math.tanh %52 : vector<8x32xf32>
    %54 = arith.mulf %49, %53 : vector<8x32xf32>
    %55 = arith.index_cast %c0_i32 : i32 to index
    %c0_21 = arith.constant 0 : index
    %c0_22 = arith.constant 0 : index
    %56 = vector.load %arg6[%55, %c0_21, %c0_22] : memref<27x32x128xf32, #tpu.memory_space<vmem>>, vector<1x32x128xf32>
    %57 = vector.shape_cast %56 : vector<1x32x128xf32> to vector<32x128xf32>
    %cst_23 = arith.constant dense<0.000000e+00> : vector<8x128xf32>
    %58 = tpu.matmul %54, %57, %cst_23 {dimension_numbers = #tpu.dot_dimension_numbers<[1], [0], [0], [1], [0, 0, 1, 1], [], []>} : vector<8x32xf32>, vector<32x128xf32>, vector<8x128xf32> -> vector<8x128xf32>
    %59 = arith.addf %15, %58 : vector<8x128xf32>
    %c1_i32 = arith.constant 1 : i32
    %c8_i32_24 = arith.constant 8 : i32
    %60 = arith.muli %c1_i32, %c8_i32_24 : i32
    %61 = tpu.assume_multiple %60, 8 : i32
    %62 = arith.index_cast %61 : i32 to index
    %c0_25 = arith.constant 0 : index
    %63 = vector.load %arg9[%62, %c0_25] : memref<216x128xf32, #tpu.memory_space<vmem>>, vector<8x128xf32>
    %cst_26 = arith.constant dense<0.000000e+00> : vector<8x128xf32>
    %64 = tpu.matmul %36, %7, %cst_26 {dimension_numbers = #tpu.dot_dimension_numbers<[1], [0], [0], [1], [0, 0, 1, 1], [], []>} : vector<8x32xf32>, vector<32x128xf32>, vector<8x128xf32> -> vector<8x128xf32>
    %65 = arith.addf %63, %64 : vector<8x128xf32>
    %66 = arith.negf %65 : vector<8x128xf32>
    %67 = math.exp %66 : vector<8x128xf32>
    %cst_27 = arith.constant 1.000000e+00 : f32
    %68 = vector.broadcast %cst_27 : f32 to vector<8x128xf32>
    %69 = arith.addf %68, %67 : vector<8x128xf32>
    %70 = arith.divf %68, %69 : vector<8x128xf32>
    %71 = math.tanh %65 : vector<8x128xf32>
    %72 = vector.extract_strided_slice %70 {offsets = [0, 0], sizes = [8, 32], strides = [1, 1]} : vector<8x128xf32> to vector<8x32xf32>
    %73 = vector.extract_strided_slice %70 {offsets = [0, 32], sizes = [8, 32], strides = [1, 1]} : vector<8x128xf32> to vector<8x32xf32>
    %74 = vector.extract_strided_slice %71 {offsets = [0, 64], sizes = [8, 32], strides = [1, 1]} : vector<8x128xf32> to vector<8x32xf32>
    %75 = vector.extract_strided_slice %70 {offsets = [0, 96], sizes = [8, 32], strides = [1, 1]} : vector<8x128xf32> to vector<8x32xf32>
    %76 = arith.mulf %73, %34 : vector<8x32xf32>
    %77 = arith.mulf %72, %74 : vector<8x32xf32>
    %78 = arith.addf %76, %77 : vector<8x32xf32>
    %79 = math.tanh %78 : vector<8x32xf32>
    %80 = arith.mulf %75, %79 : vector<8x32xf32>
    %81 = tpu.concatenate %80, %54 in 1 : vector<8x32xf32>, vector<8x32xf32> -> vector<8x64xf32>
    %cst_28 = arith.constant dense<0.000000e+00> : vector<8x128xf32>
    %82 = tpu.matmul %81, %8, %cst_28 {dimension_numbers = #tpu.dot_dimension_numbers<[1], [0], [0], [1], [0, 0, 1, 1], [], []>} : vector<8x64xf32>, vector<64x128xf32>, vector<8x128xf32> -> vector<8x128xf32>
    %83 = arith.addf %82, %11 : vector<8x128xf32>
    %84 = arith.negf %83 : vector<8x128xf32>
    %85 = math.exp %84 : vector<8x128xf32>
    %cst_29 = arith.constant 1.000000e+00 : f32
    %86 = vector.broadcast %cst_29 : f32 to vector<8x128xf32>
    %87 = arith.addf %86, %85 : vector<8x128xf32>
    %88 = arith.divf %86, %87 : vector<8x128xf32>
    %89 = math.tanh %83 : vector<8x128xf32>
    %90 = vector.extract_strided_slice %88 {offsets = [0, 0], sizes = [8, 32], strides = [1, 1]} : vector<8x128xf32> to vector<8x32xf32>
    %91 = vector.extract_strided_slice %88 {offsets = [0, 32], sizes = [8, 32], strides = [1, 1]} : vector<8x128xf32> to vector<8x32xf32>
    %92 = vector.extract_strided_slice %89 {offsets = [0, 64], sizes = [8, 32], strides = [1, 1]} : vector<8x128xf32> to vector<8x32xf32>
    %93 = vector.extract_strided_slice %88 {offsets = [0, 96], sizes = [8, 32], strides = [1, 1]} : vector<8x128xf32> to vector<8x32xf32>
    %94 = arith.mulf %91, %52 : vector<8x32xf32>
    %95 = arith.mulf %90, %92 : vector<8x32xf32>
    %96 = arith.addf %94, %95 : vector<8x32xf32>
    %97 = math.tanh %96 : vector<8x32xf32>
    %98 = arith.mulf %93, %97 : vector<8x32xf32>
    %99 = arith.index_cast %c1_i32 : i32 to index
    %c0_30 = arith.constant 0 : index
    %c0_31 = arith.constant 0 : index
    %100 = vector.load %arg6[%99, %c0_30, %c0_31] : memref<27x32x128xf32, #tpu.memory_space<vmem>>, vector<1x32x128xf32>
    %101 = vector.shape_cast %100 : vector<1x32x128xf32> to vector<32x128xf32>
    %cst_32 = arith.constant dense<0.000000e+00> : vector<8x128xf32>
    %102 = tpu.matmul %98, %101, %cst_32 {dimension_numbers = #tpu.dot_dimension_numbers<[1], [0], [0], [1], [0, 0, 1, 1], [], []>} : vector<8x32xf32>, vector<32x128xf32>, vector<8x128xf32> -> vector<8x128xf32>
    %103 = arith.addf %59, %102 : vector<8x128xf32>
    %c2_i32 = arith.constant 2 : i32
    %c8_i32_33 = arith.constant 8 : i32
    %104 = arith.muli %c2_i32, %c8_i32_33 : i32
    %105 = tpu.assume_multiple %104, 8 : i32
    %106 = arith.index_cast %105 : i32 to index
    %c0_34 = arith.constant 0 : index
    %107 = vector.load %arg9[%106, %c0_34] : memref<216x128xf32, #tpu.memory_space<vmem>>, vector<8x128xf32>
    %cst_35 = arith.constant dense<0.000000e+00> : vector<8x128xf32>
    %108 = tpu.matmul %80, %7, %cst_35 {dimension_numbers = #tpu.dot_dimension_numbers<[1], [0], [0], [1], [0, 0, 1, 1], [], []>} : vector<8x32xf32>, vector<32x128xf32>, vector<8x128xf32> -> vector<8x128xf32>
    %109 = arith.addf %107, %108 : vector<8x128xf32>
    %110 = arith.negf %109 : vector<8x128xf32>
    %111 = math.exp %110 : vector<8x128xf32>
    %cst_36 = arith.constant 1.000000e+00 : f32
    %112 = vector.broadcast %cst_36 : f32 to vector<8x128xf32>
    %113 = arith.addf %112, %111 : vector<8x128xf32>
    %114 = arith.divf %112, %113 : vector<8x128xf32>
    %115 = math.tanh %109 : vector<8x128xf32>
    %116 = vector.extract_strided_slice %114 {offsets = [0, 0], sizes = [8, 32], strides = [1, 1]} : vector<8x128xf32> to vector<8x32xf32>
    %117 = vector.extract_strided_slice %114 {offsets = [0, 32], sizes = [8, 32], strides = [1, 1]} : vector<8x128xf32> to vector<8x32xf32>
    %118 = vector.extract_strided_slice %115 {offsets = [0, 64], sizes = [8, 32], strides = [1, 1]} : vector<8x128xf32> to vector<8x32xf32>
    %119 = vector.extract_strided_slice %114 {offsets = [0, 96], sizes = [8, 32], strides = [1, 1]} : vector<8x128xf32> to vector<8x32xf32>
    %120 = arith.mulf %117, %78 : vector<8x32xf32>
    %121 = arith.mulf %116, %118 : vector<8x32xf32>
    %122 = arith.addf %120, %121 : vector<8x32xf32>
    %123 = math.tanh %122 : vector<8x32xf32>
    %124 = arith.mulf %119, %123 : vector<8x32xf32>
    %125 = tpu.concatenate %124, %98 in 1 : vector<8x32xf32>, vector<8x32xf32> -> vector<8x64xf32>
    %cst_37 = arith.constant dense<0.000000e+00> : vector<8x128xf32>
    %126 = tpu.matmul %125, %8, %cst_37 {dimension_numbers = #tpu.dot_dimension_numbers<[1], [0], [0], [1], [0, 0, 1, 1], [], []>} : vector<8x64xf32>, vector<64x128xf32>, vector<8x128xf32> -> vector<8x128xf32>
    %127 = arith.addf %126, %11 : vector<8x128xf32>
    %128 = arith.negf %127 : vector<8x128xf32>
    %129 = math.exp %128 : vector<8x128xf32>
    %cst_38 = arith.constant 1.000000e+00 : f32
    %130 = vector.broadcast %cst_38 : f32 to vector<8x128xf32>
    %131 = arith.addf %130, %129 : vector<8x128xf32>
    %132 = arith.divf %130, %131 : vector<8x128xf32>
    %133 = math.tanh %127 : vector<8x128xf32>
    %134 = vector.extract_strided_slice %132 {offsets = [0, 0], sizes = [8, 32], strides = [1, 1]} : vector<8x128xf32> to vector<8x32xf32>
    %135 = vector.extract_strided_slice %132 {offsets = [0, 32], sizes = [8, 32], strides = [1, 1]} : vector<8x128xf32> to vector<8x32xf32>
    %136 = vector.extract_strided_slice %133 {offsets = [0, 64], sizes = [8, 32], strides = [1, 1]} : vector<8x128xf32> to vector<8x32xf32>
    %137 = vector.extract_strided_slice %132 {offsets = [0, 96], sizes = [8, 32], strides = [1, 1]} : vector<8x128xf32> to vector<8x32xf32>
    %138 = arith.mulf %135, %96 : vector<8x32xf32>
    %139 = arith.mulf %134, %136 : vector<8x32xf32>
    %140 = arith.addf %138, %139 : vector<8x32xf32>
    %141 = math.tanh %140 : vector<8x32xf32>
    %142 = arith.mulf %137, %141 : vector<8x32xf32>
    %143 = arith.index_cast %c2_i32 : i32 to index
    %c0_39 = arith.constant 0 : index
    %c0_40 = arith.constant 0 : index
    %144 = vector.load %arg6[%143, %c0_39, %c0_40] : memref<27x32x128xf32, #tpu.memory_space<vmem>>, vector<1x32x128xf32>
    %145 = vector.shape_cast %144 : vector<1x32x128xf32> to vector<32x128xf32>
    %cst_41 = arith.constant dense<0.000000e+00> : vector<8x128xf32>
    %146 = tpu.matmul %142, %145, %cst_41 {dimension_numbers = #tpu.dot_dimension_numbers<[1], [0], [0], [1], [0, 0, 1, 1], [], []>} : vector<8x32xf32>, vector<32x128xf32>, vector<8x128xf32> -> vector<8x128xf32>
    %147 = arith.addf %103, %146 : vector<8x128xf32>
    %c3_i32 = arith.constant 3 : i32
    %c8_i32_42 = arith.constant 8 : i32
    %148 = arith.muli %c3_i32, %c8_i32_42 : i32
    %149 = tpu.assume_multiple %148, 8 : i32
    %150 = arith.index_cast %149 : i32 to index
    %c0_43 = arith.constant 0 : index
    %151 = vector.load %arg9[%150, %c0_43] : memref<216x128xf32, #tpu.memory_space<vmem>>, vector<8x128xf32>
    %cst_44 = arith.constant dense<0.000000e+00> : vector<8x128xf32>
    %152 = tpu.matmul %124, %7, %cst_44 {dimension_numbers = #tpu.dot_dimension_numbers<[1], [0], [0], [1], [0, 0, 1, 1], [], []>} : vector<8x32xf32>, vector<32x128xf32>, vector<8x128xf32> -> vector<8x128xf32>
    %153 = arith.addf %151, %152 : vector<8x128xf32>
    %154 = arith.negf %153 : vector<8x128xf32>
    %155 = math.exp %154 : vector<8x128xf32>
    %cst_45 = arith.constant 1.000000e+00 : f32
    %156 = vector.broadcast %cst_45 : f32 to vector<8x128xf32>
    %157 = arith.addf %156, %155 : vector<8x128xf32>
    %158 = arith.divf %156, %157 : vector<8x128xf32>
    %159 = math.tanh %153 : vector<8x128xf32>
    %160 = vector.extract_strided_slice %158 {offsets = [0, 0], sizes = [8, 32], strides = [1, 1]} : vector<8x128xf32> to vector<8x32xf32>
    %161 = vector.extract_strided_slice %158 {offsets = [0, 32], sizes = [8, 32], strides = [1, 1]} : vector<8x128xf32> to vector<8x32xf32>
    %162 = vector.extract_strided_slice %159 {offsets = [0, 64], sizes = [8, 32], strides = [1, 1]} : vector<8x128xf32> to vector<8x32xf32>
    %163 = vector.extract_strided_slice %158 {offsets = [0, 96], sizes = [8, 32], strides = [1, 1]} : vector<8x128xf32> to vector<8x32xf32>
    %164 = arith.mulf %161, %122 : vector<8x32xf32>
    %165 = arith.mulf %160, %162 : vector<8x32xf32>
    %166 = arith.addf %164, %165 : vector<8x32xf32>
    %167 = math.tanh %166 : vector<8x32xf32>
    %168 = arith.mulf %163, %167 : vector<8x32xf32>
    %169 = tpu.concatenate %168, %142 in 1 : vector<8x32xf32>, vector<8x32xf32> -> vector<8x64xf32>
    %cst_46 = arith.constant dense<0.000000e+00> : vector<8x128xf32>
    %170 = tpu.matmul %169, %8, %cst_46 {dimension_numbers = #tpu.dot_dimension_numbers<[1], [0], [0], [1], [0, 0, 1, 1], [], []>} : vector<8x64xf32>, vector<64x128xf32>, vector<8x128xf32> -> vector<8x128xf32>
    %171 = arith.addf %170, %11 : vector<8x128xf32>
    %172 = arith.negf %171 : vector<8x128xf32>
    %173 = math.exp %172 : vector<8x128xf32>
    %cst_47 = arith.constant 1.000000e+00 : f32
    %174 = vector.broadcast %cst_47 : f32 to vector<8x128xf32>
    %175 = arith.addf %174, %173 : vector<8x128xf32>
    %176 = arith.divf %174, %175 : vector<8x128xf32>
    %177 = math.tanh %171 : vector<8x128xf32>
    %178 = vector.extract_strided_slice %176 {offsets = [0, 0], sizes = [8, 32], strides = [1, 1]} : vector<8x128xf32> to vector<8x32xf32>
    %179 = vector.extract_strided_slice %176 {offsets = [0, 32], sizes = [8, 32], strides = [1, 1]} : vector<8x128xf32> to vector<8x32xf32>
    %180 = vector.extract_strided_slice %177 {offsets = [0, 64], sizes = [8, 32], strides = [1, 1]} : vector<8x128xf32> to vector<8x32xf32>
    %181 = vector.extract_strided_slice %176 {offsets = [0, 96], sizes = [8, 32], strides = [1, 1]} : vector<8x128xf32> to vector<8x32xf32>
    %182 = arith.mulf %179, %140 : vector<8x32xf32>
    %183 = arith.mulf %178, %180 : vector<8x32xf32>
    %184 = arith.addf %182, %183 : vector<8x32xf32>
    %185 = math.tanh %184 : vector<8x32xf32>
    %186 = arith.mulf %181, %185 : vector<8x32xf32>
    %187 = arith.index_cast %c3_i32 : i32 to index
    %c0_48 = arith.constant 0 : index
    %c0_49 = arith.constant 0 : index
    %188 = vector.load %arg6[%187, %c0_48, %c0_49] : memref<27x32x128xf32, #tpu.memory_space<vmem>>, vector<1x32x128xf32>
    %189 = vector.shape_cast %188 : vector<1x32x128xf32> to vector<32x128xf32>
    %cst_50 = arith.constant dense<0.000000e+00> : vector<8x128xf32>
    %190 = tpu.matmul %186, %189, %cst_50 {dimension_numbers = #tpu.dot_dimension_numbers<[1], [0], [0], [1], [0, 0, 1, 1], [], []>} : vector<8x32xf32>, vector<32x128xf32>, vector<8x128xf32> -> vector<8x128xf32>
    %191 = arith.addf %147, %190 : vector<8x128xf32>
    %c4_i32 = arith.constant 4 : i32
    %c8_i32_51 = arith.constant 8 : i32
    %192 = arith.muli %c4_i32, %c8_i32_51 : i32
    %193 = tpu.assume_multiple %192, 8 : i32
    %194 = arith.index_cast %193 : i32 to index
    %c0_52 = arith.constant 0 : index
    %195 = vector.load %arg9[%194, %c0_52] : memref<216x128xf32, #tpu.memory_space<vmem>>, vector<8x128xf32>
    %cst_53 = arith.constant dense<0.000000e+00> : vector<8x128xf32>
    %196 = tpu.matmul %168, %7, %cst_53 {dimension_numbers = #tpu.dot_dimension_numbers<[1], [0], [0], [1], [0, 0, 1, 1], [], []>} : vector<8x32xf32>, vector<32x128xf32>, vector<8x128xf32> -> vector<8x128xf32>
    %197 = arith.addf %195, %196 : vector<8x128xf32>
    %198 = arith.negf %197 : vector<8x128xf32>
    %199 = math.exp %198 : vector<8x128xf32>
    %cst_54 = arith.constant 1.000000e+00 : f32
    %200 = vector.broadcast %cst_54 : f32 to vector<8x128xf32>
    %201 = arith.addf %200, %199 : vector<8x128xf32>
    %202 = arith.divf %200, %201 : vector<8x128xf32>
    %203 = math.tanh %197 : vector<8x128xf32>
    %204 = vector.extract_strided_slice %202 {offsets = [0, 0], sizes = [8, 32], strides = [1, 1]} : vector<8x128xf32> to vector<8x32xf32>
    %205 = vector.extract_strided_slice %202 {offsets = [0, 32], sizes = [8, 32], strides = [1, 1]} : vector<8x128xf32> to vector<8x32xf32>
    %206 = vector.extract_strided_slice %203 {offsets = [0, 64], sizes = [8, 32], strides = [1, 1]} : vector<8x128xf32> to vector<8x32xf32>
    %207 = vector.extract_strided_slice %202 {offsets = [0, 96], sizes = [8, 32], strides = [1, 1]} : vector<8x128xf32> to vector<8x32xf32>
    %208 = arith.mulf %205, %166 : vector<8x32xf32>
    %209 = arith.mulf %204, %206 : vector<8x32xf32>
    %210 = arith.addf %208, %209 : vector<8x32xf32>
    %211 = math.tanh %210 : vector<8x32xf32>
    %212 = arith.mulf %207, %211 : vector<8x32xf32>
    %213 = tpu.concatenate %212, %186 in 1 : vector<8x32xf32>, vector<8x32xf32> -> vector<8x64xf32>
    %cst_55 = arith.constant dense<0.000000e+00> : vector<8x128xf32>
    %214 = tpu.matmul %213, %8, %cst_55 {dimension_numbers = #tpu.dot_dimension_numbers<[1], [0], [0], [1], [0, 0, 1, 1], [], []>} : vector<8x64xf32>, vector<64x128xf32>, vector<8x128xf32> -> vector<8x128xf32>
    %215 = arith.addf %214, %11 : vector<8x128xf32>
    %216 = arith.negf %215 : vector<8x128xf32>
    %217 = math.exp %216 : vector<8x128xf32>
    %cst_56 = arith.constant 1.000000e+00 : f32
    %218 = vector.broadcast %cst_56 : f32 to vector<8x128xf32>
    %219 = arith.addf %218, %217 : vector<8x128xf32>
    %220 = arith.divf %218, %219 : vector<8x128xf32>
    %221 = math.tanh %215 : vector<8x128xf32>
    %222 = vector.extract_strided_slice %220 {offsets = [0, 0], sizes = [8, 32], strides = [1, 1]} : vector<8x128xf32> to vector<8x32xf32>
    %223 = vector.extract_strided_slice %220 {offsets = [0, 32], sizes = [8, 32], strides = [1, 1]} : vector<8x128xf32> to vector<8x32xf32>
    %224 = vector.extract_strided_slice %221 {offsets = [0, 64], sizes = [8, 32], strides = [1, 1]} : vector<8x128xf32> to vector<8x32xf32>
    %225 = vector.extract_strided_slice %220 {offsets = [0, 96], sizes = [8, 32], strides = [1, 1]} : vector<8x128xf32> to vector<8x32xf32>
    %226 = arith.mulf %223, %184 : vector<8x32xf32>
    %227 = arith.mulf %222, %224 : vector<8x32xf32>
    %228 = arith.addf %226, %227 : vector<8x32xf32>
    %229 = math.tanh %228 : vector<8x32xf32>
    %230 = arith.mulf %225, %229 : vector<8x32xf32>
    %231 = arith.index_cast %c4_i32 : i32 to index
    %c0_57 = arith.constant 0 : index
    %c0_58 = arith.constant 0 : index
    %232 = vector.load %arg6[%231, %c0_57, %c0_58] : memref<27x32x128xf32, #tpu.memory_space<vmem>>, vector<1x32x128xf32>
    %233 = vector.shape_cast %232 : vector<1x32x128xf32> to vector<32x128xf32>
    %cst_59 = arith.constant dense<0.000000e+00> : vector<8x128xf32>
    %234 = tpu.matmul %230, %233, %cst_59 {dimension_numbers = #tpu.dot_dimension_numbers<[1], [0], [0], [1], [0, 0, 1, 1], [], []>} : vector<8x32xf32>, vector<32x128xf32>, vector<8x128xf32> -> vector<8x128xf32>
    %235 = arith.addf %191, %234 : vector<8x128xf32>
    %c5_i32 = arith.constant 5 : i32
    %c8_i32_60 = arith.constant 8 : i32
    %236 = arith.muli %c5_i32, %c8_i32_60 : i32
    %237 = tpu.assume_multiple %236, 8 : i32
    %238 = arith.index_cast %237 : i32 to index
    %c0_61 = arith.constant 0 : index
    %239 = vector.load %arg9[%238, %c0_61] : memref<216x128xf32, #tpu.memory_space<vmem>>, vector<8x128xf32>
    %cst_62 = arith.constant dense<0.000000e+00> : vector<8x128xf32>
    %240 = tpu.matmul %212, %7, %cst_62 {dimension_numbers = #tpu.dot_dimension_numbers<[1], [0], [0], [1], [0, 0, 1, 1], [], []>} : vector<8x32xf32>, vector<32x128xf32>, vector<8x128xf32> -> vector<8x128xf32>
    %241 = arith.addf %239, %240 : vector<8x128xf32>
    %242 = arith.negf %241 : vector<8x128xf32>
    %243 = math.exp %242 : vector<8x128xf32>
    %cst_63 = arith.constant 1.000000e+00 : f32
    %244 = vector.broadcast %cst_63 : f32 to vector<8x128xf32>
    %245 = arith.addf %244, %243 : vector<8x128xf32>
    %246 = arith.divf %244, %245 : vector<8x128xf32>
    %247 = math.tanh %241 : vector<8x128xf32>
    %248 = vector.extract_strided_slice %246 {offsets = [0, 0], sizes = [8, 32], strides = [1, 1]} : vector<8x128xf32> to vector<8x32xf32>
    %249 = vector.extract_strided_slice %246 {offsets = [0, 32], sizes = [8, 32], strides = [1, 1]} : vector<8x128xf32> to vector<8x32xf32>
    %250 = vector.extract_strided_slice %247 {offsets = [0, 64], sizes = [8, 32], strides = [1, 1]} : vector<8x128xf32> to vector<8x32xf32>
    %251 = vector.extract_strided_slice %246 {offsets = [0, 96], sizes = [8, 32], strides = [1, 1]} : vector<8x128xf32> to vector<8x32xf32>
    %252 = arith.mulf %249, %210 : vector<8x32xf32>
    %253 = arith.mulf %248, %250 : vector<8x32xf32>
    %254 = arith.addf %252, %253 : vector<8x32xf32>
    %255 = math.tanh %254 : vector<8x32xf32>
    %256 = arith.mulf %251, %255 : vector<8x32xf32>
    %257 = tpu.concatenate %256, %230 in 1 : vector<8x32xf32>, vector<8x32xf32> -> vector<8x64xf32>
    %cst_64 = arith.constant dense<0.000000e+00> : vector<8x128xf32>
    %258 = tpu.matmul %257, %8, %cst_64 {dimension_numbers = #tpu.dot_dimension_numbers<[1], [0], [0], [1], [0, 0, 1, 1], [], []>} : vector<8x64xf32>, vector<64x128xf32>, vector<8x128xf32> -> vector<8x128xf32>
    %259 = arith.addf %258, %11 : vector<8x128xf32>
    %260 = arith.negf %259 : vector<8x128xf32>
    %261 = math.exp %260 : vector<8x128xf32>
    %cst_65 = arith.constant 1.000000e+00 : f32
    %262 = vector.broadcast %cst_65 : f32 to vector<8x128xf32>
    %263 = arith.addf %262, %261 : vector<8x128xf32>
    %264 = arith.divf %262, %263 : vector<8x128xf32>
    %265 = math.tanh %259 : vector<8x128xf32>
    %266 = vector.extract_strided_slice %264 {offsets = [0, 0], sizes = [8, 32], strides = [1, 1]} : vector<8x128xf32> to vector<8x32xf32>
    %267 = vector.extract_strided_slice %264 {offsets = [0, 32], sizes = [8, 32], strides = [1, 1]} : vector<8x128xf32> to vector<8x32xf32>
    %268 = vector.extract_strided_slice %265 {offsets = [0, 64], sizes = [8, 32], strides = [1, 1]} : vector<8x128xf32> to vector<8x32xf32>
    %269 = vector.extract_strided_slice %264 {offsets = [0, 96], sizes = [8, 32], strides = [1, 1]} : vector<8x128xf32> to vector<8x32xf32>
    %270 = arith.mulf %267, %228 : vector<8x32xf32>
    %271 = arith.mulf %266, %268 : vector<8x32xf32>
    %272 = arith.addf %270, %271 : vector<8x32xf32>
    %273 = math.tanh %272 : vector<8x32xf32>
    %274 = arith.mulf %269, %273 : vector<8x32xf32>
    %275 = arith.index_cast %c5_i32 : i32 to index
    %c0_66 = arith.constant 0 : index
    %c0_67 = arith.constant 0 : index
    %276 = vector.load %arg6[%275, %c0_66, %c0_67] : memref<27x32x128xf32, #tpu.memory_space<vmem>>, vector<1x32x128xf32>
    %277 = vector.shape_cast %276 : vector<1x32x128xf32> to vector<32x128xf32>
    %cst_68 = arith.constant dense<0.000000e+00> : vector<8x128xf32>
    %278 = tpu.matmul %274, %277, %cst_68 {dimension_numbers = #tpu.dot_dimension_numbers<[1], [0], [0], [1], [0, 0, 1, 1], [], []>} : vector<8x32xf32>, vector<32x128xf32>, vector<8x128xf32> -> vector<8x128xf32>
    %279 = arith.addf %235, %278 : vector<8x128xf32>
    %c6_i32 = arith.constant 6 : i32
    %c8_i32_69 = arith.constant 8 : i32
    %280 = arith.muli %c6_i32, %c8_i32_69 : i32
    %281 = tpu.assume_multiple %280, 8 : i32
    %282 = arith.index_cast %281 : i32 to index
    %c0_70 = arith.constant 0 : index
    %283 = vector.load %arg9[%282, %c0_70] : memref<216x128xf32, #tpu.memory_space<vmem>>, vector<8x128xf32>
    %cst_71 = arith.constant dense<0.000000e+00> : vector<8x128xf32>
    %284 = tpu.matmul %256, %7, %cst_71 {dimension_numbers = #tpu.dot_dimension_numbers<[1], [0], [0], [1], [0, 0, 1, 1], [], []>} : vector<8x32xf32>, vector<32x128xf32>, vector<8x128xf32> -> vector<8x128xf32>
    %285 = arith.addf %283, %284 : vector<8x128xf32>
    %286 = arith.negf %285 : vector<8x128xf32>
    %287 = math.exp %286 : vector<8x128xf32>
    %cst_72 = arith.constant 1.000000e+00 : f32
    %288 = vector.broadcast %cst_72 : f32 to vector<8x128xf32>
    %289 = arith.addf %288, %287 : vector<8x128xf32>
    %290 = arith.divf %288, %289 : vector<8x128xf32>
    %291 = math.tanh %285 : vector<8x128xf32>
    %292 = vector.extract_strided_slice %290 {offsets = [0, 0], sizes = [8, 32], strides = [1, 1]} : vector<8x128xf32> to vector<8x32xf32>
    %293 = vector.extract_strided_slice %290 {offsets = [0, 32], sizes = [8, 32], strides = [1, 1]} : vector<8x128xf32> to vector<8x32xf32>
    %294 = vector.extract_strided_slice %291 {offsets = [0, 64], sizes = [8, 32], strides = [1, 1]} : vector<8x128xf32> to vector<8x32xf32>
    %295 = vector.extract_strided_slice %290 {offsets = [0, 96], sizes = [8, 32], strides = [1, 1]} : vector<8x128xf32> to vector<8x32xf32>
    %296 = arith.mulf %293, %254 : vector<8x32xf32>
    %297 = arith.mulf %292, %294 : vector<8x32xf32>
    %298 = arith.addf %296, %297 : vector<8x32xf32>
    %299 = math.tanh %298 : vector<8x32xf32>
    %300 = arith.mulf %295, %299 : vector<8x32xf32>
    %301 = tpu.concatenate %300, %274 in 1 : vector<8x32xf32>, vector<8x32xf32> -> vector<8x64xf32>
    %cst_73 = arith.constant dense<0.000000e+00> : vector<8x128xf32>
    %302 = tpu.matmul %301, %8, %cst_73 {dimension_numbers = #tpu.dot_dimension_numbers<[1], [0], [0], [1], [0, 0, 1, 1], [], []>} : vector<8x64xf32>, vector<64x128xf32>, vector<8x128xf32> -> vector<8x128xf32>
    %303 = arith.addf %302, %11 : vector<8x128xf32>
    %304 = arith.negf %303 : vector<8x128xf32>
    %305 = math.exp %304 : vector<8x128xf32>
    %cst_74 = arith.constant 1.000000e+00 : f32
    %306 = vector.broadcast %cst_74 : f32 to vector<8x128xf32>
    %307 = arith.addf %306, %305 : vector<8x128xf32>
    %308 = arith.divf %306, %307 : vector<8x128xf32>
    %309 = math.tanh %303 : vector<8x128xf32>
    %310 = vector.extract_strided_slice %308 {offsets = [0, 0], sizes = [8, 32], strides = [1, 1]} : vector<8x128xf32> to vector<8x32xf32>
    %311 = vector.extract_strided_slice %308 {offsets = [0, 32], sizes = [8, 32], strides = [1, 1]} : vector<8x128xf32> to vector<8x32xf32>
    %312 = vector.extract_strided_slice %309 {offsets = [0, 64], sizes = [8, 32], strides = [1, 1]} : vector<8x128xf32> to vector<8x32xf32>
    %313 = vector.extract_strided_slice %308 {offsets = [0, 96], sizes = [8, 32], strides = [1, 1]} : vector<8x128xf32> to vector<8x32xf32>
    %314 = arith.mulf %311, %272 : vector<8x32xf32>
    %315 = arith.mulf %310, %312 : vector<8x32xf32>
    %316 = arith.addf %314, %315 : vector<8x32xf32>
    %317 = math.tanh %316 : vector<8x32xf32>
    %318 = arith.mulf %313, %317 : vector<8x32xf32>
    %319 = arith.index_cast %c6_i32 : i32 to index
    %c0_75 = arith.constant 0 : index
    %c0_76 = arith.constant 0 : index
    %320 = vector.load %arg6[%319, %c0_75, %c0_76] : memref<27x32x128xf32, #tpu.memory_space<vmem>>, vector<1x32x128xf32>
    %321 = vector.shape_cast %320 : vector<1x32x128xf32> to vector<32x128xf32>
    %cst_77 = arith.constant dense<0.000000e+00> : vector<8x128xf32>
    %322 = tpu.matmul %318, %321, %cst_77 {dimension_numbers = #tpu.dot_dimension_numbers<[1], [0], [0], [1], [0, 0, 1, 1], [], []>} : vector<8x32xf32>, vector<32x128xf32>, vector<8x128xf32> -> vector<8x128xf32>
    %323 = arith.addf %279, %322 : vector<8x128xf32>
    %c7_i32 = arith.constant 7 : i32
    %c8_i32_78 = arith.constant 8 : i32
    %324 = arith.muli %c7_i32, %c8_i32_78 : i32
    %325 = tpu.assume_multiple %324, 8 : i32
    %326 = arith.index_cast %325 : i32 to index
    %c0_79 = arith.constant 0 : index
    %327 = vector.load %arg9[%326, %c0_79] : memref<216x128xf32, #tpu.memory_space<vmem>>, vector<8x128xf32>
    %cst_80 = arith.constant dense<0.000000e+00> : vector<8x128xf32>
    %328 = tpu.matmul %300, %7, %cst_80 {dimension_numbers = #tpu.dot_dimension_numbers<[1], [0], [0], [1], [0, 0, 1, 1], [], []>} : vector<8x32xf32>, vector<32x128xf32>, vector<8x128xf32> -> vector<8x128xf32>
    %329 = arith.addf %327, %328 : vector<8x128xf32>
    %330 = arith.negf %329 : vector<8x128xf32>
    %331 = math.exp %330 : vector<8x128xf32>
    %cst_81 = arith.constant 1.000000e+00 : f32
    %332 = vector.broadcast %cst_81 : f32 to vector<8x128xf32>
    %333 = arith.addf %332, %331 : vector<8x128xf32>
    %334 = arith.divf %332, %333 : vector<8x128xf32>
    %335 = math.tanh %329 : vector<8x128xf32>
    %336 = vector.extract_strided_slice %334 {offsets = [0, 0], sizes = [8, 32], strides = [1, 1]} : vector<8x128xf32> to vector<8x32xf32>
    %337 = vector.extract_strided_slice %334 {offsets = [0, 32], sizes = [8, 32], strides = [1, 1]} : vector<8x128xf32> to vector<8x32xf32>
    %338 = vector.extract_strided_slice %335 {offsets = [0, 64], sizes = [8, 32], strides = [1, 1]} : vector<8x128xf32> to vector<8x32xf32>
    %339 = vector.extract_strided_slice %334 {offsets = [0, 96], sizes = [8, 32], strides = [1, 1]} : vector<8x128xf32> to vector<8x32xf32>
    %340 = arith.mulf %337, %298 : vector<8x32xf32>
    %341 = arith.mulf %336, %338 : vector<8x32xf32>
    %342 = arith.addf %340, %341 : vector<8x32xf32>
    %343 = math.tanh %342 : vector<8x32xf32>
    %344 = arith.mulf %339, %343 : vector<8x32xf32>
    %345 = tpu.concatenate %344, %318 in 1 : vector<8x32xf32>, vector<8x32xf32> -> vector<8x64xf32>
    %cst_82 = arith.constant dense<0.000000e+00> : vector<8x128xf32>
    %346 = tpu.matmul %345, %8, %cst_82 {dimension_numbers = #tpu.dot_dimension_numbers<[1], [0], [0], [1], [0, 0, 1, 1], [], []>} : vector<8x64xf32>, vector<64x128xf32>, vector<8x128xf32> -> vector<8x128xf32>
    %347 = arith.addf %346, %11 : vector<8x128xf32>
    %348 = arith.negf %347 : vector<8x128xf32>
    %349 = math.exp %348 : vector<8x128xf32>
    %cst_83 = arith.constant 1.000000e+00 : f32
    %350 = vector.broadcast %cst_83 : f32 to vector<8x128xf32>
    %351 = arith.addf %350, %349 : vector<8x128xf32>
    %352 = arith.divf %350, %351 : vector<8x128xf32>
    %353 = math.tanh %347 : vector<8x128xf32>
    %354 = vector.extract_strided_slice %352 {offsets = [0, 0], sizes = [8, 32], strides = [1, 1]} : vector<8x128xf32> to vector<8x32xf32>
    %355 = vector.extract_strided_slice %352 {offsets = [0, 32], sizes = [8, 32], strides = [1, 1]} : vector<8x128xf32> to vector<8x32xf32>
    %356 = vector.extract_strided_slice %353 {offsets = [0, 64], sizes = [8, 32], strides = [1, 1]} : vector<8x128xf32> to vector<8x32xf32>
    %357 = vector.extract_strided_slice %352 {offsets = [0, 96], sizes = [8, 32], strides = [1, 1]} : vector<8x128xf32> to vector<8x32xf32>
    %358 = arith.mulf %355, %316 : vector<8x32xf32>
    %359 = arith.mulf %354, %356 : vector<8x32xf32>
    %360 = arith.addf %358, %359 : vector<8x32xf32>
    %361 = math.tanh %360 : vector<8x32xf32>
    %362 = arith.mulf %357, %361 : vector<8x32xf32>
    %363 = arith.index_cast %c7_i32 : i32 to index
    %c0_84 = arith.constant 0 : index
    %c0_85 = arith.constant 0 : index
    %364 = vector.load %arg6[%363, %c0_84, %c0_85] : memref<27x32x128xf32, #tpu.memory_space<vmem>>, vector<1x32x128xf32>
    %365 = vector.shape_cast %364 : vector<1x32x128xf32> to vector<32x128xf32>
    %cst_86 = arith.constant dense<0.000000e+00> : vector<8x128xf32>
    %366 = tpu.matmul %362, %365, %cst_86 {dimension_numbers = #tpu.dot_dimension_numbers<[1], [0], [0], [1], [0, 0, 1, 1], [], []>} : vector<8x32xf32>, vector<32x128xf32>, vector<8x128xf32> -> vector<8x128xf32>
    %367 = arith.addf %323, %366 : vector<8x128xf32>
    %c8_i32_87 = arith.constant 8 : i32
    %c8_i32_88 = arith.constant 8 : i32
    %368 = arith.muli %c8_i32_87, %c8_i32_88 : i32
    %369 = tpu.assume_multiple %368, 8 : i32
    %370 = arith.index_cast %369 : i32 to index
    %c0_89 = arith.constant 0 : index
    %371 = vector.load %arg9[%370, %c0_89] : memref<216x128xf32, #tpu.memory_space<vmem>>, vector<8x128xf32>
    %cst_90 = arith.constant dense<0.000000e+00> : vector<8x128xf32>
    %372 = tpu.matmul %344, %7, %cst_90 {dimension_numbers = #tpu.dot_dimension_numbers<[1], [0], [0], [1], [0, 0, 1, 1], [], []>} : vector<8x32xf32>, vector<32x128xf32>, vector<8x128xf32> -> vector<8x128xf32>
    %373 = arith.addf %371, %372 : vector<8x128xf32>
    %374 = arith.negf %373 : vector<8x128xf32>
    %375 = math.exp %374 : vector<8x128xf32>
    %cst_91 = arith.constant 1.000000e+00 : f32
    %376 = vector.broadcast %cst_91 : f32 to vector<8x128xf32>
    %377 = arith.addf %376, %375 : vector<8x128xf32>
    %378 = arith.divf %376, %377 : vector<8x128xf32>
    %379 = math.tanh %373 : vector<8x128xf32>
    %380 = vector.extract_strided_slice %378 {offsets = [0, 0], sizes = [8, 32], strides = [1, 1]} : vector<8x128xf32> to vector<8x32xf32>
    %381 = vector.extract_strided_slice %378 {offsets = [0, 32], sizes = [8, 32], strides = [1, 1]} : vector<8x128xf32> to vector<8x32xf32>
    %382 = vector.extract_strided_slice %379 {offsets = [0, 64], sizes = [8, 32], strides = [1, 1]} : vector<8x128xf32> to vector<8x32xf32>
    %383 = vector.extract_strided_slice %378 {offsets = [0, 96], sizes = [8, 32], strides = [1, 1]} : vector<8x128xf32> to vector<8x32xf32>
    %384 = arith.mulf %381, %342 : vector<8x32xf32>
    %385 = arith.mulf %380, %382 : vector<8x32xf32>
    %386 = arith.addf %384, %385 : vector<8x32xf32>
    %387 = math.tanh %386 : vector<8x32xf32>
    %388 = arith.mulf %383, %387 : vector<8x32xf32>
    %389 = tpu.concatenate %388, %362 in 1 : vector<8x32xf32>, vector<8x32xf32> -> vector<8x64xf32>
    %cst_92 = arith.constant dense<0.000000e+00> : vector<8x128xf32>
    %390 = tpu.matmul %389, %8, %cst_92 {dimension_numbers = #tpu.dot_dimension_numbers<[1], [0], [0], [1], [0, 0, 1, 1], [], []>} : vector<8x64xf32>, vector<64x128xf32>, vector<8x128xf32> -> vector<8x128xf32>
    %391 = arith.addf %390, %11 : vector<8x128xf32>
    %392 = arith.negf %391 : vector<8x128xf32>
    %393 = math.exp %392 : vector<8x128xf32>
    %cst_93 = arith.constant 1.000000e+00 : f32
    %394 = vector.broadcast %cst_93 : f32 to vector<8x128xf32>
    %395 = arith.addf %394, %393 : vector<8x128xf32>
    %396 = arith.divf %394, %395 : vector<8x128xf32>
    %397 = math.tanh %391 : vector<8x128xf32>
    %398 = vector.extract_strided_slice %396 {offsets = [0, 0], sizes = [8, 32], strides = [1, 1]} : vector<8x128xf32> to vector<8x32xf32>
    %399 = vector.extract_strided_slice %396 {offsets = [0, 32], sizes = [8, 32], strides = [1, 1]} : vector<8x128xf32> to vector<8x32xf32>
    %400 = vector.extract_strided_slice %397 {offsets = [0, 64], sizes = [8, 32], strides = [1, 1]} : vector<8x128xf32> to vector<8x32xf32>
    %401 = vector.extract_strided_slice %396 {offsets = [0, 96], sizes = [8, 32], strides = [1, 1]} : vector<8x128xf32> to vector<8x32xf32>
    %402 = arith.mulf %399, %360 : vector<8x32xf32>
    %403 = arith.mulf %398, %400 : vector<8x32xf32>
    %404 = arith.addf %402, %403 : vector<8x32xf32>
    %405 = math.tanh %404 : vector<8x32xf32>
    %406 = arith.mulf %401, %405 : vector<8x32xf32>
    %407 = arith.index_cast %c8_i32_87 : i32 to index
    %c0_94 = arith.constant 0 : index
    %c0_95 = arith.constant 0 : index
    %408 = vector.load %arg6[%407, %c0_94, %c0_95] : memref<27x32x128xf32, #tpu.memory_space<vmem>>, vector<1x32x128xf32>
    %409 = vector.shape_cast %408 : vector<1x32x128xf32> to vector<32x128xf32>
    %cst_96 = arith.constant dense<0.000000e+00> : vector<8x128xf32>
    %410 = tpu.matmul %406, %409, %cst_96 {dimension_numbers = #tpu.dot_dimension_numbers<[1], [0], [0], [1], [0, 0, 1, 1], [], []>} : vector<8x32xf32>, vector<32x128xf32>, vector<8x128xf32> -> vector<8x128xf32>
    %411 = arith.addf %367, %410 : vector<8x128xf32>
    %c9_i32 = arith.constant 9 : i32
    %c8_i32_97 = arith.constant 8 : i32
    %412 = arith.muli %c9_i32, %c8_i32_97 : i32
    %413 = tpu.assume_multiple %412, 8 : i32
    %414 = arith.index_cast %413 : i32 to index
    %c0_98 = arith.constant 0 : index
    %415 = vector.load %arg9[%414, %c0_98] : memref<216x128xf32, #tpu.memory_space<vmem>>, vector<8x128xf32>
    %cst_99 = arith.constant dense<0.000000e+00> : vector<8x128xf32>
    %416 = tpu.matmul %388, %7, %cst_99 {dimension_numbers = #tpu.dot_dimension_numbers<[1], [0], [0], [1], [0, 0, 1, 1], [], []>} : vector<8x32xf32>, vector<32x128xf32>, vector<8x128xf32> -> vector<8x128xf32>
    %417 = arith.addf %415, %416 : vector<8x128xf32>
    %418 = arith.negf %417 : vector<8x128xf32>
    %419 = math.exp %418 : vector<8x128xf32>
    %cst_100 = arith.constant 1.000000e+00 : f32
    %420 = vector.broadcast %cst_100 : f32 to vector<8x128xf32>
    %421 = arith.addf %420, %419 : vector<8x128xf32>
    %422 = arith.divf %420, %421 : vector<8x128xf32>
    %423 = math.tanh %417 : vector<8x128xf32>
    %424 = vector.extract_strided_slice %422 {offsets = [0, 0], sizes = [8, 32], strides = [1, 1]} : vector<8x128xf32> to vector<8x32xf32>
    %425 = vector.extract_strided_slice %422 {offsets = [0, 32], sizes = [8, 32], strides = [1, 1]} : vector<8x128xf32> to vector<8x32xf32>
    %426 = vector.extract_strided_slice %423 {offsets = [0, 64], sizes = [8, 32], strides = [1, 1]} : vector<8x128xf32> to vector<8x32xf32>
    %427 = vector.extract_strided_slice %422 {offsets = [0, 96], sizes = [8, 32], strides = [1, 1]} : vector<8x128xf32> to vector<8x32xf32>
    %428 = arith.mulf %425, %386 : vector<8x32xf32>
    %429 = arith.mulf %424, %426 : vector<8x32xf32>
    %430 = arith.addf %428, %429 : vector<8x32xf32>
    %431 = math.tanh %430 : vector<8x32xf32>
    %432 = arith.mulf %427, %431 : vector<8x32xf32>
    %433 = tpu.concatenate %432, %406 in 1 : vector<8x32xf32>, vector<8x32xf32> -> vector<8x64xf32>
    %cst_101 = arith.constant dense<0.000000e+00> : vector<8x128xf32>
    %434 = tpu.matmul %433, %8, %cst_101 {dimension_numbers = #tpu.dot_dimension_numbers<[1], [0], [0], [1], [0, 0, 1, 1], [], []>} : vector<8x64xf32>, vector<64x128xf32>, vector<8x128xf32> -> vector<8x128xf32>
    %435 = arith.addf %434, %11 : vector<8x128xf32>
    %436 = arith.negf %435 : vector<8x128xf32>
    %437 = math.exp %436 : vector<8x128xf32>
    %cst_102 = arith.constant 1.000000e+00 : f32
    %438 = vector.broadcast %cst_102 : f32 to vector<8x128xf32>
    %439 = arith.addf %438, %437 : vector<8x128xf32>
    %440 = arith.divf %438, %439 : vector<8x128xf32>
    %441 = math.tanh %435 : vector<8x128xf32>
    %442 = vector.extract_strided_slice %440 {offsets = [0, 0], sizes = [8, 32], strides = [1, 1]} : vector<8x128xf32> to vector<8x32xf32>
    %443 = vector.extract_strided_slice %440 {offsets = [0, 32], sizes = [8, 32], strides = [1, 1]} : vector<8x128xf32> to vector<8x32xf32>
    %444 = vector.extract_strided_slice %441 {offsets = [0, 64], sizes = [8, 32], strides = [1, 1]} : vector<8x128xf32> to vector<8x32xf32>
    %445 = vector.extract_strided_slice %440 {offsets = [0, 96], sizes = [8, 32], strides = [1, 1]} : vector<8x128xf32> to vector<8x32xf32>
    %446 = arith.mulf %443, %404 : vector<8x32xf32>
    %447 = arith.mulf %442, %444 : vector<8x32xf32>
    %448 = arith.addf %446, %447 : vector<8x32xf32>
    %449 = math.tanh %448 : vector<8x32xf32>
    %450 = arith.mulf %445, %449 : vector<8x32xf32>
    %451 = arith.index_cast %c9_i32 : i32 to index
    %c0_103 = arith.constant 0 : index
    %c0_104 = arith.constant 0 : index
    %452 = vector.load %arg6[%451, %c0_103, %c0_104] : memref<27x32x128xf32, #tpu.memory_space<vmem>>, vector<1x32x128xf32>
    %453 = vector.shape_cast %452 : vector<1x32x128xf32> to vector<32x128xf32>
    %cst_105 = arith.constant dense<0.000000e+00> : vector<8x128xf32>
    %454 = tpu.matmul %450, %453, %cst_105 {dimension_numbers = #tpu.dot_dimension_numbers<[1], [0], [0], [1], [0, 0, 1, 1], [], []>} : vector<8x32xf32>, vector<32x128xf32>, vector<8x128xf32> -> vector<8x128xf32>
    %455 = arith.addf %411, %454 : vector<8x128xf32>
    %c10_i32 = arith.constant 10 : i32
    %c8_i32_106 = arith.constant 8 : i32
    %456 = arith.muli %c10_i32, %c8_i32_106 : i32
    %457 = tpu.assume_multiple %456, 8 : i32
    %458 = arith.index_cast %457 : i32 to index
    %c0_107 = arith.constant 0 : index
    %459 = vector.load %arg9[%458, %c0_107] : memref<216x128xf32, #tpu.memory_space<vmem>>, vector<8x128xf32>
    %cst_108 = arith.constant dense<0.000000e+00> : vector<8x128xf32>
    %460 = tpu.matmul %432, %7, %cst_108 {dimension_numbers = #tpu.dot_dimension_numbers<[1], [0], [0], [1], [0, 0, 1, 1], [], []>} : vector<8x32xf32>, vector<32x128xf32>, vector<8x128xf32> -> vector<8x128xf32>
    %461 = arith.addf %459, %460 : vector<8x128xf32>
    %462 = arith.negf %461 : vector<8x128xf32>
    %463 = math.exp %462 : vector<8x128xf32>
    %cst_109 = arith.constant 1.000000e+00 : f32
    %464 = vector.broadcast %cst_109 : f32 to vector<8x128xf32>
    %465 = arith.addf %464, %463 : vector<8x128xf32>
    %466 = arith.divf %464, %465 : vector<8x128xf32>
    %467 = math.tanh %461 : vector<8x128xf32>
    %468 = vector.extract_strided_slice %466 {offsets = [0, 0], sizes = [8, 32], strides = [1, 1]} : vector<8x128xf32> to vector<8x32xf32>
    %469 = vector.extract_strided_slice %466 {offsets = [0, 32], sizes = [8, 32], strides = [1, 1]} : vector<8x128xf32> to vector<8x32xf32>
    %470 = vector.extract_strided_slice %467 {offsets = [0, 64], sizes = [8, 32], strides = [1, 1]} : vector<8x128xf32> to vector<8x32xf32>
    %471 = vector.extract_strided_slice %466 {offsets = [0, 96], sizes = [8, 32], strides = [1, 1]} : vector<8x128xf32> to vector<8x32xf32>
    %472 = arith.mulf %469, %430 : vector<8x32xf32>
    %473 = arith.mulf %468, %470 : vector<8x32xf32>
    %474 = arith.addf %472, %473 : vector<8x32xf32>
    %475 = math.tanh %474 : vector<8x32xf32>
    %476 = arith.mulf %471, %475 : vector<8x32xf32>
    %477 = tpu.concatenate %476, %450 in 1 : vector<8x32xf32>, vector<8x32xf32> -> vector<8x64xf32>
    %cst_110 = arith.constant dense<0.000000e+00> : vector<8x128xf32>
    %478 = tpu.matmul %477, %8, %cst_110 {dimension_numbers = #tpu.dot_dimension_numbers<[1], [0], [0], [1], [0, 0, 1, 1], [], []>} : vector<8x64xf32>, vector<64x128xf32>, vector<8x128xf32> -> vector<8x128xf32>
    %479 = arith.addf %478, %11 : vector<8x128xf32>
    %480 = arith.negf %479 : vector<8x128xf32>
    %481 = math.exp %480 : vector<8x128xf32>
    %cst_111 = arith.constant 1.000000e+00 : f32
    %482 = vector.broadcast %cst_111 : f32 to vector<8x128xf32>
    %483 = arith.addf %482, %481 : vector<8x128xf32>
    %484 = arith.divf %482, %483 : vector<8x128xf32>
    %485 = math.tanh %479 : vector<8x128xf32>
    %486 = vector.extract_strided_slice %484 {offsets = [0, 0], sizes = [8, 32], strides = [1, 1]} : vector<8x128xf32> to vector<8x32xf32>
    %487 = vector.extract_strided_slice %484 {offsets = [0, 32], sizes = [8, 32], strides = [1, 1]} : vector<8x128xf32> to vector<8x32xf32>
    %488 = vector.extract_strided_slice %485 {offsets = [0, 64], sizes = [8, 32], strides = [1, 1]} : vector<8x128xf32> to vector<8x32xf32>
    %489 = vector.extract_strided_slice %484 {offsets = [0, 96], sizes = [8, 32], strides = [1, 1]} : vector<8x128xf32> to vector<8x32xf32>
    %490 = arith.mulf %487, %448 : vector<8x32xf32>
    %491 = arith.mulf %486, %488 : vector<8x32xf32>
    %492 = arith.addf %490, %491 : vector<8x32xf32>
    %493 = math.tanh %492 : vector<8x32xf32>
    %494 = arith.mulf %489, %493 : vector<8x32xf32>
    %495 = arith.index_cast %c10_i32 : i32 to index
    %c0_112 = arith.constant 0 : index
    %c0_113 = arith.constant 0 : index
    %496 = vector.load %arg6[%495, %c0_112, %c0_113] : memref<27x32x128xf32, #tpu.memory_space<vmem>>, vector<1x32x128xf32>
    %497 = vector.shape_cast %496 : vector<1x32x128xf32> to vector<32x128xf32>
    %cst_114 = arith.constant dense<0.000000e+00> : vector<8x128xf32>
    %498 = tpu.matmul %494, %497, %cst_114 {dimension_numbers = #tpu.dot_dimension_numbers<[1], [0], [0], [1], [0, 0, 1, 1], [], []>} : vector<8x32xf32>, vector<32x128xf32>, vector<8x128xf32> -> vector<8x128xf32>
    %499 = arith.addf %455, %498 : vector<8x128xf32>
    %c11_i32 = arith.constant 11 : i32
    %c8_i32_115 = arith.constant 8 : i32
    %500 = arith.muli %c11_i32, %c8_i32_115 : i32
    %501 = tpu.assume_multiple %500, 8 : i32
    %502 = arith.index_cast %501 : i32 to index
    %c0_116 = arith.constant 0 : index
    %503 = vector.load %arg9[%502, %c0_116] : memref<216x128xf32, #tpu.memory_space<vmem>>, vector<8x128xf32>
    %cst_117 = arith.constant dense<0.000000e+00> : vector<8x128xf32>
    %504 = tpu.matmul %476, %7, %cst_117 {dimension_numbers = #tpu.dot_dimension_numbers<[1], [0], [0], [1], [0, 0, 1, 1], [], []>} : vector<8x32xf32>, vector<32x128xf32>, vector<8x128xf32> -> vector<8x128xf32>
    %505 = arith.addf %503, %504 : vector<8x128xf32>
    %506 = arith.negf %505 : vector<8x128xf32>
    %507 = math.exp %506 : vector<8x128xf32>
    %cst_118 = arith.constant 1.000000e+00 : f32
    %508 = vector.broadcast %cst_118 : f32 to vector<8x128xf32>
    %509 = arith.addf %508, %507 : vector<8x128xf32>
    %510 = arith.divf %508, %509 : vector<8x128xf32>
    %511 = math.tanh %505 : vector<8x128xf32>
    %512 = vector.extract_strided_slice %510 {offsets = [0, 0], sizes = [8, 32], strides = [1, 1]} : vector<8x128xf32> to vector<8x32xf32>
    %513 = vector.extract_strided_slice %510 {offsets = [0, 32], sizes = [8, 32], strides = [1, 1]} : vector<8x128xf32> to vector<8x32xf32>
    %514 = vector.extract_strided_slice %511 {offsets = [0, 64], sizes = [8, 32], strides = [1, 1]} : vector<8x128xf32> to vector<8x32xf32>
    %515 = vector.extract_strided_slice %510 {offsets = [0, 96], sizes = [8, 32], strides = [1, 1]} : vector<8x128xf32> to vector<8x32xf32>
    %516 = arith.mulf %513, %474 : vector<8x32xf32>
    %517 = arith.mulf %512, %514 : vector<8x32xf32>
    %518 = arith.addf %516, %517 : vector<8x32xf32>
    %519 = math.tanh %518 : vector<8x32xf32>
    %520 = arith.mulf %515, %519 : vector<8x32xf32>
    %521 = tpu.concatenate %520, %494 in 1 : vector<8x32xf32>, vector<8x32xf32> -> vector<8x64xf32>
    %cst_119 = arith.constant dense<0.000000e+00> : vector<8x128xf32>
    %522 = tpu.matmul %521, %8, %cst_119 {dimension_numbers = #tpu.dot_dimension_numbers<[1], [0], [0], [1], [0, 0, 1, 1], [], []>} : vector<8x64xf32>, vector<64x128xf32>, vector<8x128xf32> -> vector<8x128xf32>
    %523 = arith.addf %522, %11 : vector<8x128xf32>
    %524 = arith.negf %523 : vector<8x128xf32>
    %525 = math.exp %524 : vector<8x128xf32>
    %cst_120 = arith.constant 1.000000e+00 : f32
    %526 = vector.broadcast %cst_120 : f32 to vector<8x128xf32>
    %527 = arith.addf %526, %525 : vector<8x128xf32>
    %528 = arith.divf %526, %527 : vector<8x128xf32>
    %529 = math.tanh %523 : vector<8x128xf32>
    %530 = vector.extract_strided_slice %528 {offsets = [0, 0], sizes = [8, 32], strides = [1, 1]} : vector<8x128xf32> to vector<8x32xf32>
    %531 = vector.extract_strided_slice %528 {offsets = [0, 32], sizes = [8, 32], strides = [1, 1]} : vector<8x128xf32> to vector<8x32xf32>
    %532 = vector.extract_strided_slice %529 {offsets = [0, 64], sizes = [8, 32], strides = [1, 1]} : vector<8x128xf32> to vector<8x32xf32>
    %533 = vector.extract_strided_slice %528 {offsets = [0, 96], sizes = [8, 32], strides = [1, 1]} : vector<8x128xf32> to vector<8x32xf32>
    %534 = arith.mulf %531, %492 : vector<8x32xf32>
    %535 = arith.mulf %530, %532 : vector<8x32xf32>
    %536 = arith.addf %534, %535 : vector<8x32xf32>
    %537 = math.tanh %536 : vector<8x32xf32>
    %538 = arith.mulf %533, %537 : vector<8x32xf32>
    %539 = arith.index_cast %c11_i32 : i32 to index
    %c0_121 = arith.constant 0 : index
    %c0_122 = arith.constant 0 : index
    %540 = vector.load %arg6[%539, %c0_121, %c0_122] : memref<27x32x128xf32, #tpu.memory_space<vmem>>, vector<1x32x128xf32>
    %541 = vector.shape_cast %540 : vector<1x32x128xf32> to vector<32x128xf32>
    %cst_123 = arith.constant dense<0.000000e+00> : vector<8x128xf32>
    %542 = tpu.matmul %538, %541, %cst_123 {dimension_numbers = #tpu.dot_dimension_numbers<[1], [0], [0], [1], [0, 0, 1, 1], [], []>} : vector<8x32xf32>, vector<32x128xf32>, vector<8x128xf32> -> vector<8x128xf32>
    %543 = arith.addf %499, %542 : vector<8x128xf32>
    %c12_i32 = arith.constant 12 : i32
    %c8_i32_124 = arith.constant 8 : i32
    %544 = arith.muli %c12_i32, %c8_i32_124 : i32
    %545 = tpu.assume_multiple %544, 8 : i32
    %546 = arith.index_cast %545 : i32 to index
    %c0_125 = arith.constant 0 : index
    %547 = vector.load %arg9[%546, %c0_125] : memref<216x128xf32, #tpu.memory_space<vmem>>, vector<8x128xf32>
    %cst_126 = arith.constant dense<0.000000e+00> : vector<8x128xf32>
    %548 = tpu.matmul %520, %7, %cst_126 {dimension_numbers = #tpu.dot_dimension_numbers<[1], [0], [0], [1], [0, 0, 1, 1], [], []>} : vector<8x32xf32>, vector<32x128xf32>, vector<8x128xf32> -> vector<8x128xf32>
    %549 = arith.addf %547, %548 : vector<8x128xf32>
    %550 = arith.negf %549 : vector<8x128xf32>
    %551 = math.exp %550 : vector<8x128xf32>
    %cst_127 = arith.constant 1.000000e+00 : f32
    %552 = vector.broadcast %cst_127 : f32 to vector<8x128xf32>
    %553 = arith.addf %552, %551 : vector<8x128xf32>
    %554 = arith.divf %552, %553 : vector<8x128xf32>
    %555 = math.tanh %549 : vector<8x128xf32>
    %556 = vector.extract_strided_slice %554 {offsets = [0, 0], sizes = [8, 32], strides = [1, 1]} : vector<8x128xf32> to vector<8x32xf32>
    %557 = vector.extract_strided_slice %554 {offsets = [0, 32], sizes = [8, 32], strides = [1, 1]} : vector<8x128xf32> to vector<8x32xf32>
    %558 = vector.extract_strided_slice %555 {offsets = [0, 64], sizes = [8, 32], strides = [1, 1]} : vector<8x128xf32> to vector<8x32xf32>
    %559 = vector.extract_strided_slice %554 {offsets = [0, 96], sizes = [8, 32], strides = [1, 1]} : vector<8x128xf32> to vector<8x32xf32>
    %560 = arith.mulf %557, %518 : vector<8x32xf32>
    %561 = arith.mulf %556, %558 : vector<8x32xf32>
    %562 = arith.addf %560, %561 : vector<8x32xf32>
    %563 = math.tanh %562 : vector<8x32xf32>
    %564 = arith.mulf %559, %563 : vector<8x32xf32>
    %565 = tpu.concatenate %564, %538 in 1 : vector<8x32xf32>, vector<8x32xf32> -> vector<8x64xf32>
    %cst_128 = arith.constant dense<0.000000e+00> : vector<8x128xf32>
    %566 = tpu.matmul %565, %8, %cst_128 {dimension_numbers = #tpu.dot_dimension_numbers<[1], [0], [0], [1], [0, 0, 1, 1], [], []>} : vector<8x64xf32>, vector<64x128xf32>, vector<8x128xf32> -> vector<8x128xf32>
    %567 = arith.addf %566, %11 : vector<8x128xf32>
    %568 = arith.negf %567 : vector<8x128xf32>
    %569 = math.exp %568 : vector<8x128xf32>
    %cst_129 = arith.constant 1.000000e+00 : f32
    %570 = vector.broadcast %cst_129 : f32 to vector<8x128xf32>
    %571 = arith.addf %570, %569 : vector<8x128xf32>
    %572 = arith.divf %570, %571 : vector<8x128xf32>
    %573 = math.tanh %567 : vector<8x128xf32>
    %574 = vector.extract_strided_slice %572 {offsets = [0, 0], sizes = [8, 32], strides = [1, 1]} : vector<8x128xf32> to vector<8x32xf32>
    %575 = vector.extract_strided_slice %572 {offsets = [0, 32], sizes = [8, 32], strides = [1, 1]} : vector<8x128xf32> to vector<8x32xf32>
    %576 = vector.extract_strided_slice %573 {offsets = [0, 64], sizes = [8, 32], strides = [1, 1]} : vector<8x128xf32> to vector<8x32xf32>
    %577 = vector.extract_strided_slice %572 {offsets = [0, 96], sizes = [8, 32], strides = [1, 1]} : vector<8x128xf32> to vector<8x32xf32>
    %578 = arith.mulf %575, %536 : vector<8x32xf32>
    %579 = arith.mulf %574, %576 : vector<8x32xf32>
    %580 = arith.addf %578, %579 : vector<8x32xf32>
    %581 = math.tanh %580 : vector<8x32xf32>
    %582 = arith.mulf %577, %581 : vector<8x32xf32>
    %583 = arith.index_cast %c12_i32 : i32 to index
    %c0_130 = arith.constant 0 : index
    %c0_131 = arith.constant 0 : index
    %584 = vector.load %arg6[%583, %c0_130, %c0_131] : memref<27x32x128xf32, #tpu.memory_space<vmem>>, vector<1x32x128xf32>
    %585 = vector.shape_cast %584 : vector<1x32x128xf32> to vector<32x128xf32>
    %cst_132 = arith.constant dense<0.000000e+00> : vector<8x128xf32>
    %586 = tpu.matmul %582, %585, %cst_132 {dimension_numbers = #tpu.dot_dimension_numbers<[1], [0], [0], [1], [0, 0, 1, 1], [], []>} : vector<8x32xf32>, vector<32x128xf32>, vector<8x128xf32> -> vector<8x128xf32>
    %587 = arith.addf %543, %586 : vector<8x128xf32>
    %c13_i32 = arith.constant 13 : i32
    %c8_i32_133 = arith.constant 8 : i32
    %588 = arith.muli %c13_i32, %c8_i32_133 : i32
    %589 = tpu.assume_multiple %588, 8 : i32
    %590 = arith.index_cast %589 : i32 to index
    %c0_134 = arith.constant 0 : index
    %591 = vector.load %arg9[%590, %c0_134] : memref<216x128xf32, #tpu.memory_space<vmem>>, vector<8x128xf32>
    %cst_135 = arith.constant dense<0.000000e+00> : vector<8x128xf32>
    %592 = tpu.matmul %564, %7, %cst_135 {dimension_numbers = #tpu.dot_dimension_numbers<[1], [0], [0], [1], [0, 0, 1, 1], [], []>} : vector<8x32xf32>, vector<32x128xf32>, vector<8x128xf32> -> vector<8x128xf32>
    %593 = arith.addf %591, %592 : vector<8x128xf32>
    %594 = arith.negf %593 : vector<8x128xf32>
    %595 = math.exp %594 : vector<8x128xf32>
    %cst_136 = arith.constant 1.000000e+00 : f32
    %596 = vector.broadcast %cst_136 : f32 to vector<8x128xf32>
    %597 = arith.addf %596, %595 : vector<8x128xf32>
    %598 = arith.divf %596, %597 : vector<8x128xf32>
    %599 = math.tanh %593 : vector<8x128xf32>
    %600 = vector.extract_strided_slice %598 {offsets = [0, 0], sizes = [8, 32], strides = [1, 1]} : vector<8x128xf32> to vector<8x32xf32>
    %601 = vector.extract_strided_slice %598 {offsets = [0, 32], sizes = [8, 32], strides = [1, 1]} : vector<8x128xf32> to vector<8x32xf32>
    %602 = vector.extract_strided_slice %599 {offsets = [0, 64], sizes = [8, 32], strides = [1, 1]} : vector<8x128xf32> to vector<8x32xf32>
    %603 = vector.extract_strided_slice %598 {offsets = [0, 96], sizes = [8, 32], strides = [1, 1]} : vector<8x128xf32> to vector<8x32xf32>
    %604 = arith.mulf %601, %562 : vector<8x32xf32>
    %605 = arith.mulf %600, %602 : vector<8x32xf32>
    %606 = arith.addf %604, %605 : vector<8x32xf32>
    %607 = math.tanh %606 : vector<8x32xf32>
    %608 = arith.mulf %603, %607 : vector<8x32xf32>
    %609 = tpu.concatenate %608, %582 in 1 : vector<8x32xf32>, vector<8x32xf32> -> vector<8x64xf32>
    %cst_137 = arith.constant dense<0.000000e+00> : vector<8x128xf32>
    %610 = tpu.matmul %609, %8, %cst_137 {dimension_numbers = #tpu.dot_dimension_numbers<[1], [0], [0], [1], [0, 0, 1, 1], [], []>} : vector<8x64xf32>, vector<64x128xf32>, vector<8x128xf32> -> vector<8x128xf32>
    %611 = arith.addf %610, %11 : vector<8x128xf32>
    %612 = arith.negf %611 : vector<8x128xf32>
    %613 = math.exp %612 : vector<8x128xf32>
    %cst_138 = arith.constant 1.000000e+00 : f32
    %614 = vector.broadcast %cst_138 : f32 to vector<8x128xf32>
    %615 = arith.addf %614, %613 : vector<8x128xf32>
    %616 = arith.divf %614, %615 : vector<8x128xf32>
    %617 = math.tanh %611 : vector<8x128xf32>
    %618 = vector.extract_strided_slice %616 {offsets = [0, 0], sizes = [8, 32], strides = [1, 1]} : vector<8x128xf32> to vector<8x32xf32>
    %619 = vector.extract_strided_slice %616 {offsets = [0, 32], sizes = [8, 32], strides = [1, 1]} : vector<8x128xf32> to vector<8x32xf32>
    %620 = vector.extract_strided_slice %617 {offsets = [0, 64], sizes = [8, 32], strides = [1, 1]} : vector<8x128xf32> to vector<8x32xf32>
    %621 = vector.extract_strided_slice %616 {offsets = [0, 96], sizes = [8, 32], strides = [1, 1]} : vector<8x128xf32> to vector<8x32xf32>
    %622 = arith.mulf %619, %580 : vector<8x32xf32>
    %623 = arith.mulf %618, %620 : vector<8x32xf32>
    %624 = arith.addf %622, %623 : vector<8x32xf32>
    %625 = math.tanh %624 : vector<8x32xf32>
    %626 = arith.mulf %621, %625 : vector<8x32xf32>
    %627 = arith.index_cast %c13_i32 : i32 to index
    %c0_139 = arith.constant 0 : index
    %c0_140 = arith.constant 0 : index
    %628 = vector.load %arg6[%627, %c0_139, %c0_140] : memref<27x32x128xf32, #tpu.memory_space<vmem>>, vector<1x32x128xf32>
    %629 = vector.shape_cast %628 : vector<1x32x128xf32> to vector<32x128xf32>
    %cst_141 = arith.constant dense<0.000000e+00> : vector<8x128xf32>
    %630 = tpu.matmul %626, %629, %cst_141 {dimension_numbers = #tpu.dot_dimension_numbers<[1], [0], [0], [1], [0, 0, 1, 1], [], []>} : vector<8x32xf32>, vector<32x128xf32>, vector<8x128xf32> -> vector<8x128xf32>
    %631 = arith.addf %587, %630 : vector<8x128xf32>
    %c14_i32 = arith.constant 14 : i32
    %c8_i32_142 = arith.constant 8 : i32
    %632 = arith.muli %c14_i32, %c8_i32_142 : i32
    %633 = tpu.assume_multiple %632, 8 : i32
    %634 = arith.index_cast %633 : i32 to index
    %c0_143 = arith.constant 0 : index
    %635 = vector.load %arg9[%634, %c0_143] : memref<216x128xf32, #tpu.memory_space<vmem>>, vector<8x128xf32>
    %cst_144 = arith.constant dense<0.000000e+00> : vector<8x128xf32>
    %636 = tpu.matmul %608, %7, %cst_144 {dimension_numbers = #tpu.dot_dimension_numbers<[1], [0], [0], [1], [0, 0, 1, 1], [], []>} : vector<8x32xf32>, vector<32x128xf32>, vector<8x128xf32> -> vector<8x128xf32>
    %637 = arith.addf %635, %636 : vector<8x128xf32>
    %638 = arith.negf %637 : vector<8x128xf32>
    %639 = math.exp %638 : vector<8x128xf32>
    %cst_145 = arith.constant 1.000000e+00 : f32
    %640 = vector.broadcast %cst_145 : f32 to vector<8x128xf32>
    %641 = arith.addf %640, %639 : vector<8x128xf32>
    %642 = arith.divf %640, %641 : vector<8x128xf32>
    %643 = math.tanh %637 : vector<8x128xf32>
    %644 = vector.extract_strided_slice %642 {offsets = [0, 0], sizes = [8, 32], strides = [1, 1]} : vector<8x128xf32> to vector<8x32xf32>
    %645 = vector.extract_strided_slice %642 {offsets = [0, 32], sizes = [8, 32], strides = [1, 1]} : vector<8x128xf32> to vector<8x32xf32>
    %646 = vector.extract_strided_slice %643 {offsets = [0, 64], sizes = [8, 32], strides = [1, 1]} : vector<8x128xf32> to vector<8x32xf32>
    %647 = vector.extract_strided_slice %642 {offsets = [0, 96], sizes = [8, 32], strides = [1, 1]} : vector<8x128xf32> to vector<8x32xf32>
    %648 = arith.mulf %645, %606 : vector<8x32xf32>
    %649 = arith.mulf %644, %646 : vector<8x32xf32>
    %650 = arith.addf %648, %649 : vector<8x32xf32>
    %651 = math.tanh %650 : vector<8x32xf32>
    %652 = arith.mulf %647, %651 : vector<8x32xf32>
    %653 = tpu.concatenate %652, %626 in 1 : vector<8x32xf32>, vector<8x32xf32> -> vector<8x64xf32>
    %cst_146 = arith.constant dense<0.000000e+00> : vector<8x128xf32>
    %654 = tpu.matmul %653, %8, %cst_146 {dimension_numbers = #tpu.dot_dimension_numbers<[1], [0], [0], [1], [0, 0, 1, 1], [], []>} : vector<8x64xf32>, vector<64x128xf32>, vector<8x128xf32> -> vector<8x128xf32>
    %655 = arith.addf %654, %11 : vector<8x128xf32>
    %656 = arith.negf %655 : vector<8x128xf32>
    %657 = math.exp %656 : vector<8x128xf32>
    %cst_147 = arith.constant 1.000000e+00 : f32
    %658 = vector.broadcast %cst_147 : f32 to vector<8x128xf32>
    %659 = arith.addf %658, %657 : vector<8x128xf32>
    %660 = arith.divf %658, %659 : vector<8x128xf32>
    %661 = math.tanh %655 : vector<8x128xf32>
    %662 = vector.extract_strided_slice %660 {offsets = [0, 0], sizes = [8, 32], strides = [1, 1]} : vector<8x128xf32> to vector<8x32xf32>
    %663 = vector.extract_strided_slice %660 {offsets = [0, 32], sizes = [8, 32], strides = [1, 1]} : vector<8x128xf32> to vector<8x32xf32>
    %664 = vector.extract_strided_slice %661 {offsets = [0, 64], sizes = [8, 32], strides = [1, 1]} : vector<8x128xf32> to vector<8x32xf32>
    %665 = vector.extract_strided_slice %660 {offsets = [0, 96], sizes = [8, 32], strides = [1, 1]} : vector<8x128xf32> to vector<8x32xf32>
    %666 = arith.mulf %663, %624 : vector<8x32xf32>
    %667 = arith.mulf %662, %664 : vector<8x32xf32>
    %668 = arith.addf %666, %667 : vector<8x32xf32>
    %669 = math.tanh %668 : vector<8x32xf32>
    %670 = arith.mulf %665, %669 : vector<8x32xf32>
    %671 = arith.index_cast %c14_i32 : i32 to index
    %c0_148 = arith.constant 0 : index
    %c0_149 = arith.constant 0 : index
    %672 = vector.load %arg6[%671, %c0_148, %c0_149] : memref<27x32x128xf32, #tpu.memory_space<vmem>>, vector<1x32x128xf32>
    %673 = vector.shape_cast %672 : vector<1x32x128xf32> to vector<32x128xf32>
    %cst_150 = arith.constant dense<0.000000e+00> : vector<8x128xf32>
    %674 = tpu.matmul %670, %673, %cst_150 {dimension_numbers = #tpu.dot_dimension_numbers<[1], [0], [0], [1], [0, 0, 1, 1], [], []>} : vector<8x32xf32>, vector<32x128xf32>, vector<8x128xf32> -> vector<8x128xf32>
    %675 = arith.addf %631, %674 : vector<8x128xf32>
    %c15_i32 = arith.constant 15 : i32
    %c8_i32_151 = arith.constant 8 : i32
    %676 = arith.muli %c15_i32, %c8_i32_151 : i32
    %677 = tpu.assume_multiple %676, 8 : i32
    %678 = arith.index_cast %677 : i32 to index
    %c0_152 = arith.constant 0 : index
    %679 = vector.load %arg9[%678, %c0_152] : memref<216x128xf32, #tpu.memory_space<vmem>>, vector<8x128xf32>
    %cst_153 = arith.constant dense<0.000000e+00> : vector<8x128xf32>
    %680 = tpu.matmul %652, %7, %cst_153 {dimension_numbers = #tpu.dot_dimension_numbers<[1], [0], [0], [1], [0, 0, 1, 1], [], []>} : vector<8x32xf32>, vector<32x128xf32>, vector<8x128xf32> -> vector<8x128xf32>
    %681 = arith.addf %679, %680 : vector<8x128xf32>
    %682 = arith.negf %681 : vector<8x128xf32>
    %683 = math.exp %682 : vector<8x128xf32>
    %cst_154 = arith.constant 1.000000e+00 : f32
    %684 = vector.broadcast %cst_154 : f32 to vector<8x128xf32>
    %685 = arith.addf %684, %683 : vector<8x128xf32>
    %686 = arith.divf %684, %685 : vector<8x128xf32>
    %687 = math.tanh %681 : vector<8x128xf32>
    %688 = vector.extract_strided_slice %686 {offsets = [0, 0], sizes = [8, 32], strides = [1, 1]} : vector<8x128xf32> to vector<8x32xf32>
    %689 = vector.extract_strided_slice %686 {offsets = [0, 32], sizes = [8, 32], strides = [1, 1]} : vector<8x128xf32> to vector<8x32xf32>
    %690 = vector.extract_strided_slice %687 {offsets = [0, 64], sizes = [8, 32], strides = [1, 1]} : vector<8x128xf32> to vector<8x32xf32>
    %691 = vector.extract_strided_slice %686 {offsets = [0, 96], sizes = [8, 32], strides = [1, 1]} : vector<8x128xf32> to vector<8x32xf32>
    %692 = arith.mulf %689, %650 : vector<8x32xf32>
    %693 = arith.mulf %688, %690 : vector<8x32xf32>
    %694 = arith.addf %692, %693 : vector<8x32xf32>
    %695 = math.tanh %694 : vector<8x32xf32>
    %696 = arith.mulf %691, %695 : vector<8x32xf32>
    %697 = tpu.concatenate %696, %670 in 1 : vector<8x32xf32>, vector<8x32xf32> -> vector<8x64xf32>
    %cst_155 = arith.constant dense<0.000000e+00> : vector<8x128xf32>
    %698 = tpu.matmul %697, %8, %cst_155 {dimension_numbers = #tpu.dot_dimension_numbers<[1], [0], [0], [1], [0, 0, 1, 1], [], []>} : vector<8x64xf32>, vector<64x128xf32>, vector<8x128xf32> -> vector<8x128xf32>
    %699 = arith.addf %698, %11 : vector<8x128xf32>
    %700 = arith.negf %699 : vector<8x128xf32>
    %701 = math.exp %700 : vector<8x128xf32>
    %cst_156 = arith.constant 1.000000e+00 : f32
    %702 = vector.broadcast %cst_156 : f32 to vector<8x128xf32>
    %703 = arith.addf %702, %701 : vector<8x128xf32>
    %704 = arith.divf %702, %703 : vector<8x128xf32>
    %705 = math.tanh %699 : vector<8x128xf32>
    %706 = vector.extract_strided_slice %704 {offsets = [0, 0], sizes = [8, 32], strides = [1, 1]} : vector<8x128xf32> to vector<8x32xf32>
    %707 = vector.extract_strided_slice %704 {offsets = [0, 32], sizes = [8, 32], strides = [1, 1]} : vector<8x128xf32> to vector<8x32xf32>
    %708 = vector.extract_strided_slice %705 {offsets = [0, 64], sizes = [8, 32], strides = [1, 1]} : vector<8x128xf32> to vector<8x32xf32>
    %709 = vector.extract_strided_slice %704 {offsets = [0, 96], sizes = [8, 32], strides = [1, 1]} : vector<8x128xf32> to vector<8x32xf32>
    %710 = arith.mulf %707, %668 : vector<8x32xf32>
    %711 = arith.mulf %706, %708 : vector<8x32xf32>
    %712 = arith.addf %710, %711 : vector<8x32xf32>
    %713 = math.tanh %712 : vector<8x32xf32>
    %714 = arith.mulf %709, %713 : vector<8x32xf32>
    %715 = arith.index_cast %c15_i32 : i32 to index
    %c0_157 = arith.constant 0 : index
    %c0_158 = arith.constant 0 : index
    %716 = vector.load %arg6[%715, %c0_157, %c0_158] : memref<27x32x128xf32, #tpu.memory_space<vmem>>, vector<1x32x128xf32>
    %717 = vector.shape_cast %716 : vector<1x32x128xf32> to vector<32x128xf32>
    %cst_159 = arith.constant dense<0.000000e+00> : vector<8x128xf32>
    %718 = tpu.matmul %714, %717, %cst_159 {dimension_numbers = #tpu.dot_dimension_numbers<[1], [0], [0], [1], [0, 0, 1, 1], [], []>} : vector<8x32xf32>, vector<32x128xf32>, vector<8x128xf32> -> vector<8x128xf32>
    %719 = arith.addf %675, %718 : vector<8x128xf32>
    %c16_i32 = arith.constant 16 : i32
    %c8_i32_160 = arith.constant 8 : i32
    %720 = arith.muli %c16_i32, %c8_i32_160 : i32
    %721 = tpu.assume_multiple %720, 8 : i32
    %722 = arith.index_cast %721 : i32 to index
    %c0_161 = arith.constant 0 : index
    %723 = vector.load %arg9[%722, %c0_161] : memref<216x128xf32, #tpu.memory_space<vmem>>, vector<8x128xf32>
    %cst_162 = arith.constant dense<0.000000e+00> : vector<8x128xf32>
    %724 = tpu.matmul %696, %7, %cst_162 {dimension_numbers = #tpu.dot_dimension_numbers<[1], [0], [0], [1], [0, 0, 1, 1], [], []>} : vector<8x32xf32>, vector<32x128xf32>, vector<8x128xf32> -> vector<8x128xf32>
    %725 = arith.addf %723, %724 : vector<8x128xf32>
    %726 = arith.negf %725 : vector<8x128xf32>
    %727 = math.exp %726 : vector<8x128xf32>
    %cst_163 = arith.constant 1.000000e+00 : f32
    %728 = vector.broadcast %cst_163 : f32 to vector<8x128xf32>
    %729 = arith.addf %728, %727 : vector<8x128xf32>
    %730 = arith.divf %728, %729 : vector<8x128xf32>
    %731 = math.tanh %725 : vector<8x128xf32>
    %732 = vector.extract_strided_slice %730 {offsets = [0, 0], sizes = [8, 32], strides = [1, 1]} : vector<8x128xf32> to vector<8x32xf32>
    %733 = vector.extract_strided_slice %730 {offsets = [0, 32], sizes = [8, 32], strides = [1, 1]} : vector<8x128xf32> to vector<8x32xf32>
    %734 = vector.extract_strided_slice %731 {offsets = [0, 64], sizes = [8, 32], strides = [1, 1]} : vector<8x128xf32> to vector<8x32xf32>
    %735 = vector.extract_strided_slice %730 {offsets = [0, 96], sizes = [8, 32], strides = [1, 1]} : vector<8x128xf32> to vector<8x32xf32>
    %736 = arith.mulf %733, %694 : vector<8x32xf32>
    %737 = arith.mulf %732, %734 : vector<8x32xf32>
    %738 = arith.addf %736, %737 : vector<8x32xf32>
    %739 = math.tanh %738 : vector<8x32xf32>
    %740 = arith.mulf %735, %739 : vector<8x32xf32>
    %741 = tpu.concatenate %740, %714 in 1 : vector<8x32xf32>, vector<8x32xf32> -> vector<8x64xf32>
    %cst_164 = arith.constant dense<0.000000e+00> : vector<8x128xf32>
    %742 = tpu.matmul %741, %8, %cst_164 {dimension_numbers = #tpu.dot_dimension_numbers<[1], [0], [0], [1], [0, 0, 1, 1], [], []>} : vector<8x64xf32>, vector<64x128xf32>, vector<8x128xf32> -> vector<8x128xf32>
    %743 = arith.addf %742, %11 : vector<8x128xf32>
    %744 = arith.negf %743 : vector<8x128xf32>
    %745 = math.exp %744 : vector<8x128xf32>
    %cst_165 = arith.constant 1.000000e+00 : f32
    %746 = vector.broadcast %cst_165 : f32 to vector<8x128xf32>
    %747 = arith.addf %746, %745 : vector<8x128xf32>
    %748 = arith.divf %746, %747 : vector<8x128xf32>
    %749 = math.tanh %743 : vector<8x128xf32>
    %750 = vector.extract_strided_slice %748 {offsets = [0, 0], sizes = [8, 32], strides = [1, 1]} : vector<8x128xf32> to vector<8x32xf32>
    %751 = vector.extract_strided_slice %748 {offsets = [0, 32], sizes = [8, 32], strides = [1, 1]} : vector<8x128xf32> to vector<8x32xf32>
    %752 = vector.extract_strided_slice %749 {offsets = [0, 64], sizes = [8, 32], strides = [1, 1]} : vector<8x128xf32> to vector<8x32xf32>
    %753 = vector.extract_strided_slice %748 {offsets = [0, 96], sizes = [8, 32], strides = [1, 1]} : vector<8x128xf32> to vector<8x32xf32>
    %754 = arith.mulf %751, %712 : vector<8x32xf32>
    %755 = arith.mulf %750, %752 : vector<8x32xf32>
    %756 = arith.addf %754, %755 : vector<8x32xf32>
    %757 = math.tanh %756 : vector<8x32xf32>
    %758 = arith.mulf %753, %757 : vector<8x32xf32>
    %759 = arith.index_cast %c16_i32 : i32 to index
    %c0_166 = arith.constant 0 : index
    %c0_167 = arith.constant 0 : index
    %760 = vector.load %arg6[%759, %c0_166, %c0_167] : memref<27x32x128xf32, #tpu.memory_space<vmem>>, vector<1x32x128xf32>
    %761 = vector.shape_cast %760 : vector<1x32x128xf32> to vector<32x128xf32>
    %cst_168 = arith.constant dense<0.000000e+00> : vector<8x128xf32>
    %762 = tpu.matmul %758, %761, %cst_168 {dimension_numbers = #tpu.dot_dimension_numbers<[1], [0], [0], [1], [0, 0, 1, 1], [], []>} : vector<8x32xf32>, vector<32x128xf32>, vector<8x128xf32> -> vector<8x128xf32>
    %763 = arith.addf %719, %762 : vector<8x128xf32>
    %c17_i32 = arith.constant 17 : i32
    %c8_i32_169 = arith.constant 8 : i32
    %764 = arith.muli %c17_i32, %c8_i32_169 : i32
    %765 = tpu.assume_multiple %764, 8 : i32
    %766 = arith.index_cast %765 : i32 to index
    %c0_170 = arith.constant 0 : index
    %767 = vector.load %arg9[%766, %c0_170] : memref<216x128xf32, #tpu.memory_space<vmem>>, vector<8x128xf32>
    %cst_171 = arith.constant dense<0.000000e+00> : vector<8x128xf32>
    %768 = tpu.matmul %740, %7, %cst_171 {dimension_numbers = #tpu.dot_dimension_numbers<[1], [0], [0], [1], [0, 0, 1, 1], [], []>} : vector<8x32xf32>, vector<32x128xf32>, vector<8x128xf32> -> vector<8x128xf32>
    %769 = arith.addf %767, %768 : vector<8x128xf32>
    %770 = arith.negf %769 : vector<8x128xf32>
    %771 = math.exp %770 : vector<8x128xf32>
    %cst_172 = arith.constant 1.000000e+00 : f32
    %772 = vector.broadcast %cst_172 : f32 to vector<8x128xf32>
    %773 = arith.addf %772, %771 : vector<8x128xf32>
    %774 = arith.divf %772, %773 : vector<8x128xf32>
    %775 = math.tanh %769 : vector<8x128xf32>
    %776 = vector.extract_strided_slice %774 {offsets = [0, 0], sizes = [8, 32], strides = [1, 1]} : vector<8x128xf32> to vector<8x32xf32>
    %777 = vector.extract_strided_slice %774 {offsets = [0, 32], sizes = [8, 32], strides = [1, 1]} : vector<8x128xf32> to vector<8x32xf32>
    %778 = vector.extract_strided_slice %775 {offsets = [0, 64], sizes = [8, 32], strides = [1, 1]} : vector<8x128xf32> to vector<8x32xf32>
    %779 = vector.extract_strided_slice %774 {offsets = [0, 96], sizes = [8, 32], strides = [1, 1]} : vector<8x128xf32> to vector<8x32xf32>
    %780 = arith.mulf %777, %738 : vector<8x32xf32>
    %781 = arith.mulf %776, %778 : vector<8x32xf32>
    %782 = arith.addf %780, %781 : vector<8x32xf32>
    %783 = math.tanh %782 : vector<8x32xf32>
    %784 = arith.mulf %779, %783 : vector<8x32xf32>
    %785 = tpu.concatenate %784, %758 in 1 : vector<8x32xf32>, vector<8x32xf32> -> vector<8x64xf32>
    %cst_173 = arith.constant dense<0.000000e+00> : vector<8x128xf32>
    %786 = tpu.matmul %785, %8, %cst_173 {dimension_numbers = #tpu.dot_dimension_numbers<[1], [0], [0], [1], [0, 0, 1, 1], [], []>} : vector<8x64xf32>, vector<64x128xf32>, vector<8x128xf32> -> vector<8x128xf32>
    %787 = arith.addf %786, %11 : vector<8x128xf32>
    %788 = arith.negf %787 : vector<8x128xf32>
    %789 = math.exp %788 : vector<8x128xf32>
    %cst_174 = arith.constant 1.000000e+00 : f32
    %790 = vector.broadcast %cst_174 : f32 to vector<8x128xf32>
    %791 = arith.addf %790, %789 : vector<8x128xf32>
    %792 = arith.divf %790, %791 : vector<8x128xf32>
    %793 = math.tanh %787 : vector<8x128xf32>
    %794 = vector.extract_strided_slice %792 {offsets = [0, 0], sizes = [8, 32], strides = [1, 1]} : vector<8x128xf32> to vector<8x32xf32>
    %795 = vector.extract_strided_slice %792 {offsets = [0, 32], sizes = [8, 32], strides = [1, 1]} : vector<8x128xf32> to vector<8x32xf32>
    %796 = vector.extract_strided_slice %793 {offsets = [0, 64], sizes = [8, 32], strides = [1, 1]} : vector<8x128xf32> to vector<8x32xf32>
    %797 = vector.extract_strided_slice %792 {offsets = [0, 96], sizes = [8, 32], strides = [1, 1]} : vector<8x128xf32> to vector<8x32xf32>
    %798 = arith.mulf %795, %756 : vector<8x32xf32>
    %799 = arith.mulf %794, %796 : vector<8x32xf32>
    %800 = arith.addf %798, %799 : vector<8x32xf32>
    %801 = math.tanh %800 : vector<8x32xf32>
    %802 = arith.mulf %797, %801 : vector<8x32xf32>
    %803 = arith.index_cast %c17_i32 : i32 to index
    %c0_175 = arith.constant 0 : index
    %c0_176 = arith.constant 0 : index
    %804 = vector.load %arg6[%803, %c0_175, %c0_176] : memref<27x32x128xf32, #tpu.memory_space<vmem>>, vector<1x32x128xf32>
    %805 = vector.shape_cast %804 : vector<1x32x128xf32> to vector<32x128xf32>
    %cst_177 = arith.constant dense<0.000000e+00> : vector<8x128xf32>
    %806 = tpu.matmul %802, %805, %cst_177 {dimension_numbers = #tpu.dot_dimension_numbers<[1], [0], [0], [1], [0, 0, 1, 1], [], []>} : vector<8x32xf32>, vector<32x128xf32>, vector<8x128xf32> -> vector<8x128xf32>
    %807 = arith.addf %763, %806 : vector<8x128xf32>
    %c18_i32 = arith.constant 18 : i32
    %c8_i32_178 = arith.constant 8 : i32
    %808 = arith.muli %c18_i32, %c8_i32_178 : i32
    %809 = tpu.assume_multiple %808, 8 : i32
    %810 = arith.index_cast %809 : i32 to index
    %c0_179 = arith.constant 0 : index
    %811 = vector.load %arg9[%810, %c0_179] : memref<216x128xf32, #tpu.memory_space<vmem>>, vector<8x128xf32>
    %cst_180 = arith.constant dense<0.000000e+00> : vector<8x128xf32>
    %812 = tpu.matmul %784, %7, %cst_180 {dimension_numbers = #tpu.dot_dimension_numbers<[1], [0], [0], [1], [0, 0, 1, 1], [], []>} : vector<8x32xf32>, vector<32x128xf32>, vector<8x128xf32> -> vector<8x128xf32>
    %813 = arith.addf %811, %812 : vector<8x128xf32>
    %814 = arith.negf %813 : vector<8x128xf32>
    %815 = math.exp %814 : vector<8x128xf32>
    %cst_181 = arith.constant 1.000000e+00 : f32
    %816 = vector.broadcast %cst_181 : f32 to vector<8x128xf32>
    %817 = arith.addf %816, %815 : vector<8x128xf32>
    %818 = arith.divf %816, %817 : vector<8x128xf32>
    %819 = math.tanh %813 : vector<8x128xf32>
    %820 = vector.extract_strided_slice %818 {offsets = [0, 0], sizes = [8, 32], strides = [1, 1]} : vector<8x128xf32> to vector<8x32xf32>
    %821 = vector.extract_strided_slice %818 {offsets = [0, 32], sizes = [8, 32], strides = [1, 1]} : vector<8x128xf32> to vector<8x32xf32>
    %822 = vector.extract_strided_slice %819 {offsets = [0, 64], sizes = [8, 32], strides = [1, 1]} : vector<8x128xf32> to vector<8x32xf32>
    %823 = vector.extract_strided_slice %818 {offsets = [0, 96], sizes = [8, 32], strides = [1, 1]} : vector<8x128xf32> to vector<8x32xf32>
    %824 = arith.mulf %821, %782 : vector<8x32xf32>
    %825 = arith.mulf %820, %822 : vector<8x32xf32>
    %826 = arith.addf %824, %825 : vector<8x32xf32>
    %827 = math.tanh %826 : vector<8x32xf32>
    %828 = arith.mulf %823, %827 : vector<8x32xf32>
    %829 = tpu.concatenate %828, %802 in 1 : vector<8x32xf32>, vector<8x32xf32> -> vector<8x64xf32>
    %cst_182 = arith.constant dense<0.000000e+00> : vector<8x128xf32>
    %830 = tpu.matmul %829, %8, %cst_182 {dimension_numbers = #tpu.dot_dimension_numbers<[1], [0], [0], [1], [0, 0, 1, 1], [], []>} : vector<8x64xf32>, vector<64x128xf32>, vector<8x128xf32> -> vector<8x128xf32>
    %831 = arith.addf %830, %11 : vector<8x128xf32>
    %832 = arith.negf %831 : vector<8x128xf32>
    %833 = math.exp %832 : vector<8x128xf32>
    %cst_183 = arith.constant 1.000000e+00 : f32
    %834 = vector.broadcast %cst_183 : f32 to vector<8x128xf32>
    %835 = arith.addf %834, %833 : vector<8x128xf32>
    %836 = arith.divf %834, %835 : vector<8x128xf32>
    %837 = math.tanh %831 : vector<8x128xf32>
    %838 = vector.extract_strided_slice %836 {offsets = [0, 0], sizes = [8, 32], strides = [1, 1]} : vector<8x128xf32> to vector<8x32xf32>
    %839 = vector.extract_strided_slice %836 {offsets = [0, 32], sizes = [8, 32], strides = [1, 1]} : vector<8x128xf32> to vector<8x32xf32>
    %840 = vector.extract_strided_slice %837 {offsets = [0, 64], sizes = [8, 32], strides = [1, 1]} : vector<8x128xf32> to vector<8x32xf32>
    %841 = vector.extract_strided_slice %836 {offsets = [0, 96], sizes = [8, 32], strides = [1, 1]} : vector<8x128xf32> to vector<8x32xf32>
    %842 = arith.mulf %839, %800 : vector<8x32xf32>
    %843 = arith.mulf %838, %840 : vector<8x32xf32>
    %844 = arith.addf %842, %843 : vector<8x32xf32>
    %845 = math.tanh %844 : vector<8x32xf32>
    %846 = arith.mulf %841, %845 : vector<8x32xf32>
    %847 = arith.index_cast %c18_i32 : i32 to index
    %c0_184 = arith.constant 0 : index
    %c0_185 = arith.constant 0 : index
    %848 = vector.load %arg6[%847, %c0_184, %c0_185] : memref<27x32x128xf32, #tpu.memory_space<vmem>>, vector<1x32x128xf32>
    %849 = vector.shape_cast %848 : vector<1x32x128xf32> to vector<32x128xf32>
    %cst_186 = arith.constant dense<0.000000e+00> : vector<8x128xf32>
    %850 = tpu.matmul %846, %849, %cst_186 {dimension_numbers = #tpu.dot_dimension_numbers<[1], [0], [0], [1], [0, 0, 1, 1], [], []>} : vector<8x32xf32>, vector<32x128xf32>, vector<8x128xf32> -> vector<8x128xf32>
    %851 = arith.addf %807, %850 : vector<8x128xf32>
    %c19_i32 = arith.constant 19 : i32
    %c8_i32_187 = arith.constant 8 : i32
    %852 = arith.muli %c19_i32, %c8_i32_187 : i32
    %853 = tpu.assume_multiple %852, 8 : i32
    %854 = arith.index_cast %853 : i32 to index
    %c0_188 = arith.constant 0 : index
    %855 = vector.load %arg9[%854, %c0_188] : memref<216x128xf32, #tpu.memory_space<vmem>>, vector<8x128xf32>
    %cst_189 = arith.constant dense<0.000000e+00> : vector<8x128xf32>
    %856 = tpu.matmul %828, %7, %cst_189 {dimension_numbers = #tpu.dot_dimension_numbers<[1], [0], [0], [1], [0, 0, 1, 1], [], []>} : vector<8x32xf32>, vector<32x128xf32>, vector<8x128xf32> -> vector<8x128xf32>
    %857 = arith.addf %855, %856 : vector<8x128xf32>
    %858 = arith.negf %857 : vector<8x128xf32>
    %859 = math.exp %858 : vector<8x128xf32>
    %cst_190 = arith.constant 1.000000e+00 : f32
    %860 = vector.broadcast %cst_190 : f32 to vector<8x128xf32>
    %861 = arith.addf %860, %859 : vector<8x128xf32>
    %862 = arith.divf %860, %861 : vector<8x128xf32>
    %863 = math.tanh %857 : vector<8x128xf32>
    %864 = vector.extract_strided_slice %862 {offsets = [0, 0], sizes = [8, 32], strides = [1, 1]} : vector<8x128xf32> to vector<8x32xf32>
    %865 = vector.extract_strided_slice %862 {offsets = [0, 32], sizes = [8, 32], strides = [1, 1]} : vector<8x128xf32> to vector<8x32xf32>
    %866 = vector.extract_strided_slice %863 {offsets = [0, 64], sizes = [8, 32], strides = [1, 1]} : vector<8x128xf32> to vector<8x32xf32>
    %867 = vector.extract_strided_slice %862 {offsets = [0, 96], sizes = [8, 32], strides = [1, 1]} : vector<8x128xf32> to vector<8x32xf32>
    %868 = arith.mulf %865, %826 : vector<8x32xf32>
    %869 = arith.mulf %864, %866 : vector<8x32xf32>
    %870 = arith.addf %868, %869 : vector<8x32xf32>
    %871 = math.tanh %870 : vector<8x32xf32>
    %872 = arith.mulf %867, %871 : vector<8x32xf32>
    %873 = tpu.concatenate %872, %846 in 1 : vector<8x32xf32>, vector<8x32xf32> -> vector<8x64xf32>
    %cst_191 = arith.constant dense<0.000000e+00> : vector<8x128xf32>
    %874 = tpu.matmul %873, %8, %cst_191 {dimension_numbers = #tpu.dot_dimension_numbers<[1], [0], [0], [1], [0, 0, 1, 1], [], []>} : vector<8x64xf32>, vector<64x128xf32>, vector<8x128xf32> -> vector<8x128xf32>
    %875 = arith.addf %874, %11 : vector<8x128xf32>
    %876 = arith.negf %875 : vector<8x128xf32>
    %877 = math.exp %876 : vector<8x128xf32>
    %cst_192 = arith.constant 1.000000e+00 : f32
    %878 = vector.broadcast %cst_192 : f32 to vector<8x128xf32>
    %879 = arith.addf %878, %877 : vector<8x128xf32>
    %880 = arith.divf %878, %879 : vector<8x128xf32>
    %881 = math.tanh %875 : vector<8x128xf32>
    %882 = vector.extract_strided_slice %880 {offsets = [0, 0], sizes = [8, 32], strides = [1, 1]} : vector<8x128xf32> to vector<8x32xf32>
    %883 = vector.extract_strided_slice %880 {offsets = [0, 32], sizes = [8, 32], strides = [1, 1]} : vector<8x128xf32> to vector<8x32xf32>
    %884 = vector.extract_strided_slice %881 {offsets = [0, 64], sizes = [8, 32], strides = [1, 1]} : vector<8x128xf32> to vector<8x32xf32>
    %885 = vector.extract_strided_slice %880 {offsets = [0, 96], sizes = [8, 32], strides = [1, 1]} : vector<8x128xf32> to vector<8x32xf32>
    %886 = arith.mulf %883, %844 : vector<8x32xf32>
    %887 = arith.mulf %882, %884 : vector<8x32xf32>
    %888 = arith.addf %886, %887 : vector<8x32xf32>
    %889 = math.tanh %888 : vector<8x32xf32>
    %890 = arith.mulf %885, %889 : vector<8x32xf32>
    %891 = arith.index_cast %c19_i32 : i32 to index
    %c0_193 = arith.constant 0 : index
    %c0_194 = arith.constant 0 : index
    %892 = vector.load %arg6[%891, %c0_193, %c0_194] : memref<27x32x128xf32, #tpu.memory_space<vmem>>, vector<1x32x128xf32>
    %893 = vector.shape_cast %892 : vector<1x32x128xf32> to vector<32x128xf32>
    %cst_195 = arith.constant dense<0.000000e+00> : vector<8x128xf32>
    %894 = tpu.matmul %890, %893, %cst_195 {dimension_numbers = #tpu.dot_dimension_numbers<[1], [0], [0], [1], [0, 0, 1, 1], [], []>} : vector<8x32xf32>, vector<32x128xf32>, vector<8x128xf32> -> vector<8x128xf32>
    %895 = arith.addf %851, %894 : vector<8x128xf32>
    %c20_i32 = arith.constant 20 : i32
    %c8_i32_196 = arith.constant 8 : i32
    %896 = arith.muli %c20_i32, %c8_i32_196 : i32
    %897 = tpu.assume_multiple %896, 8 : i32
    %898 = arith.index_cast %897 : i32 to index
    %c0_197 = arith.constant 0 : index
    %899 = vector.load %arg9[%898, %c0_197] : memref<216x128xf32, #tpu.memory_space<vmem>>, vector<8x128xf32>
    %cst_198 = arith.constant dense<0.000000e+00> : vector<8x128xf32>
    %900 = tpu.matmul %872, %7, %cst_198 {dimension_numbers = #tpu.dot_dimension_numbers<[1], [0], [0], [1], [0, 0, 1, 1], [], []>} : vector<8x32xf32>, vector<32x128xf32>, vector<8x128xf32> -> vector<8x128xf32>
    %901 = arith.addf %899, %900 : vector<8x128xf32>
    %902 = arith.negf %901 : vector<8x128xf32>
    %903 = math.exp %902 : vector<8x128xf32>
    %cst_199 = arith.constant 1.000000e+00 : f32
    %904 = vector.broadcast %cst_199 : f32 to vector<8x128xf32>
    %905 = arith.addf %904, %903 : vector<8x128xf32>
    %906 = arith.divf %904, %905 : vector<8x128xf32>
    %907 = math.tanh %901 : vector<8x128xf32>
    %908 = vector.extract_strided_slice %906 {offsets = [0, 0], sizes = [8, 32], strides = [1, 1]} : vector<8x128xf32> to vector<8x32xf32>
    %909 = vector.extract_strided_slice %906 {offsets = [0, 32], sizes = [8, 32], strides = [1, 1]} : vector<8x128xf32> to vector<8x32xf32>
    %910 = vector.extract_strided_slice %907 {offsets = [0, 64], sizes = [8, 32], strides = [1, 1]} : vector<8x128xf32> to vector<8x32xf32>
    %911 = vector.extract_strided_slice %906 {offsets = [0, 96], sizes = [8, 32], strides = [1, 1]} : vector<8x128xf32> to vector<8x32xf32>
    %912 = arith.mulf %909, %870 : vector<8x32xf32>
    %913 = arith.mulf %908, %910 : vector<8x32xf32>
    %914 = arith.addf %912, %913 : vector<8x32xf32>
    %915 = math.tanh %914 : vector<8x32xf32>
    %916 = arith.mulf %911, %915 : vector<8x32xf32>
    %917 = tpu.concatenate %916, %890 in 1 : vector<8x32xf32>, vector<8x32xf32> -> vector<8x64xf32>
    %cst_200 = arith.constant dense<0.000000e+00> : vector<8x128xf32>
    %918 = tpu.matmul %917, %8, %cst_200 {dimension_numbers = #tpu.dot_dimension_numbers<[1], [0], [0], [1], [0, 0, 1, 1], [], []>} : vector<8x64xf32>, vector<64x128xf32>, vector<8x128xf32> -> vector<8x128xf32>
    %919 = arith.addf %918, %11 : vector<8x128xf32>
    %920 = arith.negf %919 : vector<8x128xf32>
    %921 = math.exp %920 : vector<8x128xf32>
    %cst_201 = arith.constant 1.000000e+00 : f32
    %922 = vector.broadcast %cst_201 : f32 to vector<8x128xf32>
    %923 = arith.addf %922, %921 : vector<8x128xf32>
    %924 = arith.divf %922, %923 : vector<8x128xf32>
    %925 = math.tanh %919 : vector<8x128xf32>
    %926 = vector.extract_strided_slice %924 {offsets = [0, 0], sizes = [8, 32], strides = [1, 1]} : vector<8x128xf32> to vector<8x32xf32>
    %927 = vector.extract_strided_slice %924 {offsets = [0, 32], sizes = [8, 32], strides = [1, 1]} : vector<8x128xf32> to vector<8x32xf32>
    %928 = vector.extract_strided_slice %925 {offsets = [0, 64], sizes = [8, 32], strides = [1, 1]} : vector<8x128xf32> to vector<8x32xf32>
    %929 = vector.extract_strided_slice %924 {offsets = [0, 96], sizes = [8, 32], strides = [1, 1]} : vector<8x128xf32> to vector<8x32xf32>
    %930 = arith.mulf %927, %888 : vector<8x32xf32>
    %931 = arith.mulf %926, %928 : vector<8x32xf32>
    %932 = arith.addf %930, %931 : vector<8x32xf32>
    %933 = math.tanh %932 : vector<8x32xf32>
    %934 = arith.mulf %929, %933 : vector<8x32xf32>
    %935 = arith.index_cast %c20_i32 : i32 to index
    %c0_202 = arith.constant 0 : index
    %c0_203 = arith.constant 0 : index
    %936 = vector.load %arg6[%935, %c0_202, %c0_203] : memref<27x32x128xf32, #tpu.memory_space<vmem>>, vector<1x32x128xf32>
    %937 = vector.shape_cast %936 : vector<1x32x128xf32> to vector<32x128xf32>
    %cst_204 = arith.constant dense<0.000000e+00> : vector<8x128xf32>
    %938 = tpu.matmul %934, %937, %cst_204 {dimension_numbers = #tpu.dot_dimension_numbers<[1], [0], [0], [1], [0, 0, 1, 1], [], []>} : vector<8x32xf32>, vector<32x128xf32>, vector<8x128xf32> -> vector<8x128xf32>
    %939 = arith.addf %895, %938 : vector<8x128xf32>
    %c21_i32 = arith.constant 21 : i32
    %c8_i32_205 = arith.constant 8 : i32
    %940 = arith.muli %c21_i32, %c8_i32_205 : i32
    %941 = tpu.assume_multiple %940, 8 : i32
    %942 = arith.index_cast %941 : i32 to index
    %c0_206 = arith.constant 0 : index
    %943 = vector.load %arg9[%942, %c0_206] : memref<216x128xf32, #tpu.memory_space<vmem>>, vector<8x128xf32>
    %cst_207 = arith.constant dense<0.000000e+00> : vector<8x128xf32>
    %944 = tpu.matmul %916, %7, %cst_207 {dimension_numbers = #tpu.dot_dimension_numbers<[1], [0], [0], [1], [0, 0, 1, 1], [], []>} : vector<8x32xf32>, vector<32x128xf32>, vector<8x128xf32> -> vector<8x128xf32>
    %945 = arith.addf %943, %944 : vector<8x128xf32>
    %946 = arith.negf %945 : vector<8x128xf32>
    %947 = math.exp %946 : vector<8x128xf32>
    %cst_208 = arith.constant 1.000000e+00 : f32
    %948 = vector.broadcast %cst_208 : f32 to vector<8x128xf32>
    %949 = arith.addf %948, %947 : vector<8x128xf32>
    %950 = arith.divf %948, %949 : vector<8x128xf32>
    %951 = math.tanh %945 : vector<8x128xf32>
    %952 = vector.extract_strided_slice %950 {offsets = [0, 0], sizes = [8, 32], strides = [1, 1]} : vector<8x128xf32> to vector<8x32xf32>
    %953 = vector.extract_strided_slice %950 {offsets = [0, 32], sizes = [8, 32], strides = [1, 1]} : vector<8x128xf32> to vector<8x32xf32>
    %954 = vector.extract_strided_slice %951 {offsets = [0, 64], sizes = [8, 32], strides = [1, 1]} : vector<8x128xf32> to vector<8x32xf32>
    %955 = vector.extract_strided_slice %950 {offsets = [0, 96], sizes = [8, 32], strides = [1, 1]} : vector<8x128xf32> to vector<8x32xf32>
    %956 = arith.mulf %953, %914 : vector<8x32xf32>
    %957 = arith.mulf %952, %954 : vector<8x32xf32>
    %958 = arith.addf %956, %957 : vector<8x32xf32>
    %959 = math.tanh %958 : vector<8x32xf32>
    %960 = arith.mulf %955, %959 : vector<8x32xf32>
    %961 = tpu.concatenate %960, %934 in 1 : vector<8x32xf32>, vector<8x32xf32> -> vector<8x64xf32>
    %cst_209 = arith.constant dense<0.000000e+00> : vector<8x128xf32>
    %962 = tpu.matmul %961, %8, %cst_209 {dimension_numbers = #tpu.dot_dimension_numbers<[1], [0], [0], [1], [0, 0, 1, 1], [], []>} : vector<8x64xf32>, vector<64x128xf32>, vector<8x128xf32> -> vector<8x128xf32>
    %963 = arith.addf %962, %11 : vector<8x128xf32>
    %964 = arith.negf %963 : vector<8x128xf32>
    %965 = math.exp %964 : vector<8x128xf32>
    %cst_210 = arith.constant 1.000000e+00 : f32
    %966 = vector.broadcast %cst_210 : f32 to vector<8x128xf32>
    %967 = arith.addf %966, %965 : vector<8x128xf32>
    %968 = arith.divf %966, %967 : vector<8x128xf32>
    %969 = math.tanh %963 : vector<8x128xf32>
    %970 = vector.extract_strided_slice %968 {offsets = [0, 0], sizes = [8, 32], strides = [1, 1]} : vector<8x128xf32> to vector<8x32xf32>
    %971 = vector.extract_strided_slice %968 {offsets = [0, 32], sizes = [8, 32], strides = [1, 1]} : vector<8x128xf32> to vector<8x32xf32>
    %972 = vector.extract_strided_slice %969 {offsets = [0, 64], sizes = [8, 32], strides = [1, 1]} : vector<8x128xf32> to vector<8x32xf32>
    %973 = vector.extract_strided_slice %968 {offsets = [0, 96], sizes = [8, 32], strides = [1, 1]} : vector<8x128xf32> to vector<8x32xf32>
    %974 = arith.mulf %971, %932 : vector<8x32xf32>
    %975 = arith.mulf %970, %972 : vector<8x32xf32>
    %976 = arith.addf %974, %975 : vector<8x32xf32>
    %977 = math.tanh %976 : vector<8x32xf32>
    %978 = arith.mulf %973, %977 : vector<8x32xf32>
    %979 = arith.index_cast %c21_i32 : i32 to index
    %c0_211 = arith.constant 0 : index
    %c0_212 = arith.constant 0 : index
    %980 = vector.load %arg6[%979, %c0_211, %c0_212] : memref<27x32x128xf32, #tpu.memory_space<vmem>>, vector<1x32x128xf32>
    %981 = vector.shape_cast %980 : vector<1x32x128xf32> to vector<32x128xf32>
    %cst_213 = arith.constant dense<0.000000e+00> : vector<8x128xf32>
    %982 = tpu.matmul %978, %981, %cst_213 {dimension_numbers = #tpu.dot_dimension_numbers<[1], [0], [0], [1], [0, 0, 1, 1], [], []>} : vector<8x32xf32>, vector<32x128xf32>, vector<8x128xf32> -> vector<8x128xf32>
    %983 = arith.addf %939, %982 : vector<8x128xf32>
    %c22_i32 = arith.constant 22 : i32
    %c8_i32_214 = arith.constant 8 : i32
    %984 = arith.muli %c22_i32, %c8_i32_214 : i32
    %985 = tpu.assume_multiple %984, 8 : i32
    %986 = arith.index_cast %985 : i32 to index
    %c0_215 = arith.constant 0 : index
    %987 = vector.load %arg9[%986, %c0_215] : memref<216x128xf32, #tpu.memory_space<vmem>>, vector<8x128xf32>
    %cst_216 = arith.constant dense<0.000000e+00> : vector<8x128xf32>
    %988 = tpu.matmul %960, %7, %cst_216 {dimension_numbers = #tpu.dot_dimension_numbers<[1], [0], [0], [1], [0, 0, 1, 1], [], []>} : vector<8x32xf32>, vector<32x128xf32>, vector<8x128xf32> -> vector<8x128xf32>
    %989 = arith.addf %987, %988 : vector<8x128xf32>
    %990 = arith.negf %989 : vector<8x128xf32>
    %991 = math.exp %990 : vector<8x128xf32>
    %cst_217 = arith.constant 1.000000e+00 : f32
    %992 = vector.broadcast %cst_217 : f32 to vector<8x128xf32>
    %993 = arith.addf %992, %991 : vector<8x128xf32>
    %994 = arith.divf %992, %993 : vector<8x128xf32>
    %995 = math.tanh %989 : vector<8x128xf32>
    %996 = vector.extract_strided_slice %994 {offsets = [0, 0], sizes = [8, 32], strides = [1, 1]} : vector<8x128xf32> to vector<8x32xf32>
    %997 = vector.extract_strided_slice %994 {offsets = [0, 32], sizes = [8, 32], strides = [1, 1]} : vector<8x128xf32> to vector<8x32xf32>
    %998 = vector.extract_strided_slice %995 {offsets = [0, 64], sizes = [8, 32], strides = [1, 1]} : vector<8x128xf32> to vector<8x32xf32>
    %999 = vector.extract_strided_slice %994 {offsets = [0, 96], sizes = [8, 32], strides = [1, 1]} : vector<8x128xf32> to vector<8x32xf32>
    %1000 = arith.mulf %997, %958 : vector<8x32xf32>
    %1001 = arith.mulf %996, %998 : vector<8x32xf32>
    %1002 = arith.addf %1000, %1001 : vector<8x32xf32>
    %1003 = math.tanh %1002 : vector<8x32xf32>
    %1004 = arith.mulf %999, %1003 : vector<8x32xf32>
    %1005 = tpu.concatenate %1004, %978 in 1 : vector<8x32xf32>, vector<8x32xf32> -> vector<8x64xf32>
    %cst_218 = arith.constant dense<0.000000e+00> : vector<8x128xf32>
    %1006 = tpu.matmul %1005, %8, %cst_218 {dimension_numbers = #tpu.dot_dimension_numbers<[1], [0], [0], [1], [0, 0, 1, 1], [], []>} : vector<8x64xf32>, vector<64x128xf32>, vector<8x128xf32> -> vector<8x128xf32>
    %1007 = arith.addf %1006, %11 : vector<8x128xf32>
    %1008 = arith.negf %1007 : vector<8x128xf32>
    %1009 = math.exp %1008 : vector<8x128xf32>
    %cst_219 = arith.constant 1.000000e+00 : f32
    %1010 = vector.broadcast %cst_219 : f32 to vector<8x128xf32>
    %1011 = arith.addf %1010, %1009 : vector<8x128xf32>
    %1012 = arith.divf %1010, %1011 : vector<8x128xf32>
    %1013 = math.tanh %1007 : vector<8x128xf32>
    %1014 = vector.extract_strided_slice %1012 {offsets = [0, 0], sizes = [8, 32], strides = [1, 1]} : vector<8x128xf32> to vector<8x32xf32>
    %1015 = vector.extract_strided_slice %1012 {offsets = [0, 32], sizes = [8, 32], strides = [1, 1]} : vector<8x128xf32> to vector<8x32xf32>
    %1016 = vector.extract_strided_slice %1013 {offsets = [0, 64], sizes = [8, 32], strides = [1, 1]} : vector<8x128xf32> to vector<8x32xf32>
    %1017 = vector.extract_strided_slice %1012 {offsets = [0, 96], sizes = [8, 32], strides = [1, 1]} : vector<8x128xf32> to vector<8x32xf32>
    %1018 = arith.mulf %1015, %976 : vector<8x32xf32>
    %1019 = arith.mulf %1014, %1016 : vector<8x32xf32>
    %1020 = arith.addf %1018, %1019 : vector<8x32xf32>
    %1021 = math.tanh %1020 : vector<8x32xf32>
    %1022 = arith.mulf %1017, %1021 : vector<8x32xf32>
    %1023 = arith.index_cast %c22_i32 : i32 to index
    %c0_220 = arith.constant 0 : index
    %c0_221 = arith.constant 0 : index
    %1024 = vector.load %arg6[%1023, %c0_220, %c0_221] : memref<27x32x128xf32, #tpu.memory_space<vmem>>, vector<1x32x128xf32>
    %1025 = vector.shape_cast %1024 : vector<1x32x128xf32> to vector<32x128xf32>
    %cst_222 = arith.constant dense<0.000000e+00> : vector<8x128xf32>
    %1026 = tpu.matmul %1022, %1025, %cst_222 {dimension_numbers = #tpu.dot_dimension_numbers<[1], [0], [0], [1], [0, 0, 1, 1], [], []>} : vector<8x32xf32>, vector<32x128xf32>, vector<8x128xf32> -> vector<8x128xf32>
    %1027 = arith.addf %983, %1026 : vector<8x128xf32>
    %c23_i32 = arith.constant 23 : i32
    %c8_i32_223 = arith.constant 8 : i32
    %1028 = arith.muli %c23_i32, %c8_i32_223 : i32
    %1029 = tpu.assume_multiple %1028, 8 : i32
    %1030 = arith.index_cast %1029 : i32 to index
    %c0_224 = arith.constant 0 : index
    %1031 = vector.load %arg9[%1030, %c0_224] : memref<216x128xf32, #tpu.memory_space<vmem>>, vector<8x128xf32>
    %cst_225 = arith.constant dense<0.000000e+00> : vector<8x128xf32>
    %1032 = tpu.matmul %1004, %7, %cst_225 {dimension_numbers = #tpu.dot_dimension_numbers<[1], [0], [0], [1], [0, 0, 1, 1], [], []>} : vector<8x32xf32>, vector<32x128xf32>, vector<8x128xf32> -> vector<8x128xf32>
    %1033 = arith.addf %1031, %1032 : vector<8x128xf32>
    %1034 = arith.negf %1033 : vector<8x128xf32>
    %1035 = math.exp %1034 : vector<8x128xf32>
    %cst_226 = arith.constant 1.000000e+00 : f32
    %1036 = vector.broadcast %cst_226 : f32 to vector<8x128xf32>
    %1037 = arith.addf %1036, %1035 : vector<8x128xf32>
    %1038 = arith.divf %1036, %1037 : vector<8x128xf32>
    %1039 = math.tanh %1033 : vector<8x128xf32>
    %1040 = vector.extract_strided_slice %1038 {offsets = [0, 0], sizes = [8, 32], strides = [1, 1]} : vector<8x128xf32> to vector<8x32xf32>
    %1041 = vector.extract_strided_slice %1038 {offsets = [0, 32], sizes = [8, 32], strides = [1, 1]} : vector<8x128xf32> to vector<8x32xf32>
    %1042 = vector.extract_strided_slice %1039 {offsets = [0, 64], sizes = [8, 32], strides = [1, 1]} : vector<8x128xf32> to vector<8x32xf32>
    %1043 = vector.extract_strided_slice %1038 {offsets = [0, 96], sizes = [8, 32], strides = [1, 1]} : vector<8x128xf32> to vector<8x32xf32>
    %1044 = arith.mulf %1041, %1002 : vector<8x32xf32>
    %1045 = arith.mulf %1040, %1042 : vector<8x32xf32>
    %1046 = arith.addf %1044, %1045 : vector<8x32xf32>
    %1047 = math.tanh %1046 : vector<8x32xf32>
    %1048 = arith.mulf %1043, %1047 : vector<8x32xf32>
    %1049 = tpu.concatenate %1048, %1022 in 1 : vector<8x32xf32>, vector<8x32xf32> -> vector<8x64xf32>
    %cst_227 = arith.constant dense<0.000000e+00> : vector<8x128xf32>
    %1050 = tpu.matmul %1049, %8, %cst_227 {dimension_numbers = #tpu.dot_dimension_numbers<[1], [0], [0], [1], [0, 0, 1, 1], [], []>} : vector<8x64xf32>, vector<64x128xf32>, vector<8x128xf32> -> vector<8x128xf32>
    %1051 = arith.addf %1050, %11 : vector<8x128xf32>
    %1052 = arith.negf %1051 : vector<8x128xf32>
    %1053 = math.exp %1052 : vector<8x128xf32>
    %cst_228 = arith.constant 1.000000e+00 : f32
    %1054 = vector.broadcast %cst_228 : f32 to vector<8x128xf32>
    %1055 = arith.addf %1054, %1053 : vector<8x128xf32>
    %1056 = arith.divf %1054, %1055 : vector<8x128xf32>
    %1057 = math.tanh %1051 : vector<8x128xf32>
    %1058 = vector.extract_strided_slice %1056 {offsets = [0, 0], sizes = [8, 32], strides = [1, 1]} : vector<8x128xf32> to vector<8x32xf32>
    %1059 = vector.extract_strided_slice %1056 {offsets = [0, 32], sizes = [8, 32], strides = [1, 1]} : vector<8x128xf32> to vector<8x32xf32>
    %1060 = vector.extract_strided_slice %1057 {offsets = [0, 64], sizes = [8, 32], strides = [1, 1]} : vector<8x128xf32> to vector<8x32xf32>
    %1061 = vector.extract_strided_slice %1056 {offsets = [0, 96], sizes = [8, 32], strides = [1, 1]} : vector<8x128xf32> to vector<8x32xf32>
    %1062 = arith.mulf %1059, %1020 : vector<8x32xf32>
    %1063 = arith.mulf %1058, %1060 : vector<8x32xf32>
    %1064 = arith.addf %1062, %1063 : vector<8x32xf32>
    %1065 = math.tanh %1064 : vector<8x32xf32>
    %1066 = arith.mulf %1061, %1065 : vector<8x32xf32>
    %1067 = arith.index_cast %c23_i32 : i32 to index
    %c0_229 = arith.constant 0 : index
    %c0_230 = arith.constant 0 : index
    %1068 = vector.load %arg6[%1067, %c0_229, %c0_230] : memref<27x32x128xf32, #tpu.memory_space<vmem>>, vector<1x32x128xf32>
    %1069 = vector.shape_cast %1068 : vector<1x32x128xf32> to vector<32x128xf32>
    %cst_231 = arith.constant dense<0.000000e+00> : vector<8x128xf32>
    %1070 = tpu.matmul %1066, %1069, %cst_231 {dimension_numbers = #tpu.dot_dimension_numbers<[1], [0], [0], [1], [0, 0, 1, 1], [], []>} : vector<8x32xf32>, vector<32x128xf32>, vector<8x128xf32> -> vector<8x128xf32>
    %1071 = arith.addf %1027, %1070 : vector<8x128xf32>
    %c24_i32 = arith.constant 24 : i32
    %c8_i32_232 = arith.constant 8 : i32
    %1072 = arith.muli %c24_i32, %c8_i32_232 : i32
    %1073 = tpu.assume_multiple %1072, 8 : i32
    %1074 = arith.index_cast %1073 : i32 to index
    %c0_233 = arith.constant 0 : index
    %1075 = vector.load %arg9[%1074, %c0_233] : memref<216x128xf32, #tpu.memory_space<vmem>>, vector<8x128xf32>
    %cst_234 = arith.constant dense<0.000000e+00> : vector<8x128xf32>
    %1076 = tpu.matmul %1048, %7, %cst_234 {dimension_numbers = #tpu.dot_dimension_numbers<[1], [0], [0], [1], [0, 0, 1, 1], [], []>} : vector<8x32xf32>, vector<32x128xf32>, vector<8x128xf32> -> vector<8x128xf32>
    %1077 = arith.addf %1075, %1076 : vector<8x128xf32>
    %1078 = arith.negf %1077 : vector<8x128xf32>
    %1079 = math.exp %1078 : vector<8x128xf32>
    %cst_235 = arith.constant 1.000000e+00 : f32
    %1080 = vector.broadcast %cst_235 : f32 to vector<8x128xf32>
    %1081 = arith.addf %1080, %1079 : vector<8x128xf32>
    %1082 = arith.divf %1080, %1081 : vector<8x128xf32>
    %1083 = math.tanh %1077 : vector<8x128xf32>
    %1084 = vector.extract_strided_slice %1082 {offsets = [0, 0], sizes = [8, 32], strides = [1, 1]} : vector<8x128xf32> to vector<8x32xf32>
    %1085 = vector.extract_strided_slice %1082 {offsets = [0, 32], sizes = [8, 32], strides = [1, 1]} : vector<8x128xf32> to vector<8x32xf32>
    %1086 = vector.extract_strided_slice %1083 {offsets = [0, 64], sizes = [8, 32], strides = [1, 1]} : vector<8x128xf32> to vector<8x32xf32>
    %1087 = vector.extract_strided_slice %1082 {offsets = [0, 96], sizes = [8, 32], strides = [1, 1]} : vector<8x128xf32> to vector<8x32xf32>
    %1088 = arith.mulf %1085, %1046 : vector<8x32xf32>
    %1089 = arith.mulf %1084, %1086 : vector<8x32xf32>
    %1090 = arith.addf %1088, %1089 : vector<8x32xf32>
    %1091 = math.tanh %1090 : vector<8x32xf32>
    %1092 = arith.mulf %1087, %1091 : vector<8x32xf32>
    %1093 = tpu.concatenate %1092, %1066 in 1 : vector<8x32xf32>, vector<8x32xf32> -> vector<8x64xf32>
    %cst_236 = arith.constant dense<0.000000e+00> : vector<8x128xf32>
    %1094 = tpu.matmul %1093, %8, %cst_236 {dimension_numbers = #tpu.dot_dimension_numbers<[1], [0], [0], [1], [0, 0, 1, 1], [], []>} : vector<8x64xf32>, vector<64x128xf32>, vector<8x128xf32> -> vector<8x128xf32>
    %1095 = arith.addf %1094, %11 : vector<8x128xf32>
    %1096 = arith.negf %1095 : vector<8x128xf32>
    %1097 = math.exp %1096 : vector<8x128xf32>
    %cst_237 = arith.constant 1.000000e+00 : f32
    %1098 = vector.broadcast %cst_237 : f32 to vector<8x128xf32>
    %1099 = arith.addf %1098, %1097 : vector<8x128xf32>
    %1100 = arith.divf %1098, %1099 : vector<8x128xf32>
    %1101 = math.tanh %1095 : vector<8x128xf32>
    %1102 = vector.extract_strided_slice %1100 {offsets = [0, 0], sizes = [8, 32], strides = [1, 1]} : vector<8x128xf32> to vector<8x32xf32>
    %1103 = vector.extract_strided_slice %1100 {offsets = [0, 32], sizes = [8, 32], strides = [1, 1]} : vector<8x128xf32> to vector<8x32xf32>
    %1104 = vector.extract_strided_slice %1101 {offsets = [0, 64], sizes = [8, 32], strides = [1, 1]} : vector<8x128xf32> to vector<8x32xf32>
    %1105 = vector.extract_strided_slice %1100 {offsets = [0, 96], sizes = [8, 32], strides = [1, 1]} : vector<8x128xf32> to vector<8x32xf32>
    %1106 = arith.mulf %1103, %1064 : vector<8x32xf32>
    %1107 = arith.mulf %1102, %1104 : vector<8x32xf32>
    %1108 = arith.addf %1106, %1107 : vector<8x32xf32>
    %1109 = math.tanh %1108 : vector<8x32xf32>
    %1110 = arith.mulf %1105, %1109 : vector<8x32xf32>
    %1111 = arith.index_cast %c24_i32 : i32 to index
    %c0_238 = arith.constant 0 : index
    %c0_239 = arith.constant 0 : index
    %1112 = vector.load %arg6[%1111, %c0_238, %c0_239] : memref<27x32x128xf32, #tpu.memory_space<vmem>>, vector<1x32x128xf32>
    %1113 = vector.shape_cast %1112 : vector<1x32x128xf32> to vector<32x128xf32>
    %cst_240 = arith.constant dense<0.000000e+00> : vector<8x128xf32>
    %1114 = tpu.matmul %1110, %1113, %cst_240 {dimension_numbers = #tpu.dot_dimension_numbers<[1], [0], [0], [1], [0, 0, 1, 1], [], []>} : vector<8x32xf32>, vector<32x128xf32>, vector<8x128xf32> -> vector<8x128xf32>
    %1115 = arith.addf %1071, %1114 : vector<8x128xf32>
    %c25_i32 = arith.constant 25 : i32
    %c8_i32_241 = arith.constant 8 : i32
    %1116 = arith.muli %c25_i32, %c8_i32_241 : i32
    %1117 = tpu.assume_multiple %1116, 8 : i32
    %1118 = arith.index_cast %1117 : i32 to index
    %c0_242 = arith.constant 0 : index
    %1119 = vector.load %arg9[%1118, %c0_242] : memref<216x128xf32, #tpu.memory_space<vmem>>, vector<8x128xf32>
    %cst_243 = arith.constant dense<0.000000e+00> : vector<8x128xf32>
    %1120 = tpu.matmul %1092, %7, %cst_243 {dimension_numbers = #tpu.dot_dimension_numbers<[1], [0], [0], [1], [0, 0, 1, 1], [], []>} : vector<8x32xf32>, vector<32x128xf32>, vector<8x128xf32> -> vector<8x128xf32>
    %1121 = arith.addf %1119, %1120 : vector<8x128xf32>
    %1122 = arith.negf %1121 : vector<8x128xf32>
    %1123 = math.exp %1122 : vector<8x128xf32>
    %cst_244 = arith.constant 1.000000e+00 : f32
    %1124 = vector.broadcast %cst_244 : f32 to vector<8x128xf32>
    %1125 = arith.addf %1124, %1123 : vector<8x128xf32>
    %1126 = arith.divf %1124, %1125 : vector<8x128xf32>
    %1127 = math.tanh %1121 : vector<8x128xf32>
    %1128 = vector.extract_strided_slice %1126 {offsets = [0, 0], sizes = [8, 32], strides = [1, 1]} : vector<8x128xf32> to vector<8x32xf32>
    %1129 = vector.extract_strided_slice %1126 {offsets = [0, 32], sizes = [8, 32], strides = [1, 1]} : vector<8x128xf32> to vector<8x32xf32>
    %1130 = vector.extract_strided_slice %1127 {offsets = [0, 64], sizes = [8, 32], strides = [1, 1]} : vector<8x128xf32> to vector<8x32xf32>
    %1131 = vector.extract_strided_slice %1126 {offsets = [0, 96], sizes = [8, 32], strides = [1, 1]} : vector<8x128xf32> to vector<8x32xf32>
    %1132 = arith.mulf %1129, %1090 : vector<8x32xf32>
    %1133 = arith.mulf %1128, %1130 : vector<8x32xf32>
    %1134 = arith.addf %1132, %1133 : vector<8x32xf32>
    %1135 = math.tanh %1134 : vector<8x32xf32>
    %1136 = arith.mulf %1131, %1135 : vector<8x32xf32>
    %1137 = tpu.concatenate %1136, %1110 in 1 : vector<8x32xf32>, vector<8x32xf32> -> vector<8x64xf32>
    %cst_245 = arith.constant dense<0.000000e+00> : vector<8x128xf32>
    %1138 = tpu.matmul %1137, %8, %cst_245 {dimension_numbers = #tpu.dot_dimension_numbers<[1], [0], [0], [1], [0, 0, 1, 1], [], []>} : vector<8x64xf32>, vector<64x128xf32>, vector<8x128xf32> -> vector<8x128xf32>
    %1139 = arith.addf %1138, %11 : vector<8x128xf32>
    %1140 = arith.negf %1139 : vector<8x128xf32>
    %1141 = math.exp %1140 : vector<8x128xf32>
    %cst_246 = arith.constant 1.000000e+00 : f32
    %1142 = vector.broadcast %cst_246 : f32 to vector<8x128xf32>
    %1143 = arith.addf %1142, %1141 : vector<8x128xf32>
    %1144 = arith.divf %1142, %1143 : vector<8x128xf32>
    %1145 = math.tanh %1139 : vector<8x128xf32>
    %1146 = vector.extract_strided_slice %1144 {offsets = [0, 0], sizes = [8, 32], strides = [1, 1]} : vector<8x128xf32> to vector<8x32xf32>
    %1147 = vector.extract_strided_slice %1144 {offsets = [0, 32], sizes = [8, 32], strides = [1, 1]} : vector<8x128xf32> to vector<8x32xf32>
    %1148 = vector.extract_strided_slice %1145 {offsets = [0, 64], sizes = [8, 32], strides = [1, 1]} : vector<8x128xf32> to vector<8x32xf32>
    %1149 = vector.extract_strided_slice %1144 {offsets = [0, 96], sizes = [8, 32], strides = [1, 1]} : vector<8x128xf32> to vector<8x32xf32>
    %1150 = arith.mulf %1147, %1108 : vector<8x32xf32>
    %1151 = arith.mulf %1146, %1148 : vector<8x32xf32>
    %1152 = arith.addf %1150, %1151 : vector<8x32xf32>
    %1153 = math.tanh %1152 : vector<8x32xf32>
    %1154 = arith.mulf %1149, %1153 : vector<8x32xf32>
    %1155 = arith.index_cast %c25_i32 : i32 to index
    %c0_247 = arith.constant 0 : index
    %c0_248 = arith.constant 0 : index
    %1156 = vector.load %arg6[%1155, %c0_247, %c0_248] : memref<27x32x128xf32, #tpu.memory_space<vmem>>, vector<1x32x128xf32>
    %1157 = vector.shape_cast %1156 : vector<1x32x128xf32> to vector<32x128xf32>
    %cst_249 = arith.constant dense<0.000000e+00> : vector<8x128xf32>
    %1158 = tpu.matmul %1154, %1157, %cst_249 {dimension_numbers = #tpu.dot_dimension_numbers<[1], [0], [0], [1], [0, 0, 1, 1], [], []>} : vector<8x32xf32>, vector<32x128xf32>, vector<8x128xf32> -> vector<8x128xf32>
    %1159 = arith.addf %1115, %1158 : vector<8x128xf32>
    %c26_i32 = arith.constant 26 : i32
    %c8_i32_250 = arith.constant 8 : i32
    %1160 = arith.muli %c26_i32, %c8_i32_250 : i32
    %1161 = tpu.assume_multiple %1160, 8 : i32
    %1162 = arith.index_cast %1161 : i32 to index
    %c0_251 = arith.constant 0 : index
    %1163 = vector.load %arg9[%1162, %c0_251] : memref<216x128xf32, #tpu.memory_space<vmem>>, vector<8x128xf32>
    %cst_252 = arith.constant dense<0.000000e+00> : vector<8x128xf32>
    %1164 = tpu.matmul %1136, %7, %cst_252 {dimension_numbers = #tpu.dot_dimension_numbers<[1], [0], [0], [1], [0, 0, 1, 1], [], []>} : vector<8x32xf32>, vector<32x128xf32>, vector<8x128xf32> -> vector<8x128xf32>
    %1165 = arith.addf %1163, %1164 : vector<8x128xf32>
    %1166 = arith.negf %1165 : vector<8x128xf32>
    %1167 = math.exp %1166 : vector<8x128xf32>
    %cst_253 = arith.constant 1.000000e+00 : f32
    %1168 = vector.broadcast %cst_253 : f32 to vector<8x128xf32>
    %1169 = arith.addf %1168, %1167 : vector<8x128xf32>
    %1170 = arith.divf %1168, %1169 : vector<8x128xf32>
    %1171 = math.tanh %1165 : vector<8x128xf32>
    %1172 = vector.extract_strided_slice %1170 {offsets = [0, 0], sizes = [8, 32], strides = [1, 1]} : vector<8x128xf32> to vector<8x32xf32>
    %1173 = vector.extract_strided_slice %1170 {offsets = [0, 32], sizes = [8, 32], strides = [1, 1]} : vector<8x128xf32> to vector<8x32xf32>
    %1174 = vector.extract_strided_slice %1171 {offsets = [0, 64], sizes = [8, 32], strides = [1, 1]} : vector<8x128xf32> to vector<8x32xf32>
    %1175 = vector.extract_strided_slice %1170 {offsets = [0, 96], sizes = [8, 32], strides = [1, 1]} : vector<8x128xf32> to vector<8x32xf32>
    %1176 = arith.mulf %1173, %1134 : vector<8x32xf32>
    %1177 = arith.mulf %1172, %1174 : vector<8x32xf32>
    %1178 = arith.addf %1176, %1177 : vector<8x32xf32>
    %1179 = math.tanh %1178 : vector<8x32xf32>
    %1180 = arith.mulf %1175, %1179 : vector<8x32xf32>
    %1181 = tpu.concatenate %1180, %1154 in 1 : vector<8x32xf32>, vector<8x32xf32> -> vector<8x64xf32>
    %cst_254 = arith.constant dense<0.000000e+00> : vector<8x128xf32>
    %1182 = tpu.matmul %1181, %8, %cst_254 {dimension_numbers = #tpu.dot_dimension_numbers<[1], [0], [0], [1], [0, 0, 1, 1], [], []>} : vector<8x64xf32>, vector<64x128xf32>, vector<8x128xf32> -> vector<8x128xf32>
    %1183 = arith.addf %1182, %11 : vector<8x128xf32>
    %1184 = arith.negf %1183 : vector<8x128xf32>
    %1185 = math.exp %1184 : vector<8x128xf32>
    %cst_255 = arith.constant 1.000000e+00 : f32
    %1186 = vector.broadcast %cst_255 : f32 to vector<8x128xf32>
    %1187 = arith.addf %1186, %1185 : vector<8x128xf32>
    %1188 = arith.divf %1186, %1187 : vector<8x128xf32>
    %1189 = math.tanh %1183 : vector<8x128xf32>
    %1190 = vector.extract_strided_slice %1188 {offsets = [0, 0], sizes = [8, 32], strides = [1, 1]} : vector<8x128xf32> to vector<8x32xf32>
    %1191 = vector.extract_strided_slice %1188 {offsets = [0, 32], sizes = [8, 32], strides = [1, 1]} : vector<8x128xf32> to vector<8x32xf32>
    %1192 = vector.extract_strided_slice %1189 {offsets = [0, 64], sizes = [8, 32], strides = [1, 1]} : vector<8x128xf32> to vector<8x32xf32>
    %1193 = vector.extract_strided_slice %1188 {offsets = [0, 96], sizes = [8, 32], strides = [1, 1]} : vector<8x128xf32> to vector<8x32xf32>
    %1194 = arith.mulf %1191, %1152 : vector<8x32xf32>
    %1195 = arith.mulf %1190, %1192 : vector<8x32xf32>
    %1196 = arith.addf %1194, %1195 : vector<8x32xf32>
    %1197 = math.tanh %1196 : vector<8x32xf32>
    %1198 = arith.mulf %1193, %1197 : vector<8x32xf32>
    %1199 = arith.index_cast %c26_i32 : i32 to index
    %c0_256 = arith.constant 0 : index
    %c0_257 = arith.constant 0 : index
    %1200 = vector.load %arg6[%1199, %c0_256, %c0_257] : memref<27x32x128xf32, #tpu.memory_space<vmem>>, vector<1x32x128xf32>
    %1201 = vector.shape_cast %1200 : vector<1x32x128xf32> to vector<32x128xf32>
    %cst_258 = arith.constant dense<0.000000e+00> : vector<8x128xf32>
    %1202 = tpu.matmul %1198, %1201, %cst_258 {dimension_numbers = #tpu.dot_dimension_numbers<[1], [0], [0], [1], [0, 0, 1, 1], [], []>} : vector<8x32xf32>, vector<32x128xf32>, vector<8x128xf32> -> vector<8x128xf32>
    %1203 = arith.addf %1159, %1202 : vector<8x128xf32>
    %c27_i32 = arith.constant 27 : i32
    %1204 = tpu.iota {dimensions = array<i32: 1>} : vector<8x128xi32>
    %c60_i32 = arith.constant 60 : i32
    %1205 = vector.broadcast %c60_i32 : i32 to vector<8x128xi32>
    %1206 = arith.cmpi slt, %1204, %1205 : vector<8x128xi32>
    %cst_259 = arith.constant -1.000000e+30 : f32
    %1207 = vector.broadcast %cst_259 : f32 to vector<8x128xf32>
    %1208 = arith.select %1206, %1203, %1207 : vector<8x128xi1>, vector<8x128xf32>
    %cst_260 = arith.constant dense<0xFF800000> : vector<8xf32>
    %1209 = vector.multi_reduction <maximumf>, %1208, %cst_260 [1] : vector<8x128xf32> to vector<8xf32>
    %1210 = vector.shape_cast %1209 : vector<8xf32> to vector<8x1xf32>
    %1211 = vector.broadcast %1210 : vector<8x1xf32> to vector<8x128xf32>
    %1212 = arith.subf %1208, %1211 : vector<8x128xf32>
    %1213 = math.exp %1212 : vector<8x128xf32>
    %cst_261 = arith.constant dense<0.000000e+00> : vector<8xf32>
    %1214 = vector.multi_reduction <add>, %1213, %cst_261 [1] : vector<8x128xf32> to vector<8xf32>
    %1215 = vector.shape_cast %1214 : vector<8xf32> to vector<8x1xf32>
    %1216 = math.log %1215 : vector<8x1xf32>
    %1217 = vector.broadcast %1216 : vector<8x1xf32> to vector<8x128xf32>
    %1218 = arith.subf %1212, %1217 : vector<8x128xf32>
    %1219 = vector.extract_strided_slice %1218 {offsets = [0, 0], sizes = [2, 60], strides = [1, 1]} : vector<8x128xf32> to vector<2x60xf32>
    %1220 = vector.extract_strided_slice %1218 {offsets = [2, 0], sizes = [2, 60], strides = [1, 1]} : vector<8x128xf32> to vector<2x60xf32>
    %1221 = arith.addf %1219, %1220 : vector<2x60xf32>
    %cst_262 = arith.constant 5.000000e-01 : f32
    %1222 = vector.broadcast %cst_262 : f32 to vector<2x60xf32>
    %1223 = arith.mulf %1221, %1222 : vector<2x60xf32>
    %c0_263 = arith.constant 0 : index
    %c0_264 = arith.constant 0 : index
    %1224 = vector.load %arg8[%c0_263, %c0_264] : memref<2x60xf32, #tpu.memory_space<vmem>>, vector<2x60xf32>
    tpu.vector_store %arg8[%c0_263, %c0_264], %1223 {strides = array<i32>} : memref<2x60xf32, #tpu.memory_space<vmem>>, vector<2x60xf32>,
    return
  }
}

</mosaic_0001>

<bundles_post_ra>
// kernel: spatial_rnn_forward.1
= control target key start
LH: loop header
LB: loop body
LE: loop exit
PB: predicated region body
PF: predicated region fallthrough
CT: control target
= control target key end

     0   :  { %13 = vsyncpa [#allocation4], 0  ;;  %s6966_s0 = inlined_call_operand.vmem [shape: f32[216,24], index: 0, kind: input, shape index: {}]   ;;  %s6967_s1 = inlined_call_operand.vmem [shape: f32[24,128], index: 1, kind: input, shape index: {}]   ;;  %s6968_s2 = inlined_call_operand.vmem [shape: f32[32,128], index: 2, kind: input, shape index: {}]   ;;  %s6969_s3 = inlined_call_operand.vmem [shape: f32[1,128], index: 3, kind: input, shape index: {}]   ;;  %s6970_s4 = inlined_call_operand.vmem [shape: f32[64,128], index: 4, kind: input, shape index: {}]   ;;  %s6971_s5 = inlined_call_operand.vmem [shape: f32[1,128], index: 5, kind: input, shape index: {}]   ;;  %s6972_s6 = inlined_call_operand.hbm [shape: f32[27,32,128], index: 6, kind: input, shape index: {}]   ;;  %s6973_s7 = inlined_call_operand.vmem [shape: f32[1,128], index: 7, kind: input, shape index: {}]   ;;  %s6974_s8 = inlined_call_operand.hbm [shape: f32[2,60], index: 8, kind: output, shape index: {}]  }
   0x1   :  { %14 = vsyncpa [#allocation5], 0  ;;  %s31_s29 = sshll.u32 %s6972_s6, 4  ;;  %s5406_s30 = smov [#allocation3]   ;;  %s32_s29 = int_to_ptr.hbm [resolvable:$true] %s31_s29 }
   0x2   :  { %s33_s9 = sshll.u32 %s5406_s30, 4  ;;  %s5407_s10 = smov 128   ;;  %s34_s9 = int_to_ptr.vmem [resolvable:$true] %s33_s9 }
   0x3   :  { %s5408_s11 = smov 8  }
   0x4   :  { %39 = dma.hbm_to_vmem [thread:$0]  %s32_s29, 13824, %s34_s9, [#allocation4], %s5407_s10, %s5407_s10, %s5408_s11  }
   0x5   :  { %5402 = dma.done.wait [#allocation4], 13824  }
   0x6   :  { %5403 = vsyncadd [#allocation4], 4294953472  ;;  %v75_v0 = vld [vmem:[%s6967_s1 + $0x10] sm:$0xff]  ;;  %v5467_v1 = vld [vmem:[%s6968_s2 + $0x18] sm:$0xff]  ;;  %vm80_vm0 = vcmask 195584   ;;  %v5409_v8 = vmov 0.0  }
   0x7   :  { %v74_v2 = vld [vmem:[%s6967_s1 + $0x8] sm:$0xff]  ;;  %175 = vmatpush.msra.mxu0 %v75_v0  ;;  %324 = vmatpush.msra.mxu1 %v5467_v1  ;;  %v5476_v3 = vld [vmem:[%s6968_s2 + $0x10] sm:$0xff]  ;;  %v73_v4 = vld [vmem:[%s6967_s1] sm:$0xff]  ;;  %s5410_s28 = smov 64   ;;  %s5411_s29 = smov 32   ;;  %vm308_vm5 = vcmask 261120  }
   0x8   :  { %v5484_v5 = vld [vmem:[%s6968_s2 + $0x8] sm:$0xff]  ;;  %v46_v6 = vld [vmem:[%s6966_s0] sm:$0xff]  ;;  %v5517_v34 = vld [vmem:[%s6970_s4 + $0x38] sm:$0xff]  ;;  %vm375_vm6 = vcmask 523264   ;;  %s4680_s30 = sshll.u32 %s6974_s8, 4  ;;  %s4681_s30 = int_to_ptr.hbm [resolvable:$true] %s4680_s30 }
   0x9   :  { %176 = vmatpush.msra.mxu0 %v74_v2  ;;  %325 = vmatpush.msra.mxu1 %v5476_v3  ;;  %v5493_v7 = vld [vmem:[%s6968_s2] sm:$0xff]  ;;  %v5522_v35 = vld [vmem:[%s6970_s4 + $0x30] sm:$0xff]  ;;  %v5529_v36 = vld [vmem:[%s6970_s4 + $0x28] sm:$0xff] }
   0xa   :  { %v5505_v9 = vld [vmem:[%s6969_s3] ss:$0 sm:$0xff]  ;;  %387 = vmatpush.msra.mxu2 %v5517_v34  ;;  %v47_v37 = vld [vmem:[%s6966_s0 + $0x8] sm:$0xff]  ;;  %v5546_v39 = vld [vmem:[%s6970_s4 + $0x18] sm:$0xff] }
   0xb   :  { %177 = vmatpush.msra.mxu0 %v73_v4  ;;  %326 = vmatpush.msra.mxu1 %v5484_v5  ;;  %v5539_v38 = vld [vmem:[%s6970_s4 + $0x20] sm:$0xff]  ;;  %v5553_v40 = vld [vmem:[%s6970_s4 + $0x10] sm:$0xff]  ;;  %v5560_v41 = vld [vmem:[%s6970_s4 + $0x8] sm:$0xff] }
   0xc   :  { %4690 = vmatmul.msk.f32.vlgmr.msra.gmra.mxu0 %vm80_vm0, %v46_v6  ;;  %388 = vmatpush.msra.mxu2 %v5522_v35  ;;  %v5571_v44 = vld [vmem:[%s6970_s4] sm:$0xff] }
   0xd   :  { %327 = vmatpush.msra.mxu1 %v5493_v7  ;;  %3606 = vmatpush.msrb.mxu0 %v5517_v34  ;;  %v5585_v47 = vld [vmem:[%s6971_s5] ss:$0 sm:$0xff] }
   0xe   :  { %328 = vmatmul.f32.vlgmr.msra.gmra.mxu1 %v5409_v8  ;;  %389 = vmatpush.msra.mxu2 %v5529_v36 }
   0xf   :  { %482 = vmatpush.msrb.mxu1 %v5467_v1  ;;  %3607 = vmatpush.msrb.mxu0 %v5522_v35 }
  0x10   :  { %390 = vmatpush.msra.mxu2 %v5539_v38 }
  0x11   :  { %483 = vmatpush.msrb.mxu1 %v5476_v3  ;;  %3608 = vmatpush.msrb.mxu0 %v5529_v36 }
  0x12   :  { %391 = vmatpush.msra.mxu2 %v5546_v39 }
  0x13   :  { %484 = vmatpush.msrb.mxu1 %v5484_v5  ;;  %3609 = vmatpush.msrb.mxu0 %v5539_v38 }
  0x14   :  { %4691 = vmatmul.msk.f32.gmra.mxu0 %vm80_vm0, %v47_v37  ;;  %392 = vmatpush.msra.mxu2 %v5553_v40 }
  0x15   :  { %485 = vmatpush.msrb.mxu1 %v5493_v7  ;;  %3610 = vmatpush.msrb.mxu0 %v5546_v39 }
  0x16   :  { %393 = vmatpush.msra.mxu2 %v5560_v41 }
  0x17   :  { %3611 = vmatpush.msrb.mxu0 %v5553_v40 }
  0x18   :  { %394 = vmatpush.msra.mxu2 %v5571_v44 }
  0x19   :  { %3612 = vmatpush.msrb.mxu0 %v5560_v41 }
  0x1a   :  { %643 = vmatpush.msrb.mxu2 %v5467_v1 }
  0x1b   :  { %3613 = vmatpush.msrb.mxu0 %v5571_v44 }
  0x1c   :  { %644 = vmatpush.msrb.mxu2 %v5476_v3 }
  0x1e   :  { %645 = vmatpush.msrb.mxu2 %v5484_v5 }
  0x20   :  { %646 = vmatpush.msrb.mxu2 %v5493_v7 }
  0x89   :  { %v179_v10 = vpop.f32.mrf.mxu0 }
  0x8a   :  { %v180_v11 = vadd.f32 %v5505_v9, %v179_v10 }
  0x8b   :  { %v329_v12 = vpop.f32.mrf.mxu1 }
  0x8c   :  { %v332_v13 = vadd.f32 %v329_v12, %v180_v11 }
  0x8e   :  { %4861 = vtanh.f32 %v332_v13  ;;  %v4717_v15 = vmul.f32 -1.442695, %v332_v13 }
  0x90   :  { %4863 = vpow2.f32 %v4717_v15 }
  0x91   :  { %v182_v48 = vpop.f32.mrf.mxu0 }
  0x92   :  { %v183_v51 = vadd.f32 %v5505_v9, %v182_v48  ;;  %v438_v48 = vld [vmem:[#allocation3 + $0x10] sm:$0xff] }
  0x94   :  { %v4862_v14 = vpop.eup %4861 }
  0x95   :  { %355 = vrot.lane.b32.xlu0 %v4862_v14, %s5410_s28 }
  0x96   :  { %v4864_v16 = vpop.eup %4863 }
  0x97   :  { %v336_v17 = vadd.f32 1.0, %v4864_v16 }
  0x99   :  { %4865 = vrcp.f32 %v336_v17  ;;  %v348_v23 = vand.u32 2147483648, %v336_v17  ;;  %vm342_vm2 = vweird.f32 %v336_v17  ;;  %v346_v24 = vand.u32 2147483647, %v336_v17 }
  0x9b   :  { %v349_v26 = vor.u32 1.1754944e-38, %v348_v23  ;;  %vm347_vm4 = vcmp.eq.f32.partialorder %v346_v24, 8.507059e+37 }
  0x9f   :  { %v4866_v18 = vpop.eup %4865 }
  0xa0   :  { %v338_v19 = vmul.f32 %v4866_v18, %v336_v17  ;;  %vm343_vm1 = vweird.f32 %v4866_v18 }
  0xa1   :  { %vm344_vm3 = vmor %vm342_vm2, %vm343_vm1 }
  0xa2   :  { %v339_v20 = vsub.f32 1.0, %v338_v19 }
  0xa4   :  { %v340_v21 = vmul.f32 %v4866_v18, %v339_v20 }
  0xa6   :  { %v341_v22 = vadd.f32 %v4866_v18, %v340_v21 }
  0xa8   :  { %v345_v25 = vsel %vm344_vm3, %v4866_v18, %v341_v22 }
  0xa9   :  { %v350_v28 = vsel %vm347_vm4, %v349_v26, %v345_v25 }
  0xaa   :  { %v353_v30 = vmul.f32 0.0, %v350_v28 }
 0x107   :  { %v356_v27 = vpop.permute.xlu0 %355 }
 0x108   :  { %v358_v29 = vmul.f32 %v356_v27, %v350_v28 }
 0x10a   :  { %360 = vrot.lane.b32.xlu0 %v358_v29, %s5411_s29 }
 0x17c   :  { %v361_v31 = vpop.permute.xlu0 %360 }
 0x17d   :  { %v5510_v32 = vadd.f32 %v361_v31, %v353_v30 }
 0x17f   :  { %4867 = vtanh.f32 %v5510_v32 }
 0x185   :  { %v4868_v33 = vpop.eup %4867 }
 0x186   :  { %366 = vrot.lane.b32.xlu1 %v4868_v33, %s5410_s28 }
 0x1f8   :  { %v367_v42 = vpop.permute.xlu1 %366 }
 0x1f9   :  { %v369_v43 = vmul.f32 %v367_v42, %v350_v28 }
 0x1fb   :  { %371 = vrot.lane.b32.xlu1 %v369_v43, %s5411_s29 }
 0x26d   :  { %v372_v45 = vpop.permute.xlu1 %371 }
 0x26e   :  { %4721 = vmatmul.msk.f32.vlgmr.msrb.gmra.mxu1 %vm308_vm5, %v372_v45  ;;  %v374_v46 = vsel %vm308_vm5, %v372_v45, 0.0 }
 0x26f   :  { %4718 = vmatmul.msk.f32.vlgmr.msra.gmra.mxu2 %vm375_vm6, %v374_v46  ;;  %v439_v46 = vld [vmem:[#allocation3 + $0x18] sm:$0xff] }
 0x270   :  { %457 = vmatpush.msra.mxu3 %v439_v46 }
 0x272   :  { %458 = vmatpush.msra.mxu3 %v438_v48 }
 0x2eb   :  { %v487_v52 = vpop.f32.mrf.mxu1 }
 0x2ec   :  { %v490_v53 = vadd.f32 %v487_v52, %v183_v51  ;;  %v48_v52 = vld [vmem:[%s6966_s0 + $0x10] sm:$0xff] }
 0x2ed   :  { %4692 = vmatmul.msk.f32.gmra.mxu0 %vm80_vm0, %v48_v52 }
 0x2ee   :  { %v4722_v57 = vmul.f32 -1.442695, %v490_v53 }
 0x2f2   :  { %v396_v49 = vpop.f32.mrf.mxu2 }
 0x2f3   :  { %v397_v50 = vadd.f32 %v5585_v47, %v396_v49  ;;  %v436_v49 = vld [vmem:[#allocation3] sm:$0xff] }
 0x2f5   :  { %4869 = vtanh.f32 %v397_v50  ;;  %v4719_v56 = vmul.f32 -1.442695, %v397_v50 }
 0x2f6   :  { %4871 = vtanh.f32 %v490_v53 }
 0x2f7   :  { %4873 = vpow2.f32 %v4719_v56 }
 0x2f8   :  { %4875 = vpow2.f32 %v4722_v57 }
 0x2fb   :  { %v4870_v54 = vpop.eup %4869 }
 0x2fc   :  { %421 = vrot.lane.b32.xlu2 %v4870_v54, %s5410_s28  ;;  %v4872_v55 = vpop.eup %4871 }
 0x2fd   :  { %v4874_v58 = vpop.eup %4873 }
 0x2fe   :  { %v402_v59 = vadd.f32 1.0, %v4874_v58  ;;  %v4876_v60 = vpop.eup %4875 }
 0x2ff   :  { %v494_v61 = vadd.f32 1.0, %v4876_v60 }
 0x300   :  { %4877 = vrcp.f32 %v402_v59  ;;  %v414_v11 = vand.u32 2147483648, %v402_v59  ;;  %vm408_vm8 = vweird.f32 %v402_v59  ;;  %v412_v12 = vand.u32 2147483647, %v402_v59 }
 0x301   :  { %4879 = vrcp.f32 %v494_v61  ;;  %v506_v20 = vand.u32 2147483648, %v494_v61  ;;  %vm500_vm12 = vweird.f32 %v494_v61  ;;  %v504_v21 = vand.u32 2147483647, %v494_v61 }
 0x302   :  { %v415_v15 = vor.u32 1.1754944e-38, %v414_v11  ;;  %vm413_vm10 = vcmp.eq.f32.partialorder %v412_v12, 8.507059e+37 }
 0x303   :  { %v507_v23 = vor.u32 1.1754944e-38, %v506_v20  ;;  %vm505_vm14 = vcmp.eq.f32.partialorder %v504_v21, 8.507059e+37 }
 0x304   :  { %513 = vrot.lane.b32.xlu2 %v4872_v55, %s5410_s28 }
 0x306   :  { %v4878_v62 = vpop.eup %4877 }
 0x307   :  { %v404_v63 = vmul.f32 %v4878_v62, %v402_v59  ;;  %v4880_v2 = vpop.eup %4879  ;;  %vm409_vm7 = vweird.f32 %v4878_v62 }
 0x308   :  { %v496_v6 = vmul.f32 %v4880_v2, %v494_v61  ;;  %vm410_vm9 = vmor %vm408_vm8, %vm409_vm7  ;;  %vm501_vm11 = vweird.f32 %v4880_v2 }
 0x309   :  { %v405_v0 = vsub.f32 1.0, %v404_v63  ;;  %vm502_vm13 = vmor %vm500_vm12, %vm501_vm11 }
 0x30a   :  { %v497_v10 = vsub.f32 1.0, %v496_v6 }
 0x30b   :  { %v406_v4 = vmul.f32 %v4878_v62, %v405_v0 }
 0x30c   :  { %v498_v14 = vmul.f32 %v4880_v2, %v497_v10 }
 0x30d   :  { %v407_v8 = vadd.f32 %v4878_v62, %v406_v4 }
 0x30e   :  { %v499_v19 = vadd.f32 %v4880_v2, %v498_v14 }
 0x30f   :  { %v411_v13 = vsel %vm410_vm9, %v4878_v62, %v407_v8 }
 0x310   :  { %v416_v17 = vsel %vm413_vm10, %v415_v15, %v411_v13  ;;  %v503_v22 = vsel %vm502_vm13, %v4880_v2, %v499_v19 }
 0x311   :  { %v508_v24 = vsel %vm505_vm14, %v507_v23, %v503_v22  ;;  %v419_v27 = vmul.f32 0.0, %v416_v17 }
 0x312   :  { %v511_v30 = vmul.f32 %v508_v24, %v5510_v32  ;;  %v437_v32 = vld [vmem:[#allocation3 + $0x8] sm:$0xff] }
 0x313   :  { %459 = vmatpush.msra.mxu3 %v437_v32 }
 0x315   :  { %460 = vmatpush.msra.mxu3 %v436_v49 }
 0x317   :  { %547 = vmatpush.msrb.mxu3 %v5517_v34 }
 0x319   :  { %548 = vmatpush.msrb.mxu3 %v5522_v35 }
 0x31b   :  { %549 = vmatpush.msrb.mxu3 %v5529_v36 }
 0x31d   :  { %550 = vmatpush.msrb.mxu3 %v5539_v38 }
 0x31f   :  { %551 = vmatpush.msrb.mxu3 %v5546_v39 }
 0x321   :  { %552 = vmatpush.msrb.mxu3 %v5553_v40 }
 0x323   :  { %553 = vmatpush.msrb.mxu3 %v5560_v41 }
 0x325   :  { %554 = vmatpush.msrb.mxu3 %v5571_v44 }
 0x356   :  { %v422_v16 = vpop.permute.xlu2 %421 }
 0x357   :  { %v424_v18 = vmul.f32 %v422_v16, %v416_v17 }
 0x359   :  { %426 = vrot.lane.b32.xlu0 %v424_v18, %s5411_s29 }
 0x35e   :  { %v514_v25 = vpop.permute.xlu2 %513 }
 0x35f   :  { %v516_v26 = vmul.f32 %v514_v25, %v508_v24 }
 0x361   :  { %518 = vrot.lane.b32.xlu1 %v516_v26, %s5411_s29 }
 0x36a   :  { %v185_v58 = vpop.f32.mrf.mxu0 }
 0x36b   :  { %v186_v59 = vadd.f32 %v5505_v9, %v185_v58 }
 0x3cb   :  { %v427_v28 = vpop.permute.xlu0 %426 }
 0x3cc   :  { %v5593_v29 = vadd.f32 %v427_v28, %v419_v27 }
 0x3ce   :  { %4881 = vtanh.f32 %v5593_v29 }
 0x3d3   :  { %v519_v31 = vpop.permute.xlu1 %518 }
 0x3d4   :  { %v4882_v33 = vpop.eup %4881  ;;  %v5597_v37 = vadd.f32 %v519_v31, %v511_v30 }
 0x3d5   :  { %432 = vrot.lane.b32.xlu2 %v4882_v33, %s5410_s28 }
 0x3d6   :  { %4883 = vtanh.f32 %v5597_v37 }
 0x3dc   :  { %v4884_v42 = vpop.eup %4883 }
 0x3dd   :  { %524 = vrot.lane.b32.xlu0 %v4884_v42, %s5410_s28 }
 0x42f   :  { %v433_v43 = vpop.permute.xlu2 %432 }
 0x430   :  { %v435_v45 = vmul.f32 %v433_v43, %v416_v17 }
 0x432   :  { %532 = vrot.lane.b32.xlu0 %v435_v45, %s5410_s28  ;;  %441 = vrot.lane.b32.xlu1 %v435_v45, %s5411_s29 }
 0x44f   :  { %v525_v50 = vpop.permute.xlu0 %524 }
 0x450   :  { %v527_v51 = vmul.f32 %v525_v50, %v508_v24 }
 0x452   :  { %529 = vrot.lane.b32.xlu2 %v527_v51, %s5411_s29 }
 0x4a4   :  { %v442_v53 = vpop.permute.xlu1 %441  ;;  %v533_v54 = vpop.permute.xlu0 %532 }
 0x4a5   :  { %4720 = vmatmul.msk.f32.vlgmr.msra.gmra.mxu3 %vm308_vm5, %v442_v53 }
 0x4a6   :  { %804 = vmatpush.msra.mxu3 %v5467_v1 }
 0x4a8   :  { %805 = vmatpush.msra.mxu3 %v5476_v3 }
 0x4aa   :  { %806 = vmatpush.msra.mxu3 %v5484_v5 }
 0x4ac   :  { %v530_v55 = vpop.permute.xlu2 %529  ;;  %807 = vmatpush.msra.mxu3 %v5493_v7 }
 0x4ad   :  { %4726 = vmatmul.msk.f32.vlgmr.msrb.gmra.mxu2 %vm308_vm5, %v530_v55  ;;  %v535_v56 = vsel %vm308_vm5, %v530_v55, %v533_v54 }
 0x4ae   :  { %4723 = vmatmul.msk.f32.vlgmr.msrb.gmra.mxu3 %vm375_vm6, %v535_v56 }
 0x528   :  { %v5625_v57 = vpop.f32.mrf.mxu3 }
 0x530   :  { %v648_v60 = vpop.f32.mrf.mxu2 }
 0x531   :  { %v651_v61 = vadd.f32 %v648_v60, %v186_v59  ;;  %v556_v62 = vpop.f32.mrf.mxu3  ;;  %v600_v60 = vld [vmem:[#allocation3 + $0x38] sm:$0xff] }
 0x532   :  { %v557_v63 = vadd.f32 %v5585_v47, %v556_v62  ;;  %618 = vmatpush.msra.mxu1 %v600_v60  ;;  %v598_v62 = vld [vmem:[#allocation3 + $0x28] sm:$0xff] }
 0x533   :  { %4885 = vtanh.f32 %v651_v61  ;;  %v4727_v4 = vmul.f32 -1.442695, %v651_v61  ;;  %v599_v61 = vld [vmem:[#allocation3 + $0x30] sm:$0xff] }
 0x534   :  { %4887 = vtanh.f32 %v557_v63  ;;  %v4724_v11 = vmul.f32 -1.442695, %v557_v63  ;;  %619 = vmatpush.msra.mxu1 %v599_v61  ;;  %v597_v63 = vld [vmem:[#allocation3 + $0x20] sm:$0xff] }
 0x535   :  { %4889 = vpow2.f32 %v4727_v4 }
 0x536   :  { %620 = vmatpush.msra.mxu1 %v598_v62 }
 0x538   :  { %621 = vmatpush.msra.mxu1 %v597_v63 }
 0x539   :  { %v4886_v0 = vpop.eup %4885 }
 0x53a   :  { %v4888_v2 = vpop.eup %4887  ;;  %674 = vrot.lane.b32.xlu2 %v4886_v0, %s5410_s28  ;;  %708 = vmatpush.msrb.mxu1 %v5517_v34 }
 0x53b   :  { %581 = vrot.lane.b32.xlu1 %v4888_v2, %s5410_s28  ;;  %v4890_v6 = vpop.eup %4889 }
 0x53c   :  { %v655_v8 = vadd.f32 1.0, %v4890_v6  ;;  %709 = vmatpush.msrb.mxu1 %v5522_v35 }
 0x53e   :  { %4891 = vrcp.f32 %v655_v8  ;;  %v667_v18 = vand.u32 2147483648, %v655_v8  ;;  %vm661_vm1 = vweird.f32 %v655_v8  ;;  %v665_v19 = vand.u32 2147483647, %v655_v8  ;;  %710 = vmatpush.msrb.mxu1 %v5529_v36 }
 0x53f   :  { %4893 = vpow2.f32 %v4724_v11 }
 0x540   :  { %v668_v21 = vor.u32 1.1754944e-38, %v667_v18  ;;  %vm666_vm3 = vcmp.eq.f32.partialorder %v665_v19, 8.507059e+37  ;;  %711 = vmatpush.msrb.mxu1 %v5539_v38 }
 0x542   :  { %712 = vmatpush.msrb.mxu1 %v5546_v39 }
 0x544   :  { %v4892_v10 = vpop.eup %4891  ;;  %713 = vmatpush.msrb.mxu1 %v5553_v40 }
 0x545   :  { %v657_v12 = vmul.f32 %v4892_v10, %v655_v8  ;;  %v4894_v15 = vpop.eup %4893  ;;  %vm662_vm15 = vweird.f32 %v4892_v10 }
 0x546   :  { %v562_v16 = vadd.f32 1.0, %v4894_v15  ;;  %vm663_vm2 = vmor %vm661_vm1, %vm662_vm15  ;;  %714 = vmatpush.msrb.mxu1 %v5560_v41 }
 0x547   :  { %v658_v13 = vsub.f32 1.0, %v657_v12 }
 0x548   :  { %4895 = vrcp.f32 %v562_v16  ;;  %v574_v31 = vand.u32 2147483648, %v562_v16  ;;  %vm568_vm7 = vweird.f32 %v562_v16  ;;  %v572_v33 = vand.u32 2147483647, %v562_v16  ;;  %715 = vmatpush.msrb.mxu1 %v5571_v44 }
 0x549   :  { %v659_v14 = vmul.f32 %v4892_v10, %v658_v13 }
 0x54a   :  { %v575_v43 = vor.u32 1.1754944e-38, %v574_v31  ;;  %vm573_vm9 = vcmp.eq.f32.partialorder %v572_v33, 8.507059e+37 }
 0x54b   :  { %v660_v17 = vadd.f32 %v4892_v10, %v659_v14 }
 0x54d   :  { %v664_v20 = vsel %vm663_vm2, %v4892_v10, %v660_v17 }
 0x54e   :  { %v669_v23 = vsel %vm666_vm3, %v668_v21, %v664_v20  ;;  %v4896_v25 = vpop.eup %4895 }
 0x54f   :  { %v564_v26 = vmul.f32 %v4896_v25, %v562_v16  ;;  %vm569_vm4 = vweird.f32 %v4896_v25  ;;  %v672_v32 = vmul.f32 %v669_v23, %v5597_v37 }
 0x550   :  { %vm570_vm8 = vmor %vm568_vm7, %vm569_vm4 }
 0x551   :  { %v565_v27 = vsub.f32 1.0, %v564_v26 }
 0x553   :  { %v566_v28 = vmul.f32 %v4896_v25, %v565_v27 }
 0x555   :  { %v567_v30 = vadd.f32 %v4896_v25, %v566_v28 }
 0x557   :  { %v571_v42 = vsel %vm570_vm8, %v4896_v25, %v567_v30 }
 0x558   :  { %v576_v46 = vsel %vm573_vm9, %v575_v43, %v571_v42 }
 0x559   :  { %v579_v52 = vmul.f32 %v576_v46, %v5593_v29  ;;  %v49_v29 = vld [vmem:[%s6966_s0 + $0x18] sm:$0xff] }
 0x55a   :  { %4693 = vmatmul.msk.f32.gmra.mxu0 %vm80_vm0, %v49_v29 }
 0x594   :  { %v675_v22 = vpop.permute.xlu2 %674 }
 0x595   :  { %v677_v24 = vmul.f32 %v675_v22, %v669_v23 }
 0x597   :  { %679 = vrot.lane.b32.xlu1 %v677_v24, %s5411_s29 }
 0x5ad   :  { %v582_v45 = vpop.permute.xlu1 %581 }
 0x5ae   :  { %v584_v48 = vmul.f32 %v582_v45, %v576_v46 }
 0x5b0   :  { %586 = vrot.lane.b32.xlu0 %v584_v48, %s5411_s29 }
 0x5d7   :  { %v188_v8 = vpop.f32.mrf.mxu0 }
 0x5d8   :  { %v189_v10 = vadd.f32 %v5505_v9, %v188_v8 }
 0x609   :  { %v680_v49 = vpop.permute.xlu1 %679 }
 0x60a   :  { %v5634_v50 = vadd.f32 %v680_v49, %v672_v32 }
 0x60c   :  { %4897 = vtanh.f32 %v5634_v50 }
 0x612   :  { %v4898_v51 = vpop.eup %4897 }
 0x613   :  { %685 = vrot.lane.b32.xlu0 %v4898_v51, %s5410_s28 }
 0x622   :  { %v587_v53 = vpop.permute.xlu0 %586 }
 0x623   :  { %v5639_v54 = vadd.f32 %v587_v53, %v579_v52 }
 0x625   :  { %4899 = vtanh.f32 %v5639_v54 }
 0x62b   :  { %v4900_v55 = vpop.eup %4899 }
 0x62c   :  { %592 = vrot.lane.b32.xlu2 %v4900_v55, %s5410_s28 }
 0x685   :  { %v686_v56 = vpop.permute.xlu0 %685 }
 0x686   :  { %v688_v37 = vmul.f32 %v686_v56, %v669_v23  ;;  %v593_v58 = vpop.permute.xlu2 %592 }
 0x687   :  { %v595_v59 = vmul.f32 %v593_v58, %v576_v46 }
 0x688   :  { %690 = vrot.lane.b32.xlu2 %v688_v37, %s5411_s29 }
 0x689   :  { %693 = vrot.lane.b32.xlu0 %v595_v59, %s5410_s28  ;;  %602 = vrot.lane.b32.xlu1 %v595_v59, %s5411_s29 }
 0x6e2   :  { %v691_v0 = vpop.permute.xlu2 %690 }
 0x6e3   :  { %4731 = vmatmul.msk.f32.vlgmr.msra.gmra.mxu3 %vm308_vm5, %v691_v0 }
 0x6fb   :  { %v603_v2 = vpop.permute.xlu1 %602  ;;  %v694_v4 = vpop.permute.xlu0 %693 }
 0x6fc   :  { %4725 = vmatmul.msk.f32.vlgmr.msra.gmra.mxu1 %vm308_vm5, %v603_v2  ;;  %v696_v6 = vsel %vm308_vm5, %v691_v0, %v694_v4 }
 0x6fd   :  { %965 = vmatpush.msra.mxu1 %v5467_v1 }
 0x6ff   :  { %966 = vmatpush.msra.mxu1 %v5476_v3 }
 0x701   :  { %967 = vmatpush.msra.mxu1 %v5484_v5 }
 0x703   :  { %968 = vmatpush.msra.mxu1 %v5493_v7 }
 0x704   :  { %4728 = vmatmul.msk.f32.vlgmr.msrb.gmra.mxu1 %vm375_vm6, %v696_v6 }
 0x766   :  { %v809_v11 = vpop.f32.mrf.mxu3 }
 0x767   :  { %v812_v12 = vadd.f32 %v809_v11, %v189_v10 }
 0x769   :  { %4901 = vtanh.f32 %v812_v12  ;;  %v4732_v18 = vmul.f32 -1.442695, %v812_v12  ;;  %v761_v12 = vld [vmem:[#allocation3 + $0x58] sm:$0xff] }
 0x76a   :  { %779 = vmatpush.msra.mxu2 %v761_v12 }
 0x76f   :  { %v4902_v13 = vpop.eup %4901 }
 0x770   :  { %835 = vrot.lane.b32.xlu2 %v4902_v13, %s5410_s28  ;;  %v760_v13 = vld [vmem:[#allocation3 + $0x50] sm:$0xff] }
 0x771   :  { %780 = vmatpush.msra.mxu2 %v760_v13 }
 0x779   :  { %v5668_v14 = vpop.f32.mrf.mxu1 }
 0x781   :  { %v717_v15 = vpop.f32.mrf.mxu1 }
 0x782   :  { %v718_v16 = vadd.f32 %v5585_v47, %v717_v15  ;;  %v759_v15 = vld [vmem:[#allocation3 + $0x48] sm:$0xff] }
 0x783   :  { %781 = vmatpush.msra.mxu2 %v759_v15 }
 0x784   :  { %4903 = vtanh.f32 %v718_v16  ;;  %v4729_v43 = vmul.f32 -1.442695, %v718_v16  ;;  %v758_v16 = vld [vmem:[#allocation3 + $0x40] sm:$0xff] }
 0x785   :  { %4905 = vpow2.f32 %v4732_v18  ;;  %782 = vmatpush.msra.mxu2 %v758_v16 }
 0x787   :  { %869 = vmatpush.msrb.mxu2 %v5517_v34 }
 0x789   :  { %870 = vmatpush.msrb.mxu2 %v5522_v35 }
 0x78a   :  { %v4904_v17 = vpop.eup %4903 }
 0x78b   :  { %742 = vrot.lane.b32.xlu1 %v4904_v17, %s5410_s28  ;;  %v4906_v19 = vpop.eup %4905  ;;  %871 = vmatpush.msrb.mxu2 %v5529_v36 }
 0x78c   :  { %v816_v20 = vadd.f32 1.0, %v4906_v19 }
 0x78d   :  { %872 = vmatpush.msrb.mxu2 %v5539_v38 }
 0x78e   :  { %4907 = vrcp.f32 %v816_v20  ;;  %v828_v26 = vand.u32 2147483648, %v816_v20  ;;  %vm822_vm11 = vweird.f32 %v816_v20  ;;  %v826_v27 = vand.u32 2147483647, %v816_v20 }
 0x78f   :  { %4909 = vpow2.f32 %v4729_v43  ;;  %873 = vmatpush.msrb.mxu2 %v5546_v39 }
 0x790   :  { %v829_v30 = vor.u32 1.1754944e-38, %v828_v26  ;;  %vm827_vm13 = vcmp.eq.f32.partialorder %v826_v27, 8.507059e+37 }
 0x791   :  { %874 = vmatpush.msrb.mxu2 %v5553_v40 }
 0x793   :  { %875 = vmatpush.msrb.mxu2 %v5560_v41 }
 0x794   :  { %v4908_v21 = vpop.eup %4907 }
 0x795   :  { %v818_v22 = vmul.f32 %v4908_v21, %v816_v20  ;;  %vm823_vm10 = vweird.f32 %v4908_v21  ;;  %v4910_v45 = vpop.eup %4909  ;;  %876 = vmatpush.msrb.mxu2 %v5571_v44 }
 0x796   :  { %vm824_vm12 = vmor %vm822_vm11, %vm823_vm10  ;;  %v723_v46 = vadd.f32 1.0, %v4910_v45 }
 0x797   :  { %v819_v23 = vsub.f32 1.0, %v818_v22 }
 0x798   :  { %4911 = vrcp.f32 %v723_v46  ;;  %v735_v53 = vand.u32 2147483648, %v723_v46  ;;  %vm729_vm15 = vweird.f32 %v723_v46  ;;  %v733_v55 = vand.u32 2147483647, %v723_v46 }
 0x799   :  { %v820_v24 = vmul.f32 %v4908_v21, %v819_v23 }
 0x79a   :  { %v736_v37 = vor.u32 1.1754944e-38, %v735_v53  ;;  %vm734_vm2 = vcmp.eq.f32.partialorder %v733_v55, 8.507059e+37 }
 0x79b   :  { %v821_v25 = vadd.f32 %v4908_v21, %v820_v24 }
 0x79d   :  { %v825_v28 = vsel %vm824_vm12, %v4908_v21, %v821_v25 }
 0x79e   :  { %v830_v33 = vsel %vm827_vm13, %v829_v30, %v825_v28  ;;  %v4912_v48 = vpop.eup %4911 }
 0x79f   :  { %v725_v32 = vmul.f32 %v4912_v48, %v723_v46  ;;  %vm730_vm14 = vweird.f32 %v4912_v48  ;;  %v833_v60 = vmul.f32 %v830_v33, %v5634_v50  ;;  %v50_v50 = vld [vmem:[%s6966_s0 + $0x20] sm:$0xff] }
 0x7a0   :  { %vm731_vm1 = vmor %vm729_vm15, %vm730_vm14  ;;  %4694 = vmatmul.msk.f32.gmra.mxu0 %vm80_vm0, %v50_v50 }
 0x7a1   :  { %v726_v49 = vsub.f32 1.0, %v725_v32 }
 0x7a3   :  { %v727_v51 = vmul.f32 %v4912_v48, %v726_v49 }
 0x7a5   :  { %v728_v52 = vadd.f32 %v4912_v48, %v727_v51 }
 0x7a7   :  { %v732_v56 = vsel %vm731_vm1, %v4912_v48, %v728_v52 }
 0x7a8   :  { %v737_v59 = vsel %vm734_vm2, %v736_v37, %v732_v56 }
 0x7a9   :  { %v740_v0 = vmul.f32 %v737_v59, %v5639_v54 }
 0x7ca   :  { %v836_v31 = vpop.permute.xlu2 %835 }
 0x7cb   :  { %v838_v42 = vmul.f32 %v836_v31, %v830_v33 }
 0x7cd   :  { %840 = vrot.lane.b32.xlu1 %v838_v42, %s5411_s29 }
 0x7fd   :  { %v743_v58 = vpop.permute.xlu1 %742 }
 0x7fe   :  { %v745_v29 = vmul.f32 %v743_v58, %v737_v59 }
 0x800   :  { %747 = vrot.lane.b32.xlu0 %v745_v29, %s5411_s29 }
 0x81d   :  { %v191_v21 = vpop.f32.mrf.mxu0 }
 0x81e   :  { %v192_v22 = vadd.f32 %v5505_v9, %v191_v21 }
 0x83f   :  { %v841_v61 = vpop.permute.xlu1 %840 }
 0x840   :  { %v5675_v62 = vadd.f32 %v841_v61, %v833_v60 }
 0x842   :  { %4913 = vtanh.f32 %v5675_v62 }
 0x848   :  { %v4914_v63 = vpop.eup %4913 }
 0x849   :  { %846 = vrot.lane.b32.xlu0 %v4914_v63, %s5410_s28 }
 0x872   :  { %v748_v2 = vpop.permute.xlu0 %747 }
 0x873   :  { %v5680_v4 = vadd.f32 %v748_v2, %v740_v0 }
 0x875   :  { %4915 = vtanh.f32 %v5680_v4 }
 0x87b   :  { %v4916_v6 = vpop.eup %4915 }
 0x87c   :  { %753 = vrot.lane.b32.xlu2 %v4916_v6, %s5410_s28 }
 0x8bb   :  { %v847_v8 = vpop.permute.xlu0 %846 }
 0x8bc   :  { %v849_v10 = vmul.f32 %v847_v8, %v830_v33 }
 0x8be   :  { %851 = vrot.lane.b32.xlu2 %v849_v10, %s5411_s29 }
 0x8d6   :  { %v754_v11 = vpop.permute.xlu2 %753 }
 0x8d7   :  { %v756_v54 = vmul.f32 %v754_v11, %v737_v59 }
 0x8d9   :  { %854 = vrot.lane.b32.xlu0 %v756_v54, %s5410_s28  ;;  %763 = vrot.lane.b32.xlu1 %v756_v54, %s5411_s29 }
 0x918   :  { %v852_v17 = vpop.permute.xlu2 %851 }
 0x919   :  { %4736 = vmatmul.msk.f32.vlgmr.msra.gmra.mxu1 %vm308_vm5, %v852_v17 }
 0x94b   :  { %v764_v18 = vpop.permute.xlu1 %763  ;;  %v855_v19 = vpop.permute.xlu0 %854 }
 0x94c   :  { %4730 = vmatmul.msk.f32.vlgmr.msra.gmra.mxu2 %vm308_vm5, %v764_v18  ;;  %v857_v20 = vsel %vm308_vm5, %v852_v17, %v855_v19 }
 0x94d   :  { %1126 = vmatpush.msra.mxu2 %v5467_v1  ;;  %v4860_v1 = vld [vmem:[%s6973_s7] ss:$0 sm:$0xff] }
 0x94f   :  { %1127 = vmatpush.msra.mxu2 %v5476_v3  ;;  %v465_v3 = vadd.f32 %v4860_v1, %v5625_v57 }
 0x951   :  { %1128 = vmatpush.msra.mxu2 %v5484_v5  ;;  %v626_v26 = vadd.f32 %v5668_v14, %v465_v3  ;;  %v919_v3 = vld [vmem:[#allocation3 + $0x60] sm:$0xff] }
 0x953   :  { %1129 = vmatpush.msra.mxu2 %v5493_v7 }
 0x954   :  { %4733 = vmatmul.msk.f32.vlgmr.msrb.gmra.mxu2 %vm375_vm6, %v857_v20 }
 0x996   :  { %v970_v23 = vpop.f32.mrf.mxu1 }
 0x997   :  { %v973_v24 = vadd.f32 %v970_v23, %v192_v22  ;;  %v51_v22 = vld [vmem:[%s6966_s0 + $0x28] sm:$0xff]  ;;  %v922_v23 = vld [vmem:[#allocation3 + $0x78] sm:$0xff] }
 0x998   :  { %4695 = vmatmul.msk.f32.gmra.mxu0 %vm80_vm0, %v51_v22  ;;  %940 = vmatpush.msrb.mxu3 %v922_v23  ;;  %v52_v23 = vld [vmem:[%s6966_s0 + $0x30] sm:$0xff] }
 0x999   :  { %4917 = vtanh.f32 %v973_v24  ;;  %v4737_v5 = vmul.f32 -1.442695, %v973_v24  ;;  %v921_v24 = vld [vmem:[#allocation3 + $0x70] sm:$0xff] }
 0x99a   :  { %941 = vmatpush.msrb.mxu3 %v921_v24  ;;  %v1083_v24 = vld [vmem:[#allocation3 + $0x98] sm:$0xff] }
 0x99b   :  { %4919 = vpow2.f32 %v4737_v5  ;;  %1101 = vmatpush.msrb.mxu1 %v1083_v24 }
 0x99f   :  { %v4918_v25 = vpop.eup %4917 }
 0x9a0   :  { %996 = vrot.lane.b32.xlu2 %v4918_v25, %s5410_s28  ;;  %4696 = vmatmul.msk.f32.gmra.mxu0 %vm80_vm0, %v52_v23 }
 0x9a1   :  { %v4920_v30 = vpop.eup %4919 }
 0x9a2   :  { %v977_v42 = vadd.f32 1.0, %v4920_v30 }
 0x9a4   :  { %v989_v14 = vand.u32 2147483648, %v977_v42  ;;  %vm983_vm4 = vweird.f32 %v977_v42  ;;  %v987_v49 = vand.u32 2147483647, %v977_v42 }
 0x9a6   :  { %v990_v52 = vor.u32 1.1754944e-38, %v989_v14  ;;  %vm988_vm8 = vcmp.eq.f32.partialorder %v987_v49, 8.507059e+37 }
 0x9cf   :  { %v784_v27 = vpop.f32.mrf.mxu2 }
 0x9d0   :  { %v5714_v28 = vadd.f32 %v784_v27, %v626_v26 }
 0x9d7   :  { %v878_v31 = vpop.f32.mrf.mxu2 }
 0x9d8   :  { %v879_v33 = vadd.f32 %v5585_v47, %v878_v31 }
 0x9da   :  { %4921 = vtanh.f32 %v879_v33  ;;  %v4734_v37 = vmul.f32 -1.442695, %v879_v33 }
 0x9db   :  { %4923 = vrcp.f32 %v977_v42 }
 0x9dc   :  { %4925 = vpow2.f32 %v4734_v37 }
 0x9e0   :  { %v4922_v43 = vpop.eup %4921 }
 0x9e1   :  { %903 = vrot.lane.b32.xlu1 %v4922_v43, %s5410_s28  ;;  %v4924_v45 = vpop.eup %4923 }
 0x9e2   :  { %v979_v46 = vmul.f32 %v4924_v45, %v977_v42  ;;  %vm984_vm3 = vweird.f32 %v4924_v45  ;;  %v4926_v58 = vpop.eup %4925 }
 0x9e3   :  { %vm985_vm7 = vmor %vm983_vm4, %vm984_vm3  ;;  %v884_v59 = vadd.f32 1.0, %v4926_v58 }
 0x9e4   :  { %v980_v57 = vsub.f32 1.0, %v979_v46 }
 0x9e5   :  { %4927 = vrcp.f32 %v884_v59  ;;  %v896_v2 = vand.u32 2147483648, %v884_v59  ;;  %vm890_vm10 = vweird.f32 %v884_v59  ;;  %v894_v6 = vand.u32 2147483647, %v884_v59 }
 0x9e6   :  { %v981_v48 = vmul.f32 %v4924_v45, %v980_v57 }
 0x9e7   :  { %v897_v8 = vor.u32 1.1754944e-38, %v896_v2  ;;  %vm895_vm12 = vcmp.eq.f32.partialorder %v894_v6, 8.507059e+37 }
 0x9e8   :  { %v982_v32 = vadd.f32 %v4924_v45, %v981_v48 }
 0x9ea   :  { %v986_v51 = vsel %vm985_vm7, %v4924_v45, %v982_v32 }
 0x9eb   :  { %v991_v55 = vsel %vm988_vm8, %v990_v52, %v986_v51  ;;  %v4928_v29 = vpop.eup %4927 }
 0x9ec   :  { %v886_v60 = vmul.f32 %v4928_v29, %v884_v59  ;;  %vm891_vm9 = vweird.f32 %v4928_v29  ;;  %v994_v12 = vmul.f32 %v991_v55, %v5675_v62 }
 0x9ed   :  { %vm892_vm11 = vmor %vm890_vm10, %vm891_vm9 }
 0x9ee   :  { %v887_v61 = vsub.f32 1.0, %v886_v60 }
 0x9f0   :  { %v888_v63 = vmul.f32 %v4928_v29, %v887_v61 }
 0x9f2   :  { %v889_v0 = vadd.f32 %v4928_v29, %v888_v63 }
 0x9f4   :  { %v893_v50 = vsel %vm892_vm11, %v4928_v29, %v889_v0 }
 0x9f5   :  { %v898_v11 = vsel %vm895_vm12, %v897_v8, %v893_v50 }
 0x9f6   :  { %v901_v17 = vmul.f32 %v898_v11, %v5680_v4  ;;  %v920_v4 = vld [vmem:[#allocation3 + $0x68] sm:$0xff] }
 0x9f7   :  { %942 = vmatpush.msrb.mxu3 %v920_v4  ;;  %v1082_v4 = vld [vmem:[#allocation3 + $0x90] sm:$0xff] }
 0x9f8   :  { %1102 = vmatpush.msrb.mxu1 %v1082_v4 }
 0x9f9   :  { %943 = vmatpush.msrb.mxu3 %v919_v3  ;;  %v5801_v3 = vld [vmem:[%s6970_s4 + $0x30] sm:$0xff] }
 0x9fa   :  { %v997_v53 = vpop.permute.xlu2 %996 }
 0x9fb   :  { %v999_v56 = vmul.f32 %v997_v53, %v991_v55  ;;  %1030 = vmatpush.msra.mxu3 %v5517_v34  ;;  %v5750_v34 = vld [vmem:[%s6968_s2 + $0x18] sm:$0xff] }
 0x9fd   :  { %1001 = vrot.lane.b32.xlu1 %v999_v56, %s5411_s29  ;;  %1031 = vmatpush.msra.mxu3 %v5522_v35  ;;  %v5756_v35 = vld [vmem:[%s6968_s2 + $0x10] sm:$0xff] }
 0x9ff   :  { %1032 = vmatpush.msra.mxu3 %v5529_v36 }
 0xa01   :  { %1033 = vmatpush.msra.mxu3 %v5539_v38  ;;  %v5762_v38 = vld [vmem:[%s6968_s2 + $0x8] sm:$0xff] }
 0xa03   :  { %1034 = vmatpush.msra.mxu3 %v5546_v39 }
 0xa05   :  { %1035 = vmatpush.msra.mxu3 %v5553_v40 }
 0xa07   :  { %1036 = vmatpush.msra.mxu3 %v5560_v41 }
 0xa09   :  { %1037 = vmatpush.msra.mxu3 %v5571_v44 }
 0xa15   :  { %v194_v40 = vpop.f32.mrf.mxu0 }
 0xa16   :  { %v195_v41 = vadd.f32 %v5505_v9, %v194_v40  ;;  %v5831_v40 = vld [vmem:[%s6970_s4 + $0x8] sm:$0xff] }
 0xa53   :  { %v904_v10 = vpop.permute.xlu1 %903 }
 0xa54   :  { %v906_v54 = vmul.f32 %v904_v10, %v898_v11 }
 0xa56   :  { %908 = vrot.lane.b32.xlu0 %v906_v54, %s5411_s29 }
 0xa6f   :  { %v1002_v13 = vpop.permute.xlu1 %1001 }
 0xa70   :  { %v5721_v15 = vadd.f32 %v1002_v13, %v994_v12 }
 0xa72   :  { %4929 = vtanh.f32 %v5721_v15 }
 0xa78   :  { %v4930_v16 = vpop.eup %4929 }
 0xa79   :  { %1007 = vrot.lane.b32.xlu0 %v4930_v16, %s5410_s28 }
 0xac8   :  { %v909_v18 = vpop.permute.xlu0 %908 }
 0xac9   :  { %v5726_v19 = vadd.f32 %v909_v18, %v901_v17 }
 0xacb   :  { %4931 = vtanh.f32 %v5726_v19 }
 0xad1   :  { %v4932_v20 = vpop.eup %4931 }
 0xad2   :  { %914 = vrot.lane.b32.xlu2 %v4932_v20, %s5410_s28 }
 0xaeb   :  { %v1008_v21 = vpop.permute.xlu0 %1007 }
 0xaec   :  { %v1010_v62 = vmul.f32 %v1008_v21, %v991_v55 }
 0xaee   :  { %1012 = vrot.lane.b32.xlu2 %v1010_v62, %s5411_s29 }
 0xb2c   :  { %v915_v25 = vpop.permute.xlu2 %914 }
 0xb2d   :  { %v917_v1 = vmul.f32 %v915_v25, %v898_v11  ;;  %v1080_v25 = vld [vmem:[#allocation3 + $0x80] sm:$0xff] }
 0xb2f   :  { %1015 = vrot.lane.b32.xlu0 %v917_v1, %s5410_s28  ;;  %924 = vrot.lane.b32.xlu1 %v917_v1, %s5411_s29  ;;  %v5795_v1 = vld [vmem:[%s6970_s4 + $0x38] sm:$0xff] }
 0xb48   :  { %v1013_v5 = vpop.permute.xlu2 %1012 }
 0xb49   :  { %4741 = vmatmul.msk.f32.vlgmr.msra.gmra.mxu2 %vm308_vm5, %v1013_v5 }
 0xba1   :  { %v925_v26 = vpop.permute.xlu1 %924  ;;  %v1016_v36 = vpop.permute.xlu0 %1015 }
 0xba2   :  { %4735 = vmatmul.msk.f32.vlgmr.msrb.gmra.mxu3 %vm308_vm5, %v925_v26  ;;  %v1018_v39 = vsel %vm308_vm5, %v1013_v5, %v1016_v36  ;;  %v5807_v5 = vld [vmem:[%s6970_s4 + $0x28] sm:$0xff]  ;;  %v5813_v26 = vld [vmem:[%s6970_s4 + $0x20] sm:$0xff]  ;;  %v5819_v36 = vld [vmem:[%s6970_s4 + $0x18] sm:$0xff] }
 0xba3   :  { %1287 = vmatpush.msrb.mxu3 %v5750_v34 }
 0xba5   :  { %1288 = vmatpush.msrb.mxu3 %v5756_v35 }
 0xba7   :  { %1289 = vmatpush.msrb.mxu3 %v5762_v38 }
 0xba9   :  { %1290 = vmatpush.msrb.mxu3 %v5493_v7 }
 0xbaa   :  { %4738 = vmatmul.msk.f32.vlgmr.msra.gmra.mxu3 %vm375_vm6, %v1018_v39  ;;  %v5825_v39 = vld [vmem:[%s6970_s4 + $0x10] sm:$0xff] }
 0xbcc   :  { %v1131_v44 = vpop.f32.mrf.mxu2 }
 0xbcd   :  { %v1134_v27 = vadd.f32 %v1131_v44, %v195_v41  ;;  %v5837_v41 = vld [vmem:[%s6970_s4] sm:$0xff] }
 0xbcf   :  { %4933 = vtanh.f32 %v1134_v27  ;;  %v4742_v31 = vmul.f32 -1.442695, %v1134_v27 }
 0xbd1   :  { %4935 = vpow2.f32 %v4742_v31 }
 0xbd5   :  { %v4934_v30 = vpop.eup %4933 }
 0xbd6   :  { %1157 = vrot.lane.b32.xlu2 %v4934_v30, %s5410_s28 }
 0xbd7   :  { %v4936_v33 = vpop.eup %4935 }
 0xbd8   :  { %v1138_v42 = vadd.f32 1.0, %v4936_v33 }
 0xbda   :  { %4937 = vrcp.f32 %v1138_v42  ;;  %v1150_v51 = vand.u32 2147483648, %v1138_v42  ;;  %vm1144_vm14 = vweird.f32 %v1138_v42  ;;  %v1148_v52 = vand.u32 2147483647, %v1138_v42 }
 0xbdc   :  { %vm1149_vm1 = vcmp.eq.f32.partialorder %v1148_v52, 8.507059e+37 }
 0xbe0   :  { %v4938_v45 = vpop.eup %4937 }
 0xbe1   :  { %v1140_v46 = vmul.f32 %v4938_v45, %v1138_v42  ;;  %vm1145_vm13 = vweird.f32 %v4938_v45 }
 0xbe2   :  { %vm1146_vm15 = vmor %vm1144_vm14, %vm1145_vm13 }
 0xbe3   :  { %v1141_v48 = vsub.f32 1.0, %v1140_v46  ;;  %v5858_v46 = vld [vmem:[%s6969_s3] ss:$0 sm:$0xff] }
 0xbe5   :  { %v1142_v32 = vmul.f32 %v4938_v45, %v1141_v48 }
 0xbe7   :  { %v1143_v14 = vadd.f32 %v4938_v45, %v1142_v32 }
 0xbe9   :  { %v1147_v53 = vsel %vm1146_vm15, %v4938_v45, %v1143_v14  ;;  %v197_v45 = vpop.f32.mrf.mxu0 }
 0xc25   :  { %v945_v43 = vpop.f32.mrf.mxu3 }
 0xc26   :  { %v5771_v7 = vadd.f32 %v945_v43, %v5714_v28  ;;  %v1151_v28 = vor.u32 1.1754944e-38, %v1150_v51  ;;  %v5851_v43 = vld [vmem:[%s6968_s2] sm:$0xff] }
 0xc28   :  { %v1152_v56 = vsel %vm1149_vm1, %v1151_v28, %v1147_v53 }
 0xc29   :  { %v1155_v12 = vmul.f32 %v1152_v56, %v5721_v15 }
 0xc2d   :  { %v1039_v57 = vpop.f32.mrf.mxu3 }
 0xc2e   :  { %v1040_v9 = vadd.f32 %v5585_v47, %v1039_v57  ;;  %v198_v57 = vadd.f32 %v5858_v46, %v197_v45 }
 0xc30   :  { %4939 = vtanh.f32 %v1040_v9  ;;  %v1158_v55 = vpop.permute.xlu2 %1157  ;;  %v4739_v47 = vmul.f32 -1.442695, %v1040_v9 }
 0xc31   :  { %v1160_v37 = vmul.f32 %v1158_v55, %v1152_v56 }
 0xc32   :  { %4941 = vpow2.f32 %v4739_v47  ;;  %v5868_v47 = vld [vmem:[%s6971_s5] ss:$0 sm:$0xff] }
 0xc36   :  { %v4940_v49 = vpop.eup %4939 }
 0xc37   :  { %1064 = vrot.lane.b32.xlu1 %v4940_v49, %s5410_s28 }
 0xc38   :  { %v4942_v58 = vpop.eup %4941 }
 0xc39   :  { %v1045_v59 = vadd.f32 1.0, %v4942_v58 }
 0xc3b   :  { %4943 = vrcp.f32 %v1045_v59  ;;  %v1057_v2 = vand.u32 2147483648, %v1045_v59  ;;  %vm1051_vm3 = vweird.f32 %v1045_v59  ;;  %v1055_v6 = vand.u32 2147483647, %v1045_v59 }
 0xc3d   :  { %v1058_v8 = vor.u32 1.1754944e-38, %v1057_v2  ;;  %vm1056_vm7 = vcmp.eq.f32.partialorder %v1055_v6, 8.507059e+37 }
 0xc3f   :  { %1162 = vrot.lane.b32.xlu1 %v1160_v37, %s5411_s29 }
 0xc41   :  { %v4944_v29 = vpop.eup %4943 }
 0xc42   :  { %v1047_v60 = vmul.f32 %v4944_v29, %v1045_v59  ;;  %vm1052_vm2 = vweird.f32 %v4944_v29 }
 0xc43   :  { %vm1053_vm4 = vmor %vm1051_vm3, %vm1052_vm2 }
 0xc44   :  { %v1048_v61 = vsub.f32 1.0, %v1047_v60 }
 0xc46   :  { %v1049_v63 = vmul.f32 %v4944_v29, %v1048_v61 }
 0xc48   :  { %v1050_v0 = vadd.f32 %v4944_v29, %v1049_v63 }
 0xc4a   :  { %v1054_v50 = vsel %vm1053_vm4, %v4944_v29, %v1050_v0 }
 0xc4b   :  { %v1059_v11 = vsel %vm1056_vm7, %v1058_v8, %v1054_v50 }
 0xc4c   :  { %v1062_v18 = vmul.f32 %v1059_v11, %v5726_v19  ;;  %v1081_v19 = vld [vmem:[#allocation3 + $0x88] sm:$0xff] }
 0xc4d   :  { %1103 = vmatpush.msrb.mxu1 %v1081_v19 }
 0xc4f   :  { %1104 = vmatpush.msrb.mxu1 %v1080_v25 }
 0xc51   :  { %1191 = vmatpush.msra.mxu1 %v5795_v1 }
 0xc53   :  { %1192 = vmatpush.msra.mxu1 %v5801_v3 }
 0xc55   :  { %1193 = vmatpush.msra.mxu1 %v5807_v5 }
 0xc57   :  { %1194 = vmatpush.msra.mxu1 %v5813_v26 }
 0xc59   :  { %1195 = vmatpush.msra.mxu1 %v5819_v36 }
 0xc5b   :  { %1196 = vmatpush.msra.mxu1 %v5825_v39 }
 0xc5d   :  { %1197 = vmatpush.msra.mxu1 %v5831_v40 }
 0xc5f   :  { %1198 = vmatpush.msra.mxu1 %v5837_v41 }
 0xca9   :  { %v1065_v10 = vpop.permute.xlu1 %1064 }
 0xcaa   :  { %v1067_v54 = vmul.f32 %v1065_v10, %v1059_v11 }
 0xcac   :  { %1069 = vrot.lane.b32.xlu0 %v1067_v54, %s5411_s29 }
 0xcb1   :  { %v1163_v13 = vpop.permute.xlu1 %1162 }
 0xcb2   :  { %v5778_v16 = vadd.f32 %v1163_v13, %v1155_v12 }
 0xcb4   :  { %4945 = vtanh.f32 %v5778_v16 }
 0xcba   :  { %v4946_v17 = vpop.eup %4945 }
 0xcbb   :  { %1168 = vrot.lane.b32.xlu0 %v4946_v17, %s5410_s28 }
 0xd1e   :  { %v1070_v20 = vpop.permute.xlu0 %1069 }
 0xd1f   :  { %v5783_v21 = vadd.f32 %v1070_v20, %v1062_v18 }
 0xd21   :  { %4947 = vtanh.f32 %v5783_v21 }
 0xd27   :  { %v4948_v62 = vpop.eup %4947 }
 0xd28   :  { %1075 = vrot.lane.b32.xlu2 %v4948_v62, %s5410_s28 }
 0xd2d   :  { %v1169_v22 = vpop.permute.xlu0 %1168 }
 0xd2e   :  { %v1171_v15 = vmul.f32 %v1169_v22, %v1152_v56 }
 0xd30   :  { %1173 = vrot.lane.b32.xlu2 %v1171_v15, %s5411_s29 }
 0xd82   :  { %v1076_v44 = vpop.permute.xlu2 %1075 }
 0xd83   :  { %v1078_v27 = vmul.f32 %v1076_v44, %v1059_v11 }
 0xd85   :  { %1176 = vrot.lane.b32.xlu0 %v1078_v27, %s5410_s28  ;;  %1085 = vrot.lane.b32.xlu1 %v1078_v27, %s5411_s29 }
 0xd8a   :  { %v1174_v30 = vpop.permute.xlu2 %1173 }
 0xd8b   :  { %4746 = vmatmul.msk.f32.vlgmr.msrb.gmra.mxu3 %vm308_vm5, %v1174_v30 }
 0xdf7   :  { %v1086_v31 = vpop.permute.xlu1 %1085  ;;  %v1177_v33 = vpop.permute.xlu0 %1176 }
 0xdf8   :  { %4740 = vmatmul.msk.f32.vlgmr.msrb.gmra.mxu1 %vm308_vm5, %v1086_v31  ;;  %v1179_v42 = vsel %vm308_vm5, %v1174_v30, %v1177_v33 }
 0xdf9   :  { %1448 = vmatpush.msrb.mxu1 %v5750_v34 }
 0xdfb   :  { %1449 = vmatpush.msrb.mxu1 %v5756_v35 }
 0xdfd   :  { %1450 = vmatpush.msrb.mxu1 %v5762_v38 }
 0xdff   :  { %1451 = vmatpush.msrb.mxu1 %v5851_v43 }
 0xe00   :  { %4743 = vmatmul.msk.f32.vlgmr.msra.gmra.mxu1 %vm375_vm6, %v1179_v42 }
 0xe0e   :  { %v1292_v48 = vpop.f32.mrf.mxu3 }
 0xe0f   :  { %v1295_v9 = vadd.f32 %v1292_v48, %v198_v57  ;;  %v53_v57 = vld [vmem:[%s6966_s0 + $0x38] sm:$0xff] }
 0xe10   :  { %4697 = vmatmul.msk.f32.gmra.mxu0 %vm80_vm0, %v53_v57  ;;  %v1244_v48 = vld [vmem:[#allocation3 + $0xb8] sm:$0xff] }
 0xe11   :  { %4949 = vtanh.f32 %v1295_v9  ;;  %v4747_v14 = vmul.f32 -1.442695, %v1295_v9  ;;  %1262 = vmatpush.msrb.mxu2 %v1244_v48  ;;  %v1242_v9 = vld [vmem:[#allocation3 + $0xa8] sm:$0xff] }
 0xe13   :  { %4951 = vpow2.f32 %v4747_v14 }
 0xe17   :  { %v4950_v32 = vpop.eup %4949 }
 0xe18   :  { %1318 = vrot.lane.b32.xlu2 %v4950_v32, %s5410_s28  ;;  %v1241_v32 = vld [vmem:[#allocation3 + $0xa0] sm:$0xff] }
 0xe19   :  { %v4952_v49 = vpop.eup %4951 }
 0xe1a   :  { %v1299_v51 = vadd.f32 1.0, %v4952_v49 }
 0xe1c   :  { %4953 = vrcp.f32 %v1299_v51  ;;  %v1311_v61 = vand.u32 2147483648, %v1299_v51  ;;  %vm1305_vm9 = vweird.f32 %v1299_v51  ;;  %v1309_v63 = vand.u32 2147483647, %v1299_v51 }
 0xe1e   :  { %v1312_v2 = vor.u32 1.1754944e-38, %v1311_v61  ;;  %vm1310_vm11 = vcmp.eq.f32.partialorder %v1309_v63, 8.507059e+37 }
 0xe22   :  { %v4954_v53 = vpop.eup %4953 }
 0xe23   :  { %v1301_v28 = vmul.f32 %v4954_v53, %v1299_v51  ;;  %vm1306_vm8 = vweird.f32 %v4954_v53 }
 0xe24   :  { %vm1307_vm10 = vmor %vm1305_vm9, %vm1306_vm8 }
 0xe25   :  { %v1302_v56 = vsub.f32 1.0, %v1301_v28 }
 0xe27   :  { %v1303_v59 = vmul.f32 %v4954_v53, %v1302_v56 }
 0xe29   :  { %v1304_v29 = vadd.f32 %v4954_v53, %v1303_v59 }
 0xe72   :  { %v1319_v0 = vpop.permute.xlu2 %1318 }
 0xe75   :  { %v1106_v52 = vpop.f32.mrf.mxu1 }
 0xe76   :  { %v5863_v55 = vadd.f32 %v1106_v52, %v5771_v7  ;;  %v1308_v7 = vsel %vm1307_vm10, %v4954_v53, %v1304_v29 }
 0xe77   :  { %v1313_v6 = vsel %vm1310_vm11, %v1312_v2, %v1308_v7 }
 0xe78   :  { %v1321_v50 = vmul.f32 %v1319_v0, %v1313_v6  ;;  %v1316_v19 = vmul.f32 %v1313_v6, %v5778_v16 }
 0xe7d   :  { %v1200_v37 = vpop.f32.mrf.mxu1 }
 0xe7e   :  { %v1201_v58 = vadd.f32 %v5868_v47, %v1200_v37 }
 0xe80   :  { %4955 = vtanh.f32 %v1201_v58  ;;  %v4744_v8 = vmul.f32 -1.442695, %v1201_v58 }
 0xe82   :  { %4957 = vpow2.f32 %v4744_v8 }
 0xe86   :  { %v4956_v60 = vpop.eup %4955 }
 0xe87   :  { %1225 = vrot.lane.b32.xlu1 %v4956_v60, %s5410_s28 }
 0xe88   :  { %v4958_v10 = vpop.eup %4957 }
 0xe89   :  { %v1206_v11 = vadd.f32 1.0, %v4958_v10 }
 0xe8b   :  { %4959 = vrcp.f32 %v1206_v11  ;;  %v1218_v20 = vand.u32 2147483648, %v1206_v11  ;;  %vm1212_vm13 = vweird.f32 %v1206_v11  ;;  %v1216_v62 = vand.u32 2147483647, %v1206_v11 }
 0xe8d   :  { %v1219_v15 = vor.u32 1.1754944e-38, %v1218_v20  ;;  %vm1217_vm15 = vcmp.eq.f32.partialorder %v1216_v62, 8.507059e+37  ;;  %v200_v56 = vpop.f32.mrf.mxu0 }
 0xe8e   :  { %v201_v37 = vadd.f32 %v5858_v46, %v200_v56 }
 0xe8f   :  { %1323 = vrot.lane.b32.xlu1 %v1321_v50, %s5411_s29 }
 0xe91   :  { %v4960_v54 = vpop.eup %4959 }
 0xe92   :  { %v1208_v12 = vmul.f32 %v4960_v54, %v1206_v11  ;;  %vm1213_vm12 = vweird.f32 %v4960_v54 }
 0xe93   :  { %vm1214_vm14 = vmor %vm1212_vm13, %vm1213_vm12 }
 0xe94   :  { %v1209_v13 = vsub.f32 1.0, %v1208_v12 }
 0xe96   :  { %v1210_v17 = vmul.f32 %v4960_v54, %v1209_v13 }
 0xe98   :  { %v1211_v18 = vadd.f32 %v4960_v54, %v1210_v17 }
 0xe9a   :  { %v1215_v22 = vsel %vm1214_vm14, %v4960_v54, %v1211_v18 }
 0xe9b   :  { %v1220_v24 = vsel %vm1217_vm15, %v1219_v15, %v1215_v22 }
 0xe9c   :  { %v1223_v30 = vmul.f32 %v1220_v24, %v5783_v21  ;;  %v1243_v21 = vld [vmem:[#allocation3 + $0xb0] sm:$0xff] }
 0xe9d   :  { %1263 = vmatpush.msrb.mxu2 %v1243_v21 }
 0xe9f   :  { %1264 = vmatpush.msrb.mxu2 %v1242_v9 }
 0xea1   :  { %1265 = vmatpush.msrb.mxu2 %v1241_v32 }
 0xea3   :  { %1352 = vmatpush.msra.mxu2 %v5795_v1 }
 0xea5   :  { %1353 = vmatpush.msra.mxu2 %v5801_v3 }
 0xea7   :  { %1354 = vmatpush.msra.mxu2 %v5807_v5 }
 0xea9   :  { %1355 = vmatpush.msra.mxu2 %v5813_v26 }
 0xeab   :  { %1356 = vmatpush.msra.mxu2 %v5819_v36 }
 0xead   :  { %1357 = vmatpush.msra.mxu2 %v5825_v39 }
 0xeaf   :  { %1358 = vmatpush.msra.mxu2 %v5831_v40 }
 0xeb1   :  { %1359 = vmatpush.msra.mxu2 %v5837_v41 }
 0xef9   :  { %v1226_v23 = vpop.permute.xlu1 %1225 }
 0xefa   :  { %v1228_v4 = vmul.f32 %v1226_v23, %v1220_v24 }
 0xefc   :  { %1230 = vrot.lane.b32.xlu0 %v1228_v4, %s5411_s29 }
 0xf01   :  { %v1324_v25 = vpop.permute.xlu1 %1323 }
 0xf02   :  { %v5875_v44 = vadd.f32 %v1324_v25, %v1316_v19 }
 0xf04   :  { %4961 = vtanh.f32 %v5875_v44 }
 0xf0a   :  { %v4962_v27 = vpop.eup %4961 }
 0xf0b   :  { %1329 = vrot.lane.b32.xlu0 %v4962_v27, %s5410_s28 }
 0xf6e   :  { %v1231_v31 = vpop.permute.xlu0 %1230 }
 0xf6f   :  { %v5880_v33 = vadd.f32 %v1231_v31, %v1223_v30 }
 0xf71   :  { %4963 = vtanh.f32 %v5880_v33 }
 0xf77   :  { %v4964_v42 = vpop.eup %4963 }
 0xf78   :  { %1236 = vrot.lane.b32.xlu2 %v4964_v42, %s5410_s28 }
 0xf7d   :  { %v1330_v45 = vpop.permute.xlu0 %1329 }
 0xf7e   :  { %v1332_v16 = vmul.f32 %v1330_v45, %v1313_v6 }
 0xf80   :  { %1334 = vrot.lane.b32.xlu2 %v1332_v16, %s5411_s29 }
 0xfd2   :  { %v1237_v14 = vpop.permute.xlu2 %1236 }
 0xfd3   :  { %v1239_v49 = vmul.f32 %v1237_v14, %v1220_v24 }
 0xfd5   :  { %1337 = vrot.lane.b32.xlu0 %v1239_v49, %s5410_s28  ;;  %1246 = vrot.lane.b32.xlu1 %v1239_v49, %s5411_s29 }
 0xfda   :  { %v1335_v51 = vpop.permute.xlu2 %1334 }
 0xfdb   :  { %4751 = vmatmul.msk.f32.vlgmr.msrb.gmra.mxu1 %vm308_vm5, %v1335_v51 }
0x1047   :  { %v1247_v52 = vpop.permute.xlu1 %1246  ;;  %v1338_v53 = vpop.permute.xlu0 %1337 }
0x1048   :  { %4745 = vmatmul.msk.f32.vlgmr.msrb.gmra.mxu2 %vm308_vm5, %v1247_v52  ;;  %v1340_v28 = vsel %vm308_vm5, %v1335_v51, %v1338_v53 }
0x1049   :  { %1609 = vmatpush.msrb.mxu2 %v5750_v34 }
0x104b   :  { %1610 = vmatpush.msrb.mxu2 %v5756_v35 }
0x104d   :  { %1611 = vmatpush.msrb.mxu2 %v5762_v38 }
0x104f   :  { %1612 = vmatpush.msrb.mxu2 %v5851_v43 }
0x1050   :  { %4748 = vmatmul.msk.f32.vlgmr.msra.gmra.mxu2 %vm375_vm6, %v1340_v28 }
0x1058   :  { %v1453_v58 = vpop.f32.mrf.mxu1 }
0x1059   :  { %v1456_v59 = vadd.f32 %v1453_v58, %v201_v37  ;;  %v54_v37 = vld [vmem:[%s6966_s0 + $0x40] sm:$0xff]  ;;  %v1405_v58 = vld [vmem:[#allocation3 + $0xd8] sm:$0xff] }
0x105a   :  { %4698 = vmatmul.msk.f32.gmra.mxu0 %vm80_vm0, %v54_v37  ;;  %1423 = vmatpush.msra.mxu3 %v1405_v58 }
0x105b   :  { %4965 = vtanh.f32 %v1456_v59  ;;  %v4752_v60 = vmul.f32 -1.442695, %v1456_v59  ;;  %v1404_v59 = vld [vmem:[#allocation3 + $0xd0] sm:$0xff] }
0x105c   :  { %1424 = vmatpush.msra.mxu3 %v1404_v59 }
0x105d   :  { %4967 = vpow2.f32 %v4752_v60 }
0x1061   :  { %v4966_v29 = vpop.eup %4965 }
0x1062   :  { %1479 = vrot.lane.b32.xlu2 %v4966_v29, %s5410_s28  ;;  %v1402_v29 = vld [vmem:[#allocation3 + $0xc0] sm:$0xff] }
0x1063   :  { %v4968_v61 = vpop.eup %4967 }
0x1064   :  { %v1460_v63 = vadd.f32 1.0, %v4968_v61 }
0x1066   :  { %4969 = vrcp.f32 %v1460_v63  ;;  %v1472_v13 = vand.u32 2147483648, %v1460_v63  ;;  %vm1466_vm2 = vweird.f32 %v1460_v63  ;;  %v1470_v17 = vand.u32 2147483647, %v1460_v63 }
0x1068   :  { %vm1471_vm4 = vcmp.eq.f32.partialorder %v1470_v17, 8.507059e+37 }
0x106c   :  { %v4970_v0 = vpop.eup %4969 }
0x106d   :  { %v1462_v6 = vmul.f32 %v4970_v0, %v1460_v63  ;;  %vm1467_vm1 = vweird.f32 %v4970_v0 }
0x106e   :  { %vm1468_vm3 = vmor %vm1466_vm2, %vm1467_vm1 }
0x106f   :  { %v1463_v50 = vsub.f32 1.0, %v1462_v6 }
0x1071   :  { %v1464_v11 = vmul.f32 %v4970_v0, %v1463_v50 }
0x1073   :  { %v1465_v54 = vadd.f32 %v4970_v0, %v1464_v11 }
0x1075   :  { %v1469_v18 = vsel %vm1468_vm3, %v4970_v0, %v1465_v54 }
0x10bc   :  { %v1480_v20 = vpop.permute.xlu2 %1479 }
0x10cb   :  { %v1267_v7 = vpop.f32.mrf.mxu2 }
0x10cc   :  { %v5910_v2 = vadd.f32 %v1267_v7, %v5863_v55  ;;  %v1473_v55 = vor.u32 1.1754944e-38, %v1472_v13 }
0x10ce   :  { %v1474_v62 = vsel %vm1471_vm4, %v1473_v55, %v1469_v18 }
0x10cf   :  { %v1482_v22 = vmul.f32 %v1480_v20, %v1474_v62  ;;  %v1477_v9 = vmul.f32 %v1474_v62, %v5875_v44 }
0x10d3   :  { %v1361_v8 = vpop.f32.mrf.mxu2 }
0x10d4   :  { %v1362_v10 = vadd.f32 %v5868_v47, %v1361_v8 }
0x10d6   :  { %4971 = vtanh.f32 %v1362_v10  ;;  %v4749_v15 = vmul.f32 -1.442695, %v1362_v10 }
0x10d7   :  { %v203_v50 = vpop.f32.mrf.mxu0 }
0x10d8   :  { %4973 = vpow2.f32 %v4749_v15  ;;  %v204_v8 = vadd.f32 %v5858_v46, %v203_v50 }
0x10dc   :  { %v4972_v12 = vpop.eup %4971 }
0x10dd   :  { %1386 = vrot.lane.b32.xlu1 %v4972_v12, %s5410_s28 }
0x10de   :  { %v4974_v23 = vpop.eup %4973 }
0x10df   :  { %v1367_v24 = vadd.f32 1.0, %v4974_v23 }
0x10e1   :  { %4975 = vrcp.f32 %v1367_v24  ;;  %v1379_v31 = vand.u32 2147483648, %v1367_v24  ;;  %vm1373_vm8 = vweird.f32 %v1367_v24  ;;  %v1377_v42 = vand.u32 2147483647, %v1367_v24 }
0x10e3   :  { %v1380_v16 = vor.u32 1.1754944e-38, %v1379_v31  ;;  %vm1378_vm10 = vcmp.eq.f32.partialorder %v1377_v42, 8.507059e+37 }
0x10e5   :  { %1484 = vrot.lane.b32.xlu1 %v1482_v22, %s5411_s29 }
0x10e7   :  { %v4976_v4 = vpop.eup %4975 }
0x10e8   :  { %v1369_v19 = vmul.f32 %v4976_v4, %v1367_v24  ;;  %vm1374_vm7 = vweird.f32 %v4976_v4 }
0x10e9   :  { %vm1375_vm9 = vmor %vm1373_vm8, %vm1374_vm7 }
0x10ea   :  { %v1370_v25 = vsub.f32 1.0, %v1369_v19 }
0x10ec   :  { %v1371_v27 = vmul.f32 %v4976_v4, %v1370_v25 }
0x10ee   :  { %v1372_v30 = vadd.f32 %v4976_v4, %v1371_v27 }
0x10f0   :  { %v1376_v45 = vsel %vm1375_vm9, %v4976_v4, %v1372_v30 }
0x10f1   :  { %v1381_v48 = vsel %vm1378_vm10, %v1380_v16, %v1376_v45 }
0x10f2   :  { %v1384_v51 = vmul.f32 %v1381_v48, %v5880_v33  ;;  %v1403_v33 = vld [vmem:[#allocation3 + $0xc8] sm:$0xff] }
0x10f3   :  { %1425 = vmatpush.msra.mxu3 %v1403_v33 }
0x10f5   :  { %1426 = vmatpush.msra.mxu3 %v1402_v29 }
0x10f7   :  { %1513 = vmatpush.msrb.mxu3 %v5795_v1 }
0x10f9   :  { %1514 = vmatpush.msrb.mxu3 %v5801_v3 }
0x10fb   :  { %1515 = vmatpush.msrb.mxu3 %v5807_v5 }
0x10fd   :  { %1516 = vmatpush.msrb.mxu3 %v5813_v26 }
0x10ff   :  { %1517 = vmatpush.msrb.mxu3 %v5819_v36 }
0x1101   :  { %1518 = vmatpush.msrb.mxu3 %v5825_v39 }
0x1103   :  { %1519 = vmatpush.msrb.mxu3 %v5831_v40 }
0x1105   :  { %1520 = vmatpush.msrb.mxu3 %v5837_v41 }
0x114f   :  { %v1387_v57 = vpop.permute.xlu1 %1386 }
0x1150   :  { %v1389_v21 = vmul.f32 %v1387_v57, %v1381_v48 }
0x1152   :  { %1391 = vrot.lane.b32.xlu0 %v1389_v21, %s5411_s29 }
0x1157   :  { %v1485_v32 = vpop.permute.xlu1 %1484 }
0x1158   :  { %v5917_v14 = vadd.f32 %v1485_v32, %v1477_v9 }
0x115a   :  { %4977 = vtanh.f32 %v5917_v14 }
0x1160   :  { %v4978_v49 = vpop.eup %4977 }
0x1161   :  { %1490 = vrot.lane.b32.xlu0 %v4978_v49, %s5410_s28 }
0x11c4   :  { %v1392_v52 = vpop.permute.xlu0 %1391 }
0x11c5   :  { %v5922_v53 = vadd.f32 %v1392_v52, %v1384_v51 }
0x11c7   :  { %4979 = vtanh.f32 %v5922_v53 }
0x11cd   :  { %v4980_v28 = vpop.eup %4979 }
0x11ce   :  { %1397 = vrot.lane.b32.xlu2 %v4980_v28, %s5410_s28 }
0x11d3   :  { %v1491_v56 = vpop.permute.xlu0 %1490 }
0x11d4   :  { %v1493_v44 = vmul.f32 %v1491_v56, %v1474_v62 }
0x11d6   :  { %1495 = vrot.lane.b32.xlu2 %v1493_v44, %s5411_s29 }
0x1228   :  { %v1398_v60 = vpop.permute.xlu2 %1397 }
0x1229   :  { %v1400_v61 = vmul.f32 %v1398_v60, %v1381_v48 }
0x122b   :  { %1498 = vrot.lane.b32.xlu0 %v1400_v61, %s5410_s28  ;;  %1407 = vrot.lane.b32.xlu1 %v1400_v61, %s5411_s29 }
0x1230   :  { %v1496_v63 = vpop.permute.xlu2 %1495 }
0x1231   :  { %4756 = vmatmul.msk.f32.vlgmr.msrb.gmra.mxu2 %vm308_vm5, %v1496_v63 }
0x129d   :  { %v1408_v7 = vpop.permute.xlu1 %1407  ;;  %v1499_v0 = vpop.permute.xlu0 %1498 }
0x129e   :  { %4750 = vmatmul.msk.f32.vlgmr.msra.gmra.mxu3 %vm308_vm5, %v1408_v7  ;;  %v1501_v6 = vsel %vm308_vm5, %v1496_v63, %v1499_v0 }
0x129f   :  { %1770 = vmatpush.msra.mxu3 %v5750_v34 }
0x12a1   :  { %1771 = vmatpush.msra.mxu3 %v5756_v35 }
0x12a3   :  { %1772 = vmatpush.msra.mxu3 %v5762_v38 }
0x12a5   :  { %1773 = vmatpush.msra.mxu3 %v5851_v43 }
0x12a6   :  { %4753 = vmatmul.msk.f32.vlgmr.msrb.gmra.mxu3 %vm375_vm6, %v1501_v6 }
0x12b4   :  { %v1614_v10 = vpop.f32.mrf.mxu2 }
0x12b5   :  { %v1617_v11 = vadd.f32 %v1614_v10, %v204_v8  ;;  %v55_v8 = vld [vmem:[%s6966_s0 + $0x48] sm:$0xff]  ;;  %v1566_v10 = vld [vmem:[#allocation3 + $0xf8] sm:$0xff] }
0x12b6   :  { %4699 = vmatmul.msk.f32.gmra.mxu0 %vm80_vm0, %v55_v8  ;;  %1584 = vmatpush.msra.mxu1 %v1566_v10 }
0x12b7   :  { %4981 = vtanh.f32 %v1617_v11  ;;  %v4757_v12 = vmul.f32 -1.442695, %v1617_v11  ;;  %v1565_v11 = vld [vmem:[#allocation3 + $0xf0] sm:$0xff] }
0x12b8   :  { %1585 = vmatpush.msra.mxu1 %v1565_v11 }
0x12b9   :  { %4983 = vpow2.f32 %v4757_v12 }
0x12bd   :  { %v4982_v54 = vpop.eup %4981 }
0x12be   :  { %1640 = vrot.lane.b32.xlu2 %v4982_v54, %s5410_s28  ;;  %v1563_v54 = vld [vmem:[#allocation3 + $0xe0] sm:$0xff] }
0x12bf   :  { %v4984_v13 = vpop.eup %4983 }
0x12c0   :  { %v1621_v17 = vadd.f32 1.0, %v4984_v13 }
0x12c2   :  { %4985 = vrcp.f32 %v1621_v17  ;;  %v1633_v25 = vand.u32 2147483648, %v1621_v17  ;;  %vm1627_vm12 = vweird.f32 %v1621_v17  ;;  %v1631_v27 = vand.u32 2147483647, %v1621_v17 }
0x12c4   :  { %vm1632_vm14 = vcmp.eq.f32.partialorder %v1631_v27, 8.507059e+37 }
0x12c8   :  { %v4986_v20 = vpop.eup %4985 }
0x12c9   :  { %v1623_v62 = vmul.f32 %v4986_v20, %v1621_v17  ;;  %vm1628_vm11 = vweird.f32 %v4986_v20 }
0x12ca   :  { %vm1629_vm13 = vmor %vm1627_vm12, %vm1628_vm11 }
0x12cb   :  { %v1624_v22 = vsub.f32 1.0, %v1623_v62 }
0x12cd   :  { %v1625_v24 = vmul.f32 %v4986_v20, %v1624_v22 }
0x12cf   :  { %v1626_v4 = vadd.f32 %v4986_v20, %v1625_v24 }
0x12d1   :  { %v1630_v30 = vsel %vm1629_vm13, %v4986_v20, %v1626_v4 }
0x1318   :  { %v1641_v31 = vpop.permute.xlu2 %1640 }
0x1321   :  { %v1428_v18 = vpop.f32.mrf.mxu3 }
0x1322   :  { %v5952_v55 = vadd.f32 %v1428_v18, %v5910_v2  ;;  %v1634_v2 = vor.u32 1.1754944e-38, %v1633_v25 }
0x1324   :  { %v1635_v42 = vsel %vm1632_vm14, %v1634_v2, %v1630_v30 }
0x1325   :  { %v1643_v45 = vmul.f32 %v1641_v31, %v1635_v42  ;;  %v1638_v33 = vmul.f32 %v1635_v42, %v5917_v14 }
0x1329   :  { %v1522_v15 = vpop.f32.mrf.mxu3 }
0x132a   :  { %v1523_v23 = vadd.f32 %v5868_v47, %v1522_v15 }
0x132c   :  { %4987 = vtanh.f32 %v1523_v23  ;;  %v4754_v16 = vmul.f32 -1.442695, %v1523_v23 }
0x132e   :  { %4989 = vpow2.f32 %v4754_v16 }
0x1332   :  { %v4988_v19 = vpop.eup %4987 }
0x1333   :  { %1547 = vrot.lane.b32.xlu1 %v4988_v19, %s5410_s28  ;;  %v206_v22 = vpop.f32.mrf.mxu0 }
0x1334   :  { %v4990_v57 = vpop.eup %4989  ;;  %v207_v15 = vadd.f32 %v5858_v46, %v206_v22  ;;  %v1725_v22 = vld [vmem:[#allocation3 + $0x108] sm:$0xff] }
0x1335   :  { %v1528_v48 = vadd.f32 1.0, %v4990_v57 }
0x1337   :  { %4991 = vrcp.f32 %v1528_v48  ;;  %v1540_v52 = vand.u32 2147483648, %v1528_v48  ;;  %vm1534_vm1 = vweird.f32 %v1528_v48  ;;  %v1538_v28 = vand.u32 2147483647, %v1528_v48 }
0x1339   :  { %v1541_v44 = vor.u32 1.1754944e-38, %v1540_v52  ;;  %vm1539_vm3 = vcmp.eq.f32.partialorder %v1538_v28, 8.507059e+37 }
0x133b   :  { %1645 = vrot.lane.b32.xlu1 %v1643_v45, %s5411_s29 }
0x133d   :  { %v4992_v21 = vpop.eup %4991 }
0x133e   :  { %v1530_v9 = vmul.f32 %v4992_v21, %v1528_v48  ;;  %vm1535_vm15 = vweird.f32 %v4992_v21 }
0x133f   :  { %vm1536_vm2 = vmor %vm1534_vm1, %vm1535_vm15 }
0x1340   :  { %v1531_v32 = vsub.f32 1.0, %v1530_v9 }
0x1342   :  { %v1532_v49 = vmul.f32 %v4992_v21, %v1531_v32 }
0x1344   :  { %v1533_v51 = vadd.f32 %v4992_v21, %v1532_v49 }
0x1346   :  { %v1537_v56 = vsel %vm1536_vm2, %v4992_v21, %v1533_v51 }
0x1347   :  { %v1542_v58 = vsel %vm1539_vm3, %v1541_v44, %v1537_v56 }
0x1348   :  { %v1545_v63 = vmul.f32 %v1542_v58, %v5922_v53  ;;  %v1564_v53 = vld [vmem:[#allocation3 + $0xe8] sm:$0xff] }
0x1349   :  { %1586 = vmatpush.msra.mxu1 %v1564_v53 }
0x134b   :  { %1587 = vmatpush.msra.mxu1 %v1563_v54 }
0x134d   :  { %1674 = vmatpush.msrb.mxu1 %v5795_v1 }
0x134f   :  { %1675 = vmatpush.msrb.mxu1 %v5801_v3 }
0x1351   :  { %1676 = vmatpush.msrb.mxu1 %v5807_v5 }
0x1353   :  { %1677 = vmatpush.msrb.mxu1 %v5813_v26 }
0x1355   :  { %1678 = vmatpush.msrb.mxu1 %v5819_v36 }
0x1357   :  { %1679 = vmatpush.msrb.mxu1 %v5825_v39 }
0x1359   :  { %1680 = vmatpush.msrb.mxu1 %v5831_v40 }
0x135b   :  { %1681 = vmatpush.msrb.mxu1 %v5837_v41 }
0x13a5   :  { %v1548_v37 = vpop.permute.xlu1 %1547 }
0x13a6   :  { %v1550_v59 = vmul.f32 %v1548_v37, %v1542_v58 }
0x13a8   :  { %1552 = vrot.lane.b32.xlu0 %v1550_v59, %s5411_s29 }
0x13ad   :  { %v1646_v29 = vpop.permute.xlu1 %1645 }
0x13ae   :  { %v5959_v60 = vadd.f32 %v1646_v29, %v1638_v33 }
0x13b0   :  { %4993 = vtanh.f32 %v5959_v60 }
0x13b6   :  { %v4994_v61 = vpop.eup %4993 }
0x13b7   :  { %1651 = vrot.lane.b32.xlu0 %v4994_v61, %s5410_s28 }
0x141a   :  { %v1553_v7 = vpop.permute.xlu0 %1552 }
0x141b   :  { %v5964_v0 = vadd.f32 %v1553_v7, %v1545_v63 }
0x141d   :  { %4995 = vtanh.f32 %v5964_v0 }
0x1423   :  { %v4996_v6 = vpop.eup %4995 }
0x1424   :  { %1558 = vrot.lane.b32.xlu2 %v4996_v6, %s5410_s28 }
0x1429   :  { %v1652_v50 = vpop.permute.xlu0 %1651 }
0x142a   :  { %v1654_v14 = vmul.f32 %v1652_v50, %v1635_v42 }
0x142c   :  { %1656 = vrot.lane.b32.xlu2 %v1654_v14, %s5411_s29 }
0x147e   :  { %v1559_v12 = vpop.permute.xlu2 %1558 }
0x147f   :  { %v1561_v13 = vmul.f32 %v1559_v12, %v1542_v58 }
0x1481   :  { %1659 = vrot.lane.b32.xlu0 %v1561_v13, %s5410_s28  ;;  %1568 = vrot.lane.b32.xlu1 %v1561_v13, %s5411_s29 }
0x1486   :  { %v1657_v17 = vpop.permute.xlu2 %1656 }
0x1487   :  { %4761 = vmatmul.msk.f32.vlgmr.msra.gmra.mxu3 %vm308_vm5, %v1657_v17 }
0x14f3   :  { %v1569_v18 = vpop.permute.xlu1 %1568  ;;  %v1660_v20 = vpop.permute.xlu0 %1659 }
0x14f4   :  { %4755 = vmatmul.msk.f32.vlgmr.msra.gmra.mxu1 %vm308_vm5, %v1569_v18  ;;  %v1662_v62 = vsel %vm308_vm5, %v1657_v17, %v1660_v20  ;;  %v56_v20 = vld [vmem:[%s6966_s0 + $0x50] sm:$0xff] }
0x14f5   :  { %1931 = vmatpush.msra.mxu1 %v5750_v34  ;;  %4700 = vmatmul.msk.f32.gmra.mxu0 %vm80_vm0, %v56_v20 }
0x14f7   :  { %1932 = vmatpush.msra.mxu1 %v5756_v35 }
0x14f9   :  { %1933 = vmatpush.msra.mxu1 %v5762_v38 }
0x14fb   :  { %1934 = vmatpush.msra.mxu1 %v5851_v43 }
0x14fc   :  { %4758 = vmatmul.msk.f32.vlgmr.msrb.gmra.mxu1 %vm375_vm6, %v1662_v62  ;;  %v1727_v62 = vld [vmem:[#allocation3 + $0x118] sm:$0xff] }
0x14fd   :  { %1745 = vmatpush.msra.mxu2 %v1727_v62  ;;  %v57_v62 = vld [vmem:[%s6966_s0 + $0x58] sm:$0xff] }
0x14fe   :  { %4701 = vmatmul.msk.f32.gmra.mxu0 %vm80_vm0, %v57_v62 }
0x150a   :  { %v1775_v23 = vpop.f32.mrf.mxu3 }
0x150b   :  { %v1778_v24 = vadd.f32 %v1775_v23, %v207_v15  ;;  %v1724_v15 = vld [vmem:[#allocation3 + $0x100] sm:$0xff] }
0x150d   :  { %4997 = vtanh.f32 %v1778_v24  ;;  %v4762_v34 = vmul.f32 -1.442695, %v1778_v24 }
0x150f   :  { %4999 = vpow2.f32 %v4762_v34 }
0x1513   :  { %v4998_v4 = vpop.eup %4997 }
0x1514   :  { %1801 = vrot.lane.b32.xlu2 %v4998_v4, %s5410_s28 }
0x1515   :  { %v5000_v35 = vpop.eup %4999 }
0x1516   :  { %v1782_v19 = vadd.f32 1.0, %v5000_v35 }
0x1518   :  { %5001 = vrcp.f32 %v1782_v19  ;;  %v1794_v48 = vand.u32 2147483648, %v1782_v19  ;;  %vm1788_vm7 = vweird.f32 %v1782_v19  ;;  %v1792_v21 = vand.u32 2147483647, %v1782_v19 }
0x151a   :  { %vm1793_vm9 = vcmp.eq.f32.partialorder %v1792_v21, 8.507059e+37 }
0x151e   :  { %v5002_v25 = vpop.eup %5001 }
0x151f   :  { %v1784_v30 = vmul.f32 %v5002_v25, %v1782_v19  ;;  %vm1789_vm4 = vweird.f32 %v5002_v25 }
0x1520   :  { %vm1790_vm8 = vmor %vm1788_vm7, %vm1789_vm4 }
0x1521   :  { %v1785_v31 = vsub.f32 1.0, %v1784_v30 }
0x1523   :  { %v1786_v45 = vmul.f32 %v5002_v25, %v1785_v31 }
0x1525   :  { %v1787_v16 = vadd.f32 %v5002_v25, %v1786_v45 }
0x1527   :  { %v1791_v9 = vsel %vm1790_vm8, %v5002_v25, %v1787_v16 }
0x156e   :  { %v1802_v32 = vpop.permute.xlu2 %1801 }
0x1571   :  { %v1589_v38 = vpop.f32.mrf.mxu1 }
0x1572   :  { %v5994_v27 = vadd.f32 %v1589_v38, %v5952_v55  ;;  %v1795_v55 = vor.u32 1.1754944e-38, %v1794_v48 }
0x1574   :  { %v1796_v49 = vsel %vm1793_vm9, %v1795_v55, %v1791_v9 }
0x1575   :  { %v1804_v51 = vmul.f32 %v1802_v32, %v1796_v49  ;;  %v1799_v8 = vmul.f32 %v1796_v49, %v5959_v60 }
0x1579   :  { %v1683_v2 = vpop.f32.mrf.mxu1 }
0x157a   :  { %v1684_v42 = vadd.f32 %v5868_v47, %v1683_v2 }
0x157c   :  { %5003 = vtanh.f32 %v1684_v42  ;;  %v4759_v52 = vmul.f32 -1.442695, %v1684_v42 }
0x157e   :  { %5005 = vpow2.f32 %v4759_v52 }
0x1582   :  { %v5004_v57 = vpop.eup %5003 }
0x1583   :  { %1708 = vrot.lane.b32.xlu1 %v5004_v57, %s5410_s28 }
0x1584   :  { %v5006_v28 = vpop.eup %5005 }
0x1585   :  { %v1689_v56 = vadd.f32 1.0, %v5006_v28 }
0x1587   :  { %5007 = vrcp.f32 %v1689_v56  ;;  %v1701_v29 = vand.u32 2147483648, %v1689_v56  ;;  %vm1695_vm11 = vweird.f32 %v1689_v56  ;;  %v1699_v61 = vand.u32 2147483647, %v1689_v56 }
0x1589   :  { %v1702_v7 = vor.u32 1.1754944e-38, %v1701_v29  ;;  %vm1700_vm13 = vcmp.eq.f32.partialorder %v1699_v61, 8.507059e+37 }
0x158b   :  { %1806 = vrot.lane.b32.xlu1 %v1804_v51, %s5411_s29 }
0x158d   :  { %v5008_v44 = vpop.eup %5007 }
0x158e   :  { %v1691_v37 = vmul.f32 %v5008_v44, %v1689_v56  ;;  %vm1696_vm10 = vweird.f32 %v5008_v44 }
0x158f   :  { %vm1697_vm12 = vmor %vm1695_vm11, %vm1696_vm10 }
0x1590   :  { %v1692_v58 = vsub.f32 1.0, %v1691_v37 }
0x1592   :  { %v1693_v59 = vmul.f32 %v5008_v44, %v1692_v58 }
0x1594   :  { %v1694_v33 = vadd.f32 %v5008_v44, %v1693_v59 }
0x1596   :  { %v1698_v63 = vsel %vm1697_vm12, %v5008_v44, %v1694_v33 }
0x1597   :  { %v1703_v50 = vsel %vm1700_vm13, %v1702_v7, %v1698_v63 }
0x1598   :  { %v1706_v54 = vmul.f32 %v1703_v50, %v5964_v0  ;;  %v1726_v0 = vld [vmem:[#allocation3 + $0x110] sm:$0xff] }
0x1599   :  { %1746 = vmatpush.msra.mxu2 %v1726_v0  ;;  %v1888_v0 = vld [vmem:[#allocation3 + $0x138] sm:$0xff] }
0x159a   :  { %1906 = vmatpush.msrb.mxu3 %v1888_v0 }
0x159b   :  { %1747 = vmatpush.msra.mxu2 %v1725_v22  ;;  %v1887_v22 = vld [vmem:[#allocation3 + $0x130] sm:$0xff] }
0x159c   :  { %1907 = vmatpush.msrb.mxu3 %v1887_v22 }
0x159d   :  { %1748 = vmatpush.msra.mxu2 %v1724_v15  ;;  %v1885_v15 = vld [vmem:[#allocation3 + $0x120] sm:$0xff] }
0x159f   :  { %1835 = vmatpush.msrb.mxu2 %v5795_v1 }
0x15a1   :  { %1836 = vmatpush.msrb.mxu2 %v5801_v3 }
0x15a3   :  { %1837 = vmatpush.msrb.mxu2 %v5807_v5  ;;  %v6030_v5 = vld [vmem:[%s6968_s2 + $0x18] sm:$0xff] }
0x15a5   :  { %1838 = vmatpush.msrb.mxu2 %v5813_v26  ;;  %v6036_v26 = vld [vmem:[%s6968_s2 + $0x10] sm:$0xff] }
0x15a7   :  { %1839 = vmatpush.msrb.mxu2 %v5819_v36 }
0x15a9   :  { %1840 = vmatpush.msrb.mxu2 %v5825_v39  ;;  %v6042_v39 = vld [vmem:[%s6968_s2 + $0x8] sm:$0xff] }
0x15ab   :  { %1841 = vmatpush.msrb.mxu2 %v5831_v40 }
0x15ad   :  { %1842 = vmatpush.msrb.mxu2 %v5837_v41  ;;  %v209_v41 = vpop.f32.mrf.mxu0 }
0x15ae   :  { %v210_v4 = vadd.f32 %v5858_v46, %v209_v41  ;;  %v6111_v41 = vld [vmem:[%s6970_s4 + $0x8] sm:$0xff] }
0x15f5   :  { %v1709_v6 = vpop.permute.xlu1 %1708 }
0x15f6   :  { %v1711_v14 = vmul.f32 %v1709_v6, %v1703_v50 }
0x15f8   :  { %1713 = vrot.lane.b32.xlu0 %v1711_v14, %s5411_s29 }
0x15fd   :  { %v1807_v10 = vpop.permute.xlu1 %1806 }
0x15fe   :  { %v6001_v11 = vadd.f32 %v1807_v10, %v1799_v8 }
0x1600   :  { %5009 = vtanh.f32 %v6001_v11 }
0x1606   :  { %v5010_v53 = vpop.eup %5009 }
0x1607   :  { %1812 = vrot.lane.b32.xlu0 %v5010_v53, %s5410_s28 }
0x166a   :  { %v1714_v12 = vpop.permute.xlu0 %1713 }
0x166b   :  { %v6006_v13 = vadd.f32 %v1714_v12, %v1706_v54 }
0x166d   :  { %5011 = vtanh.f32 %v6006_v13 }
0x1673   :  { %v5012_v17 = vpop.eup %5011 }
0x1674   :  { %1719 = vrot.lane.b32.xlu2 %v5012_v17, %s5410_s28 }
0x1679   :  { %v1813_v18 = vpop.permute.xlu0 %1812 }
0x167a   :  { %v1815_v60 = vmul.f32 %v1813_v18, %v1796_v49 }
0x167c   :  { %1817 = vrot.lane.b32.xlu2 %v1815_v60, %s5411_s29 }
0x16ce   :  { %v1720_v23 = vpop.permute.xlu2 %1719 }
0x16cf   :  { %v1722_v24 = vmul.f32 %v1720_v23, %v1703_v50  ;;  %v6075_v23 = vld [vmem:[%s6970_s4 + $0x38] sm:$0xff] }
0x16d1   :  { %1820 = vrot.lane.b32.xlu0 %v1722_v24, %s5410_s28  ;;  %1729 = vrot.lane.b32.xlu1 %v1722_v24, %s5411_s29  ;;  %v6081_v24 = vld [vmem:[%s6970_s4 + $0x30] sm:$0xff] }
0x16d6   :  { %v1818_v1 = vpop.permute.xlu2 %1817 }
0x16d7   :  { %4766 = vmatmul.msk.f32.vlgmr.msra.gmra.mxu1 %vm308_vm5, %v1818_v1 }
0x1743   :  { %v1730_v3 = vpop.permute.xlu1 %1729  ;;  %v1821_v36 = vpop.permute.xlu0 %1820 }
0x1744   :  { %4760 = vmatmul.msk.f32.vlgmr.msra.gmra.mxu2 %vm308_vm5, %v1730_v3  ;;  %v1823_v40 = vsel %vm308_vm5, %v1818_v1, %v1821_v36  ;;  %v6087_v1 = vld [vmem:[%s6970_s4 + $0x28] sm:$0xff]  ;;  %v6093_v3 = vld [vmem:[%s6970_s4 + $0x20] sm:$0xff]  ;;  %v6099_v36 = vld [vmem:[%s6970_s4 + $0x18] sm:$0xff] }
0x1745   :  { %2092 = vmatpush.msra.mxu2 %v6030_v5 }
0x1747   :  { %2093 = vmatpush.msra.mxu2 %v6036_v26 }
0x1749   :  { %2094 = vmatpush.msra.mxu2 %v6042_v39 }
0x174b   :  { %2095 = vmatpush.msra.mxu2 %v5851_v43 }
0x174c   :  { %4763 = vmatmul.msk.f32.vlgmr.msrb.gmra.mxu2 %vm375_vm6, %v1823_v40  ;;  %v6105_v40 = vld [vmem:[%s6970_s4 + $0x10] sm:$0xff] }
0x1754   :  { %v1936_v34 = vpop.f32.mrf.mxu1 }
0x1755   :  { %v1939_v35 = vadd.f32 %v1936_v34, %v210_v4  ;;  %v6117_v4 = vld [vmem:[%s6970_s4] sm:$0xff] }
0x1757   :  { %5013 = vtanh.f32 %v1939_v35  ;;  %v4767_v38 = vmul.f32 -1.442695, %v1939_v35 }
0x1759   :  { %5015 = vpow2.f32 %v4767_v38 }
0x175d   :  { %v5014_v19 = vpop.eup %5013 }
0x175e   :  { %1962 = vrot.lane.b32.xlu2 %v5014_v19, %s5410_s28 }
0x175f   :  { %v5016_v25 = vpop.eup %5015 }
0x1760   :  { %v1943_v30 = vadd.f32 1.0, %v5016_v25 }
0x1762   :  { %5017 = vrcp.f32 %v1943_v30  ;;  %v1955_v9 = vand.u32 2147483648, %v1943_v30  ;;  %vm1949_vm15 = vweird.f32 %v1943_v30  ;;  %v1953_v32 = vand.u32 2147483647, %v1943_v30 }
0x1764   :  { %vm1954_vm2 = vcmp.eq.f32.partialorder %v1953_v32, 8.507059e+37 }
0x1768   :  { %v5018_v2 = vpop.eup %5017 }
0x1769   :  { %v1945_v42 = vmul.f32 %v5018_v2, %v1943_v30  ;;  %vm1950_vm14 = vweird.f32 %v5018_v2 }
0x176a   :  { %vm1951_vm1 = vmor %vm1949_vm15, %vm1950_vm14 }
0x176b   :  { %v1946_v45 = vsub.f32 1.0, %v1945_v42  ;;  %v6138_v42 = vld [vmem:[%s6969_s3] ss:$0 sm:$0xff] }
0x176d   :  { %v1947_v57 = vmul.f32 %v5018_v2, %v1946_v45 }
0x176f   :  { %v1948_v48 = vadd.f32 %v5018_v2, %v1947_v57 }
0x1771   :  { %v1952_v55 = vsel %vm1951_vm1, %v5018_v2, %v1948_v48  ;;  %v212_v2 = vpop.f32.mrf.mxu0 }
0x1772   :  { %v213_v45 = vadd.f32 %v6138_v42, %v212_v2 }
0x17b8   :  { %v1963_v49 = vpop.permute.xlu2 %1962 }
0x17c7   :  { %v1750_v31 = vpop.f32.mrf.mxu2 }
0x17c8   :  { %v6051_v43 = vadd.f32 %v1750_v31, %v5994_v27  ;;  %v1956_v27 = vor.u32 1.1754944e-38, %v1955_v9  ;;  %v6131_v31 = vld [vmem:[%s6968_s2] sm:$0xff] }
0x17ca   :  { %v1957_v51 = vsel %vm1954_vm2, %v1956_v27, %v1952_v55 }
0x17cb   :  { %v1965_v52 = vmul.f32 %v1963_v49, %v1957_v51  ;;  %v1960_v8 = vmul.f32 %v1957_v51, %v6001_v11 }
0x17cf   :  { %v1844_v16 = vpop.f32.mrf.mxu2 }
0x17d0   :  { %v1845_v46 = vadd.f32 %v5868_v47, %v1844_v16 }
0x17d2   :  { %5019 = vtanh.f32 %v1845_v46  ;;  %v4764_v47 = vmul.f32 -1.442695, %v1845_v46 }
0x17d4   :  { %5021 = vpow2.f32 %v4764_v47  ;;  %v6148_v47 = vld [vmem:[%s6971_s5] ss:$0 sm:$0xff] }
0x17d8   :  { %v5020_v21 = vpop.eup %5019 }
0x17d9   :  { %1869 = vrot.lane.b32.xlu1 %v5020_v21, %s5410_s28 }
0x17da   :  { %v5022_v28 = vpop.eup %5021 }
0x17db   :  { %v1850_v56 = vadd.f32 1.0, %v5022_v28 }
0x17dd   :  { %5023 = vrcp.f32 %v1850_v56  ;;  %v1862_v29 = vand.u32 2147483648, %v1850_v56  ;;  %vm1856_vm4 = vweird.f32 %v1850_v56  ;;  %v1860_v61 = vand.u32 2147483647, %v1850_v56 }
0x17df   :  { %v1863_v7 = vor.u32 1.1754944e-38, %v1862_v29  ;;  %vm1861_vm8 = vcmp.eq.f32.partialorder %v1860_v61, 8.507059e+37 }
0x17e1   :  { %1967 = vrot.lane.b32.xlu1 %v1965_v52, %s5411_s29 }
0x17e3   :  { %v5024_v44 = vpop.eup %5023 }
0x17e4   :  { %v1852_v37 = vmul.f32 %v5024_v44, %v1850_v56  ;;  %vm1857_vm3 = vweird.f32 %v5024_v44 }
0x17e5   :  { %vm1858_vm7 = vmor %vm1856_vm4, %vm1857_vm3 }
0x17e6   :  { %v1853_v58 = vsub.f32 1.0, %v1852_v37 }
0x17e8   :  { %v1854_v59 = vmul.f32 %v5024_v44, %v1853_v58 }
0x17ea   :  { %v1855_v33 = vadd.f32 %v5024_v44, %v1854_v59 }
0x17ec   :  { %v1859_v63 = vsel %vm1858_vm7, %v5024_v44, %v1855_v33 }
0x17ed   :  { %v1864_v50 = vsel %vm1861_vm8, %v1863_v7, %v1859_v63 }
0x17ee   :  { %v1867_v12 = vmul.f32 %v1864_v50, %v6006_v13  ;;  %v1886_v13 = vld [vmem:[#allocation3 + $0x128] sm:$0xff] }
0x17ef   :  { %1908 = vmatpush.msrb.mxu3 %v1886_v13 }
0x17f1   :  { %1909 = vmatpush.msrb.mxu3 %v1885_v15 }
0x17f3   :  { %1996 = vmatpush.msra.mxu3 %v6075_v23 }
0x17f5   :  { %1997 = vmatpush.msra.mxu3 %v6081_v24 }
0x17f7   :  { %1998 = vmatpush.msra.mxu3 %v6087_v1 }
0x17f9   :  { %1999 = vmatpush.msra.mxu3 %v6093_v3 }
0x17fb   :  { %2000 = vmatpush.msra.mxu3 %v6099_v36 }
0x17fd   :  { %2001 = vmatpush.msra.mxu3 %v6105_v40 }
0x17ff   :  { %2002 = vmatpush.msra.mxu3 %v6111_v41 }
0x1801   :  { %2003 = vmatpush.msra.mxu3 %v6117_v4 }
0x184b   :  { %v1870_v6 = vpop.permute.xlu1 %1869 }
0x184c   :  { %v1872_v14 = vmul.f32 %v1870_v6, %v1864_v50 }
0x184e   :  { %1874 = vrot.lane.b32.xlu0 %v1872_v14, %s5411_s29 }
0x1853   :  { %v1968_v10 = vpop.permute.xlu1 %1967 }
0x1854   :  { %v6058_v53 = vadd.f32 %v1968_v10, %v1960_v8 }
0x1856   :  { %5025 = vtanh.f32 %v6058_v53 }
0x185c   :  { %v5026_v54 = vpop.eup %5025 }
0x185d   :  { %1973 = vrot.lane.b32.xlu0 %v5026_v54, %s5410_s28 }
0x18c0   :  { %v1875_v17 = vpop.permute.xlu0 %1874 }
0x18c1   :  { %v6063_v18 = vadd.f32 %v1875_v17, %v1867_v12 }
0x18c3   :  { %5027 = vtanh.f32 %v6063_v18 }
0x18c9   :  { %v5028_v60 = vpop.eup %5027 }
0x18ca   :  { %1880 = vrot.lane.b32.xlu2 %v5028_v60, %s5410_s28 }
0x18cf   :  { %v1974_v20 = vpop.permute.xlu0 %1973 }
0x18d0   :  { %v1976_v11 = vmul.f32 %v1974_v20, %v1957_v51 }
0x18d2   :  { %1978 = vrot.lane.b32.xlu2 %v1976_v11, %s5411_s29 }
0x1924   :  { %v1881_v34 = vpop.permute.xlu2 %1880 }
0x1925   :  { %v1883_v35 = vmul.f32 %v1881_v34, %v1864_v50 }
0x1927   :  { %1981 = vrot.lane.b32.xlu0 %v1883_v35, %s5410_s28  ;;  %1890 = vrot.lane.b32.xlu1 %v1883_v35, %s5411_s29 }
0x192c   :  { %v1979_v19 = vpop.permute.xlu2 %1978 }
0x192d   :  { %4771 = vmatmul.msk.f32.vlgmr.msra.gmra.mxu2 %vm308_vm5, %v1979_v19 }
0x1999   :  { %v1891_v38 = vpop.permute.xlu1 %1890  ;;  %v1982_v25 = vpop.permute.xlu0 %1981 }
0x199a   :  { %4765 = vmatmul.msk.f32.vlgmr.msrb.gmra.mxu3 %vm308_vm5, %v1891_v38  ;;  %v1984_v30 = vsel %vm308_vm5, %v1979_v19, %v1982_v25 }
0x199b   :  { %2253 = vmatpush.msrb.mxu3 %v6030_v5 }
0x199d   :  { %2254 = vmatpush.msrb.mxu3 %v6036_v26 }
0x199f   :  { %2255 = vmatpush.msrb.mxu3 %v6042_v39 }
0x19a1   :  { %2256 = vmatpush.msrb.mxu3 %v6131_v31 }
0x19a2   :  { %4768 = vmatmul.msk.f32.vlgmr.msra.gmra.mxu3 %vm375_vm6, %v1984_v30 }
0x19b0   :  { %v2097_v16 = vpop.f32.mrf.mxu2 }
0x19b1   :  { %v2100_v46 = vadd.f32 %v2097_v16, %v213_v45  ;;  %v58_v45 = vld [vmem:[%s6966_s0 + $0x60] sm:$0xff]  ;;  %v2049_v16 = vld [vmem:[#allocation3 + $0x158] sm:$0xff] }
0x19b2   :  { %4702 = vmatmul.msk.f32.gmra.mxu0 %vm80_vm0, %v58_v45  ;;  %2067 = vmatpush.msrb.mxu1 %v2049_v16 }
0x19b3   :  { %5029 = vtanh.f32 %v2100_v46  ;;  %v4772_v48 = vmul.f32 -1.442695, %v2100_v46  ;;  %v2048_v46 = vld [vmem:[#allocation3 + $0x150] sm:$0xff] }
0x19b4   :  { %2068 = vmatpush.msrb.mxu1 %v2048_v46 }
0x19b5   :  { %5031 = vpow2.f32 %v4772_v48 }
0x19b9   :  { %v5030_v57 = vpop.eup %5029 }
0x19ba   :  { %2123 = vrot.lane.b32.xlu2 %v5030_v57, %s5410_s28  ;;  %v2046_v57 = vld [vmem:[#allocation3 + $0x140] sm:$0xff] }
0x19bb   :  { %v5032_v21 = vpop.eup %5031 }
0x19bc   :  { %v2104_v9 = vadd.f32 1.0, %v5032_v21 }
0x19be   :  { %5033 = vrcp.f32 %v2104_v9  ;;  %v2116_v58 = vand.u32 2147483648, %v2104_v9  ;;  %vm2110_vm10 = vweird.f32 %v2104_v9  ;;  %v2114_v59 = vand.u32 2147483647, %v2104_v9 }
0x19c0   :  { %v2117_v29 = vor.u32 1.1754944e-38, %v2116_v58  ;;  %vm2115_vm12 = vcmp.eq.f32.partialorder %v2114_v59, 8.507059e+37 }
0x19c4   :  { %v5034_v55 = vpop.eup %5033 }
0x19c5   :  { %v2106_v27 = vmul.f32 %v5034_v55, %v2104_v9  ;;  %vm2111_vm9 = vweird.f32 %v5034_v55 }
0x19c6   :  { %vm2112_vm11 = vmor %vm2110_vm10, %vm2111_vm9 }
0x19c7   :  { %v2107_v51 = vsub.f32 1.0, %v2106_v27 }
0x19c9   :  { %v2108_v56 = vmul.f32 %v5034_v55, %v2107_v51 }
0x19cb   :  { %v2109_v44 = vadd.f32 %v5034_v55, %v2108_v56 }
0x1a14   :  { %v2124_v33 = vpop.permute.xlu2 %2123 }
0x1a1d   :  { %v1911_v32 = vpop.f32.mrf.mxu3 }
0x1a1e   :  { %v6143_v49 = vadd.f32 %v1911_v32, %v6051_v43  ;;  %v2113_v43 = vsel %vm2112_vm11, %v5034_v55, %v2109_v44 }
0x1a1f   :  { %v2118_v61 = vsel %vm2115_vm12, %v2117_v29, %v2113_v43 }
0x1a20   :  { %v2126_v63 = vmul.f32 %v2124_v33, %v2118_v61  ;;  %v2121_v13 = vmul.f32 %v2118_v61, %v6058_v53 }
0x1a25   :  { %v2005_v52 = vpop.f32.mrf.mxu3 }
0x1a26   :  { %v2006_v28 = vadd.f32 %v6148_v47, %v2005_v52 }
0x1a28   :  { %5035 = vtanh.f32 %v2006_v28  ;;  %v4769_v7 = vmul.f32 -1.442695, %v2006_v28 }
0x1a2a   :  { %5037 = vpow2.f32 %v4769_v7 }
0x1a2e   :  { %v5036_v37 = vpop.eup %5035 }
0x1a2f   :  { %2030 = vrot.lane.b32.xlu1 %v5036_v37, %s5410_s28  ;;  %v215_v51 = vpop.f32.mrf.mxu0 }
0x1a30   :  { %v5038_v6 = vpop.eup %5037  ;;  %v216_v52 = vadd.f32 %v6138_v42, %v215_v51 }
0x1a31   :  { %v2011_v50 = vadd.f32 1.0, %v5038_v6 }
0x1a33   :  { %5039 = vrcp.f32 %v2011_v50  ;;  %v2023_v17 = vand.u32 2147483648, %v2011_v50  ;;  %vm2017_vm14 = vweird.f32 %v2011_v50  ;;  %v2021_v60 = vand.u32 2147483647, %v2011_v50 }
0x1a35   :  { %v2024_v11 = vor.u32 1.1754944e-38, %v2023_v17  ;;  %vm2022_vm1 = vcmp.eq.f32.partialorder %v2021_v60, 8.507059e+37 }
0x1a37   :  { %2128 = vrot.lane.b32.xlu1 %v2126_v63, %s5411_s29 }
0x1a39   :  { %v5040_v14 = vpop.eup %5039 }
0x1a3a   :  { %v2013_v8 = vmul.f32 %v5040_v14, %v2011_v50  ;;  %vm2018_vm13 = vweird.f32 %v5040_v14 }
0x1a3b   :  { %vm2019_vm15 = vmor %vm2017_vm14, %vm2018_vm13 }
0x1a3c   :  { %v2014_v10 = vsub.f32 1.0, %v2013_v8 }
0x1a3e   :  { %v2015_v54 = vmul.f32 %v5040_v14, %v2014_v10 }
0x1a40   :  { %v2016_v12 = vadd.f32 %v5040_v14, %v2015_v54 }
0x1a42   :  { %v2020_v20 = vsel %vm2019_vm15, %v5040_v14, %v2016_v12 }
0x1a43   :  { %v2025_v0 = vsel %vm2022_vm1, %v2024_v11, %v2020_v20 }
0x1a44   :  { %v2028_v19 = vmul.f32 %v2025_v0, %v6063_v18  ;;  %v2047_v18 = vld [vmem:[#allocation3 + $0x148] sm:$0xff] }
0x1a45   :  { %2069 = vmatpush.msrb.mxu1 %v2047_v18 }
0x1a47   :  { %2070 = vmatpush.msrb.mxu1 %v2046_v57 }
0x1a49   :  { %2157 = vmatpush.msra.mxu1 %v6075_v23 }
0x1a4b   :  { %2158 = vmatpush.msra.mxu1 %v6081_v24 }
0x1a4d   :  { %2159 = vmatpush.msra.mxu1 %v6087_v1 }
0x1a4f   :  { %2160 = vmatpush.msra.mxu1 %v6093_v3 }
0x1a51   :  { %2161 = vmatpush.msra.mxu1 %v6099_v36 }
0x1a53   :  { %2162 = vmatpush.msra.mxu1 %v6105_v40 }
0x1a55   :  { %2163 = vmatpush.msra.mxu1 %v6111_v41 }
0x1a57   :  { %2164 = vmatpush.msra.mxu1 %v6117_v4 }
0x1aa1   :  { %v2031_v62 = vpop.permute.xlu1 %2030 }
0x1aa2   :  { %v2033_v22 = vmul.f32 %v2031_v62, %v2025_v0 }
0x1aa4   :  { %2035 = vrot.lane.b32.xlu0 %v2033_v22, %s5411_s29 }
0x1aa9   :  { %v2129_v15 = vpop.permute.xlu1 %2128 }
0x1aaa   :  { %v6155_v34 = vadd.f32 %v2129_v15, %v2121_v13 }
0x1aac   :  { %5041 = vtanh.f32 %v6155_v34 }
0x1ab2   :  { %v5042_v35 = vpop.eup %5041 }
0x1ab3   :  { %2134 = vrot.lane.b32.xlu0 %v5042_v35, %s5410_s28 }
0x1b16   :  { %v2036_v38 = vpop.permute.xlu0 %2035 }
0x1b17   :  { %v6160_v25 = vadd.f32 %v2036_v38, %v2028_v19 }
0x1b19   :  { %5043 = vtanh.f32 %v6160_v25 }
0x1b1f   :  { %v5044_v30 = vpop.eup %5043 }
0x1b20   :  { %2041 = vrot.lane.b32.xlu2 %v5044_v30, %s5410_s28 }
0x1b25   :  { %v2135_v2 = vpop.permute.xlu0 %2134 }
0x1b26   :  { %v2137_v53 = vmul.f32 %v2135_v2, %v2118_v61 }
0x1b28   :  { %2139 = vrot.lane.b32.xlu2 %v2137_v53, %s5411_s29 }
0x1b7a   :  { %v2042_v48 = vpop.permute.xlu2 %2041 }
0x1b7b   :  { %v2044_v21 = vmul.f32 %v2042_v48, %v2025_v0 }
0x1b7d   :  { %2142 = vrot.lane.b32.xlu0 %v2044_v21, %s5410_s28  ;;  %2051 = vrot.lane.b32.xlu1 %v2044_v21, %s5411_s29 }
0x1b82   :  { %v2140_v9 = vpop.permute.xlu2 %2139 }
0x1b83   :  { %4776 = vmatmul.msk.f32.vlgmr.msrb.gmra.mxu3 %vm308_vm5, %v2140_v9 }
0x1bef   :  { %v2052_v32 = vpop.permute.xlu1 %2051  ;;  %v2143_v55 = vpop.permute.xlu0 %2142 }
0x1bf0   :  { %4770 = vmatmul.msk.f32.vlgmr.msrb.gmra.mxu1 %vm308_vm5, %v2052_v32  ;;  %v2145_v27 = vsel %vm308_vm5, %v2140_v9, %v2143_v55 }
0x1bf1   :  { %2414 = vmatpush.msrb.mxu1 %v6030_v5 }
0x1bf3   :  { %2415 = vmatpush.msrb.mxu1 %v6036_v26 }
0x1bf5   :  { %2416 = vmatpush.msrb.mxu1 %v6042_v39 }
0x1bf7   :  { %2417 = vmatpush.msrb.mxu1 %v6131_v31 }
0x1bf8   :  { %4773 = vmatmul.msk.f32.vlgmr.msra.gmra.mxu1 %vm375_vm6, %v2145_v27 }
0x1c06   :  { %v2258_v28 = vpop.f32.mrf.mxu3 }
0x1c07   :  { %v2261_v56 = vadd.f32 %v2258_v28, %v216_v52  ;;  %v59_v52 = vld [vmem:[%s6966_s0 + $0x68] sm:$0xff]  ;;  %v2210_v28 = vld [vmem:[#allocation3 + $0x178] sm:$0xff] }
0x1c08   :  { %4703 = vmatmul.msk.f32.gmra.mxu0 %vm80_vm0, %v59_v52  ;;  %2228 = vmatpush.msrb.mxu2 %v2210_v28 }
0x1c09   :  { %5045 = vtanh.f32 %v2261_v56  ;;  %v4777_v37 = vmul.f32 -1.442695, %v2261_v56  ;;  %v2208_v56 = vld [vmem:[#allocation3 + $0x168] sm:$0xff] }
0x1c0b   :  { %5047 = vpow2.f32 %v4777_v37 }
0x1c0f   :  { %v5046_v44 = vpop.eup %5045 }
0x1c10   :  { %2284 = vrot.lane.b32.xlu2 %v5046_v44, %s5410_s28  ;;  %v2207_v44 = vld [vmem:[#allocation3 + $0x160] sm:$0xff] }
0x1c11   :  { %v5048_v58 = vpop.eup %5047 }
0x1c12   :  { %v2265_v59 = vadd.f32 1.0, %v5048_v58 }
0x1c14   :  { %5049 = vrcp.f32 %v2265_v59  ;;  %v2277_v10 = vand.u32 2147483648, %v2265_v59  ;;  %vm2271_vm3 = vweird.f32 %v2265_v59  ;;  %v2275_v54 = vand.u32 2147483647, %v2265_v59 }
0x1c16   :  { %vm2276_vm7 = vcmp.eq.f32.partialorder %v2275_v54, 8.507059e+37 }
0x1c1a   :  { %v5050_v33 = vpop.eup %5049 }
0x1c1b   :  { %v2267_v61 = vmul.f32 %v5050_v33, %v2265_v59  ;;  %vm2272_vm2 = vweird.f32 %v5050_v33 }
0x1c1c   :  { %vm2273_vm4 = vmor %vm2271_vm3, %vm2272_vm2 }
0x1c1d   :  { %v2268_v63 = vsub.f32 1.0, %v2267_v61 }
0x1c1f   :  { %v2269_v50 = vmul.f32 %v5050_v33, %v2268_v63 }
0x1c21   :  { %v2270_v14 = vadd.f32 %v5050_v33, %v2269_v50 }
0x1c23   :  { %v2274_v12 = vsel %vm2273_vm4, %v5050_v33, %v2270_v14 }
0x1c6a   :  { %v2285_v17 = vpop.permute.xlu2 %2284 }
0x1c6d   :  { %v2072_v43 = vpop.f32.mrf.mxu1 }
0x1c6e   :  { %v6190_v29 = vadd.f32 %v2072_v43, %v6143_v49  ;;  %v2278_v49 = vor.u32 1.1754944e-38, %v2277_v10 }
0x1c70   :  { %v2279_v60 = vsel %vm2276_vm7, %v2278_v49, %v2274_v12 }
0x1c71   :  { %v2287_v20 = vmul.f32 %v2285_v17, %v2279_v60  ;;  %v2282_v18 = vmul.f32 %v2279_v60, %v6155_v34 }
0x1c75   :  { %v2166_v7 = vpop.f32.mrf.mxu1 }
0x1c76   :  { %v2167_v6 = vadd.f32 %v6148_v47, %v2166_v7 }
0x1c78   :  { %5051 = vtanh.f32 %v2167_v6  ;;  %v4774_v11 = vmul.f32 -1.442695, %v2167_v6 }
0x1c7a   :  { %5053 = vpow2.f32 %v4774_v11 }
0x1c7e   :  { %v5052_v8 = vpop.eup %5051 }
0x1c7f   :  { %2191 = vrot.lane.b32.xlu1 %v5052_v8, %s5410_s28 }
0x1c80   :  { %v5054_v62 = vpop.eup %5053 }
0x1c81   :  { %v2172_v0 = vadd.f32 1.0, %v5054_v62 }
0x1c83   :  { %5055 = vrcp.f32 %v2172_v0  ;;  %v2184_v38 = vand.u32 2147483648, %v2172_v0  ;;  %vm2178_vm9 = vweird.f32 %v2172_v0  ;;  %v2182_v30 = vand.u32 2147483647, %v2172_v0 }
0x1c85   :  { %v2185_v53 = vor.u32 1.1754944e-38, %v2184_v38  ;;  %vm2183_vm11 = vcmp.eq.f32.partialorder %v2182_v30, 8.507059e+37  ;;  %v218_v63 = vpop.f32.mrf.mxu0 }
0x1c86   :  { %v219_v7 = vadd.f32 %v6138_v42, %v218_v63 }
0x1c87   :  { %2289 = vrot.lane.b32.xlu1 %v2287_v20, %s5411_s29 }
0x1c89   :  { %v5056_v22 = vpop.eup %5055 }
0x1c8a   :  { %v2174_v13 = vmul.f32 %v5056_v22, %v2172_v0  ;;  %vm2179_vm8 = vweird.f32 %v5056_v22 }
0x1c8b   :  { %vm2180_vm10 = vmor %vm2178_vm9, %vm2179_vm8 }
0x1c8c   :  { %v2175_v15 = vsub.f32 1.0, %v2174_v13 }
0x1c8e   :  { %v2176_v35 = vmul.f32 %v5056_v22, %v2175_v15 }
0x1c90   :  { %v2177_v19 = vadd.f32 %v5056_v22, %v2176_v35 }
0x1c92   :  { %v2181_v2 = vsel %vm2180_vm10, %v5056_v22, %v2177_v19 }
0x1c93   :  { %v2186_v16 = vsel %vm2183_vm11, %v2185_v53, %v2181_v2 }
0x1c94   :  { %v2189_v9 = vmul.f32 %v2186_v16, %v6160_v25  ;;  %v2209_v25 = vld [vmem:[#allocation3 + $0x170] sm:$0xff] }
0x1c95   :  { %2229 = vmatpush.msrb.mxu2 %v2209_v25 }
0x1c97   :  { %2230 = vmatpush.msrb.mxu2 %v2208_v56 }
0x1c99   :  { %2231 = vmatpush.msrb.mxu2 %v2207_v44 }
0x1c9b   :  { %2318 = vmatpush.msra.mxu2 %v6075_v23 }
0x1c9d   :  { %2319 = vmatpush.msra.mxu2 %v6081_v24 }
0x1c9f   :  { %2320 = vmatpush.msra.mxu2 %v6087_v1 }
0x1ca1   :  { %2321 = vmatpush.msra.mxu2 %v6093_v3 }
0x1ca3   :  { %2322 = vmatpush.msra.mxu2 %v6099_v36 }
0x1ca5   :  { %2323 = vmatpush.msra.mxu2 %v6105_v40 }
0x1ca7   :  { %2324 = vmatpush.msra.mxu2 %v6111_v41 }
0x1ca9   :  { %2325 = vmatpush.msra.mxu2 %v6117_v4 }
0x1cf1   :  { %v2192_v45 = vpop.permute.xlu1 %2191 }
0x1cf2   :  { %v2194_v46 = vmul.f32 %v2192_v45, %v2186_v16 }
0x1cf4   :  { %2196 = vrot.lane.b32.xlu0 %v2194_v46, %s5411_s29 }
0x1cf9   :  { %v2290_v57 = vpop.permute.xlu1 %2289 }
0x1cfa   :  { %v6197_v48 = vadd.f32 %v2290_v57, %v2282_v18 }
0x1cfc   :  { %5057 = vtanh.f32 %v6197_v48 }
0x1d02   :  { %v5058_v21 = vpop.eup %5057 }
0x1d03   :  { %2295 = vrot.lane.b32.xlu0 %v5058_v21, %s5410_s28 }
0x1d66   :  { %v2197_v32 = vpop.permute.xlu0 %2196 }
0x1d67   :  { %v6202_v55 = vadd.f32 %v2197_v32, %v2189_v9 }
0x1d69   :  { %5059 = vtanh.f32 %v6202_v55 }
0x1d6f   :  { %v5060_v27 = vpop.eup %5059 }
0x1d70   :  { %2202 = vrot.lane.b32.xlu2 %v5060_v27, %s5410_s28 }
0x1d75   :  { %v2296_v51 = vpop.permute.xlu0 %2295 }
0x1d76   :  { %v2298_v34 = vmul.f32 %v2296_v51, %v2279_v60 }
0x1d78   :  { %2300 = vrot.lane.b32.xlu2 %v2298_v34, %s5411_s29 }
0x1dca   :  { %v2203_v37 = vpop.permute.xlu2 %2202 }
0x1dcb   :  { %v2205_v58 = vmul.f32 %v2203_v37, %v2186_v16 }
0x1dcd   :  { %2303 = vrot.lane.b32.xlu0 %v2205_v58, %s5410_s28  ;;  %2212 = vrot.lane.b32.xlu1 %v2205_v58, %s5411_s29 }
0x1dd2   :  { %v2301_v59 = vpop.permute.xlu2 %2300 }
0x1dd3   :  { %4781 = vmatmul.msk.f32.vlgmr.msrb.gmra.mxu1 %vm308_vm5, %v2301_v59 }
0x1e3f   :  { %v2213_v43 = vpop.permute.xlu1 %2212  ;;  %v2304_v33 = vpop.permute.xlu0 %2303 }
0x1e40   :  { %4775 = vmatmul.msk.f32.vlgmr.msrb.gmra.mxu2 %vm308_vm5, %v2213_v43  ;;  %v2306_v61 = vsel %vm308_vm5, %v2301_v59, %v2304_v33 }
0x1e41   :  { %2575 = vmatpush.msrb.mxu2 %v6030_v5 }
0x1e43   :  { %2576 = vmatpush.msrb.mxu2 %v6036_v26 }
0x1e45   :  { %2577 = vmatpush.msrb.mxu2 %v6042_v39 }
0x1e47   :  { %2578 = vmatpush.msrb.mxu2 %v6131_v31 }
0x1e48   :  { %4778 = vmatmul.msk.f32.vlgmr.msra.gmra.mxu2 %vm375_vm6, %v2306_v61 }
0x1e50   :  { %v2419_v6 = vpop.f32.mrf.mxu1 }
0x1e51   :  { %v2422_v50 = vadd.f32 %v2419_v6, %v219_v7  ;;  %v60_v7 = vld [vmem:[%s6966_s0 + $0x70] sm:$0xff]  ;;  %v2371_v6 = vld [vmem:[#allocation3 + $0x198] sm:$0xff] }
0x1e52   :  { %4704 = vmatmul.msk.f32.gmra.mxu0 %vm80_vm0, %v60_v7  ;;  %2389 = vmatpush.msra.mxu3 %v2371_v6 }
0x1e53   :  { %5061 = vtanh.f32 %v2422_v50  ;;  %v4782_v8 = vmul.f32 -1.442695, %v2422_v50  ;;  %v2370_v50 = vld [vmem:[#allocation3 + $0x190] sm:$0xff] }
0x1e54   :  { %2390 = vmatpush.msra.mxu3 %v2370_v50 }
0x1e55   :  { %5063 = vpow2.f32 %v4782_v8 }
0x1e59   :  { %v5062_v14 = vpop.eup %5061 }
0x1e5a   :  { %2445 = vrot.lane.b32.xlu2 %v5062_v14, %s5410_s28  ;;  %v2368_v14 = vld [vmem:[#allocation3 + $0x180] sm:$0xff] }
0x1e5b   :  { %v5064_v10 = vpop.eup %5063 }
0x1e5c   :  { %v2426_v54 = vadd.f32 1.0, %v5064_v10 }
0x1e5e   :  { %5065 = vrcp.f32 %v2426_v54  ;;  %v2438_v15 = vand.u32 2147483648, %v2426_v54  ;;  %vm2432_vm13 = vweird.f32 %v2426_v54  ;;  %v2436_v35 = vand.u32 2147483647, %v2426_v54 }
0x1e60   :  { %vm2437_vm15 = vcmp.eq.f32.partialorder %v2436_v35, 8.507059e+37 }
0x1e64   :  { %v5066_v17 = vpop.eup %5065 }
0x1e65   :  { %v2428_v60 = vmul.f32 %v5066_v17, %v2426_v54  ;;  %vm2433_vm12 = vweird.f32 %v5066_v17 }
0x1e66   :  { %vm2434_vm14 = vmor %vm2432_vm13, %vm2433_vm12 }
0x1e67   :  { %v2429_v20 = vsub.f32 1.0, %v2428_v60 }
0x1e69   :  { %v2430_v0 = vmul.f32 %v5066_v17, %v2429_v20 }
0x1e6b   :  { %v2431_v22 = vadd.f32 %v5066_v17, %v2430_v0 }
0x1e6d   :  { %v2435_v19 = vsel %vm2434_vm14, %v5066_v17, %v2431_v22 }
0x1eb4   :  { %v2446_v38 = vpop.permute.xlu2 %2445 }
0x1ec3   :  { %v2233_v12 = vpop.f32.mrf.mxu2 }
0x1ec4   :  { %v6232_v49 = vadd.f32 %v2233_v12, %v6190_v29  ;;  %v2439_v29 = vor.u32 1.1754944e-38, %v2438_v15 }
0x1ec6   :  { %v2440_v30 = vsel %vm2437_vm15, %v2439_v29, %v2435_v19 }
0x1ec7   :  { %v2448_v2 = vmul.f32 %v2446_v38, %v2440_v30  ;;  %v2443_v56 = vmul.f32 %v2440_v30, %v6197_v48 }
0x1ecb   :  { %v2327_v11 = vpop.f32.mrf.mxu2 }
0x1ecc   :  { %v2328_v62 = vadd.f32 %v6148_v47, %v2327_v11 }
0x1ece   :  { %5067 = vtanh.f32 %v2328_v62  ;;  %v4779_v53 = vmul.f32 -1.442695, %v2328_v62 }
0x1ecf   :  { %v221_v20 = vpop.f32.mrf.mxu0 }
0x1ed0   :  { %5069 = vpow2.f32 %v4779_v53  ;;  %v222_v11 = vadd.f32 %v6138_v42, %v221_v20  ;;  %v2531_v20 = vld [vmem:[#allocation3 + $0x1b0] sm:$0xff] }
0x1ed4   :  { %v5068_v13 = vpop.eup %5067 }
0x1ed5   :  { %2352 = vrot.lane.b32.xlu1 %v5068_v13, %s5410_s28 }
0x1ed6   :  { %v5070_v45 = vpop.eup %5069 }
0x1ed7   :  { %v2333_v16 = vadd.f32 1.0, %v5070_v45 }
0x1ed9   :  { %5071 = vrcp.f32 %v2333_v16  ;;  %v2345_v32 = vand.u32 2147483648, %v2333_v16  ;;  %vm2339_vm2 = vweird.f32 %v2333_v16  ;;  %v2343_v27 = vand.u32 2147483647, %v2333_v16 }
0x1edb   :  { %v2346_v34 = vor.u32 1.1754944e-38, %v2345_v32  ;;  %vm2344_vm4 = vcmp.eq.f32.partialorder %v2343_v27, 8.507059e+37 }
0x1edd   :  { %2450 = vrot.lane.b32.xlu1 %v2448_v2, %s5411_s29 }
0x1edf   :  { %v5072_v46 = vpop.eup %5071 }
0x1ee0   :  { %v2335_v18 = vmul.f32 %v5072_v46, %v2333_v16  ;;  %vm2340_vm1 = vweird.f32 %v5072_v46 }
0x1ee1   :  { %vm2341_vm3 = vmor %vm2339_vm2, %vm2340_vm1 }
0x1ee2   :  { %v2336_v57 = vsub.f32 1.0, %v2335_v18 }
0x1ee4   :  { %v2337_v21 = vmul.f32 %v5072_v46, %v2336_v57 }
0x1ee6   :  { %v2338_v9 = vadd.f32 %v5072_v46, %v2337_v21 }
0x1ee8   :  { %v2342_v51 = vsel %vm2341_vm3, %v5072_v46, %v2338_v9 }
0x1ee9   :  { %v2347_v28 = vsel %vm2344_vm4, %v2346_v34, %v2342_v51 }
0x1eea   :  { %v2350_v59 = vmul.f32 %v2347_v28, %v6202_v55  ;;  %v2369_v55 = vld [vmem:[#allocation3 + $0x188] sm:$0xff] }
0x1eeb   :  { %2391 = vmatpush.msra.mxu3 %v2369_v55 }
0x1eed   :  { %2392 = vmatpush.msra.mxu3 %v2368_v14 }
0x1eef   :  { %2479 = vmatpush.msrb.mxu3 %v6075_v23 }
0x1ef1   :  { %2480 = vmatpush.msrb.mxu3 %v6081_v24 }
0x1ef3   :  { %2481 = vmatpush.msrb.mxu3 %v6087_v1 }
0x1ef5   :  { %2482 = vmatpush.msrb.mxu3 %v6093_v3 }
0x1ef7   :  { %2483 = vmatpush.msrb.mxu3 %v6099_v36 }
0x1ef9   :  { %2484 = vmatpush.msrb.mxu3 %v6105_v40 }
0x1efb   :  { %2485 = vmatpush.msrb.mxu3 %v6111_v41 }
0x1efd   :  { %2486 = vmatpush.msrb.mxu3 %v6117_v4 }
0x1f47   :  { %v2353_v52 = vpop.permute.xlu1 %2352 }
0x1f48   :  { %v2355_v25 = vmul.f32 %v2353_v52, %v2347_v28 }
0x1f4a   :  { %2357 = vrot.lane.b32.xlu0 %v2355_v25, %s5411_s29 }
0x1f4f   :  { %v2451_v44 = vpop.permute.xlu1 %2450 }
0x1f50   :  { %v6239_v37 = vadd.f32 %v2451_v44, %v2443_v56 }
0x1f52   :  { %5073 = vtanh.f32 %v6239_v37 }
0x1f58   :  { %v5074_v58 = vpop.eup %5073 }
0x1f59   :  { %2456 = vrot.lane.b32.xlu0 %v5074_v58, %s5410_s28 }
0x1fbc   :  { %v2358_v43 = vpop.permute.xlu0 %2357 }
0x1fbd   :  { %v6244_v33 = vadd.f32 %v2358_v43, %v2350_v59 }
0x1fbf   :  { %5075 = vtanh.f32 %v6244_v33 }
0x1fc5   :  { %v5076_v61 = vpop.eup %5075 }
0x1fc6   :  { %2363 = vrot.lane.b32.xlu2 %v5076_v61, %s5410_s28 }
0x1fcb   :  { %v2457_v63 = vpop.permute.xlu0 %2456 }
0x1fcc   :  { %v2459_v48 = vmul.f32 %v2457_v63, %v2440_v30 }
0x1fce   :  { %2461 = vrot.lane.b32.xlu2 %v2459_v48, %s5411_s29 }
0x2020   :  { %v2364_v8 = vpop.permute.xlu2 %2363 }
0x2021   :  { %v2366_v10 = vmul.f32 %v2364_v8, %v2347_v28 }
0x2023   :  { %2464 = vrot.lane.b32.xlu0 %v2366_v10, %s5410_s28  ;;  %2373 = vrot.lane.b32.xlu1 %v2366_v10, %s5411_s29 }
0x2028   :  { %v2462_v54 = vpop.permute.xlu2 %2461 }
0x2029   :  { %4786 = vmatmul.msk.f32.vlgmr.msrb.gmra.mxu2 %vm308_vm5, %v2462_v54 }
0x2095   :  { %v2374_v12 = vpop.permute.xlu1 %2373  ;;  %v2465_v17 = vpop.permute.xlu0 %2464 }
0x2096   :  { %4780 = vmatmul.msk.f32.vlgmr.msra.gmra.mxu3 %vm308_vm5, %v2374_v12  ;;  %v2467_v60 = vsel %vm308_vm5, %v2462_v54, %v2465_v17  ;;  %v61_v17 = vld [vmem:[%s6966_s0 + $0x78] sm:$0xff] }
0x2097   :  { %2736 = vmatpush.msra.mxu3 %v6030_v5  ;;  %4705 = vmatmul.msk.f32.gmra.mxu0 %vm80_vm0, %v61_v17 }
0x2099   :  { %2737 = vmatpush.msra.mxu3 %v6036_v26 }
0x209b   :  { %2738 = vmatpush.msra.mxu3 %v6042_v39 }
0x209d   :  { %2739 = vmatpush.msra.mxu3 %v6131_v31 }
0x209e   :  { %4783 = vmatmul.msk.f32.vlgmr.msrb.gmra.mxu3 %vm375_vm6, %v2467_v60  ;;  %v2532_v60 = vld [vmem:[#allocation3 + $0x1b8] sm:$0xff] }
0x209f   :  { %2550 = vmatpush.msra.mxu1 %v2532_v60  ;;  %v62_v60 = vld [vmem:[%s6966_s0 + $0x80] sm:$0xff] }
0x20a0   :  { %4706 = vmatmul.msk.f32.gmra.mxu0 %vm80_vm0, %v62_v60 }
0x20a1   :  { %2551 = vmatpush.msra.mxu1 %v2531_v20  ;;  %v2693_v20 = vld [vmem:[#allocation3 + $0x1d8] sm:$0xff] }
0x20a2   :  { %2711 = vmatpush.msra.mxu2 %v2693_v20 }
0x20ac   :  { %v2580_v62 = vpop.f32.mrf.mxu2 }
0x20ad   :  { %v2583_v0 = vadd.f32 %v2580_v62, %v222_v11  ;;  %v2529_v11 = vld [vmem:[#allocation3 + $0x1a0] sm:$0xff] }
0x20af   :  { %5077 = vtanh.f32 %v2583_v0  ;;  %v4787_v5 = vmul.f32 -1.442695, %v2583_v0 }
0x20b1   :  { %5079 = vpow2.f32 %v4787_v5 }
0x20b5   :  { %v5078_v22 = vpop.eup %5077 }
0x20b6   :  { %2606 = vrot.lane.b32.xlu2 %v5078_v22, %s5410_s28 }
0x20b7   :  { %v5080_v26 = vpop.eup %5079 }
0x20b8   :  { %v2587_v13 = vadd.f32 1.0, %v5080_v26 }
0x20ba   :  { %5081 = vrcp.f32 %v2587_v13  ;;  %v2599_v16 = vand.u32 2147483648, %v2587_v13  ;;  %vm2593_vm8 = vweird.f32 %v2587_v13  ;;  %v2597_v46 = vand.u32 2147483647, %v2587_v13 }
0x20bc   :  { %vm2598_vm10 = vcmp.eq.f32.partialorder %v2597_v46, 8.507059e+37 }
0x20c0   :  { %v5082_v15 = vpop.eup %5081 }
0x20c1   :  { %v2589_v19 = vmul.f32 %v5082_v15, %v2587_v13  ;;  %vm2594_vm7 = vweird.f32 %v5082_v15 }
0x20c2   :  { %vm2595_vm9 = vmor %vm2593_vm8, %vm2594_vm7 }
0x20c3   :  { %v2590_v38 = vsub.f32 1.0, %v2589_v19 }
0x20c5   :  { %v2591_v2 = vmul.f32 %v5082_v15, %v2590_v38 }
0x20c7   :  { %v2592_v53 = vadd.f32 %v5082_v15, %v2591_v2 }
0x20c9   :  { %v2596_v18 = vsel %vm2595_vm9, %v5082_v15, %v2592_v53 }
0x2110   :  { %v2607_v57 = vpop.permute.xlu2 %2606 }
0x2119   :  { %v2394_v39 = vpop.f32.mrf.mxu3 }
0x211a   :  { %v6274_v35 = vadd.f32 %v2394_v39, %v6232_v49  ;;  %v2600_v49 = vor.u32 1.1754944e-38, %v2599_v16 }
0x211c   :  { %v2601_v21 = vsel %vm2598_vm10, %v2600_v49, %v2596_v18 }
0x211d   :  { %v2609_v9 = vmul.f32 %v2607_v57, %v2601_v21  ;;  %v2604_v7 = vmul.f32 %v2601_v21, %v6239_v37 }
0x2121   :  { %v2488_v29 = vpop.f32.mrf.mxu3 }
0x2122   :  { %v2489_v30 = vadd.f32 %v6148_v47, %v2488_v29 }
0x2124   :  { %5083 = vtanh.f32 %v2489_v30  ;;  %v4784_v32 = vmul.f32 -1.442695, %v2489_v30 }
0x2126   :  { %5085 = vpow2.f32 %v4784_v32 }
0x212a   :  { %v5084_v45 = vpop.eup %5083 }
0x212b   :  { %2513 = vrot.lane.b32.xlu1 %v5084_v45, %s5410_s28 }
0x212c   :  { %v5086_v27 = vpop.eup %5085 }
0x212d   :  { %v2494_v51 = vadd.f32 1.0, %v5086_v27 }
0x212f   :  { %5087 = vrcp.f32 %v2494_v51  ;;  %v2506_v44 = vand.u32 2147483648, %v2494_v51  ;;  %vm2500_vm12 = vweird.f32 %v2494_v51  ;;  %v2504_v58 = vand.u32 2147483647, %v2494_v51 }
0x2131   :  { %v2507_v43 = vor.u32 1.1754944e-38, %v2506_v44  ;;  %vm2505_vm14 = vcmp.eq.f32.partialorder %v2504_v58, 8.507059e+37 }
0x2133   :  { %2611 = vrot.lane.b32.xlu1 %v2609_v9, %s5411_s29 }
0x2135   :  { %v5088_v34 = vpop.eup %5087 }
0x2136   :  { %v2496_v52 = vmul.f32 %v5088_v34, %v2494_v51  ;;  %vm2501_vm11 = vweird.f32 %v5088_v34 }
0x2137   :  { %vm2502_vm13 = vmor %vm2500_vm12, %vm2501_vm11 }
0x2138   :  { %v2497_v28 = vsub.f32 1.0, %v2496_v52 }
0x213a   :  { %v2498_v25 = vmul.f32 %v5088_v34, %v2497_v28 }
0x213c   :  { %v2499_v56 = vadd.f32 %v5088_v34, %v2498_v25 }
0x213e   :  { %v2503_v59 = vsel %vm2502_vm13, %v5088_v34, %v2499_v56 }
0x213f   :  { %v2508_v63 = vsel %vm2505_vm14, %v2507_v43, %v2503_v59 }
0x2140   :  { %v2511_v14 = vmul.f32 %v2508_v63, %v6244_v33  ;;  %v2530_v33 = vld [vmem:[#allocation3 + $0x1a8] sm:$0xff] }
0x2141   :  { %2552 = vmatpush.msra.mxu1 %v2530_v33  ;;  %v2691_v33 = vld [vmem:[#allocation3 + $0x1c8] sm:$0xff] }
0x2143   :  { %2553 = vmatpush.msra.mxu1 %v2529_v11  ;;  %v2690_v11 = vld [vmem:[#allocation3 + $0x1c0] sm:$0xff] }
0x2145   :  { %2640 = vmatpush.msrb.mxu1 %v6075_v23 }
0x2147   :  { %2641 = vmatpush.msrb.mxu1 %v6081_v24 }
0x2149   :  { %2642 = vmatpush.msrb.mxu1 %v6087_v1  ;;  %v6310_v1 = vld [vmem:[%s6968_s2 + $0x18] sm:$0xff] }
0x214b   :  { %2643 = vmatpush.msrb.mxu1 %v6093_v3  ;;  %v6316_v3 = vld [vmem:[%s6968_s2 + $0x10] sm:$0xff] }
0x214d   :  { %2644 = vmatpush.msrb.mxu1 %v6099_v36 }
0x214f   :  { %2645 = vmatpush.msrb.mxu1 %v6105_v40  ;;  %v6322_v40 = vld [vmem:[%s6968_s2 + $0x8] sm:$0xff] }
0x2151   :  { %2646 = vmatpush.msrb.mxu1 %v6111_v41 }
0x2153   :  { %2647 = vmatpush.msrb.mxu1 %v6117_v4  ;;  %v224_v4 = vpop.f32.mrf.mxu0 }
0x2154   :  { %v225_v22 = vadd.f32 %v6138_v42, %v224_v4  ;;  %v6391_v4 = vld [vmem:[%s6970_s4 + $0x8] sm:$0xff] }
0x219d   :  { %v2514_v61 = vpop.permute.xlu1 %2513 }
0x219e   :  { %v2516_v48 = vmul.f32 %v2514_v61, %v2508_v63 }
0x21a0   :  { %2518 = vrot.lane.b32.xlu0 %v2516_v48, %s5411_s29 }
0x21a5   :  { %v2612_v6 = vpop.permute.xlu1 %2611 }
0x21a6   :  { %v6281_v50 = vadd.f32 %v2612_v6, %v2604_v7 }
0x21a8   :  { %5089 = vtanh.f32 %v6281_v50 }
0x21ae   :  { %v5090_v55 = vpop.eup %5089 }
0x21af   :  { %2617 = vrot.lane.b32.xlu0 %v5090_v55, %s5410_s28 }
0x2212   :  { %v2519_v8 = vpop.permute.xlu0 %2518 }
0x2213   :  { %v6286_v10 = vadd.f32 %v2519_v8, %v2511_v14 }
0x2215   :  { %5091 = vtanh.f32 %v6286_v10 }
0x221b   :  { %v5092_v54 = vpop.eup %5091 }
0x221c   :  { %2524 = vrot.lane.b32.xlu2 %v5092_v54, %s5410_s28 }
0x2221   :  { %v2618_v12 = vpop.permute.xlu0 %2617 }
0x2222   :  { %v2620_v37 = vmul.f32 %v2618_v12, %v2601_v21 }
0x2224   :  { %2622 = vrot.lane.b32.xlu2 %v2620_v37, %s5411_s29 }
0x2276   :  { %v2525_v62 = vpop.permute.xlu2 %2524 }
0x2277   :  { %v2527_v0 = vmul.f32 %v2525_v62, %v2508_v63  ;;  %v6355_v62 = vld [vmem:[%s6970_s4 + $0x38] sm:$0xff] }
0x2279   :  { %2625 = vrot.lane.b32.xlu0 %v2527_v0, %s5410_s28  ;;  %2534 = vrot.lane.b32.xlu1 %v2527_v0, %s5411_s29  ;;  %v6361_v0 = vld [vmem:[%s6970_s4 + $0x30] sm:$0xff] }
0x227e   :  { %v2623_v23 = vpop.permute.xlu2 %2622 }
0x227f   :  { %4791 = vmatmul.msk.f32.vlgmr.msra.gmra.mxu3 %vm308_vm5, %v2623_v23 }
0x22eb   :  { %v2535_v24 = vpop.permute.xlu1 %2534  ;;  %v2626_v36 = vpop.permute.xlu0 %2625 }
0x22ec   :  { %4785 = vmatmul.msk.f32.vlgmr.msra.gmra.mxu1 %vm308_vm5, %v2535_v24  ;;  %v2628_v41 = vsel %vm308_vm5, %v2623_v23, %v2626_v36  ;;  %v6367_v23 = vld [vmem:[%s6970_s4 + $0x28] sm:$0xff]  ;;  %v6373_v24 = vld [vmem:[%s6970_s4 + $0x20] sm:$0xff]  ;;  %v6379_v36 = vld [vmem:[%s6970_s4 + $0x18] sm:$0xff] }
0x22ed   :  { %2897 = vmatpush.msra.mxu1 %v6310_v1 }
0x22ef   :  { %2898 = vmatpush.msra.mxu1 %v6316_v3 }
0x22f1   :  { %2899 = vmatpush.msra.mxu1 %v6322_v40 }
0x22f3   :  { %2900 = vmatpush.msra.mxu1 %v6131_v31 }
0x22f4   :  { %4788 = vmatmul.msk.f32.vlgmr.msrb.gmra.mxu1 %vm375_vm6, %v2628_v41  ;;  %v6385_v41 = vld [vmem:[%s6970_s4 + $0x10] sm:$0xff] }
0x2302   :  { %v2741_v5 = vpop.f32.mrf.mxu3 }
0x2303   :  { %v2744_v26 = vadd.f32 %v2741_v5, %v225_v22  ;;  %v6397_v22 = vld [vmem:[%s6970_s4] sm:$0xff] }
0x2305   :  { %5093 = vtanh.f32 %v2744_v26  ;;  %v4792_v39 = vmul.f32 -1.442695, %v2744_v26 }
0x2307   :  { %5095 = vpow2.f32 %v4792_v39 }
0x230b   :  { %v5094_v13 = vpop.eup %5093 }
0x230c   :  { %2767 = vrot.lane.b32.xlu2 %v5094_v13, %s5410_s28 }
0x230d   :  { %v5096_v15 = vpop.eup %5095 }
0x230e   :  { %v2748_v19 = vadd.f32 1.0, %v5096_v15 }
0x2310   :  { %5097 = vrcp.f32 %v2748_v19  ;;  %v2760_v18 = vand.u32 2147483648, %v2748_v19  ;;  %vm2754_vm1 = vweird.f32 %v2748_v19  ;;  %v2758_v57 = vand.u32 2147483647, %v2748_v19 }
0x2312   :  { %vm2759_vm3 = vcmp.eq.f32.partialorder %v2758_v57, 8.507059e+37 }
0x2316   :  { %v5098_v29 = vpop.eup %5097 }
0x2317   :  { %v2750_v30 = vmul.f32 %v5098_v29, %v2748_v19  ;;  %vm2755_vm15 = vweird.f32 %v5098_v29 }
0x2318   :  { %vm2756_vm2 = vmor %vm2754_vm1, %vm2755_vm15 }
0x2319   :  { %v2751_v2 = vsub.f32 1.0, %v2750_v30  ;;  %v6418_v30 = vld [vmem:[%s6969_s3] ss:$0 sm:$0xff] }
0x231b   :  { %v2752_v45 = vmul.f32 %v5098_v29, %v2751_v2 }
0x231d   :  { %v2753_v16 = vadd.f32 %v5098_v29, %v2752_v45 }
0x231f   :  { %v2757_v49 = vsel %vm2756_vm2, %v5098_v29, %v2753_v16  ;;  %v227_v29 = vpop.f32.mrf.mxu0 }
0x2320   :  { %v228_v2 = vadd.f32 %v6418_v30, %v227_v29 }
0x2366   :  { %v2768_v21 = vpop.permute.xlu2 %2767 }
0x2369   :  { %v2555_v38 = vpop.f32.mrf.mxu1 }
0x236a   :  { %v6331_v31 = vadd.f32 %v2555_v38, %v6274_v35  ;;  %v2761_v35 = vor.u32 1.1754944e-38, %v2760_v18  ;;  %v6411_v38 = vld [vmem:[%s6968_s2] sm:$0xff] }
0x236c   :  { %v2762_v9 = vsel %vm2759_vm3, %v2761_v35, %v2757_v49 }
0x236d   :  { %v2770_v32 = vmul.f32 %v2768_v21, %v2762_v9  ;;  %v2765_v7 = vmul.f32 %v2762_v9, %v6281_v50 }
0x2371   :  { %v2649_v53 = vpop.f32.mrf.mxu1 }
0x2372   :  { %v2650_v42 = vadd.f32 %v6148_v47, %v2649_v53 }
0x2374   :  { %5099 = vtanh.f32 %v2650_v42  ;;  %v4789_v47 = vmul.f32 -1.442695, %v2650_v42 }
0x2376   :  { %5101 = vpow2.f32 %v4789_v47  ;;  %v6428_v47 = vld [vmem:[%s6971_s5] ss:$0 sm:$0xff] }
0x237a   :  { %v5100_v46 = vpop.eup %5099 }
0x237b   :  { %2674 = vrot.lane.b32.xlu1 %v5100_v46, %s5410_s28 }
0x237c   :  { %v5102_v27 = vpop.eup %5101 }
0x237d   :  { %v2655_v51 = vadd.f32 1.0, %v5102_v27 }
0x237f   :  { %5103 = vrcp.f32 %v2655_v51  ;;  %v2667_v44 = vand.u32 2147483648, %v2655_v51  ;;  %vm2661_vm7 = vweird.f32 %v2655_v51  ;;  %v2665_v58 = vand.u32 2147483647, %v2655_v51 }
0x2381   :  { %v2668_v43 = vor.u32 1.1754944e-38, %v2667_v44  ;;  %vm2666_vm9 = vcmp.eq.f32.partialorder %v2665_v58, 8.507059e+37 }
0x2383   :  { %2772 = vrot.lane.b32.xlu1 %v2770_v32, %s5411_s29 }
0x2385   :  { %v5104_v34 = vpop.eup %5103 }
0x2386   :  { %v2657_v52 = vmul.f32 %v5104_v34, %v2655_v51  ;;  %vm2662_vm4 = vweird.f32 %v5104_v34 }
0x2387   :  { %vm2663_vm8 = vmor %vm2661_vm7, %vm2662_vm4 }
0x2388   :  { %v2658_v28 = vsub.f32 1.0, %v2657_v52 }
0x238a   :  { %v2659_v25 = vmul.f32 %v5104_v34, %v2658_v28 }
0x238c   :  { %v2660_v56 = vadd.f32 %v5104_v34, %v2659_v25 }
0x238e   :  { %v2664_v59 = vsel %vm2663_vm8, %v5104_v34, %v2660_v56 }
0x238f   :  { %v2669_v63 = vsel %vm2666_vm9, %v2668_v43, %v2664_v59 }
0x2390   :  { %v2672_v8 = vmul.f32 %v2669_v63, %v6286_v10  ;;  %v2692_v10 = vld [vmem:[#allocation3 + $0x1d0] sm:$0xff] }
0x2391   :  { %2712 = vmatpush.msra.mxu2 %v2692_v10 }
0x2393   :  { %2713 = vmatpush.msra.mxu2 %v2691_v33 }
0x2395   :  { %2714 = vmatpush.msra.mxu2 %v2690_v11 }
0x2397   :  { %2801 = vmatpush.msrb.mxu2 %v6355_v62 }
0x2399   :  { %2802 = vmatpush.msrb.mxu2 %v6361_v0 }
0x239b   :  { %2803 = vmatpush.msrb.mxu2 %v6367_v23 }
0x239d   :  { %2804 = vmatpush.msrb.mxu2 %v6373_v24 }
0x239f   :  { %2805 = vmatpush.msrb.mxu2 %v6379_v36 }
0x23a1   :  { %2806 = vmatpush.msrb.mxu2 %v6385_v41 }
0x23a3   :  { %2807 = vmatpush.msrb.mxu2 %v6391_v4 }
0x23a5   :  { %2808 = vmatpush.msrb.mxu2 %v6397_v22 }
0x23ed   :  { %v2675_v61 = vpop.permute.xlu1 %2674 }
0x23ee   :  { %v2677_v48 = vmul.f32 %v2675_v61, %v2669_v63 }
0x23f0   :  { %2679 = vrot.lane.b32.xlu0 %v2677_v48, %s5411_s29 }
0x23f5   :  { %v2773_v6 = vpop.permute.xlu1 %2772 }
0x23f6   :  { %v6338_v55 = vadd.f32 %v2773_v6, %v2765_v7 }
0x23f8   :  { %5105 = vtanh.f32 %v6338_v55 }
0x23fe   :  { %v5106_v14 = vpop.eup %5105 }
0x23ff   :  { %2778 = vrot.lane.b32.xlu0 %v5106_v14, %s5410_s28 }
0x2462   :  { %v2680_v54 = vpop.permute.xlu0 %2679 }
0x2463   :  { %v6343_v12 = vadd.f32 %v2680_v54, %v2672_v8 }
0x2465   :  { %5107 = vtanh.f32 %v6343_v12 }
0x246b   :  { %v5108_v37 = vpop.eup %5107 }
0x246c   :  { %2685 = vrot.lane.b32.xlu2 %v5108_v37, %s5410_s28 }
0x2471   :  { %v2779_v17 = vpop.permute.xlu0 %2778 }
0x2472   :  { %v2781_v50 = vmul.f32 %v2779_v17, %v2762_v9 }
0x2474   :  { %2783 = vrot.lane.b32.xlu2 %v2781_v50, %s5411_s29 }
0x24c6   :  { %v2686_v5 = vpop.permute.xlu2 %2685 }
0x24c7   :  { %v2688_v26 = vmul.f32 %v2686_v5, %v2669_v63 }
0x24c9   :  { %2786 = vrot.lane.b32.xlu0 %v2688_v26, %s5410_s28  ;;  %2695 = vrot.lane.b32.xlu1 %v2688_v26, %s5411_s29 }
0x24ce   :  { %v2784_v13 = vpop.permute.xlu2 %2783 }
0x24cf   :  { %4796 = vmatmul.msk.f32.vlgmr.msra.gmra.mxu1 %vm308_vm5, %v2784_v13 }
0x253b   :  { %v2696_v39 = vpop.permute.xlu1 %2695  ;;  %v2787_v15 = vpop.permute.xlu0 %2786 }
0x253c   :  { %4790 = vmatmul.msk.f32.vlgmr.msra.gmra.mxu2 %vm308_vm5, %v2696_v39  ;;  %v2789_v19 = vsel %vm308_vm5, %v2784_v13, %v2787_v15 }
0x253d   :  { %3058 = vmatpush.msra.mxu2 %v6310_v1 }
0x253f   :  { %3059 = vmatpush.msra.mxu2 %v6316_v3 }
0x2541   :  { %3060 = vmatpush.msra.mxu2 %v6322_v40 }
0x2543   :  { %3061 = vmatpush.msra.mxu2 %v6411_v38 }
0x2544   :  { %4793 = vmatmul.msk.f32.vlgmr.msrb.gmra.mxu2 %vm375_vm6, %v2789_v19 }
0x254c   :  { %v2902_v53 = vpop.f32.mrf.mxu1 }
0x254d   :  { %v2905_v42 = vadd.f32 %v2902_v53, %v228_v2  ;;  %v63_v2 = vld [vmem:[%s6966_s0 + $0x88] sm:$0xff]  ;;  %v2854_v53 = vld [vmem:[#allocation3 + $0x1f8] sm:$0xff] }
0x254e   :  { %4707 = vmatmul.msk.f32.gmra.mxu0 %vm80_vm0, %v63_v2  ;;  %2872 = vmatpush.msrb.mxu3 %v2854_v53 }
0x254f   :  { %5109 = vtanh.f32 %v2905_v42  ;;  %v4797_v16 = vmul.f32 -1.442695, %v2905_v42  ;;  %v2853_v42 = vld [vmem:[#allocation3 + $0x1f0] sm:$0xff] }
0x2550   :  { %2873 = vmatpush.msrb.mxu3 %v2853_v42 }
0x2551   :  { %5111 = vpow2.f32 %v4797_v16 }
0x2555   :  { %v5110_v45 = vpop.eup %5109 }
0x2556   :  { %2928 = vrot.lane.b32.xlu2 %v5110_v45, %s5410_s28  ;;  %v2851_v45 = vld [vmem:[#allocation3 + $0x1e0] sm:$0xff] }
0x2557   :  { %v5112_v46 = vpop.eup %5111 }
0x2558   :  { %v2909_v18 = vadd.f32 1.0, %v5112_v46 }
0x255a   :  { %5113 = vrcp.f32 %v2909_v18  ;;  %v2921_v28 = vand.u32 2147483648, %v2909_v18  ;;  %vm2915_vm11 = vweird.f32 %v2909_v18  ;;  %v2919_v25 = vand.u32 2147483647, %v2909_v18 }
0x255c   :  { %v2922_v44 = vor.u32 1.1754944e-38, %v2921_v28  ;;  %vm2920_vm13 = vcmp.eq.f32.partialorder %v2919_v25, 8.507059e+37 }
0x2560   :  { %v5114_v49 = vpop.eup %5113 }
0x2561   :  { %v2911_v35 = vmul.f32 %v5114_v49, %v2909_v18  ;;  %vm2916_vm10 = vweird.f32 %v5114_v49 }
0x2562   :  { %vm2917_vm12 = vmor %vm2915_vm11, %vm2916_vm10 }
0x2563   :  { %v2912_v9 = vsub.f32 1.0, %v2911_v35 }
0x2565   :  { %v2913_v51 = vmul.f32 %v5114_v49, %v2912_v9 }
0x2567   :  { %v2914_v34 = vadd.f32 %v5114_v49, %v2913_v51 }
0x25b0   :  { %v2929_v56 = vpop.permute.xlu2 %2928 }
0x25bf   :  { %v2716_v57 = vpop.f32.mrf.mxu2 }
0x25c0   :  { %v6423_v21 = vadd.f32 %v2716_v57, %v6331_v31  ;;  %v2918_v31 = vsel %vm2917_vm12, %v5114_v49, %v2914_v34 }
0x25c1   :  { %v2923_v58 = vsel %vm2920_vm13, %v2922_v44, %v2918_v31 }
0x25c2   :  { %v2931_v59 = vmul.f32 %v2929_v56, %v2923_v58  ;;  %v2926_v33 = vmul.f32 %v2923_v58, %v6338_v55 }
0x25c7   :  { %v2810_v32 = vpop.f32.mrf.mxu2 }
0x25c8   :  { %v2811_v27 = vadd.f32 %v6428_v47, %v2810_v32 }
0x25ca   :  { %5115 = vtanh.f32 %v2811_v27  ;;  %v4794_v43 = vmul.f32 -1.442695, %v2811_v27 }
0x25cb   :  { %v230_v9 = vpop.f32.mrf.mxu0 }
0x25cc   :  { %5117 = vpow2.f32 %v4794_v43  ;;  %v231_v32 = vadd.f32 %v6418_v30, %v230_v9 }
0x25d0   :  { %v5116_v52 = vpop.eup %5115 }
0x25d1   :  { %2835 = vrot.lane.b32.xlu1 %v5116_v52, %s5410_s28 }
0x25d2   :  { %v5118_v61 = vpop.eup %5117 }
0x25d3   :  { %v2816_v63 = vadd.f32 1.0, %v5118_v61 }
0x25d5   :  { %5119 = vrcp.f32 %v2816_v63  ;;  %v2828_v54 = vand.u32 2147483648, %v2816_v63  ;;  %vm2822_vm15 = vweird.f32 %v2816_v63  ;;  %v2826_v37 = vand.u32 2147483647, %v2816_v63 }
0x25d7   :  { %v2829_v50 = vor.u32 1.1754944e-38, %v2828_v54  ;;  %vm2827_vm2 = vcmp.eq.f32.partialorder %v2826_v37, 8.507059e+37 }
0x25d9   :  { %2933 = vrot.lane.b32.xlu1 %v2931_v59, %s5411_s29 }
0x25db   :  { %v5120_v48 = vpop.eup %5119 }
0x25dc   :  { %v2818_v7 = vmul.f32 %v5120_v48, %v2816_v63  ;;  %vm2823_vm14 = vweird.f32 %v5120_v48 }
0x25dd   :  { %vm2824_vm1 = vmor %vm2822_vm15, %vm2823_vm14 }
0x25de   :  { %v2819_v6 = vsub.f32 1.0, %v2818_v7 }
0x25e0   :  { %v2820_v14 = vmul.f32 %v5120_v48, %v2819_v6 }
0x25e2   :  { %v2821_v8 = vadd.f32 %v5120_v48, %v2820_v14 }
0x25e4   :  { %v2825_v17 = vsel %vm2824_vm1, %v5120_v48, %v2821_v8 }
0x25e5   :  { %v2830_v20 = vsel %vm2827_vm2, %v2829_v50, %v2825_v17 }
0x25e6   :  { %v2833_v13 = vmul.f32 %v2830_v20, %v6343_v12  ;;  %v2852_v12 = vld [vmem:[#allocation3 + $0x1e8] sm:$0xff] }
0x25e7   :  { %2874 = vmatpush.msrb.mxu3 %v2852_v12 }
0x25e9   :  { %2875 = vmatpush.msrb.mxu3 %v2851_v45 }
0x25eb   :  { %2962 = vmatpush.msra.mxu3 %v6355_v62 }
0x25ed   :  { %2963 = vmatpush.msra.mxu3 %v6361_v0 }
0x25ef   :  { %2964 = vmatpush.msra.mxu3 %v6367_v23 }
0x25f1   :  { %2965 = vmatpush.msra.mxu3 %v6373_v24 }
0x25f3   :  { %2966 = vmatpush.msra.mxu3 %v6379_v36 }
0x25f5   :  { %2967 = vmatpush.msra.mxu3 %v6385_v41 }
0x25f7   :  { %2968 = vmatpush.msra.mxu3 %v6391_v4 }
0x25f9   :  { %2969 = vmatpush.msra.mxu3 %v6397_v22 }
0x2643   :  { %v2836_v60 = vpop.permute.xlu1 %2835 }
0x2644   :  { %v2838_v10 = vmul.f32 %v2836_v60, %v2830_v20 }
0x2646   :  { %2840 = vrot.lane.b32.xlu0 %v2838_v10, %s5411_s29 }
0x264b   :  { %v2934_v11 = vpop.permute.xlu1 %2933 }
0x264c   :  { %v6435_v5 = vadd.f32 %v2934_v11, %v2926_v33 }
0x264e   :  { %5121 = vtanh.f32 %v6435_v5 }
0x2654   :  { %v5122_v26 = vpop.eup %5121 }
0x2655   :  { %2939 = vrot.lane.b32.xlu0 %v5122_v26, %s5410_s28 }
0x26b8   :  { %v2841_v39 = vpop.permute.xlu0 %2840 }
0x26b9   :  { %v6440_v15 = vadd.f32 %v2841_v39, %v2833_v13 }
0x26bb   :  { %5123 = vtanh.f32 %v6440_v15 }
0x26c1   :  { %v5124_v19 = vpop.eup %5123 }
0x26c2   :  { %2846 = vrot.lane.b32.xlu2 %v5124_v19, %s5410_s28 }
0x26c7   :  { %v2940_v29 = vpop.permute.xlu0 %2939 }
0x26c8   :  { %v2942_v55 = vmul.f32 %v2940_v29, %v2923_v58 }
0x26ca   :  { %2944 = vrot.lane.b32.xlu2 %v2942_v55, %s5411_s29 }
0x271c   :  { %v2847_v16 = vpop.permute.xlu2 %2846 }
0x271d   :  { %v2849_v46 = vmul.f32 %v2847_v16, %v2830_v20 }
0x271f   :  { %2947 = vrot.lane.b32.xlu0 %v2849_v46, %s5410_s28  ;;  %2856 = vrot.lane.b32.xlu1 %v2849_v46, %s5411_s29 }
0x2724   :  { %v2945_v18 = vpop.permute.xlu2 %2944 }
0x2725   :  { %4801 = vmatmul.msk.f32.vlgmr.msra.gmra.mxu2 %vm308_vm5, %v2945_v18 }
0x2791   :  { %v2857_v57 = vpop.permute.xlu1 %2856  ;;  %v2948_v49 = vpop.permute.xlu0 %2947 }
0x2792   :  { %4795 = vmatmul.msk.f32.vlgmr.msrb.gmra.mxu3 %vm308_vm5, %v2857_v57  ;;  %v2950_v35 = vsel %vm308_vm5, %v2945_v18, %v2948_v49 }
0x2793   :  { %3219 = vmatpush.msrb.mxu3 %v6310_v1 }
0x2795   :  { %3220 = vmatpush.msrb.mxu3 %v6316_v3 }
0x2797   :  { %3221 = vmatpush.msrb.mxu3 %v6322_v40 }
0x2799   :  { %3222 = vmatpush.msrb.mxu3 %v6411_v38 }
0x279a   :  { %4798 = vmatmul.msk.f32.vlgmr.msra.gmra.mxu3 %vm375_vm6, %v2950_v35 }
0x27a8   :  { %v3063_v27 = vpop.f32.mrf.mxu2 }
0x27a9   :  { %v3066_v51 = vadd.f32 %v3063_v27, %v231_v32  ;;  %v64_v32 = vld [vmem:[%s6966_s0 + $0x90] sm:$0xff]  ;;  %v3015_v27 = vld [vmem:[#allocation3 + $0x218] sm:$0xff] }
0x27aa   :  { %4708 = vmatmul.msk.f32.gmra.mxu0 %vm80_vm0, %v64_v32  ;;  %3033 = vmatpush.msrb.mxu1 %v3015_v27 }
0x27ab   :  { %5125 = vtanh.f32 %v3066_v51  ;;  %v4802_v52 = vmul.f32 -1.442695, %v3066_v51  ;;  %v3014_v51 = vld [vmem:[#allocation3 + $0x210] sm:$0xff] }
0x27ac   :  { %3034 = vmatpush.msrb.mxu1 %v3014_v51 }
0x27ad   :  { %5127 = vpow2.f32 %v4802_v52 }
0x27b1   :  { %v5126_v34 = vpop.eup %5125 }
0x27b2   :  { %3089 = vrot.lane.b32.xlu2 %v5126_v34, %s5410_s28  ;;  %v3012_v34 = vld [vmem:[#allocation3 + $0x200] sm:$0xff] }
0x27b3   :  { %v5128_v28 = vpop.eup %5127 }
0x27b4   :  { %v3070_v25 = vadd.f32 1.0, %v5128_v28 }
0x27b6   :  { %5129 = vrcp.f32 %v3070_v25  ;;  %v3082_v6 = vand.u32 2147483648, %v3070_v25  ;;  %vm3076_vm4 = vweird.f32 %v3070_v25  ;;  %v3080_v14 = vand.u32 2147483647, %v3070_v25 }
0x27b8   :  { %vm3081_vm8 = vcmp.eq.f32.partialorder %v3080_v14, 8.507059e+37 }
0x27bc   :  { %v5130_v56 = vpop.eup %5129 }
0x27bd   :  { %v3072_v58 = vmul.f32 %v5130_v56, %v3070_v25  ;;  %vm3077_vm3 = vweird.f32 %v5130_v56 }
0x27be   :  { %vm3078_vm7 = vmor %vm3076_vm4, %vm3077_vm3 }
0x27bf   :  { %v3073_v59 = vsub.f32 1.0, %v3072_v58 }
0x27c1   :  { %v3074_v63 = vmul.f32 %v5130_v56, %v3073_v59 }
0x27c3   :  { %v3075_v48 = vadd.f32 %v5130_v56, %v3074_v63 }
0x27c5   :  { %v3079_v8 = vsel %vm3078_vm7, %v5130_v56, %v3075_v48 }
0x280c   :  { %v3090_v54 = vpop.permute.xlu2 %3089 }
0x2815   :  { %v2877_v31 = vpop.f32.mrf.mxu3 }
0x2816   :  { %v6470_v44 = vadd.f32 %v2877_v31, %v6423_v21  ;;  %v3083_v21 = vor.u32 1.1754944e-38, %v3082_v6 }
0x2818   :  { %v3084_v37 = vsel %vm3081_vm8, %v3083_v21, %v3079_v8 }
0x2819   :  { %v3092_v17 = vmul.f32 %v3090_v54, %v3084_v37  ;;  %v3087_v12 = vmul.f32 %v3084_v37, %v6435_v5 }
0x281d   :  { %v2971_v43 = vpop.f32.mrf.mxu3 }
0x281e   :  { %v2972_v61 = vadd.f32 %v6428_v47, %v2971_v43 }
0x2820   :  { %5131 = vtanh.f32 %v2972_v61  ;;  %v4799_v50 = vmul.f32 -1.442695, %v2972_v61 }
0x2822   :  { %5133 = vpow2.f32 %v4799_v50 }
0x2826   :  { %v5132_v7 = vpop.eup %5131 }
0x2827   :  { %2996 = vrot.lane.b32.xlu1 %v5132_v7, %s5410_s28  ;;  %v233_v59 = vpop.f32.mrf.mxu0 }
0x2828   :  { %v5134_v60 = vpop.eup %5133  ;;  %v234_v43 = vadd.f32 %v6418_v30, %v233_v59 }
0x2829   :  { %v2977_v20 = vadd.f32 1.0, %v5134_v60 }
0x282b   :  { %5135 = vrcp.f32 %v2977_v20  ;;  %v2989_v39 = vand.u32 2147483648, %v2977_v20  ;;  %vm2983_vm10 = vweird.f32 %v2977_v20  ;;  %v2987_v19 = vand.u32 2147483647, %v2977_v20 }
0x282d   :  { %v2990_v55 = vor.u32 1.1754944e-38, %v2989_v39  ;;  %vm2988_vm12 = vcmp.eq.f32.partialorder %v2987_v19, 8.507059e+37 }
0x282f   :  { %3094 = vrot.lane.b32.xlu1 %v3092_v17, %s5411_s29 }
0x2831   :  { %v5136_v10 = vpop.eup %5135 }
0x2832   :  { %v2979_v33 = vmul.f32 %v5136_v10, %v2977_v20  ;;  %vm2984_vm9 = vweird.f32 %v5136_v10 }
0x2833   :  { %vm2985_vm11 = vmor %vm2983_vm10, %vm2984_vm9 }
0x2834   :  { %v2980_v11 = vsub.f32 1.0, %v2979_v33 }
0x2836   :  { %v2981_v26 = vmul.f32 %v5136_v10, %v2980_v11 }
0x2838   :  { %v2982_v13 = vadd.f32 %v5136_v10, %v2981_v26 }
0x283a   :  { %v2986_v29 = vsel %vm2985_vm11, %v5136_v10, %v2982_v13 }
0x283b   :  { %v2991_v53 = vsel %vm2988_vm12, %v2990_v55, %v2986_v29 }
0x283c   :  { %v2994_v18 = vmul.f32 %v2991_v53, %v6440_v15  ;;  %v3013_v15 = vld [vmem:[#allocation3 + $0x208] sm:$0xff] }
0x283d   :  { %3035 = vmatpush.msrb.mxu1 %v3013_v15 }
0x283f   :  { %3036 = vmatpush.msrb.mxu1 %v3012_v34 }
0x2841   :  { %3123 = vmatpush.msra.mxu1 %v6355_v62 }
0x2843   :  { %3124 = vmatpush.msra.mxu1 %v6361_v0 }
0x2845   :  { %3125 = vmatpush.msra.mxu1 %v6367_v23 }
0x2847   :  { %3126 = vmatpush.msra.mxu1 %v6373_v24 }
0x2849   :  { %3127 = vmatpush.msra.mxu1 %v6379_v36 }
0x284b   :  { %3128 = vmatpush.msra.mxu1 %v6385_v41 }
0x284d   :  { %3129 = vmatpush.msra.mxu1 %v6391_v4 }
0x284f   :  { %3130 = vmatpush.msra.mxu1 %v6397_v22 }
0x2899   :  { %v2997_v2 = vpop.permute.xlu1 %2996 }
0x289a   :  { %v2999_v42 = vmul.f32 %v2997_v2, %v2991_v53 }
0x289c   :  { %3001 = vrot.lane.b32.xlu0 %v2999_v42, %s5411_s29 }
0x28a1   :  { %v3095_v45 = vpop.permute.xlu1 %3094 }
0x28a2   :  { %v6477_v16 = vadd.f32 %v3095_v45, %v3087_v12 }
0x28a4   :  { %5137 = vtanh.f32 %v6477_v16 }
0x28aa   :  { %v5138_v46 = vpop.eup %5137 }
0x28ab   :  { %3100 = vrot.lane.b32.xlu0 %v5138_v46, %s5410_s28 }
0x290e   :  { %v3002_v57 = vpop.permute.xlu0 %3001 }
0x290f   :  { %v6482_v49 = vadd.f32 %v3002_v57, %v2994_v18 }
0x2911   :  { %5139 = vtanh.f32 %v6482_v49 }
0x2917   :  { %v5140_v35 = vpop.eup %5139 }
0x2918   :  { %3007 = vrot.lane.b32.xlu2 %v5140_v35, %s5410_s28 }
0x291d   :  { %v3101_v9 = vpop.permute.xlu0 %3100 }
0x291e   :  { %v3103_v5 = vmul.f32 %v3101_v9, %v3084_v37 }
0x2920   :  { %3105 = vrot.lane.b32.xlu2 %v3103_v5, %s5411_s29 }
0x2972   :  { %v3008_v52 = vpop.permute.xlu2 %3007 }
0x2973   :  { %v3010_v28 = vmul.f32 %v3008_v52, %v2991_v53 }
0x2975   :  { %3108 = vrot.lane.b32.xlu0 %v3010_v28, %s5410_s28  ;;  %3017 = vrot.lane.b32.xlu1 %v3010_v28, %s5411_s29 }
0x297a   :  { %v3106_v25 = vpop.permute.xlu2 %3105 }
0x297b   :  { %4806 = vmatmul.msk.f32.vlgmr.msrb.gmra.mxu3 %vm308_vm5, %v3106_v25 }
0x29e7   :  { %v3018_v31 = vpop.permute.xlu1 %3017  ;;  %v3109_v56 = vpop.permute.xlu0 %3108 }
0x29e8   :  { %4800 = vmatmul.msk.f32.vlgmr.msrb.gmra.mxu1 %vm308_vm5, %v3018_v31  ;;  %v3111_v58 = vsel %vm308_vm5, %v3106_v25, %v3109_v56 }
0x29e9   :  { %3380 = vmatpush.msrb.mxu1 %v6310_v1 }
0x29eb   :  { %3381 = vmatpush.msrb.mxu1 %v6316_v3 }
0x29ed   :  { %3382 = vmatpush.msrb.mxu1 %v6322_v40 }
0x29ef   :  { %3383 = vmatpush.msrb.mxu1 %v6411_v38 }
0x29f0   :  { %4803 = vmatmul.msk.f32.vlgmr.msra.gmra.mxu1 %vm375_vm6, %v3111_v58 }
0x29fe   :  { %v3224_v61 = vpop.f32.mrf.mxu3 }
0x29ff   :  { %v3227_v63 = vadd.f32 %v3224_v61, %v234_v43  ;;  %v65_v43 = vld [vmem:[%s6966_s0 + $0x98] sm:$0xff] }
0x2a00   :  { %4709 = vmatmul.msk.f32.gmra.mxu0 %vm80_vm0, %v65_v43  ;;  %v3176_v61 = vld [vmem:[#allocation3 + $0x238] sm:$0xff] }
0x2a01   :  { %5141 = vtanh.f32 %v3227_v63  ;;  %v4807_v7 = vmul.f32 -1.442695, %v3227_v63  ;;  %3194 = vmatpush.msrb.mxu2 %v3176_v61  ;;  %v3174_v63 = vld [vmem:[#allocation3 + $0x228] sm:$0xff] }
0x2a03   :  { %5143 = vpow2.f32 %v4807_v7 }
0x2a07   :  { %v5142_v48 = vpop.eup %5141 }
0x2a08   :  { %3250 = vrot.lane.b32.xlu2 %v5142_v48, %s5410_s28  ;;  %v3173_v48 = vld [vmem:[#allocation3 + $0x220] sm:$0xff] }
0x2a09   :  { %v5144_v6 = vpop.eup %5143 }
0x2a0a   :  { %v3231_v14 = vadd.f32 1.0, %v5144_v6 }
0x2a0c   :  { %5145 = vrcp.f32 %v3231_v14  ;;  %v3243_v11 = vand.u32 2147483648, %v3231_v14  ;;  %vm3237_vm14 = vweird.f32 %v3231_v14  ;;  %v3241_v26 = vand.u32 2147483647, %v3231_v14 }
0x2a0e   :  { %vm3242_vm1 = vcmp.eq.f32.partialorder %v3241_v26, 8.507059e+37 }
0x2a12   :  { %v5146_v54 = vpop.eup %5145 }
0x2a13   :  { %v3233_v37 = vmul.f32 %v5146_v54, %v3231_v14  ;;  %vm3238_vm13 = vweird.f32 %v5146_v54 }
0x2a14   :  { %vm3239_vm15 = vmor %vm3237_vm14, %vm3238_vm13 }
0x2a15   :  { %v3234_v17 = vsub.f32 1.0, %v3233_v37 }
0x2a17   :  { %v3235_v20 = vmul.f32 %v5146_v54, %v3234_v17 }
0x2a19   :  { %v3236_v10 = vadd.f32 %v5146_v54, %v3235_v20 }
0x2a1b   :  { %v3240_v13 = vsel %vm3239_vm15, %v5146_v54, %v3236_v10 }
0x2a62   :  { %v3251_v39 = vpop.permute.xlu2 %3250 }
0x2a65   :  { %v3038_v8 = vpop.f32.mrf.mxu1 }
0x2a66   :  { %v6512_v21 = vadd.f32 %v3038_v8, %v6470_v44  ;;  %v3244_v44 = vor.u32 1.1754944e-38, %v3243_v11 }
0x2a68   :  { %v3245_v19 = vsel %vm3242_vm1, %v3244_v44, %v3240_v13 }
0x2a69   :  { %v3253_v29 = vmul.f32 %v3251_v39, %v3245_v19  ;;  %v3248_v15 = vmul.f32 %v3245_v19, %v6477_v16 }
0x2a6d   :  { %v3132_v50 = vpop.f32.mrf.mxu1 }
0x2a6e   :  { %v3133_v60 = vadd.f32 %v6428_v47, %v3132_v50 }
0x2a70   :  { %5147 = vtanh.f32 %v3133_v60  ;;  %v4804_v55 = vmul.f32 -1.442695, %v3133_v60 }
0x2a72   :  { %5149 = vpow2.f32 %v4804_v55 }
0x2a76   :  { %v5148_v33 = vpop.eup %5147 }
0x2a77   :  { %3157 = vrot.lane.b32.xlu1 %v5148_v33, %s5410_s28 }
0x2a78   :  { %v5150_v2 = vpop.eup %5149 }
0x2a79   :  { %v3138_v53 = vadd.f32 1.0, %v5150_v2 }
0x2a7b   :  { %5151 = vrcp.f32 %v3138_v53  ;;  %v3150_v57 = vand.u32 2147483648, %v3138_v53  ;;  %vm3144_vm3 = vweird.f32 %v3138_v53  ;;  %v3148_v35 = vand.u32 2147483647, %v3138_v53 }
0x2a7d   :  { %v3151_v5 = vor.u32 1.1754944e-38, %v3150_v57  ;;  %vm3149_vm7 = vcmp.eq.f32.partialorder %v3148_v35, 8.507059e+37  ;;  %v236_v17 = vpop.f32.mrf.mxu0 }
0x2a7e   :  { %v237_v50 = vadd.f32 %v6418_v30, %v236_v17  ;;  %v3334_v17 = vld [vmem:[#allocation3 + $0x240] sm:$0xff] }
0x2a7f   :  { %3255 = vrot.lane.b32.xlu1 %v3253_v29, %s5411_s29 }
0x2a81   :  { %v5152_v42 = vpop.eup %5151 }
0x2a82   :  { %v3140_v12 = vmul.f32 %v5152_v42, %v3138_v53  ;;  %vm3145_vm2 = vweird.f32 %v5152_v42 }
0x2a83   :  { %vm3146_vm4 = vmor %vm3144_vm3, %vm3145_vm2 }
0x2a84   :  { %v3141_v45 = vsub.f32 1.0, %v3140_v12 }
0x2a86   :  { %v3142_v46 = vmul.f32 %v5152_v42, %v3141_v45 }
0x2a88   :  { %v3143_v18 = vadd.f32 %v5152_v42, %v3142_v46 }
0x2a8a   :  { %v3147_v9 = vsel %vm3146_vm4, %v5152_v42, %v3143_v18 }
0x2a8b   :  { %v3152_v27 = vsel %vm3149_vm7, %v3151_v5, %v3147_v9 }
0x2a8c   :  { %v3155_v25 = vmul.f32 %v3152_v27, %v6482_v49  ;;  %v3175_v49 = vld [vmem:[#allocation3 + $0x230] sm:$0xff] }
0x2a8d   :  { %3195 = vmatpush.msrb.mxu2 %v3175_v49 }
0x2a8f   :  { %3196 = vmatpush.msrb.mxu2 %v3174_v63 }
0x2a91   :  { %3197 = vmatpush.msrb.mxu2 %v3173_v48 }
0x2a93   :  { %3284 = vmatpush.msra.mxu2 %v6355_v62 }
0x2a95   :  { %3285 = vmatpush.msra.mxu2 %v6361_v0 }
0x2a97   :  { %3286 = vmatpush.msra.mxu2 %v6367_v23 }
0x2a99   :  { %3287 = vmatpush.msra.mxu2 %v6373_v24 }
0x2a9b   :  { %3288 = vmatpush.msra.mxu2 %v6379_v36 }
0x2a9d   :  { %3289 = vmatpush.msra.mxu2 %v6385_v41 }
0x2a9f   :  { %3290 = vmatpush.msra.mxu2 %v6391_v4 }
0x2aa1   :  { %3291 = vmatpush.msra.mxu2 %v6397_v22 }
0x2ae9   :  { %v3158_v32 = vpop.permute.xlu1 %3157 }
0x2aea   :  { %v3160_v51 = vmul.f32 %v3158_v32, %v3152_v27 }
0x2aec   :  { %3162 = vrot.lane.b32.xlu0 %v3160_v51, %s5411_s29 }
0x2af1   :  { %v3256_v34 = vpop.permute.xlu1 %3255 }
0x2af2   :  { %v6519_v52 = vadd.f32 %v3256_v34, %v3248_v15 }
0x2af4   :  { %5153 = vtanh.f32 %v6519_v52 }
0x2afa   :  { %v5154_v28 = vpop.eup %5153 }
0x2afb   :  { %3261 = vrot.lane.b32.xlu0 %v5154_v28, %s5410_s28 }
0x2b5e   :  { %v3163_v31 = vpop.permute.xlu0 %3162 }
0x2b5f   :  { %v6524_v56 = vadd.f32 %v3163_v31, %v3155_v25 }
0x2b61   :  { %5155 = vtanh.f32 %v6524_v56 }
0x2b67   :  { %v5156_v58 = vpop.eup %5155 }
0x2b68   :  { %3168 = vrot.lane.b32.xlu2 %v5156_v58, %s5410_s28 }
0x2b6d   :  { %v3262_v59 = vpop.permute.xlu0 %3261 }
0x2b6e   :  { %v3264_v16 = vmul.f32 %v3262_v59, %v3245_v19 }
0x2b70   :  { %3266 = vrot.lane.b32.xlu2 %v3264_v16, %s5411_s29 }
0x2bc2   :  { %v3169_v7 = vpop.permute.xlu2 %3168 }
0x2bc3   :  { %v3171_v6 = vmul.f32 %v3169_v7, %v3152_v27 }
0x2bc5   :  { %3269 = vrot.lane.b32.xlu0 %v3171_v6, %s5410_s28  ;;  %3178 = vrot.lane.b32.xlu1 %v3171_v6, %s5411_s29 }
0x2bca   :  { %v3267_v14 = vpop.permute.xlu2 %3266 }
0x2bcb   :  { %4811 = vmatmul.msk.f32.vlgmr.msrb.gmra.mxu1 %vm308_vm5, %v3267_v14 }
0x2c37   :  { %v3179_v8 = vpop.permute.xlu1 %3178  ;;  %v3270_v54 = vpop.permute.xlu0 %3269 }
0x2c38   :  { %4805 = vmatmul.msk.f32.vlgmr.msrb.gmra.mxu2 %vm308_vm5, %v3179_v8  ;;  %v3272_v37 = vsel %vm308_vm5, %v3267_v14, %v3270_v54  ;;  %v66_v8 = vld [vmem:[%s6966_s0 + $0xa0] sm:$0xff]  ;;  %v3337_v54 = vld [vmem:[#allocation3 + $0x258] sm:$0xff] }
0x2c39   :  { %3541 = vmatpush.msrb.mxu2 %v6310_v1  ;;  %4710 = vmatmul.msk.f32.gmra.mxu0 %vm80_vm0, %v66_v8  ;;  %v70_v8 = vld [vmem:[%s6966_s0 + $0xc0] sm:$0xff] }
0x2c3a   :  { %3355 = vmatpush.msra.mxu3 %v3337_v54 }
0x2c3b   :  { %3542 = vmatpush.msrb.mxu2 %v6316_v3 }
0x2c3d   :  { %3543 = vmatpush.msrb.mxu2 %v6322_v40 }
0x2c3f   :  { %3544 = vmatpush.msrb.mxu2 %v6411_v38 }
0x2c40   :  { %4808 = vmatmul.msk.f32.vlgmr.msra.gmra.mxu2 %vm375_vm6, %v3272_v37  ;;  %v3336_v37 = vld [vmem:[#allocation3 + $0x250] sm:$0xff] }
0x2c41   :  { %3702 = vmatpush.msra.mxu2 %v6310_v1  ;;  %3356 = vmatpush.msra.mxu3 %v3336_v37 }
0x2c43   :  { %3703 = vmatpush.msra.mxu2 %v6316_v3 }
0x2c45   :  { %3704 = vmatpush.msra.mxu2 %v6322_v40 }
0x2c47   :  { %3705 = vmatpush.msra.mxu2 %v6411_v38 }
0x2c48   :  { %v3385_v60 = vpop.f32.mrf.mxu1 }
0x2c49   :  { %v3388_v20 = vadd.f32 %v3385_v60, %v237_v50 }
0x2c4b   :  { %5157 = vtanh.f32 %v3388_v20  ;;  %v4812_v33 = vmul.f32 -1.442695, %v3388_v20 }
0x2c4d   :  { %5159 = vpow2.f32 %v4812_v33 }
0x2c51   :  { %v5158_v10 = vpop.eup %5157 }
0x2c52   :  { %3411 = vrot.lane.b32.xlu2 %v5158_v10, %s5410_s28 }
0x2c53   :  { %v5160_v11 = vpop.eup %5159 }
0x2c54   :  { %v3392_v26 = vadd.f32 1.0, %v5160_v11 }
0x2c56   :  { %5161 = vrcp.f32 %v3392_v26  ;;  %v3404_v2 = vand.u32 2147483648, %v3392_v26  ;;  %vm3398_vm9 = vweird.f32 %v3392_v26  ;;  %v3402_v53 = vand.u32 2147483647, %v3392_v26 }
0x2c58   :  { %vm3403_vm11 = vcmp.eq.f32.partialorder %v3402_v53, 8.507059e+37 }
0x2c5c   :  { %v5162_v13 = vpop.eup %5161 }
0x2c5d   :  { %v3394_v39 = vmul.f32 %v5162_v13, %v3392_v26  ;;  %vm3399_vm8 = vweird.f32 %v5162_v13 }
0x2c5e   :  { %vm3400_vm10 = vmor %vm3398_vm9, %vm3399_vm8 }
0x2c5f   :  { %v3395_v40 = vsub.f32 1.0, %v3394_v39 }
0x2c61   :  { %v3396_v19 = vmul.f32 %v5162_v13, %v3395_v40 }
0x2c63   :  { %v3397_v29 = vadd.f32 %v5162_v13, %v3396_v19 }
0x2c65   :  { %v3401_v42 = vsel %vm3400_vm10, %v5162_v13, %v3397_v29 }
0x2cac   :  { %v3412_v12 = vpop.permute.xlu2 %3411 }
0x2cb6   :  { %v239_v26 = vpop.f32.mrf.mxu0 }
0x2cbb   :  { %v3199_v1 = vpop.f32.mrf.mxu2 }
0x2cbc   :  { %v6558_v3 = vadd.f32 %v3199_v1, %v6512_v21  ;;  %v3405_v21 = vor.u32 1.1754944e-38, %v3404_v2  ;;  %v240_v1 = vadd.f32 %v6418_v30, %v239_v26  ;;  %v6699_v26 = vld [vmem:[%s6970_s4 + $0x10] sm:$0xff] }
0x2cbe   :  { %v3406_v45 = vsel %vm3403_vm11, %v3405_v21, %v3401_v42 }
0x2cbf   :  { %v3414_v46 = vmul.f32 %v3412_v12, %v3406_v45  ;;  %v3409_v16 = vmul.f32 %v3406_v45, %v6519_v52 }
0x2cc3   :  { %v3293_v44 = vpop.f32.mrf.mxu2 }
0x2cc4   :  { %v3294_v38 = vadd.f32 %v6428_v47, %v3293_v44 }
0x2cc6   :  { %5163 = vtanh.f32 %v3294_v38  ;;  %v4809_v18 = vmul.f32 -1.442695, %v3294_v38 }
0x2cc8   :  { %5165 = vpow2.f32 %v4809_v18 }
0x2ccc   :  { %v5164_v55 = vpop.eup %5163 }
0x2ccd   :  { %3318 = vrot.lane.b32.xlu1 %v5164_v55, %s5410_s28 }
0x2cce   :  { %v5166_v57 = vpop.eup %5165 }
0x2ccf   :  { %v3299_v35 = vadd.f32 1.0, %v5166_v57 }
0x2cd1   :  { %5167 = vrcp.f32 %v3299_v35  ;;  %v3311_v15 = vand.u32 2147483648, %v3299_v35  ;;  %vm3305_vm13 = vweird.f32 %v3299_v35  ;;  %v3309_v34 = vand.u32 2147483647, %v3299_v35 }
0x2cd3   :  { %v3312_v25 = vor.u32 1.1754944e-38, %v3311_v15  ;;  %vm3310_vm15 = vcmp.eq.f32.partialorder %v3309_v34, 8.507059e+37 }
0x2cd5   :  { %3416 = vrot.lane.b32.xlu1 %v3414_v46, %s5411_s29 }
0x2cd7   :  { %v5168_v9 = vpop.eup %5167 }
0x2cd8   :  { %v3301_v5 = vmul.f32 %v5168_v9, %v3299_v35  ;;  %vm3306_vm12 = vweird.f32 %v5168_v9 }
0x2cd9   :  { %vm3307_vm14 = vmor %vm3305_vm13, %vm3306_vm12 }
0x2cda   :  { %v3302_v32 = vsub.f32 1.0, %v3301_v5 }
0x2cdc   :  { %v3303_v27 = vmul.f32 %v5168_v9, %v3302_v32 }
0x2cde   :  { %v3304_v51 = vadd.f32 %v5168_v9, %v3303_v27 }
0x2ce0   :  { %v3308_v28 = vsel %vm3307_vm14, %v5168_v9, %v3304_v51 }
0x2ce1   :  { %v3313_v58 = vsel %vm3310_vm15, %v3312_v25, %v3308_v28 }
0x2ce2   :  { %v3316_v63 = vmul.f32 %v3313_v58, %v6524_v56  ;;  %v3335_v56 = vld [vmem:[#allocation3 + $0x248] sm:$0xff] }
0x2ce3   :  { %3357 = vmatpush.msra.mxu3 %v3335_v56 }
0x2ce5   :  { %3358 = vmatpush.msra.mxu3 %v3334_v17  ;;  %v71_v17 = vld [vmem:[%s6966_s0 + $0xc8] sm:$0xff] }
0x2ce7   :  { %3445 = vmatpush.msrb.mxu3 %v6355_v62 }
0x2ce9   :  { %3446 = vmatpush.msrb.mxu3 %v6361_v0 }
0x2ceb   :  { %3447 = vmatpush.msrb.mxu3 %v6367_v23 }
0x2ced   :  { %3448 = vmatpush.msrb.mxu3 %v6373_v24 }
0x2cef   :  { %3449 = vmatpush.msrb.mxu3 %v6379_v36 }
0x2cf1   :  { %3450 = vmatpush.msrb.mxu3 %v6385_v41 }
0x2cf3   :  { %3451 = vmatpush.msrb.mxu3 %v6391_v4 }
0x2cf5   :  { %3452 = vmatpush.msrb.mxu3 %v6397_v22 }
0x2d3f   :  { %v3319_v31 = vpop.permute.xlu1 %3318 }
0x2d40   :  { %v3321_v59 = vmul.f32 %v3319_v31, %v3313_v58 }
0x2d42   :  { %3323 = vrot.lane.b32.xlu0 %v3321_v59, %s5411_s29 }
0x2d47   :  { %v3417_v43 = vpop.permute.xlu1 %3416 }
0x2d48   :  { %v6565_v61 = vadd.f32 %v3417_v43, %v3409_v16 }
0x2d4a   :  { %5169 = vtanh.f32 %v6565_v61 }
0x2d50   :  { %v5170_v49 = vpop.eup %5169 }
0x2d51   :  { %3422 = vrot.lane.b32.xlu0 %v5170_v49, %s5410_s28 }
0x2db4   :  { %v3324_v48 = vpop.permute.xlu0 %3323 }
0x2db5   :  { %v6570_v7 = vadd.f32 %v3324_v48, %v3316_v63 }
0x2db7   :  { %5171 = vtanh.f32 %v6570_v7 }
0x2dbd   :  { %v5172_v6 = vpop.eup %5171 }
0x2dbe   :  { %3329 = vrot.lane.b32.xlu2 %v5172_v6, %s5410_s28 }
0x2dc3   :  { %v3423_v14 = vpop.permute.xlu0 %3422 }
0x2dc4   :  { %v3425_v52 = vmul.f32 %v3423_v14, %v3406_v45 }
0x2dc6   :  { %3427 = vrot.lane.b32.xlu2 %v3425_v52, %s5411_s29  ;;  %v69_v52 = vld [vmem:[%s6966_s0 + $0xb8] sm:$0xff] }
0x2e18   :  { %v3330_v50 = vpop.permute.xlu2 %3329 }
0x2e19   :  { %v3332_v60 = vmul.f32 %v3330_v50, %v3313_v58  ;;  %v6662_v50 = vld [vmem:[%s6970_s4 + $0x38] sm:$0xff] }
0x2e1b   :  { %3430 = vrot.lane.b32.xlu0 %v3332_v60, %s5410_s28  ;;  %3339 = vrot.lane.b32.xlu1 %v3332_v60, %s5411_s29  ;;  %v6671_v60 = vld [vmem:[%s6970_s4 + $0x30] sm:$0xff] }
0x2e20   :  { %v3428_v20 = vpop.permute.xlu2 %3427 }
0x2e21   :  { %4816 = vmatmul.msk.f32.vlgmr.msrb.gmra.mxu2 %vm308_vm5, %v3428_v20 }
0x2e22   :  { %3928 = vmatpush.msrb.mxu2 %v6355_v62 }
0x2e24   :  { %3929 = vmatpush.msrb.mxu2 %v6361_v0 }
0x2e26   :  { %3930 = vmatpush.msrb.mxu2 %v6367_v23 }
0x2e28   :  { %3931 = vmatpush.msrb.mxu2 %v6373_v24 }
0x2e2a   :  { %3932 = vmatpush.msrb.mxu2 %v6379_v36 }
0x2e2c   :  { %3933 = vmatpush.msrb.mxu2 %v6385_v41 }
0x2e2e   :  { %3934 = vmatpush.msrb.mxu2 %v6391_v4 }
0x2e30   :  { %3935 = vmatpush.msrb.mxu2 %v6397_v22 }
0x2e8d   :  { %v3340_v10 = vpop.permute.xlu1 %3339  ;;  %v3431_v33 = vpop.permute.xlu0 %3430 }
0x2e8e   :  { %4810 = vmatmul.msk.f32.vlgmr.msra.gmra.mxu3 %vm308_vm5, %v3340_v10  ;;  %v3433_v11 = vsel %vm308_vm5, %v3428_v20, %v3431_v33  ;;  %v6677_v20 = vld [vmem:[%s6970_s4 + $0x28] sm:$0xff]  ;;  %v6683_v10 = vld [vmem:[%s6970_s4 + $0x20] sm:$0xff]  ;;  %v72_v33 = vld [vmem:[%s6966_s0 + $0xd0] sm:$0xff] }
0x2e8f   :  { %3767 = vmatpush.msra.mxu3 %v6355_v62 }
0x2e91   :  { %3768 = vmatpush.msra.mxu3 %v6361_v0 }
0x2e93   :  { %3769 = vmatpush.msra.mxu3 %v6367_v23 }
0x2e95   :  { %3770 = vmatpush.msra.mxu3 %v6373_v24 }
0x2e96   :  { %4813 = vmatmul.msk.f32.vlgmr.msrb.gmra.mxu3 %vm375_vm6, %v3433_v11  ;;  %v6692_v11 = vld [vmem:[%s6970_s4 + $0x18] sm:$0xff] }
0x2e97   :  { %3771 = vmatpush.msra.mxu3 %v6379_v36 }
0x2e99   :  { %3772 = vmatpush.msra.mxu3 %v6385_v41 }
0x2e9b   :  { %3773 = vmatpush.msra.mxu3 %v6391_v4 }
0x2e9d   :  { %3774 = vmatpush.msra.mxu3 %v6397_v22 }
0x2e9f   :  { %4089 = vmatpush.msrb.mxu3 %v6355_v62 }
0x2ea1   :  { %4090 = vmatpush.msrb.mxu3 %v6361_v0 }
0x2ea3   :  { %4091 = vmatpush.msrb.mxu3 %v6367_v23 }
0x2ea4   :  { %v3546_v13 = vpop.f32.mrf.mxu2 }
0x2ea5   :  { %4092 = vmatpush.msrb.mxu3 %v6373_v24  ;;  %v3549_v39 = vadd.f32 %v3546_v13, %v240_v1  ;;  %v6705_v1 = vld [vmem:[%s6970_s4 + $0x8] sm:$0xff]  ;;  %v6711_v13 = vld [vmem:[%s6970_s4] sm:$0xff] }
0x2ea7   :  { %4093 = vmatpush.msrb.mxu3 %v6379_v36  ;;  %5173 = vtanh.f32 %v3549_v39  ;;  %v4817_v0 = vmul.f32 -1.442695, %v3549_v39 }
0x2ea9   :  { %4094 = vmatpush.msrb.mxu3 %v6385_v41  ;;  %5175 = vpow2.f32 %v4817_v0 }
0x2eab   :  { %4095 = vmatpush.msrb.mxu3 %v6391_v4 }
0x2ead   :  { %4096 = vmatpush.msrb.mxu3 %v6397_v22  ;;  %v5174_v62 = vpop.eup %5173 }
0x2eae   :  { %3572 = vrot.lane.b32.xlu1 %v5174_v62, %s5410_s28 }
0x2eaf   :  { %v5176_v30 = vpop.eup %5175 }
0x2eb0   :  { %v3553_v23 = vadd.f32 1.0, %v5176_v30  ;;  %v6719_v30 = vld [vmem:[%s6969_s3] ss:$0 sm:$0xff] }
0x2eb2   :  { %5177 = vrcp.f32 %v3553_v23  ;;  %v3565_v29 = vand.u32 2147483648, %v3553_v23  ;;  %vm3559_vm2 = vweird.f32 %v3553_v23  ;;  %v3563_v55 = vand.u32 2147483647, %v3553_v23 }
0x2eb4   :  { %v3566_v53 = vor.u32 1.1754944e-38, %v3565_v29  ;;  %vm3564_vm4 = vcmp.eq.f32.partialorder %v3563_v55, 8.507059e+37 }
0x2eb8   :  { %v5178_v40 = vpop.eup %5177 }
0x2eb9   :  { %v3555_v24 = vmul.f32 %v5178_v40, %v3553_v23  ;;  %vm3560_vm1 = vweird.f32 %v5178_v40 }
0x2eba   :  { %vm3561_vm3 = vmor %vm3559_vm2, %vm3560_vm1 }
0x2ebb   :  { %v3556_v38 = vsub.f32 1.0, %v3555_v24 }
0x2ebd   :  { %v3557_v41 = vmul.f32 %v5178_v40, %v3556_v38 }
0x2ebf   :  { %v3558_v4 = vadd.f32 %v5178_v40, %v3557_v41 }
0x2ec1   :  { %v3562_v2 = vsel %vm3561_vm3, %v5178_v40, %v3558_v4 }
0x2ec2   :  { %v3567_v12 = vsel %vm3564_vm4, %v3566_v53, %v3562_v2  ;;  %v6736_v53 = vld [vmem:[%s6971_s5] ss:$0 sm:$0xff] }
0x2ec3   :  { %v3570_v31 = vmul.f32 %v3567_v12, %v6565_v61  ;;  %v67_v61 = vld [vmem:[%s6966_s0 + $0xa8] sm:$0xff] }
0x2ec4   :  { %4711 = vmatmul.msk.f32.gmra.mxu0 %vm80_vm0, %v67_v61  ;;  %v3498_v61 = vld [vmem:[#allocation3 + $0x278] sm:$0xff] }
0x2ec5   :  { %3516 = vmatpush.msra.mxu1 %v3498_v61 }
0x2f11   :  { %v3360_v44 = vpop.f32.mrf.mxu3 }
0x2f12   :  { %v6620_v36 = vadd.f32 %v3360_v44, %v6558_v3 }
0x2f19   :  { %v3454_v19 = vpop.f32.mrf.mxu3 }
0x2f1a   :  { %v3455_v22 = vadd.f32 %v6428_v47, %v3454_v19 }
0x2f1c   :  { %5179 = vtanh.f32 %v3455_v22  ;;  %v4814_v3 = vmul.f32 -1.442695, %v3455_v22 }
0x2f1e   :  { %5181 = vpow2.f32 %v4814_v3 }
0x2f20   :  { %v3573_v42 = vpop.permute.xlu1 %3572 }
0x2f21   :  { %v3575_v21 = vmul.f32 %v3573_v42, %v3567_v12 }
0x2f22   :  { %v5180_v45 = vpop.eup %5179 }
0x2f23   :  { %3577 = vrot.lane.b32.xlu0 %v3575_v21, %s5411_s29  ;;  %3479 = vrot.lane.b32.xlu2 %v5180_v45, %s5410_s28 }
0x2f24   :  { %v5182_v46 = vpop.eup %5181 }
0x2f25   :  { %v3460_v47 = vadd.f32 1.0, %v5182_v46 }
0x2f27   :  { %5183 = vrcp.f32 %v3460_v47  ;;  %v3472_v32 = vand.u32 2147483648, %v3460_v47  ;;  %vm3466_vm8 = vweird.f32 %v3460_v47  ;;  %v3470_v27 = vand.u32 2147483647, %v3460_v47 }
0x2f29   :  { %v3473_v15 = vor.u32 1.1754944e-38, %v3472_v32  ;;  %vm3471_vm10 = vcmp.eq.f32.partialorder %v3470_v27, 8.507059e+37 }
0x2f2d   :  { %v5184_v18 = vpop.eup %5183 }
0x2f2e   :  { %v3462_v57 = vmul.f32 %v5184_v18, %v3460_v47  ;;  %vm3467_vm7 = vweird.f32 %v5184_v18 }
0x2f2f   :  { %vm3468_vm9 = vmor %vm3466_vm8, %vm3467_vm7 }
0x2f30   :  { %v3463_v35 = vsub.f32 1.0, %v3462_v57 }
0x2f32   :  { %v3464_v9 = vmul.f32 %v5184_v18, %v3463_v35 }
0x2f34   :  { %v3465_v5 = vadd.f32 %v5184_v18, %v3464_v9 }
0x2f36   :  { %v3469_v51 = vsel %vm3468_vm9, %v5184_v18, %v3465_v5 }
0x2f37   :  { %v3474_v28 = vsel %vm3471_vm10, %v3473_v15, %v3469_v51 }
0x2f38   :  { %v3477_v43 = vmul.f32 %v3474_v28, %v6570_v7  ;;  %v68_v7 = vld [vmem:[%s6966_s0 + $0xb0] sm:$0xff] }
0x2f39   :  { %4712 = vmatmul.msk.f32.gmra.mxu0 %vm80_vm0, %v68_v7 }
0x2f41   :  { %4713 = vmatmul.msk.f32.gmra.mxu0 %vm80_vm0, %v69_v52  ;;  %v242_v0 = vpop.f32.mrf.mxu0 }
0x2f42   :  { %v243_v23 = vadd.f32 %v6719_v30, %v242_v0 }
0x2f49   :  { %4714 = vmatmul.msk.f32.gmra.mxu0 %vm80_vm0, %v70_v8  ;;  %v3497_v8 = vld [vmem:[#allocation3 + $0x270] sm:$0xff] }
0x2f4a   :  { %3517 = vmatpush.msra.mxu1 %v3497_v8 }
0x2f51   :  { %4715 = vmatmul.msk.f32.gmra.mxu0 %vm80_vm0, %v71_v17 }
0x2f59   :  { %4716 = vmatmul.msk.f32.gmra.mxu0 %vm80_vm0, %v72_v33 }
0x2f7d   :  { %v3480_v34 = vpop.permute.xlu2 %3479 }
0x2f7e   :  { %v3482_v25 = vmul.f32 %v3480_v34, %v3474_v28 }
0x2f80   :  { %3484 = vrot.lane.b32.xlu1 %v3482_v25, %s5411_s29 }
0x2f95   :  { %v3578_v58 = vpop.permute.xlu0 %3577 }
0x2f96   :  { %v6627_v59 = vadd.f32 %v3578_v58, %v3570_v31 }
0x2f98   :  { %5185 = vtanh.f32 %v6627_v59 }
0x2f9e   :  { %v5186_v16 = vpop.eup %5185 }
0x2f9f   :  { %3583 = vrot.lane.b32.xlu2 %v5186_v16, %s5410_s28 }
0x2fb6   :  { %v6723_v38 = vpop.f32.mrf.mxu0 }
0x2fbe   :  { %v6725_v41 = vpop.f32.mrf.mxu0 }
0x2fc6   :  { %v6727_v19 = vpop.f32.mrf.mxu0 }
0x2fce   :  { %v6729_v4 = vpop.f32.mrf.mxu0 }
0x2fd6   :  { %v6731_v22 = vpop.f32.mrf.mxu0 }
0x2ff2   :  { %v3485_v49 = vpop.permute.xlu1 %3484 }
0x2ff3   :  { %v6632_v63 = vadd.f32 %v3485_v49, %v3477_v43 }
0x2ff5   :  { %5187 = vtanh.f32 %v6632_v63 }
0x2ff9   :  { %v3584_v48 = vpop.permute.xlu2 %3583 }
0x2ffa   :  { %v3586_v6 = vmul.f32 %v3584_v48, %v3567_v12 }
0x2ffb   :  { %v5188_v14 = vpop.eup %5187 }
0x2ffc   :  { %3588 = vrot.lane.b32.xlu1 %v3586_v6, %s5411_s29  ;;  %3490 = vrot.lane.b32.xlu0 %v5188_v14, %s5410_s28 }
0x306e   :  { %v3589_v54 = vpop.permute.xlu1 %3588  ;;  %v3491_v37 = vpop.permute.xlu0 %3490 }
0x306f   :  { %v6653_v56 = vmul.f32 %v3491_v37, %v3474_v28  ;;  %4821 = vmatmul.msk.f32.vlgmr.msra.gmra.mxu2 %vm308_vm5, %v3589_v54  ;;  %v3496_v37 = vld [vmem:[#allocation3 + $0x268] sm:$0xff] }
0x3070   :  { %4250 = vmatpush.msra.mxu2 %v6662_v50  ;;  %3518 = vmatpush.msra.mxu1 %v3496_v37 }
0x3071   :  { %3591 = vrot.lane.b32.xlu2 %v6653_v56, %s5410_s28 }
0x3072   :  { %4251 = vmatpush.msra.mxu2 %v6671_v60 }
0x3074   :  { %4252 = vmatpush.msra.mxu2 %v6677_v20 }
0x3076   :  { %4253 = vmatpush.msra.mxu2 %v6683_v10 }
0x3078   :  { %4254 = vmatpush.msra.mxu2 %v6692_v11 }
0x307a   :  { %4255 = vmatpush.msra.mxu2 %v6699_v26 }
0x307c   :  { %4256 = vmatpush.msra.mxu2 %v6705_v1 }
0x307e   :  { %4257 = vmatpush.msra.mxu2 %v6711_v13 }
0x30cb   :  { %v3592_v39 = vpop.permute.xlu2 %3591 }
0x30cc   :  { %v3594_v62 = vsel %vm308_vm5, %v3589_v54, %v3592_v39 }
0x30cd   :  { %4818 = vmatmul.msk.f32.vlgmr.msrb.gmra.mxu0 %vm375_vm6, %v3594_v62 }
0x30f2   :  { %v3707_v40 = vpop.f32.mrf.mxu2 }
0x30f3   :  { %v3710_v24 = vadd.f32 %v3707_v40, %v243_v23 }
0x30f5   :  { %5189 = vtanh.f32 %v3710_v24  ;;  %v4822_v29 = vmul.f32 -1.442695, %v3710_v24 }
0x30f7   :  { %5191 = vpow2.f32 %v4822_v29 }
0x30fb   :  { %v5190_v44 = vpop.eup %5189 }
0x30fc   :  { %3733 = vrot.lane.b32.xlu1 %v5190_v44, %s5410_s28 }
0x30fd   :  { %v5192_v2 = vpop.eup %5191 }
0x30fe   :  { %v3714_v12 = vadd.f32 1.0, %v5192_v2  ;;  %v3658_v2 = vld [vmem:[#allocation3 + $0x290] sm:$0xff] }
0x3100   :  { %v3726_v57 = vand.u32 2147483648, %v3714_v12  ;;  %vm3720_vm11 = vweird.f32 %v3714_v12  ;;  %v3724_v35 = vand.u32 2147483647, %v3714_v12 }
0x3102   :  { %v3727_v5 = vor.u32 1.1754944e-38, %v3726_v57  ;;  %vm3725_vm13 = vcmp.eq.f32.partialorder %v3724_v35, 8.507059e+37 }
0x314a   :  { %v3615_v55 = vpop.f32.mrf.mxu0 }
0x314b   :  { %v3616_v42 = vadd.f32 %v6736_v53, %v3615_v55  ;;  %v3659_v55 = vld [vmem:[#allocation3 + $0x298] sm:$0xff] }
0x314d   :  { %5193 = vtanh.f32 %v3616_v42  ;;  %v4819_v15 = vmul.f32 -1.442695, %v3616_v42  ;;  %v3657_v42 = vld [vmem:[#allocation3 + $0x288] sm:$0xff] }
0x314e   :  { %5195 = vrcp.f32 %v3714_v12 }
0x314f   :  { %5197 = vpow2.f32 %v4819_v15  ;;  %v246_v15 = vadd.f32 %v6719_v30, %v6723_v38 }
0x3153   :  { %v5194_v21 = vpop.eup %5193 }
0x3154   :  { %3640 = vrot.lane.b32.xlu0 %v5194_v21, %s5410_s28  ;;  %v5196_v45 = vpop.eup %5195  ;;  %v6765_v21 = vld [vmem:[%s6968_s2 + $0x10] sm:$0xff] }
0x3155   :  { %v3716_v3 = vmul.f32 %v5196_v45, %v3714_v12  ;;  %vm3721_vm0 = vweird.f32 %v5196_v45  ;;  %v5198_v34 = vpop.eup %5197  ;;  %v3656_v12 = vld [vmem:[#allocation3 + $0x280] sm:$0xff] }
0x3156   :  { %vm3722_vm12 = vmor %vm3720_vm11, %vm3721_vm0  ;;  %v3621_v28 = vadd.f32 1.0, %v5198_v34 }
0x3157   :  { %v3717_v46 = vsub.f32 1.0, %v3716_v3  ;;  %v6777_v3 = vld [vmem:[%s6968_s2] sm:$0xff] }
0x3158   :  { %5199 = vrcp.f32 %v3621_v28  ;;  %v3633_v49 = vand.u32 2147483648, %v3621_v28  ;;  %vm3627_vm15 = vweird.f32 %v3621_v28  ;;  %v3631_v48 = vand.u32 2147483647, %v3621_v28 }
0x3159   :  { %v3718_v47 = vmul.f32 %v5196_v45, %v3717_v46 }
0x315a   :  { %v3634_v14 = vor.u32 1.1754944e-38, %v3633_v49  ;;  %vm3632_vm2 = vcmp.eq.f32.partialorder %v3631_v48, 8.507059e+37 }
0x315b   :  { %v3719_v18 = vadd.f32 %v5196_v45, %v3718_v47 }
0x315d   :  { %v3723_v9 = vsel %vm3722_vm12, %v5196_v45, %v3719_v18  ;;  %v6771_v45 = vld [vmem:[%s6968_s2 + $0x8] sm:$0xff] }
0x315e   :  { %v3728_v27 = vsel %vm3725_vm13, %v3727_v5, %v3723_v9  ;;  %v5200_v25 = vpop.eup %5199 }
0x315f   :  { %v3623_v31 = vmul.f32 %v5200_v25, %v3621_v28  ;;  %vm3628_vm14 = vweird.f32 %v5200_v25  ;;  %v3731_v17 = vmul.f32 %v3728_v27, %v6627_v59 }
0x3160   :  { %vm3629_vm1 = vmor %vm3627_vm15, %vm3628_vm14 }
0x3161   :  { %v3624_v58 = vsub.f32 1.0, %v3623_v31 }
0x3163   :  { %v3625_v16 = vmul.f32 %v5200_v25, %v3624_v58 }
0x3165   :  { %v3626_v43 = vadd.f32 %v5200_v25, %v3625_v16 }
0x3167   :  { %v3630_v6 = vsel %vm3629_vm1, %v5200_v25, %v3626_v43 }
0x3168   :  { %v3635_v52 = vsel %vm3632_vm2, %v3634_v14, %v3630_v6 }
0x3169   :  { %v3638_v23 = vmul.f32 %v3635_v52, %v6632_v63  ;;  %v6759_v63 = vld [vmem:[%s6968_s2 + $0x18] sm:$0xff] }
0x316e   :  { %v3734_v32 = vpop.permute.xlu1 %3733 }
0x316f   :  { %v3736_v51 = vmul.f32 %v3734_v32, %v3728_v27 }
0x3171   :  { %3738 = vrot.lane.b32.xlu0 %v3736_v51, %s5411_s29 }
0x3179   :  { %3500 = vrot.lane.b32.xlu0 %v6653_v56, %s5411_s29  ;;  %v3495_v56 = vld [vmem:[#allocation3 + $0x260] sm:$0xff] }
0x317a   :  { %3519 = vmatpush.msra.mxu1 %v3495_v56 }
0x317c   :  { %3677 = vmatpush.msrb.mxu1 %v3659_v55 }
0x317e   :  { %3678 = vmatpush.msrb.mxu1 %v3658_v2 }
0x3180   :  { %3679 = vmatpush.msrb.mxu1 %v3657_v42 }
0x3182   :  { %3680 = vmatpush.msrb.mxu1 %v3656_v12 }
0x31c6   :  { %v3641_v7 = vpop.permute.xlu0 %3640 }
0x31c7   :  { %v3643_v54 = vmul.f32 %v3641_v7, %v3635_v52 }
0x31c9   :  { %3645 = vrot.lane.b32.xlu2 %v3643_v54, %s5411_s29 }
0x31e3   :  { %v3739_v33 = vpop.permute.xlu0 %3738 }
0x31e4   :  { %v6745_v39 = vadd.f32 %v3739_v33, %v3731_v17 }
0x31e6   :  { %5201 = vtanh.f32 %v6745_v39 }
0x31eb   :  { %v3501_v62 = vpop.permute.xlu0 %3500 }
0x31ec   :  { %v5202_v0 = vpop.eup %5201  ;;  %4815 = vmatmul.msk.f32.vlgmr.msra.gmra.mxu1 %vm308_vm5, %v3501_v62 }
0x31ed   :  { %3744 = vrot.lane.b32.xlu2 %v5202_v0, %s5410_s28  ;;  %3863 = vmatpush.msra.mxu1 %v6759_v63 }
0x31ef   :  { %3864 = vmatpush.msra.mxu1 %v6765_v21 }
0x31f1   :  { %3865 = vmatpush.msra.mxu1 %v6771_v45 }
0x31f3   :  { %3866 = vmatpush.msra.mxu1 %v6777_v3 }
0x3223   :  { %v3646_v40 = vpop.permute.xlu2 %3645 }
0x3224   :  { %v6751_v24 = vadd.f32 %v3646_v40, %v3638_v23 }
0x3226   :  { %5203 = vtanh.f32 %v6751_v24 }
0x322c   :  { %v5204_v44 = vpop.eup %5203 }
0x322d   :  { %3651 = vrot.lane.b32.xlu1 %v5204_v44, %s5410_s28 }
0x3247   :  { %v3745_v59 = vpop.permute.xlu2 %3744 }
0x3248   :  { %v3747_v29 = vmul.f32 %v3745_v59, %v3728_v27 }
0x324a   :  { %3749 = vrot.lane.b32.xlu2 %v3747_v29, %s5411_s29 }
0x3269   :  { %v3521_v5 = vpop.f32.mrf.mxu1 }
0x326a   :  { %v3524_v32 = vadd.f32 %v3521_v5, %v6620_v36 }
0x329f   :  { %v3652_v46 = vpop.permute.xlu1 %3651 }
0x32a0   :  { %v3654_v47 = vmul.f32 %v3652_v46, %v3635_v52 }
0x32a2   :  { %3752 = vrot.lane.b32.xlu0 %v3654_v47, %s5410_s28  ;;  %3661 = vrot.lane.b32.xlu1 %v3654_v47, %s5411_s29 }
0x32a4   :  { %v3750_v18 = vpop.permute.xlu2 %3749 }
0x3314   :  { %v3753_v57 = vpop.permute.xlu0 %3752  ;;  %v3662_v35 = vpop.permute.xlu1 %3661 }
0x3315   :  { %v3755_v9 = vsel %vm308_vm5, %v3750_v18, %v3753_v57  ;;  %4820 = vmatmul.msk.f32.vlgmr.msrb.gmra.mxu1 %vm308_vm5, %v3662_v35 }
0x3316   :  { %4823 = vmatmul.msk.f32.vlgmr.msra.gmra.mxu3 %vm375_vm6, %v3755_v9  ;;  %4024 = vmatpush.msrb.mxu1 %v6759_v63 }
0x3317   :  { %4411 = vmatpush.msra.mxu3 %v6662_v50 }
0x3318   :  { %4025 = vmatpush.msrb.mxu1 %v6765_v21 }
0x3319   :  { %4412 = vmatpush.msra.mxu3 %v6671_v60 }
0x331a   :  { %4026 = vmatpush.msrb.mxu1 %v6771_v45 }
0x331b   :  { %4413 = vmatpush.msra.mxu3 %v6677_v20 }
0x331c   :  { %4027 = vmatpush.msrb.mxu1 %v6777_v3 }
0x331d   :  { %4826 = vmatmul.msk.f32.vlgmr.msra.gmra.mxu1 %vm308_vm5, %v3750_v18  ;;  %4414 = vmatpush.msra.mxu3 %v6683_v10 }
0x331e   :  { %4185 = vmatpush.msra.mxu1 %v6759_v63 }
0x331f   :  { %4415 = vmatpush.msra.mxu3 %v6692_v11 }
0x3320   :  { %4186 = vmatpush.msra.mxu1 %v6765_v21 }
0x3321   :  { %4416 = vmatpush.msra.mxu3 %v6699_v26 }
0x3322   :  { %4187 = vmatpush.msra.mxu1 %v6771_v45 }
0x3323   :  { %4417 = vmatpush.msra.mxu3 %v6705_v1 }
0x3324   :  { %4188 = vmatpush.msra.mxu1 %v6777_v3 }
0x3325   :  { %4418 = vmatpush.msra.mxu3 %v6711_v13 }
0x3392   :  { %v3682_v27 = vpop.f32.mrf.mxu1 }
0x3393   :  { %v6803_v51 = vadd.f32 %v3682_v27, %v3524_v32 }
0x3399   :  { %v3776_v34 = vpop.f32.mrf.mxu3 }
0x339a   :  { %v3777_v28 = vadd.f32 %v6736_v53, %v3776_v34  ;;  %v3868_v25 = vpop.f32.mrf.mxu1 }
0x339b   :  { %v3871_v31 = vadd.f32 %v3868_v25, %v246_v15 }
0x339c   :  { %5205 = vtanh.f32 %v3777_v28  ;;  %v4824_v38 = vmul.f32 -1.442695, %v3777_v28 }
0x339d   :  { %5207 = vtanh.f32 %v3871_v31  ;;  %v4827_v36 = vmul.f32 -1.442695, %v3871_v31 }
0x339f   :  { %5209 = vpow2.f32 %v4827_v36 }
0x33a2   :  { %v5206_v58 = vpop.eup %5205 }
0x33a3   :  { %v5208_v16 = vpop.eup %5207  ;;  %3801 = vrot.lane.b32.xlu1 %v5206_v58, %s5410_s28 }
0x33a4   :  { %3894 = vrot.lane.b32.xlu2 %v5208_v16, %s5410_s28 }
0x33a5   :  { %v5210_v43 = vpop.eup %5209 }
0x33a6   :  { %v3875_v49 = vadd.f32 1.0, %v5210_v43 }
0x33a8   :  { %5211 = vrcp.f32 %v3875_v49  ;;  %v3887_v54 = vand.u32 2147483648, %v3875_v49  ;;  %vm3881_vm4 = vweird.f32 %v3875_v49  ;;  %v3885_v37 = vand.u32 2147483647, %v3875_v49 }
0x33a9   :  { %5213 = vpow2.f32 %v4824_v38 }
0x33aa   :  { %v3888_v17 = vor.u32 1.1754944e-38, %v3887_v54  ;;  %vm3886_vm8 = vcmp.eq.f32.partialorder %v3885_v37, 8.507059e+37 }
0x33ae   :  { %v5212_v48 = vpop.eup %5211 }
0x33af   :  { %v3877_v6 = vmul.f32 %v5212_v48, %v3875_v49  ;;  %v5214_v61 = vpop.eup %5213  ;;  %vm3882_vm3 = vweird.f32 %v5212_v48 }
0x33b0   :  { %v3782_v52 = vadd.f32 1.0, %v5214_v61  ;;  %vm3883_vm7 = vmor %vm3881_vm4, %vm3882_vm3 }
0x33b1   :  { %v3878_v14 = vsub.f32 1.0, %v3877_v6 }
0x33b2   :  { %5215 = vrcp.f32 %v3782_v52  ;;  %v3794_v55 = vand.u32 2147483648, %v3782_v52  ;;  %vm3788_vm10 = vweird.f32 %v3782_v52  ;;  %v3792_v2 = vand.u32 2147483647, %v3782_v52 }
0x33b3   :  { %v3879_v7 = vmul.f32 %v5212_v48, %v3878_v14 }
0x33b4   :  { %v3795_v12 = vor.u32 1.1754944e-38, %v3794_v55  ;;  %vm3793_vm11 = vcmp.eq.f32.partialorder %v3792_v2, 8.507059e+37 }
0x33b5   :  { %v3880_v8 = vadd.f32 %v5212_v48, %v3879_v7 }
0x33b7   :  { %v3884_v56 = vsel %vm3883_vm7, %v5212_v48, %v3880_v8 }
0x33b8   :  { %v3889_v62 = vsel %vm3886_vm8, %v3888_v17, %v3884_v56  ;;  %v5216_v0 = vpop.eup %5215 }
0x33b9   :  { %v3784_v40 = vmul.f32 %v5216_v0, %v3782_v52  ;;  %vm3789_vm9 = vweird.f32 %v5216_v0  ;;  %v3892_v57 = vmul.f32 %v3889_v62, %v6745_v39 }
0x33ba   :  { %vm3790_vm0 = vmor %vm3788_vm10, %vm3789_vm9 }
0x33bb   :  { %v3785_v44 = vsub.f32 1.0, %v3784_v40 }
0x33bd   :  { %v3786_v59 = vmul.f32 %v5216_v0, %v3785_v44 }
0x33bf   :  { %v3787_v29 = vadd.f32 %v5216_v0, %v3786_v59 }
0x33c1   :  { %v3791_v42 = vsel %vm3790_vm0, %v5216_v0, %v3787_v29 }
0x33c2   :  { %v3796_v46 = vsel %vm3793_vm11, %v3795_v12, %v3791_v42 }
0x33c3   :  { %v3799_v32 = vmul.f32 %v3796_v46, %v6751_v24 }
0x33fe   :  { %v3895_v33 = vpop.permute.xlu2 %3894 }
0x33ff   :  { %v3897_v23 = vmul.f32 %v3895_v33, %v3889_v62 }
0x3401   :  { %3899 = vrot.lane.b32.xlu1 %v3897_v23, %s5411_s29 }
0x3415   :  { %v3802_v47 = vpop.permute.xlu1 %3801 }
0x3416   :  { %v3804_v18 = vmul.f32 %v3802_v47, %v3796_v46 }
0x3418   :  { %3806 = vrot.lane.b32.xlu0 %v3804_v18, %s5411_s29 }
0x3473   :  { %v3900_v35 = vpop.permute.xlu1 %3899 }
0x3474   :  { %v6813_v9 = vadd.f32 %v3900_v35, %v3892_v57 }
0x3476   :  { %5217 = vtanh.f32 %v6813_v9 }
0x347c   :  { %v5218_v5 = vpop.eup %5217 }
0x347d   :  { %3905 = vrot.lane.b32.xlu0 %v5218_v5, %s5410_s28 }
0x348a   :  { %v3807_v27 = vpop.permute.xlu0 %3806 }
0x348b   :  { %v6818_v15 = vadd.f32 %v3807_v27, %v3799_v32 }
0x348d   :  { %5219 = vtanh.f32 %v6818_v15 }
0x3493   :  { %v5220_v34 = vpop.eup %5219 }
0x3494   :  { %3812 = vrot.lane.b32.xlu2 %v5220_v34, %s5410_s28 }
0x34ee   :  { %v3813_v28 = vpop.permute.xlu2 %3812 }
0x34ef   :  { %v6822_v39 = vmul.f32 %v3813_v28, %v3796_v46  ;;  %v3906_v25 = vpop.permute.xlu0 %3905 }
0x34f0   :  { %v3908_v31 = vmul.f32 %v3906_v25, %v3889_v62 }
0x34f1   :  { %3913 = vrot.lane.b32.xlu2 %v6822_v39, %s5410_s28 }
0x34f2   :  { %3910 = vrot.lane.b32.xlu1 %v3908_v31, %s5411_s29 }
0x354b   :  { %v3914_v58 = vpop.permute.xlu2 %3913 }
0x3564   :  { %v3911_v24 = vpop.permute.xlu1 %3910 }
0x3565   :  { %v3916_v16 = vsel %vm308_vm5, %v3911_v24, %v3914_v58  ;;  %4831 = vmatmul.msk.f32.vlgmr.msrb.gmra.mxu1 %vm308_vm5, %v3911_v24 }
0x3566   :  { %4828 = vmatmul.msk.f32.vlgmr.msrb.gmra.mxu2 %vm375_vm6, %v3916_v16  ;;  %4346 = vmatpush.msrb.mxu1 %v6759_v63  ;;  %v252_v16 = vadd.f32 %v6719_v30, %v6727_v19 }
0x3567   :  { %4572 = vmatpush.msrb.mxu2 %v6662_v50  ;;  %v249_v50 = vadd.f32 %v6719_v30, %v6725_v41 }
0x3568   :  { %4347 = vmatpush.msrb.mxu1 %v6765_v21 }
0x3569   :  { %4573 = vmatpush.msrb.mxu2 %v6671_v60 }
0x356a   :  { %4348 = vmatpush.msrb.mxu1 %v6771_v45 }
0x356b   :  { %4574 = vmatpush.msrb.mxu2 %v6677_v20 }
0x356c   :  { %4349 = vmatpush.msrb.mxu1 %v6777_v3 }
0x356d   :  { %4575 = vmatpush.msrb.mxu2 %v6683_v10 }
0x356f   :  { %4576 = vmatpush.msrb.mxu2 %v6692_v11 }
0x3571   :  { %4577 = vmatpush.msrb.mxu2 %v6699_v26 }
0x3573   :  { %4578 = vmatpush.msrb.mxu2 %v6705_v1 }
0x3575   :  { %4579 = vmatpush.msrb.mxu2 %v6711_v13 }
0x35e2   :  { %v4029_v60 = vpop.f32.mrf.mxu1 }
0x35e3   :  { %v4032_v36 = vadd.f32 %v4029_v60, %v249_v50 }
0x35e5   :  { %5221 = vtanh.f32 %v4032_v36  ;;  %v4832_v11 = vmul.f32 -1.442695, %v4032_v36 }
0x35e9   :  { %v3937_v43 = vpop.f32.mrf.mxu2 }
0x35ea   :  { %v3938_v20 = vadd.f32 %v6736_v53, %v3937_v43 }
0x35eb   :  { %v5222_v49 = vpop.eup %5221 }
0x35ec   :  { %5223 = vtanh.f32 %v3938_v20  ;;  %4055 = vrot.lane.b32.xlu1 %v5222_v49, %s5410_s28  ;;  %v4829_v26 = vmul.f32 -1.442695, %v3938_v20 }
0x35ed   :  { %5225 = vpow2.f32 %v4832_v11 }
0x35ee   :  { %5227 = vpow2.f32 %v4829_v26 }
0x35f2   :  { %v5224_v10 = vpop.eup %5223 }
0x35f3   :  { %3962 = vrot.lane.b32.xlu0 %v5224_v10, %s5410_s28  ;;  %v5226_v1 = vpop.eup %5225 }
0x35f4   :  { %v4036_v13 = vadd.f32 1.0, %v5226_v1  ;;  %v5228_v41 = vpop.eup %5227 }
0x35f5   :  { %v3943_v48 = vadd.f32 1.0, %v5228_v41 }
0x35f6   :  { %5229 = vrcp.f32 %v4036_v13  ;;  %v4048_v37 = vand.u32 2147483648, %v4036_v13  ;;  %vm4042_vm13 = vweird.f32 %v4036_v13  ;;  %v4046_v56 = vand.u32 2147483647, %v4036_v13 }
0x35f7   :  { %5231 = vrcp.f32 %v3943_v48  ;;  %v3955_v59 = vand.u32 2147483648, %v3943_v48  ;;  %vm3949_vm2 = vweird.f32 %v3943_v48  ;;  %v3953_v29 = vand.u32 2147483647, %v3943_v48 }
0x35f8   :  { %v4049_v62 = vor.u32 1.1754944e-38, %v4048_v37  ;;  %vm4047_vm15 = vcmp.eq.f32.partialorder %v4046_v56, 8.507059e+37 }
0x35f9   :  { %v3956_v2 = vor.u32 1.1754944e-38, %v3955_v59  ;;  %vm3954_vm4 = vcmp.eq.f32.partialorder %v3953_v29, 8.507059e+37 }
0x35fc   :  { %v5230_v38 = vpop.eup %5229 }
0x35fd   :  { %v4038_v6 = vmul.f32 %v5230_v38, %v4036_v13  ;;  %v5232_v14 = vpop.eup %5231  ;;  %vm4043_vm12 = vweird.f32 %v5230_v38 }
0x35fe   :  { %v3945_v7 = vmul.f32 %v5232_v14, %v3943_v48  ;;  %vm4044_vm14 = vmor %vm4042_vm13, %vm4043_vm12  ;;  %vm3950_vm1 = vweird.f32 %v5232_v14 }
0x35ff   :  { %v4039_v61 = vsub.f32 1.0, %v4038_v6  ;;  %vm3951_vm3 = vmor %vm3949_vm2, %vm3950_vm1 }
0x3600   :  { %v3946_v8 = vsub.f32 1.0, %v3945_v7 }
0x3601   :  { %v4040_v52 = vmul.f32 %v5230_v38, %v4039_v61 }
0x3602   :  { %v3947_v17 = vmul.f32 %v5232_v14, %v3946_v8 }
0x3603   :  { %v4041_v54 = vadd.f32 %v5230_v38, %v4040_v52 }
0x3604   :  { %v3948_v40 = vadd.f32 %v5232_v14, %v3947_v17 }
0x3605   :  { %v4045_v33 = vsel %vm4044_vm14, %v5230_v38, %v4041_v54 }
0x3606   :  { %v4050_v23 = vsel %vm4047_vm15, %v4049_v62, %v4045_v33  ;;  %v3952_v55 = vsel %vm3951_vm3, %v5232_v14, %v3948_v40 }
0x3607   :  { %v3957_v12 = vsel %vm3954_vm4, %v3956_v2, %v3952_v55  ;;  %v4053_v5 = vmul.f32 %v4050_v23, %v6813_v9 }
0x3608   :  { %v3960_v47 = vmul.f32 %v3957_v12, %v6818_v15 }
0x365e   :  { %v4056_v0 = vpop.permute.xlu1 %4055 }
0x365f   :  { %v4058_v44 = vmul.f32 %v4056_v0, %v4050_v23 }
0x3661   :  { %4060 = vrot.lane.b32.xlu0 %v4058_v44, %s5411_s29 }
0x3665   :  { %v3963_v42 = vpop.permute.xlu0 %3962 }
0x3666   :  { %v3965_v46 = vmul.f32 %v3963_v42, %v3957_v12 }
0x3668   :  { %3967 = vrot.lane.b32.xlu2 %v3965_v46, %s5411_s29 }
0x36c2   :  { %v3968_v18 = vpop.permute.xlu2 %3967 }
0x36c3   :  { %v6850_v57 = vadd.f32 %v3968_v18, %v3960_v47 }
0x36c5   :  { %5233 = vtanh.f32 %v6850_v57 }
0x36cb   :  { %v5234_v35 = vpop.eup %5233 }
0x36cc   :  { %3973 = vrot.lane.b32.xlu1 %v5234_v35, %s5410_s28 }
0x36d3   :  { %v4061_v32 = vpop.permute.xlu0 %4060 }
0x36d4   :  { %v6855_v27 = vadd.f32 %v4061_v32, %v4053_v5 }
0x36d6   :  { %5235 = vtanh.f32 %v6855_v27 }
0x36dc   :  { %v5236_v34 = vpop.eup %5235 }
0x36dd   :  { %4066 = vrot.lane.b32.xlu2 %v5236_v34, %s5410_s28 }
0x3737   :  { %v4067_v28 = vpop.permute.xlu2 %4066 }
0x3738   :  { %v4069_v15 = vmul.f32 %v4067_v28, %v4050_v23 }
0x373a   :  { %4071 = vrot.lane.b32.xlu0 %v4069_v15, %s5411_s29  ;;  %v255_v15 = vadd.f32 %v6719_v30, %v6729_v4 }
0x373e   :  { %v3974_v25 = vpop.permute.xlu1 %3973 }
0x373f   :  { %v6860_v31 = vmul.f32 %v3974_v25, %v3957_v12 }
0x3741   :  { %4074 = vrot.lane.b32.xlu1 %v6860_v31, %s5410_s28 }
0x37ac   :  { %v4072_v58 = vpop.permute.xlu0 %4071 }
0x37ad   :  { %4836 = vmatmul.msk.f32.vlgmr.msra.gmra.mxu1 %vm308_vm5, %v4072_v58 }
0x37ae   :  { %4507 = vmatpush.msra.mxu1 %v6759_v63 }
0x37b0   :  { %4508 = vmatpush.msra.mxu1 %v6765_v21 }
0x37b2   :  { %4509 = vmatpush.msra.mxu1 %v6771_v45 }
0x37b3   :  { %v4075_v9 = vpop.permute.xlu1 %4074 }
0x37b4   :  { %v4077_v24 = vsel %vm308_vm5, %v4072_v58, %v4075_v9  ;;  %4510 = vmatpush.msra.mxu1 %v6777_v3 }
0x37b5   :  { %4833 = vmatmul.msk.f32.vlgmr.msrb.gmra.mxu3 %vm375_vm6, %v4077_v24 }
0x382a   :  { %v4190_v50 = vpop.f32.mrf.mxu1 }
0x382b   :  { %v4193_v60 = vadd.f32 %v4190_v50, %v252_v16 }
0x382d   :  { %5237 = vtanh.f32 %v4193_v60  ;;  %v4837_v20 = vmul.f32 -1.442695, %v4193_v60 }
0x3833   :  { %v5238_v36 = vpop.eup %5237 }
0x3834   :  { %4216 = vrot.lane.b32.xlu0 %v5238_v36, %s5410_s28 }
0x3838   :  { %v4098_v63 = vpop.f32.mrf.mxu3 }
0x3839   :  { %v4099_v21 = vadd.f32 %v6736_v53, %v4098_v63 }
0x383b   :  { %5239 = vtanh.f32 %v4099_v21  ;;  %v4834_v43 = vmul.f32 -1.442695, %v4099_v21 }
0x383d   :  { %5241 = vpow2.f32 %v4834_v43 }
0x383e   :  { %5243 = vpow2.f32 %v4837_v20 }
0x3841   :  { %v5240_v45 = vpop.eup %5239 }
0x3842   :  { %4123 = vrot.lane.b32.xlu2 %v5240_v45, %s5410_s28 }
0x3843   :  { %v5242_v3 = vpop.eup %5241 }
0x3844   :  { %v4104_v49 = vadd.f32 1.0, %v5242_v3  ;;  %v5244_v19 = vpop.eup %5243 }
0x3845   :  { %v4197_v11 = vadd.f32 1.0, %v5244_v19 }
0x3846   :  { %5245 = vrcp.f32 %v4104_v49  ;;  %v4116_v6 = vand.u32 2147483648, %v4104_v49  ;;  %vm4110_vm8 = vweird.f32 %v4104_v49  ;;  %v4114_v14 = vand.u32 2147483647, %v4104_v49 }
0x3847   :  { %5247 = vrcp.f32 %v4197_v11  ;;  %v4209_v33 = vand.u32 2147483648, %v4197_v11  ;;  %vm4203_vm11 = vweird.f32 %v4197_v11  ;;  %v4207_v62 = vand.u32 2147483647, %v4197_v11 }
0x3848   :  { %v4117_v52 = vor.u32 1.1754944e-38, %v4116_v6  ;;  %vm4115_vm10 = vcmp.eq.f32.partialorder %v4114_v14, 8.507059e+37 }
0x3849   :  { %v4210_v23 = vor.u32 1.1754944e-38, %v4209_v33  ;;  %vm4208_vm13 = vcmp.eq.f32.partialorder %v4207_v62, 8.507059e+37 }
0x384c   :  { %v5246_v10 = vpop.eup %5245 }
0x384d   :  { %v4106_v26 = vmul.f32 %v5246_v10, %v4104_v49  ;;  %v5248_v13 = vpop.eup %5247  ;;  %vm4111_vm7 = vweird.f32 %v5246_v10 }
0x384e   :  { %v4199_v48 = vmul.f32 %v5248_v13, %v4197_v11  ;;  %vm4112_vm9 = vmor %vm4110_vm8, %vm4111_vm7  ;;  %vm4204_vm0 = vweird.f32 %v5248_v13 }
0x384f   :  { %v4107_v1 = vsub.f32 1.0, %v4106_v26  ;;  %vm4205_vm12 = vmor %vm4203_vm11, %vm4204_vm0 }
0x3850   :  { %v4200_v61 = vsub.f32 1.0, %v4199_v48 }
0x3851   :  { %v4108_v41 = vmul.f32 %v5246_v10, %v4107_v1 }
0x3852   :  { %v4201_v8 = vmul.f32 %v5248_v13, %v4200_v61 }
0x3853   :  { %v4109_v38 = vadd.f32 %v5246_v10, %v4108_v41 }
0x3854   :  { %v4202_v17 = vadd.f32 %v5248_v13, %v4201_v8 }
0x3855   :  { %v4113_v7 = vsel %vm4112_vm9, %v5246_v10, %v4109_v38 }
0x3856   :  { %v4118_v37 = vsel %vm4115_vm10, %v4117_v52, %v4113_v7  ;;  %v4206_v0 = vsel %vm4205_vm12, %v5248_v13, %v4202_v17 }
0x3857   :  { %v4211_v44 = vsel %vm4208_vm13, %v4210_v23, %v4206_v0  ;;  %v4121_v12 = vmul.f32 %v4118_v37, %v6850_v57 }
0x3858   :  { %v4214_v29 = vmul.f32 %v4211_v44, %v6855_v27 }
0x389c   :  { %v4124_v54 = vpop.permute.xlu2 %4123 }
0x389d   :  { %v4126_v56 = vmul.f32 %v4124_v54, %v4118_v37 }
0x389f   :  { %4128 = vrot.lane.b32.xlu1 %v4126_v56, %s5411_s29 }
0x38a6   :  { %v4217_v40 = vpop.permute.xlu0 %4216 }
0x38a7   :  { %v4219_v59 = vmul.f32 %v4217_v40, %v4211_v44 }
0x38a9   :  { %4221 = vrot.lane.b32.xlu2 %v4219_v59, %s5411_s29 }
0x3903   :  { %v4222_v55 = vpop.permute.xlu2 %4221 }
0x3904   :  { %v6879_v2 = vadd.f32 %v4222_v55, %v4214_v29 }
0x3906   :  { %5249 = vtanh.f32 %v6879_v2 }
0x390c   :  { %v5250_v42 = vpop.eup %5249 }
0x390d   :  { %4227 = vrot.lane.b32.xlu1 %v5250_v42, %s5410_s28 }
0x3911   :  { %v4129_v46 = vpop.permute.xlu1 %4128 }
0x3912   :  { %v6884_v47 = vadd.f32 %v4129_v46, %v4121_v12 }
0x3914   :  { %5251 = vtanh.f32 %v6884_v47 }
0x391a   :  { %v5252_v18 = vpop.eup %5251 }
0x391b   :  { %4134 = vrot.lane.b32.xlu0 %v5252_v18, %s5410_s28 }
0x397f   :  { %v4228_v35 = vpop.permute.xlu1 %4227 }
0x3980   :  { %v4230_v5 = vmul.f32 %v4228_v35, %v4211_v44 }
0x3982   :  { %4232 = vrot.lane.b32.xlu2 %v4230_v5, %s5411_s29  ;;  %v258_v5 = vadd.f32 %v6719_v30, %v6731_v22 }
0x398d   :  { %v4135_v32 = vpop.permute.xlu0 %4134 }
0x398e   :  { %v6889_v27 = vmul.f32 %v4135_v32, %v4118_v37 }
0x3990   :  { %4235 = vrot.lane.b32.xlu0 %v6889_v27, %s5410_s28 }
0x39dc   :  { %v4233_v34 = vpop.permute.xlu2 %4232 }
0x39dd   :  { %4841 = vmatmul.msk.f32.vlgmr.msrb.gmra.mxu1 %vm308_vm5, %v4233_v34 }
0x3a02   :  { %v4236_v57 = vpop.permute.xlu0 %4235 }
0x3a03   :  { %v4238_v28 = vsel %vm308_vm5, %v4233_v34, %v4236_v57 }
0x3a04   :  { %4838 = vmatmul.msk.f32.vlgmr.msra.gmra.mxu2 %vm375_vm6, %v4238_v28 }
0x3a5a   :  { %v4351_v25 = vpop.f32.mrf.mxu1 }
0x3a5b   :  { %v4354_v58 = vadd.f32 %v4351_v25, %v255_v15 }
0x3a5d   :  { %5253 = vtanh.f32 %v4354_v58  ;;  %v4842_v60 = vmul.f32 -1.442695, %v4354_v58 }
0x3a63   :  { %v5254_v9 = vpop.eup %5253 }
0x3a64   :  { %4377 = vrot.lane.b32.xlu2 %v5254_v9, %s5410_s28 }
0x3a87   :  { %v4259_v24 = vpop.f32.mrf.mxu2 }
0x3a88   :  { %v4260_v16 = vadd.f32 %v6736_v53, %v4259_v24 }
0x3a8a   :  { %5255 = vtanh.f32 %v4260_v16  ;;  %v4839_v13 = vmul.f32 -1.442695, %v4260_v16 }
0x3a8b   :  { %5257 = vpow2.f32 %v4842_v60 }
0x3a90   :  { %v5256_v50 = vpop.eup %5255 }
0x3a91   :  { %4284 = vrot.lane.b32.xlu1 %v5256_v50, %s5410_s28  ;;  %v5258_v36 = vpop.eup %5257 }
0x3a92   :  { %v4358_v63 = vadd.f32 1.0, %v5258_v36 }
0x3a94   :  { %5259 = vrcp.f32 %v4358_v63  ;;  %v4370_v20 = vand.u32 2147483648, %v4358_v63  ;;  %vm4364_vm15 = vweird.f32 %v4358_v63  ;;  %v4368_v49 = vand.u32 2147483647, %v4358_v63 }
0x3a95   :  { %5261 = vpow2.f32 %v4839_v13 }
0x3a96   :  { %v4371_v10 = vor.u32 1.1754944e-38, %v4370_v20  ;;  %vm4369_vm2 = vcmp.eq.f32.partialorder %v4368_v49, 8.507059e+37 }
0x3a9a   :  { %v5260_v21 = vpop.eup %5259 }
0x3a9b   :  { %v4360_v4 = vmul.f32 %v5260_v21, %v4358_v63  ;;  %vm4365_vm14 = vweird.f32 %v5260_v21  ;;  %v5262_v41 = vpop.eup %5261 }
0x3a9c   :  { %vm4366_vm1 = vmor %vm4364_vm15, %vm4365_vm14  ;;  %v4265_v48 = vadd.f32 1.0, %v5262_v41 }
0x3a9d   :  { %v4361_v45 = vsub.f32 1.0, %v4360_v4 }
0x3a9e   :  { %5263 = vrcp.f32 %v4265_v48  ;;  %v4277_v52 = vand.u32 2147483648, %v4265_v48  ;;  %vm4271_vm4 = vweird.f32 %v4265_v48  ;;  %v4275_v8 = vand.u32 2147483647, %v4265_v48 }
0x3a9f   :  { %v4362_v43 = vmul.f32 %v5260_v21, %v4361_v45 }
0x3aa0   :  { %v4278_v37 = vor.u32 1.1754944e-38, %v4277_v52  ;;  %vm4276_vm8 = vcmp.eq.f32.partialorder %v4275_v8, 8.507059e+37 }
0x3aa1   :  { %v4363_v3 = vadd.f32 %v5260_v21, %v4362_v43 }
0x3aa3   :  { %v4367_v19 = vsel %vm4366_vm1, %v5260_v21, %v4363_v3 }
0x3aa4   :  { %v4372_v26 = vsel %vm4369_vm2, %v4371_v10, %v4367_v19  ;;  %v5264_v38 = vpop.eup %5263 }
0x3aa5   :  { %v4267_v6 = vmul.f32 %v5264_v38, %v4265_v48  ;;  %vm4272_vm3 = vweird.f32 %v5264_v38  ;;  %v4375_v62 = vmul.f32 %v4372_v26, %v6879_v2 }
0x3aa6   :  { %vm4273_vm7 = vmor %vm4271_vm4, %vm4272_vm3 }
0x3aa7   :  { %v4268_v14 = vsub.f32 1.0, %v4267_v6 }
0x3aa9   :  { %v4269_v61 = vmul.f32 %v5264_v38, %v4268_v14 }
0x3aab   :  { %v4270_v7 = vadd.f32 %v5264_v38, %v4269_v61 }
0x3aad   :  { %v4274_v54 = vsel %vm4273_vm7, %v5264_v38, %v4270_v7 }
0x3aae   :  { %v4279_v17 = vsel %vm4276_vm8, %v4278_v37, %v4274_v54 }
0x3aaf   :  { %v4282_v44 = vmul.f32 %v4279_v17, %v6884_v47 }
0x3abe   :  { %v4378_v11 = vpop.permute.xlu2 %4377 }
0x3abf   :  { %v4380_v1 = vmul.f32 %v4378_v11, %v4372_v26 }
0x3ac1   :  { %4382 = vrot.lane.b32.xlu1 %v4380_v1, %s5411_s29 }
0x3b03   :  { %v4285_v56 = vpop.permute.xlu1 %4284 }
0x3b04   :  { %v4287_v33 = vmul.f32 %v4285_v56, %v4279_v17 }
0x3b06   :  { %4289 = vrot.lane.b32.xlu0 %v4287_v33, %s5411_s29 }
0x3b33   :  { %v4383_v0 = vpop.permute.xlu1 %4382 }
0x3b34   :  { %v6904_v23 = vadd.f32 %v4383_v0, %v4375_v62 }
0x3b36   :  { %5265 = vtanh.f32 %v6904_v23 }
0x3b3c   :  { %v5266_v40 = vpop.eup %5265 }
0x3b3d   :  { %4388 = vrot.lane.b32.xlu0 %v5266_v40, %s5410_s28 }
0x3b78   :  { %v4290_v59 = vpop.permute.xlu0 %4289 }
0x3b79   :  { %v6909_v29 = vadd.f32 %v4290_v59, %v4282_v44 }
0x3b7b   :  { %5267 = vtanh.f32 %v6909_v29 }
0x3b81   :  { %v5268_v55 = vpop.eup %5267 }
0x3b82   :  { %4295 = vrot.lane.b32.xlu2 %v5268_v55, %s5410_s28 }
0x3baf   :  { %v4389_v42 = vpop.permute.xlu0 %4388 }
0x3bb0   :  { %v4391_v2 = vmul.f32 %v4389_v42, %v4372_v26  ;;  %v5353_v42 = vld [vmem:[%s6971_s5] ss:$0 sm:$0xff]  ;;  %s5412_s5 = smov [#allocation6]  }
0x3bb2   :  { %4393 = vrot.lane.b32.xlu1 %v4391_v2, %s5411_s29 }
0x3bdc   :  { %v4296_v12 = vpop.permute.xlu2 %4295 }
0x3bdd   :  { %v6914_v46 = vmul.f32 %v4296_v12, %v4279_v17 }
0x3bdf   :  { %4396 = vrot.lane.b32.xlu2 %v6914_v46, %s5410_s28 }
0x3c24   :  { %v4394_v18 = vpop.permute.xlu1 %4393 }
0x3c25   :  { %4846 = vmatmul.msk.f32.vlgmr.msra.gmra.mxu1 %vm308_vm5, %v4394_v18 }
0x3c39   :  { %v4397_v47 = vpop.permute.xlu2 %4396 }
0x3c3a   :  { %v4399_v35 = vsel %vm308_vm5, %v4394_v18, %v4397_v47 }
0x3c3b   :  { %4843 = vmatmul.msk.f32.vlgmr.msra.gmra.mxu3 %vm375_vm6, %v4399_v35 }
0x3ca2   :  { %v4512_v32 = vpop.f32.mrf.mxu1 }
0x3ca3   :  { %v4515_v34 = vadd.f32 %v4512_v32, %v258_v5  ;;  %v3820_v5 = vld [vmem:[#allocation3 + $0x2b8] sm:$0xff]  ;;  %v3819_v32 = vld [vmem:[#allocation3 + $0x2b0] sm:$0xff] }
0x3ca4   :  { %3838 = vmatpush.msra.mxu0 %v3820_v5 }
0x3ca5   :  { %5269 = vtanh.f32 %v4515_v34  ;;  %v4847_v58 = vmul.f32 -1.442695, %v4515_v34  ;;  %v3818_v34 = vld [vmem:[#allocation3 + $0x2a8] sm:$0xff] }
0x3ca6   :  { %3839 = vmatpush.msra.mxu0 %v3819_v32 }
0x3ca8   :  { %3840 = vmatpush.msra.mxu0 %v3818_v34 }
0x3cab   :  { %v5270_v57 = vpop.eup %5269 }
0x3cac   :  { %4538 = vrot.lane.b32.xlu1 %v5270_v57, %s5410_s28  ;;  %v3817_v57 = vld [vmem:[#allocation3 + $0x2a0] sm:$0xff] }
0x3cad   :  { %3841 = vmatpush.msra.mxu0 %v3817_v57 }
0x3cbe   :  { %v4420_v28 = vpop.f32.mrf.mxu3 }
0x3cbf   :  { %v4421_v15 = vadd.f32 %v6736_v53, %v4420_v28 }
0x3cc1   :  { %5271 = vtanh.f32 %v4421_v15  ;;  %v4844_v22 = vmul.f32 -1.442695, %v4421_v15 }
0x3cc2   :  { %5273 = vpow2.f32 %v4847_v58 }
0x3cc7   :  { %v5272_v25 = vpop.eup %5271 }
0x3cc8   :  { %4445 = vrot.lane.b32.xlu0 %v5272_v25, %s5410_s28  ;;  %v5274_v9 = vpop.eup %5273 }
0x3cc9   :  { %v4519_v24 = vadd.f32 1.0, %v5274_v9 }
0x3ccb   :  { %5275 = vrcp.f32 %v4519_v24  ;;  %v4531_v21 = vand.u32 2147483648, %v4519_v24  ;;  %vm4525_vm10 = vweird.f32 %v4519_v24  ;;  %v4529_v53 = vand.u32 2147483647, %v4519_v24 }
0x3ccc   :  { %5277 = vpow2.f32 %v4844_v22 }
0x3ccd   :  { %v4532_v43 = vor.u32 1.1754944e-38, %v4531_v21  ;;  %vm4530_vm11 = vcmp.eq.f32.partialorder %v4529_v53, 8.507059e+37  ;;  %v3979_v21 = vld [vmem:[#allocation3 + $0x2c8] sm:$0xff]  ;;  %v3978_v53 = vld [vmem:[#allocation3 + $0x2c0] sm:$0xff] }
0x3cd1   :  { %v5276_v16 = vpop.eup %5275 }
0x3cd2   :  { %v4521_v30 = vmul.f32 %v5276_v16, %v4519_v24  ;;  %v5278_v36 = vpop.eup %5277  ;;  %vm4526_vm9 = vweird.f32 %v5276_v16 }
0x3cd3   :  { %v4426_v4 = vadd.f32 1.0, %v5278_v36  ;;  %vm4527_vm0 = vmor %vm4525_vm10, %vm4526_vm9  ;;  %v3981_v36 = vld [vmem:[#allocation3 + $0x2d8] sm:$0xff] }
0x3cd4   :  { %v4522_v50 = vsub.f32 1.0, %v4521_v30  ;;  %3999 = vmatpush.msrb.mxu0 %v3981_v36 }
0x3cd5   :  { %5279 = vrcp.f32 %v4426_v4  ;;  %v4438_v13 = vand.u32 2147483648, %v4426_v4  ;;  %vm4432_vm13 = vweird.f32 %v4426_v4  ;;  %v4436_v41 = vand.u32 2147483647, %v4426_v4 }
0x3cd6   :  { %v4523_v60 = vmul.f32 %v5276_v16, %v4522_v50 }
0x3cd7   :  { %v4439_v38 = vor.u32 1.1754944e-38, %v4438_v13  ;;  %vm4437_vm15 = vcmp.eq.f32.partialorder %v4436_v41, 8.507059e+37  ;;  %v4300_v13 = vld [vmem:[#allocation3 + $0x300] sm:$0xff] }
0x3cd8   :  { %v4524_v63 = vadd.f32 %v5276_v16, %v4523_v60 }
0x3cda   :  { %v4528_v45 = vsel %vm4527_vm0, %v5276_v16, %v4524_v63  ;;  %v3980_v63 = vld [vmem:[#allocation3 + $0x2d0] sm:$0xff] }
0x3cdb   :  { %v4533_v20 = vsel %vm4530_vm11, %v4532_v43, %v4528_v45  ;;  %v5280_v19 = vpop.eup %5279  ;;  %4000 = vmatpush.msrb.mxu0 %v3980_v63 }
0x3cdc   :  { %v4428_v10 = vmul.f32 %v5280_v19, %v4426_v4  ;;  %vm4433_vm12 = vweird.f32 %v5280_v19  ;;  %v4536_v7 = vmul.f32 %v4533_v20, %v6904_v23 }
0x3cdd   :  { %vm4434_vm14 = vmor %vm4432_vm13, %vm4433_vm12  ;;  %4001 = vmatpush.msrb.mxu0 %v3979_v21 }
0x3cde   :  { %v4429_v11 = vsub.f32 1.0, %v4428_v10  ;;  %v4139_v10 = vld [vmem:[#allocation3 + $0x2e0] sm:$0xff] }
0x3cdf   :  { %4002 = vmatpush.msrb.mxu0 %v3978_v53 }
0x3ce0   :  { %v4430_v26 = vmul.f32 %v5280_v19, %v4429_v11  ;;  %v4303_v11 = vld [vmem:[#allocation3 + $0x318] sm:$0xff] }
0x3ce2   :  { %v4431_v1 = vadd.f32 %v5280_v19, %v4430_v26  ;;  %v4302_v26 = vld [vmem:[#allocation3 + $0x310] sm:$0xff] }
0x3ce4   :  { %v4435_v48 = vsel %vm4434_vm14, %v5280_v19, %v4431_v1  ;;  %v4140_v19 = vld [vmem:[#allocation3 + $0x2e8] sm:$0xff] }
0x3ce5   :  { %v4440_v14 = vsel %vm4437_vm15, %v4439_v38, %v4435_v48  ;;  %v4301_v1 = vld [vmem:[#allocation3 + $0x308] sm:$0xff] }
0x3ce6   :  { %v4443_v54 = vmul.f32 %v4440_v14, %v6909_v29 }
0x3d1e   :  { %v4539_v3 = vpop.permute.xlu1 %4538 }
0x3d1f   :  { %v4541_v49 = vmul.f32 %v4539_v3, %v4533_v20 }
0x3d21   :  { %4543 = vrot.lane.b32.xlu0 %v4541_v49, %s5411_s29  ;;  %v4141_v49 = vld [vmem:[#allocation3 + $0x2f0] sm:$0xff] }
0x3d3a   :  { %v4446_v6 = vpop.permute.xlu0 %4445 }
0x3d3b   :  { %v4448_v61 = vmul.f32 %v4446_v6, %v4440_v14  ;;  %v4463_v6 = vld [vmem:[#allocation3 + $0x330] sm:$0xff] }
0x3d3d   :  { %4450 = vrot.lane.b32.xlu2 %v4448_v61, %s5411_s29  ;;  %v4461_v61 = vld [vmem:[#allocation3 + $0x320] sm:$0xff] }
0x3d93   :  { %v4544_v52 = vpop.permute.xlu0 %4543 }
0x3d94   :  { %v4546_v8 = vadd.f32 %v4544_v52, %v4536_v7  ;;  %v4625_v7 = vld [vmem:[#allocation3 + $0x358] sm:$0xff] }
0x3d96   :  { %5281 = vtanh.f32 %v4546_v8  ;;  %v4624_v8 = vld [vmem:[#allocation3 + $0x350] sm:$0xff] }
0x3d97   :  { %v4451_v37 = vpop.permute.xlu2 %4450 }
0x3d98   :  { %v6930_v56 = vadd.f32 %v4451_v37, %v4443_v54  ;;  %v4623_v54 = vld [vmem:[#allocation3 + $0x348] sm:$0xff]  ;;  %v4622_v37 = vld [vmem:[#allocation3 + $0x340] sm:$0xff] }
0x3d9a   :  { %5283 = vtanh.f32 %v6930_v56 }
0x3d9c   :  { %v5282_v17 = vpop.eup %5281 }
0x3d9d   :  { %4549 = vrot.lane.b32.xlu2 %v5282_v17, %s5410_s28 }
0x3da0   :  { %v5284_v33 = vpop.eup %5283 }
0x3da1   :  { %4456 = vrot.lane.b32.xlu1 %v5284_v33, %s5410_s28 }
0x3df7   :  { %v4550_v62 = vpop.permute.xlu2 %4549 }
0x3df8   :  { %v4552_v0 = vmul.f32 %v4550_v62, %v4533_v20 }
0x3dfa   :  { %4554 = vrot.lane.b32.xlu0 %v4552_v0, %s5411_s29 }
0x3e13   :  { %v4457_v23 = vpop.permute.xlu1 %4456 }
0x3e14   :  { %v4459_v40 = vmul.f32 %v4457_v23, %v4440_v14  ;;  %v4462_v14 = vld [vmem:[#allocation3 + $0x328] sm:$0xff] }
0x3e16   :  { %4557 = vrot.lane.b32.xlu1 %v4459_v40, %s5410_s28 }
0x3e6c   :  { %v4555_v44 = vpop.permute.xlu0 %4554 }
0x3e88   :  { %v4558_v59 = vpop.permute.xlu1 %4557 }
0x3e89   :  { %v4560_v29 = vsel %vm308_vm5, %v4555_v44, %v4558_v59  ;;  %v4652_v59 = vlaneseq }
0x3e8a   :  { %4848 = vmatmul.msk.f32.vlgmr.msrb.gmra.mxu2 %vm375_vm6, %v4560_v29 }
0x3f0d   :  { %v4581_v55 = vpop.f32.mrf.mxu2 }
0x3f0e   :  { %v4582_v2 = vadd.f32 %v5353_v42, %v4581_v55  ;;  %v4653_v42 = vand.u32 127, %v4652_v59 }
0x3f10   :  { %5285 = vtanh.f32 %v4582_v2  ;;  %v4849_v18 = vmul.f32 -1.442695, %v4582_v2  ;;  %vm4654_vm4 = vcmp.lt.s32.totalorder %v4653_v42, 60 }
0x3f12   :  { %5287 = vpow2.f32 %v4849_v18 }
0x3f16   :  { %v5286_v12 = vpop.eup %5285 }
0x3f17   :  { %4606 = vrot.lane.b32.xlu2 %v5286_v12, %s5410_s28 }
0x3f18   :  { %v5288_v47 = vpop.eup %5287 }
0x3f19   :  { %v4587_v35 = vadd.f32 1.0, %v5288_v47 }
0x3f1b   :  { %5289 = vrcp.f32 %v4587_v35  ;;  %vm4593_vm1 = vweird.f32 %v4587_v35  ;;  %v4597_v9 = vand.u32 2147483647, %v4587_v35 }
0x3f1d   :  { %vm4598_vm3 = vcmp.eq.f32.partialorder %v4597_v9, 8.507059e+37 }
0x3f1f   :  { %3822 = vrot.lane.b32.xlu2 %v6822_v39, %s5411_s29 }
0x3f21   :  { %v5290_v28 = vpop.eup %5289 }
0x3f22   :  { %v4589_v15 = vmul.f32 %v5290_v28, %v4587_v35  ;;  %vm4594_vm6 = vweird.f32 %v5290_v28 }
0x3f23   :  { %vm4595_vm2 = vmor %vm4593_vm1, %vm4594_vm6 }
0x3f24   :  { %v4590_v25 = vsub.f32 1.0, %v4589_v15 }
0x3f26   :  { %v4591_v39 = vmul.f32 %v5290_v28, %v4590_v25 }
0x3f27   :  { %4305 = vrot.lane.b32.xlu2 %v6914_v46, %s5411_s29  ;;  %v4599_v46 = vand.u32 2147483648, %v4587_v35 }
0x3f28   :  { %v4592_v58 = vadd.f32 %v5290_v28, %v4591_v39 }
0x3f29   :  { %v4600_v16 = vor.u32 1.1754944e-38, %v4599_v46 }
0x3f2a   :  { %v4596_v24 = vsel %vm4595_vm2, %v5290_v28, %v4592_v58 }
0x3f2b   :  { %v4601_v22 = vsel %vm4598_vm3, %v4600_v16, %v4596_v24 }
0x3f2c   :  { %v4604_v4 = vmul.f32 %v4601_v22, %v6930_v56 }
0x3f71   :  { %v4607_v30 = vpop.permute.xlu2 %4606 }
0x3f72   :  { %v4609_v50 = vmul.f32 %v4607_v30, %v4601_v22 }
0x3f74   :  { %4611 = vrot.lane.b32.xlu0 %v4609_v50, %s5411_s29 }
0x3f79   :  { %v3823_v60 = vpop.permute.xlu2 %3822 }
0x3f7a   :  { %4825 = vmatmul.msk.f32.vlgmr.msra.gmra.mxu0 %vm308_vm5, %v3823_v60 }
0x3f7c   :  { %3983 = vrot.lane.b32.xlu0 %v6860_v31, %s5411_s29  ;;  %v4142_v31 = vld [vmem:[#allocation3 + $0x2f8] sm:$0xff] }
0x3f7d   :  { %4160 = vmatpush.msra.mxu0 %v4142_v31 }
0x3f7f   :  { %4161 = vmatpush.msra.mxu0 %v4141_v49 }
0x3f81   :  { %4162 = vmatpush.msra.mxu0 %v4140_v19  ;;  %v4306_v52 = vpop.permute.xlu2 %4305 }
0x3f83   :  { %4163 = vmatpush.msra.mxu0 %v4139_v10 }
0x3f84   :  { %4466 = vrot.lane.b32.xlu0 %v4459_v40, %s5411_s29 }
0x3fe6   :  { %v4612_v45 = vpop.permute.xlu0 %4611 }
0x3fe7   :  { %v4614_v43 = vadd.f32 %v4612_v45, %v4604_v4 }
0x3fe9   :  { %5291 = vtanh.f32 %v4614_v43 }
0x3fee   :  { %v3984_v3 = vpop.permute.xlu0 %3983 }
0x3fef   :  { %v5292_v20 = vpop.eup %5291  ;;  %4830 = vmatmul.msk.f32.vlgmr.msrb.gmra.mxu0 %vm308_vm5, %v3984_v3 }
0x3ff0   :  { %4617 = vrot.lane.b32.xlu1 %v5292_v20, %s5410_s28  ;;  %4321 = vmatpush.msrb.mxu0 %v4303_v11  ;;  %s4678_s28 = sshll.u32 %s5412_s5, 4  ;;  %s4679_s28 = int_to_ptr.vmem [resolvable:$true] %s4678_s28 }
0x3ff2   :  { %4322 = vmatpush.msrb.mxu0 %v4302_v26 }
0x3ff4   :  { %4323 = vmatpush.msrb.mxu0 %v4301_v1 }
0x3ff6   :  { %4324 = vmatpush.msrb.mxu0 %v4300_v13  ;;  %v4467_v56 = vpop.permute.xlu0 %4466 }
0x3ff7   :  { %v3843_v33 = vpop.f32.mrf.mxu0 }
0x3ff8   :  { %4144 = vrot.lane.b32.xlu1 %v6889_v27, %s5411_s29  ;;  %v4464_v27 = vld [vmem:[#allocation3 + $0x338] sm:$0xff]  ;;  %v3846_v40 = vadd.f32 %v3843_v33, %v6803_v51 }
0x4062   :  { %v4618_v41 = vpop.permute.xlu1 %4617 }
0x4063   :  { %v4620_v48 = vmul.f32 %v4618_v41, %v4601_v22 }
0x4065   :  { %4627 = vrot.lane.b32.xlu1 %v4620_v48, %s5411_s29 }
0x406a   :  { %v4145_v38 = vpop.permute.xlu1 %4144 }
0x406b   :  { %4835 = vmatmul.msk.f32.vlgmr.msra.gmra.mxu0 %vm308_vm5, %v4145_v38 }
0x406c   :  { %4482 = vmatpush.msra.mxu0 %v4464_v27  ;;  %v4004_v62 = vpop.f32.mrf.mxu0 }
0x406d   :  { %v4007_v29 = vadd.f32 %v4004_v62, %v3846_v40 }
0x406e   :  { %4483 = vmatpush.msra.mxu0 %v4463_v6 }
0x4070   :  { %4484 = vmatpush.msra.mxu0 %v4462_v14 }
0x4072   :  { %4485 = vmatpush.msra.mxu0 %v4461_v61 }
0x4073   :  { %4840 = vmatmul.msk.f32.vlgmr.msrb.gmra.mxu0 %vm308_vm5, %v4306_v52 }
0x4074   :  { %4643 = vmatpush.msrb.mxu0 %v4625_v7 }
0x4076   :  { %4644 = vmatpush.msrb.mxu0 %v4624_v8 }
0x4078   :  { %4645 = vmatpush.msrb.mxu0 %v4623_v54 }
0x407a   :  { %4646 = vmatpush.msrb.mxu0 %v4622_v37 }
0x407b   :  { %4845 = vmatmul.msk.f32.vlgmr.msra.gmra.mxu0 %vm308_vm5, %v4467_v56 }
0x40d7   :  { %v4628_v17 = vpop.permute.xlu1 %4627 }
0x40d8   :  { %4850 = vmatmul.msk.f32.vlgmr.msrb.gmra.mxu0 %vm308_vm5, %v4628_v17  ;;  %vm4671_vm5 = vcmask 484352  }
0x40e8   :  { %v4165_v0 = vpop.f32.mrf.mxu0 }
0x40e9   :  { %v4168_v55 = vadd.f32 %v4165_v0, %v4007_v29 }
0x40f0   :  { %v4326_v23 = vpop.f32.mrf.mxu0 }
0x40f1   :  { %v4329_v2 = vadd.f32 %v4326_v23, %v4168_v55 }
0x40f8   :  { %v4487_v44 = vpop.f32.mrf.mxu0 }
0x40f9   :  { %v4490_v12 = vadd.f32 %v4487_v44, %v4329_v2 }
0x4155   :  { %v4648_v18 = vpop.f32.mrf.mxu0 }
0x4156   :  { %v4651_v47 = vadd.f32 %v4648_v18, %v4490_v12 }
0x4158   :  { %v4655_v35 = vsel %vm4654_vm4, %v4651_v47, -1e+30 }
0x4159   :  { %4656 = vmax.xlane.f32.xlu2 %v4655_v35 }
0x41cc   :  { %v4657_v5 = vpop.xlane.xlu2 %4656 }
0x41cd   :  { %v4658_v32 = vsub.f32 %v4655_v35, %v4657_v5 }
0x41cf   :  { %v4659_v34 = vmul.f32 1.442695, %v4658_v32 }
0x41d1   :  { %5293 = vpow2.f32 %v4659_v34 }
0x41d7   :  { %v5294_v57 = vpop.eup %5293 }
0x41d8   :  { %4661 = vadd.xlane.f32.xlu0 %v5294_v57 }
0x424b   :  { %v4662_v28 = vpop.xlane.xlu0 %4661 }
0x424c   :  { %5295 = vlog2.f32 %v4662_v28 }
0x4252   :  { %v5296_v51 = vpop.eup %5295 }
0x4253   :  { %v4664_v15 = vmul.f32 0.6931472, %v5296_v51 }
0x4255   :  { %v4665_v25 = vsub.f32 %v4658_v32, %v4664_v15 }
0x4257   :  { %v4667_v39 = vrot.slane %v4665_v25, 2 }
0x4259   :  { %v4669_v58 = vadd.f32 %v4667_v39, %v4665_v25 }
0x425b   :  { %v4670_v46 = vmul.f32 0.5, %v4669_v58 }
0x425d   :  { %4672 = vst.msk [vmem:[#allocation6] sm:$0x3] %vm4671_vm5, %v4670_v46 }
0x425e   :  { %4683 = dma.vmem_to_hbm [thread:$0]  %s4679_s28, 32, %s4681_s30, [#allocation5]  }
0x425f   :  { %5404 = dma.done.wait [#allocation5], 32  }
0x4260   :  { %5405 = vsyncadd [#allocation5], 4294967264 }
0x4261   :  { %4688 = vsyncpa [#allocation4], 1 }
0x4262   :  { %4689 = vsyncpa [#allocation5], 1 }

</bundles_post_ra>
